<compile_context>
chip_gen: v7x
topology: tpu7x:2x2x1
jax: 0.10.0
libtpu: 0.0.40
codegen_flags: <defaults>
</compile_context>

<pallas_src>
import jax
import jax.numpy as jnp
import numpy as np
from jax.experimental import pallas as pl
from jax.experimental.pallas import tpu as pltpu

LANE = 128


def _round_up(x, m):
    return ((x + m - 1) // m) * m


# ---------------------------------------------------------------------------
# Fused kernel: conv3+BN+ReLU (z), conv3+BN+ReLU (x-rows), depthwise xcorr, head
# ---------------------------------------------------------------------------
def _fused_dwxcorr_kernel(z_ref, x_ref,
                          wk_ref, bk_ref,
                          ws_ref, bs_ref,
                          w1_ref, b1_ref,
                          w2_ref, b2_ref,
                          o_ref):
    # z_ref:  (1, Hz, Wz, Cp)        template input (channels padded to Cp)
    # x_ref:  (1, Hx_pad, Wx, Cp)    search input (rows zero-padded so Ho tiles evenly)
    # wk_ref/ws_ref: (9, Cp, Hh) bf16  per-tap 3x3 weights, BN scale folded
    # bk_ref/bs_ref: (1, Hh) f32       folded BN bias
    # w1_ref: (Hh, Hh) bf16  b1_ref: (1, Hh) f32   head 1x1 conv (BN folded)
    # w2_ref: (Hh, Cop) bf16 b2_ref: (1, Cop) f32  head 1x1 conv with bias
    # o_ref:  (1, Tq, Wo, Cop)       one row-tile of the output
    Hz, Wz, Cp = z_ref.shape[1], z_ref.shape[2], z_ref.shape[3]
    Wx = x_ref.shape[2]
    Hh = wk_ref.shape[2]
    Tq, Wo, Cop = o_ref.shape[1], o_ref.shape[2], o_ref.shape[3]
    Hko, Wko = Hz - 2, Wz - 2            # conv_kernel output spatial (= xcorr window)

    def conv3(x3d, w_ref, b_ref):
        # 3x3 VALID conv as 9 accumulating bf16 matmuls (K = Cp), f32 accumulate.
        Hrows, W = x3d.shape[0], x3d.shape[1]
        Hoo, Woo = Hrows - 2, W - 2
        xb = x3d.astype(jnp.bfloat16)
        acc = None
        for dy in range(3):
            for dx in range(3):
                tap = xb[dy:dy + Hoo, dx:dx + Woo, :].reshape(Hoo * Woo, Cp)
                p = jnp.dot(tap, w_ref[dy * 3 + dx],
                            preferred_element_type=jnp.float32)
                acc = p if acc is None else acc + p
        y = jnp.maximum(acc + b_ref[0], 0.0)
        return y.reshape(Hoo, Woo, Hh)

    # Template branch (tiny; recomputed per row-tile, negligible cost).
    kfeat = conv3(z_ref[0], wk_ref, bk_ref)                   # (Hko, Wko, Hh)

    # Search branch: only the input rows this output row-tile needs.
    t = pl.program_id(1)
    rows = Tq + Hko + 1                                       # x rows feeding this tile
    r0 = pl.multiple_of(t * Tq, Tq)
    xrows = x_ref[0, pl.ds(r0, rows), :, :]                   # (rows, Wx, Cp)
    sfeat = conv3(xrows, ws_ref, bs_ref)                      # (Tq+Hko-1, Wx-2, Hh)

    # Depthwise cross-correlation, grouped by template row u: one partial sum
    # per u, added to acc once per u (cuts accumulator RMW traffic ~Wko-fold).
    acc = jnp.zeros((Tq, Wo, Hh), jnp.float32)
    for u in range(Hko):
        srows = sfeat[u:u + Tq]                               # (Tq, Wx-2, Hh)
        krow = kfeat[u]                                       # (Wko, Hh)
        part = srows[:, 0:Wo, :] * krow[0]
        for v in range(1, Wko):
            part = part + srows[:, v:v + Wo, :] * krow[v]
        acc = acc + part

    # Head: two 1x1 convs as bf16 matmuls with f32 accumulation + f32 bias.
    f = acc.reshape(Tq * Wo, Hh).astype(jnp.bfloat16)
    h = jnp.dot(f, w1_ref[...], preferred_element_type=jnp.float32) + b1_ref[0]
    h = jnp.maximum(h, 0.0)
    out = jnp.dot(h.astype(jnp.bfloat16), w2_ref[...],
                  preferred_element_type=jnp.float32) + b2_ref[0]
    o_ref[0] = out.reshape(Tq, Wo, Cop)


# ---------------------------------------------------------------------------
# Parameter folding / padding (done once, outside the kernel)
# ---------------------------------------------------------------------------
def fold_and_pad_params(p, cin, hidden, cout, lane=LANE):
    # Contraction (K) axis only needs sublane alignment (16 for bf16);
    # lane-mapped channel axes (hidden / cout) stay padded to 128.
    cp = _round_up(cin, 16)
    hp = _round_up(hidden, lane)
    cop = _round_up(cout, lane)

    def pad_to(a, shape):
        return jnp.pad(a, [(0, t - s) for s, t in zip(a.shape, shape)])

    # Fold BN scale into conv weights, zero-pad channels, keep per-tap layout
    # (9, Cp, Hh) with tap index = dy*3 + dx, and cast weights to bf16.
    wk = pad_to(p["wk"] * p["sk"].reshape(1, 1, 1, hidden),
                (3, 3, cp, hp)).reshape(9, cp, hp).astype(jnp.bfloat16)
    ws = pad_to(p["ws"] * p["ss"].reshape(1, 1, 1, hidden),
                (3, 3, cp, hp)).reshape(9, cp, hp).astype(jnp.bfloat16)
    bk = pad_to(p["bk"].reshape(1, hidden), (1, hp))
    bs = pad_to(p["bs"].reshape(1, hidden), (1, hp))

    w1 = pad_to(p["w1"] * p["s1"].reshape(1, hidden), (hp, hp)).astype(jnp.bfloat16)
    b1 = pad_to(p["b1"].reshape(1, hidden), (1, hp))
    w2 = pad_to(p["w2"], (hp, cop)).astype(jnp.bfloat16)
    b2 = pad_to(p["b2"].reshape(1, cout), (1, cop))

    return dict(wk=wk, bk=bk, ws=ws, bs=bs, w1=w1, b1=b1, w2=w2, b2=b2,
                cp=cp, hp=hp, cop=cop, cin=cin, hidden=hidden, cout=cout)


def _vmem_limit_bytes():
    # Size the scoped VMEM budget per generation: ~48 MiB on v7x (64 MiB
    # physical), ~96 MiB on v5e/v6e (128 MiB physical).
    try:
        cap = pltpu.get_tpu_info().vmem_capacity_bytes
    except Exception:
        cap = 64 * 1024 * 1024
    return int(min(int(0.75 * cap), 100 * 1024 * 1024))


# ---------------------------------------------------------------------------
# Full module forward (NCHW in / NCHW out, like the PyTorch module)
# ---------------------------------------------------------------------------
def depthwise_xcorr_forward(z_nchw, x_nchw, fp, n_row_tiles=2):
    B, Cin, Hz, Wz = z_nchw.shape
    _, _, Hx, Wx = x_nchw.shape
    cp, hp, cop, cout = fp["cp"], fp["hp"], fp["cop"], fp["cout"]

    Hko, Wko = Hz - 2, Wz - 2
    Ho, Wo = Hx - Hz + 1, Wx - Wz + 1

    # Row-tile the output so v7x's 2 TensorCores are both busy at B == 1.
    n_t = max(1, min(n_row_tiles, Ho))
    Tq = -(-Ho // n_t)                    # ceil
    Ho_pad = Tq * n_t
    Hx_pad = Ho_pad + Hz - 1              # extra zero rows feed only padded output rows

    z = jnp.transpose(z_nchw, (0, 2, 3, 1))            # NCHW -> NHWC
    x = jnp.transpose(x_nchw, (0, 2, 3, 1))
    z = jnp.pad(z, ((0, 0), (0, 0), (0, 0), (0, cp - Cin)))
    x = jnp.pad(x, ((0, 0), (0, Hx_pad - Hx), (0, 0), (0, cp - Cin)))

    # Advisory cost estimate (bf16 matmuls, f32 acc).
    m_search = (Tq + Hko - 1) * (Wx - 2)
    m_kernel = Hko * Wko
    m_out = Tq * Wo
    per_tile_flops = (2 * (m_kernel + m_search) * (9 * cp) * hp
                      + 2 * m_out * hp * (Hko * Wko)
                      + 2 * m_out * hp * hp
                      + 2 * m_out * hp * cop)
    flops = int(B * n_t * per_tile_flops)
    bytes_accessed = int(
        z.size * 4 + x.size * 4
        + 2 * (fp["wk"].size + fp["ws"].size + fp["w1"].size + fp["w2"].size)
        + 4 * (fp["bk"].size + fp["bs"].size + fp["b1"].size + fp["b2"].size)
        + B * Ho_pad * Wo * cop * 4)

    out = pl.pallas_call(
        _fused_dwxcorr_kernel,
        out_shape=jax.ShapeDtypeStruct((B, Ho_pad, Wo, cop), jnp.float32),
        grid=(B, n_t),
        in_specs=[
            pl.BlockSpec((1, Hz, Wz, cp), lambda b, t: (b, 0, 0, 0)),
            pl.BlockSpec((1, Hx_pad, Wx, cp), lambda b, t: (b, 0, 0, 0)),
            pl.BlockSpec((9, cp, hp), lambda b, t: (0, 0, 0)),
            pl.BlockSpec((1, hp), lambda b, t: (0, 0)),
            pl.BlockSpec((9, cp, hp), lambda b, t: (0, 0, 0)),
            pl.BlockSpec((1, hp), lambda b, t: (0, 0)),
            pl.BlockSpec((hp, hp), lambda b, t: (0, 0)),
            pl.BlockSpec((1, hp), lambda b, t: (0, 0)),
            pl.BlockSpec((hp, cop), lambda b, t: (0, 0)),
            pl.BlockSpec((1, cop), lambda b, t: (0, 0)),
        ],
        out_specs=pl.BlockSpec((1, Tq, Wo, cop), lambda b, t: (b, t, 0, 0)),
        compiler_params=pltpu.CompilerParams(
            dimension_semantics=("parallel", "parallel"),
            vmem_limit_bytes=_vmem_limit_bytes(),
        ),
        cost_estimate=pl.CostEstimate(flops=flops, transcendentals=0,
                                      bytes_accessed=bytes_accessed),
    )(z, x, fp["wk"], fp["bk"], fp["ws"], fp["bs"],
      fp["w1"], fp["b1"], fp["w2"], fp["b2"])

    out = out[:, :Ho, :, :cout]                         # drop padded rows / lanes
    return jnp.transpose(out, (0, 3, 1, 2))             # NHWC -> NCHW


# ---------------------------------------------------------------------------
# Deterministic raw parameters (unfolded: tests the folding path too)
# ---------------------------------------------------------------------------
def make_params(key, cin, hidden, cout):
    eps = 1e-5
    ks = jax.random.split(key, 17)

    def bn_fold(kg, kb, km, kv, c):
        gamma = 1.0 + 0.1 * jax.random.normal(kg, (c,), jnp.float32)
        beta = 0.1 * jax.random.normal(kb, (c,), jnp.float32)
        mean = 0.1 * jax.random.normal(km, (c,), jnp.float32)
        var = 1.0 + 0.1 * jax.random.uniform(kv, (c,), jnp.float32)
        scale = gamma / jnp.sqrt(var + eps)
        bias = beta - mean * scale
        return scale, bias

    sk, bk = bn_fold(ks[0], ks[1], ks[2], ks[3], hidden)
    ss, bs = bn_fold(ks[4], ks[5], ks[6], ks[7], hidden)
    s1, b1 = bn_fold(ks[8], ks[9], ks[10], ks[11], hidden)

    return dict(
        wk=0.1 * jax.random.normal(ks[12], (3, 3, cin, hidden), jnp.float32),
        ws=0.1 * jax.random.normal(ks[13], (3, 3, cin, hidden), jnp.float32),
        sk=sk, bk=bk, ss=ss, bs=bs,
        w1=0.1 * jax.random.normal(ks[14], (hidden, hidden), jnp.float32),
        s1=s1, b1=b1,
        w2=0.1 * jax.random.normal(ks[15], (hidden, cout), jnp.float32),
        b2=0.05 * jax.random.normal(ks[16], (cout,), jnp.float32),
    )


# ---------------------------------------------------------------------------
# Pure-JAX f32 reference (uses the raw, unfolded parameters)
# ---------------------------------------------------------------------------
def _ref_conv3_bn_relu(x, w, scale, bias):
    y = jax.lax.conv_general_dilated(
        x, w, (1, 1), "VALID", dimension_numbers=("NHWC", "HWIO", "NHWC"))
    return jnp.maximum(y * scale.reshape(1, 1, 1, -1) + bias.reshape(1, 1, 1, -1), 0.0)


def _ref_dw_xcorr(s, k):
    B, Hs, Ws, C = s.shape
    _, Hk, Wk, _ = k.shape
    Ho, Wo = Hs - Hk + 1, Ws - Wk + 1
    out = jnp.zeros((B, Ho, Wo, C), jnp.float32)
    for u in range(Hk):
        for v in range(Wk):
            out = out + s[:, u:u + Ho, v:v + Wo, :] * k[:, u:u + 1, v:v + 1, :]
    return out


def _ref_forward(z_nchw, x_nchw, p):
    z = jnp.transpose(z_nchw, (0, 2, 3, 1))
    x = jnp.transpose(x_nchw, (0, 2, 3, 1))
    kfeat = _ref_conv3_bn_relu(z, p["wk"], p["sk"], p["bk"])
    sfeat = _ref_conv3_bn_relu(x, p["ws"], p["ss"], p["bs"])
    feat = _ref_dw_xcorr(sfeat, kfeat)
    B, H, W, Ch = feat.shape
    f = feat.reshape(B, H * W, Ch)
    h = jnp.maximum((f @ p["w1"]) * p["s1"].reshape(1, 1, -1) + p["b1"].reshape(1, 1, -1), 0.0)
    out = (h @ p["w2"] + p["b2"].reshape(1, 1, -1)).reshape(B, H, W, -1)
    return jnp.transpose(out, (0, 3, 1, 2))


if __name__ == "__main__":
    B, Cin, hidden, Cout = 2, 4, 8, 6
    Hz = Wz = 7     # template ("kernel") input spatial
    Hx = Wx = 15    # search input spatial

    key = jax.random.PRNGKey(0)
    kz, kx, kp = jax.random.split(key, 3)
    z_nchw = jax.random.normal(kz, (B, Cin, Hz, Wz), jnp.float32)   # kernel arg
    x_nchw = jax.random.normal(kx, (B, Cin, Hx, Wx), jnp.float32)   # search arg
    params = make_params(kp, Cin, hidden, Cout)
    folded = fold_and_pad_params(params, Cin, hidden, Cout)

    out = depthwise_xcorr_forward(z_nchw, x_nchw, folded)
    out = jax.block_until_ready(out)

    ref = jax.block_until_ready(_ref_forward(z_nchw, x_nchw, params))
    assert out.shape == (B, Cout, Hx - Hz + 1, Wx - Wz + 1), out.shape  # (2, 6, 9, 9)
    # bf16 MXU inputs with f32 accumulation -> loosened tolerance vs f32 reference.
    np.testing.assert_allclose(np.asarray(out), np.asarray(ref), rtol=5e-2, atol=5e-2)

    print("KERNEL_OK")
</pallas_src>

<mosaic_0001>
module attributes {stable_mosaic.version = 11 : i64} {
  func.func @_fused_dwxcorr_kernel(%arg0: i32, %arg1: i32, %arg2: memref<1x7x7x16xf32, #tpu.memory_space<vmem>>, %arg3: memref<1x16x15x16xf32, #tpu.memory_space<vmem>>, %arg4: memref<9x16x128xbf16, #tpu.memory_space<vmem>>, %arg5: memref<1x128xf32, #tpu.memory_space<vmem>>, %arg6: memref<9x16x128xbf16, #tpu.memory_space<vmem>>, %arg7: memref<1x128xf32, #tpu.memory_space<vmem>>, %arg8: memref<128x128xbf16, #tpu.memory_space<vmem>>, %arg9: memref<1x128xf32, #tpu.memory_space<vmem>>, %arg10: memref<128x128xbf16, #tpu.memory_space<vmem>>, %arg11: memref<1x128xf32, #tpu.memory_space<vmem>>, %arg12: memref<1x5x9x128xf32, #tpu.memory_space<vmem>>) attributes {dimension_semantics = [#tpu.dimension_semantics<parallel>, #tpu.dimension_semantics<parallel>], iteration_bounds = array<i64: 2, 2>, scalar_prefetch = 0 : i64, scratch_operands = 0 : i64, tpu.core_type = #tpu.core_type<tc>, window_params = [{transform_indices = @transform_0, window_bounds = array<i64: 1, 7, 7, 16>}, {transform_indices = @transform_1, window_bounds = array<i64: 1, 16, 15, 16>}, {pipeline_mode = #tpu.pipeline_mode<synchronous>, transform_indices = @transform_2, window_bounds = array<i64: 9, 16, 128>}, {pipeline_mode = #tpu.pipeline_mode<synchronous>, transform_indices = @transform_3, window_bounds = array<i64: 1, 128>}, {pipeline_mode = #tpu.pipeline_mode<synchronous>, transform_indices = @transform_4, window_bounds = array<i64: 9, 16, 128>}, {pipeline_mode = #tpu.pipeline_mode<synchronous>, transform_indices = @transform_5, window_bounds = array<i64: 1, 128>}, {pipeline_mode = #tpu.pipeline_mode<synchronous>, transform_indices = @transform_6, window_bounds = array<i64: 128, 128>}, {pipeline_mode = #tpu.pipeline_mode<synchronous>, transform_indices = @transform_7, window_bounds = array<i64: 1, 128>}, {pipeline_mode = #tpu.pipeline_mode<synchronous>, transform_indices = @transform_8, window_bounds = array<i64: 128, 128>}, {pipeline_mode = #tpu.pipeline_mode<synchronous>, transform_indices = @transform_9, window_bounds = array<i64: 1, 128>}, {transform_indices = @transform_10, window_bounds = array<i64: 1, 5, 9, 128>}]} {
    %c0 = arith.constant 0 : index
    %c0_0 = arith.constant 0 : index
    %c0_1 = arith.constant 0 : index
    %c0_2 = arith.constant 0 : index
    %0 = vector.load %arg2[%c0, %c0_0, %c0_1, %c0_2] : memref<1x7x7x16xf32, #tpu.memory_space<vmem>>, vector<1x7x7x16xf32>
    %1 = vector.shape_cast %0 : vector<1x7x7x16xf32> to vector<7x7x16xf32>
    %2 = arith.truncf %1 : vector<7x7x16xf32> to vector<7x7x16xbf16>
    %3 = vector.extract_strided_slice %2 {offsets = [0, 0, 0], sizes = [5, 5, 16], strides = [1, 1, 1]} : vector<7x7x16xbf16> to vector<5x5x16xbf16>
    %4 = vector.shape_cast %3 : vector<5x5x16xbf16> to vector<25x16xbf16>
    %c0_3 = arith.constant 0 : index
    %c0_4 = arith.constant 0 : index
    %c0_5 = arith.constant 0 : index
    %5 = vector.load %arg4[%c0_3, %c0_4, %c0_5] : memref<9x16x128xbf16, #tpu.memory_space<vmem>>, vector<1x16x128xbf16>
    %6 = vector.shape_cast %5 : vector<1x16x128xbf16> to vector<16x128xbf16>
    %cst = arith.constant dense<0.000000e+00> : vector<25x128xf32>
    %7 = tpu.matmul %4, %6, %cst {dimension_numbers = #tpu.dot_dimension_numbers<[1], [0], [0], [1], [0, 0, 1, 1], [], []>} : vector<25x16xbf16>, vector<16x128xbf16>, vector<25x128xf32> -> vector<25x128xf32>
    %8 = vector.extract_strided_slice %2 {offsets = [0, 1, 0], sizes = [5, 5, 16], strides = [1, 1, 1]} : vector<7x7x16xbf16> to vector<5x5x16xbf16>
    %9 = vector.shape_cast %8 : vector<5x5x16xbf16> to vector<25x16xbf16>
    %c1 = arith.constant 1 : index
    %c0_6 = arith.constant 0 : index
    %c0_7 = arith.constant 0 : index
    %10 = vector.load %arg4[%c1, %c0_6, %c0_7] : memref<9x16x128xbf16, #tpu.memory_space<vmem>>, vector<1x16x128xbf16>
    %11 = vector.shape_cast %10 : vector<1x16x128xbf16> to vector<16x128xbf16>
    %cst_8 = arith.constant dense<0.000000e+00> : vector<25x128xf32>
    %12 = tpu.matmul %9, %11, %cst_8 {dimension_numbers = #tpu.dot_dimension_numbers<[1], [0], [0], [1], [0, 0, 1, 1], [], []>} : vector<25x16xbf16>, vector<16x128xbf16>, vector<25x128xf32> -> vector<25x128xf32>
    %13 = arith.addf %7, %12 : vector<25x128xf32>
    %14 = vector.extract_strided_slice %2 {offsets = [0, 2, 0], sizes = [5, 5, 16], strides = [1, 1, 1]} : vector<7x7x16xbf16> to vector<5x5x16xbf16>
    %15 = vector.shape_cast %14 : vector<5x5x16xbf16> to vector<25x16xbf16>
    %c2 = arith.constant 2 : index
    %c0_9 = arith.constant 0 : index
    %c0_10 = arith.constant 0 : index
    %16 = vector.load %arg4[%c2, %c0_9, %c0_10] : memref<9x16x128xbf16, #tpu.memory_space<vmem>>, vector<1x16x128xbf16>
    %17 = vector.shape_cast %16 : vector<1x16x128xbf16> to vector<16x128xbf16>
    %cst_11 = arith.constant dense<0.000000e+00> : vector<25x128xf32>
    %18 = tpu.matmul %15, %17, %cst_11 {dimension_numbers = #tpu.dot_dimension_numbers<[1], [0], [0], [1], [0, 0, 1, 1], [], []>} : vector<25x16xbf16>, vector<16x128xbf16>, vector<25x128xf32> -> vector<25x128xf32>
    %19 = arith.addf %13, %18 : vector<25x128xf32>
    %20 = vector.extract_strided_slice %2 {offsets = [1, 0, 0], sizes = [5, 5, 16], strides = [1, 1, 1]} : vector<7x7x16xbf16> to vector<5x5x16xbf16>
    %21 = vector.shape_cast %20 : vector<5x5x16xbf16> to vector<25x16xbf16>
    %c3 = arith.constant 3 : index
    %c0_12 = arith.constant 0 : index
    %c0_13 = arith.constant 0 : index
    %22 = vector.load %arg4[%c3, %c0_12, %c0_13] : memref<9x16x128xbf16, #tpu.memory_space<vmem>>, vector<1x16x128xbf16>
    %23 = vector.shape_cast %22 : vector<1x16x128xbf16> to vector<16x128xbf16>
    %cst_14 = arith.constant dense<0.000000e+00> : vector<25x128xf32>
    %24 = tpu.matmul %21, %23, %cst_14 {dimension_numbers = #tpu.dot_dimension_numbers<[1], [0], [0], [1], [0, 0, 1, 1], [], []>} : vector<25x16xbf16>, vector<16x128xbf16>, vector<25x128xf32> -> vector<25x128xf32>
    %25 = arith.addf %19, %24 : vector<25x128xf32>
    %26 = vector.extract_strided_slice %2 {offsets = [1, 1, 0], sizes = [5, 5, 16], strides = [1, 1, 1]} : vector<7x7x16xbf16> to vector<5x5x16xbf16>
    %27 = vector.shape_cast %26 : vector<5x5x16xbf16> to vector<25x16xbf16>
    %c4 = arith.constant 4 : index
    %c0_15 = arith.constant 0 : index
    %c0_16 = arith.constant 0 : index
    %28 = vector.load %arg4[%c4, %c0_15, %c0_16] : memref<9x16x128xbf16, #tpu.memory_space<vmem>>, vector<1x16x128xbf16>
    %29 = vector.shape_cast %28 : vector<1x16x128xbf16> to vector<16x128xbf16>
    %cst_17 = arith.constant dense<0.000000e+00> : vector<25x128xf32>
    %30 = tpu.matmul %27, %29, %cst_17 {dimension_numbers = #tpu.dot_dimension_numbers<[1], [0], [0], [1], [0, 0, 1, 1], [], []>} : vector<25x16xbf16>, vector<16x128xbf16>, vector<25x128xf32> -> vector<25x128xf32>
    %31 = arith.addf %25, %30 : vector<25x128xf32>
    %32 = vector.extract_strided_slice %2 {offsets = [1, 2, 0], sizes = [5, 5, 16], strides = [1, 1, 1]} : vector<7x7x16xbf16> to vector<5x5x16xbf16>
    %33 = vector.shape_cast %32 : vector<5x5x16xbf16> to vector<25x16xbf16>
    %c5 = arith.constant 5 : index
    %c0_18 = arith.constant 0 : index
    %c0_19 = arith.constant 0 : index
    %34 = vector.load %arg4[%c5, %c0_18, %c0_19] : memref<9x16x128xbf16, #tpu.memory_space<vmem>>, vector<1x16x128xbf16>
    %35 = vector.shape_cast %34 : vector<1x16x128xbf16> to vector<16x128xbf16>
    %cst_20 = arith.constant dense<0.000000e+00> : vector<25x128xf32>
    %36 = tpu.matmul %33, %35, %cst_20 {dimension_numbers = #tpu.dot_dimension_numbers<[1], [0], [0], [1], [0, 0, 1, 1], [], []>} : vector<25x16xbf16>, vector<16x128xbf16>, vector<25x128xf32> -> vector<25x128xf32>
    %37 = arith.addf %31, %36 : vector<25x128xf32>
    %38 = vector.extract_strided_slice %2 {offsets = [2, 0, 0], sizes = [5, 5, 16], strides = [1, 1, 1]} : vector<7x7x16xbf16> to vector<5x5x16xbf16>
    %39 = vector.shape_cast %38 : vector<5x5x16xbf16> to vector<25x16xbf16>
    %c6 = arith.constant 6 : index
    %c0_21 = arith.constant 0 : index
    %c0_22 = arith.constant 0 : index
    %40 = vector.load %arg4[%c6, %c0_21, %c0_22] : memref<9x16x128xbf16, #tpu.memory_space<vmem>>, vector<1x16x128xbf16>
    %41 = vector.shape_cast %40 : vector<1x16x128xbf16> to vector<16x128xbf16>
    %cst_23 = arith.constant dense<0.000000e+00> : vector<25x128xf32>
    %42 = tpu.matmul %39, %41, %cst_23 {dimension_numbers = #tpu.dot_dimension_numbers<[1], [0], [0], [1], [0, 0, 1, 1], [], []>} : vector<25x16xbf16>, vector<16x128xbf16>, vector<25x128xf32> -> vector<25x128xf32>
    %43 = arith.addf %37, %42 : vector<25x128xf32>
    %44 = vector.extract_strided_slice %2 {offsets = [2, 1, 0], sizes = [5, 5, 16], strides = [1, 1, 1]} : vector<7x7x16xbf16> to vector<5x5x16xbf16>
    %45 = vector.shape_cast %44 : vector<5x5x16xbf16> to vector<25x16xbf16>
    %c7 = arith.constant 7 : index
    %c0_24 = arith.constant 0 : index
    %c0_25 = arith.constant 0 : index
    %46 = vector.load %arg4[%c7, %c0_24, %c0_25] : memref<9x16x128xbf16, #tpu.memory_space<vmem>>, vector<1x16x128xbf16>
    %47 = vector.shape_cast %46 : vector<1x16x128xbf16> to vector<16x128xbf16>
    %cst_26 = arith.constant dense<0.000000e+00> : vector<25x128xf32>
    %48 = tpu.matmul %45, %47, %cst_26 {dimension_numbers = #tpu.dot_dimension_numbers<[1], [0], [0], [1], [0, 0, 1, 1], [], []>} : vector<25x16xbf16>, vector<16x128xbf16>, vector<25x128xf32> -> vector<25x128xf32>
    %49 = arith.addf %43, %48 : vector<25x128xf32>
    %50 = vector.extract_strided_slice %2 {offsets = [2, 2, 0], sizes = [5, 5, 16], strides = [1, 1, 1]} : vector<7x7x16xbf16> to vector<5x5x16xbf16>
    %51 = vector.shape_cast %50 : vector<5x5x16xbf16> to vector<25x16xbf16>
    %c8 = arith.constant 8 : index
    %c0_27 = arith.constant 0 : index
    %c0_28 = arith.constant 0 : index
    %52 = vector.load %arg4[%c8, %c0_27, %c0_28] : memref<9x16x128xbf16, #tpu.memory_space<vmem>>, vector<1x16x128xbf16>
    %53 = vector.shape_cast %52 : vector<1x16x128xbf16> to vector<16x128xbf16>
    %cst_29 = arith.constant dense<0.000000e+00> : vector<25x128xf32>
    %54 = tpu.matmul %51, %53, %cst_29 {dimension_numbers = #tpu.dot_dimension_numbers<[1], [0], [0], [1], [0, 0, 1, 1], [], []>} : vector<25x16xbf16>, vector<16x128xbf16>, vector<25x128xf32> -> vector<25x128xf32>
    %55 = arith.addf %49, %54 : vector<25x128xf32>
    %c0_30 = arith.constant 0 : index
    %c0_31 = arith.constant 0 : index
    %56 = vector.load %arg5[%c0_30, %c0_31] : memref<1x128xf32, #tpu.memory_space<vmem>>, vector<1x128xf32>
    %57 = vector.shape_cast %56 : vector<1x128xf32> to vector<128xf32>
    %58 = vector.shape_cast %57 : vector<128xf32> to vector<1x128xf32>
    %59 = vector.broadcast %58 : vector<1x128xf32> to vector<25x128xf32>
    %60 = arith.addf %55, %59 : vector<25x128xf32>
    %cst_32 = arith.constant 0.000000e+00 : f32
    %61 = vector.broadcast %cst_32 : f32 to vector<25x128xf32>
    %62 = arith.maximumf %60, %61 : vector<25x128xf32>
    %63 = vector.shape_cast %62 : vector<25x128xf32> to vector<5x5x128xf32>
    %c5_i32 = arith.constant 5 : i32
    %64 = arith.muli %arg1, %c5_i32 : i32
    %65 = tpu.assume_multiple %64, 5 : i32
    %c0_33 = arith.constant 0 : index
    %66 = arith.index_cast %65 : i32 to index
    %c0_34 = arith.constant 0 : index
    %c0_35 = arith.constant 0 : index
    %67 = vector.load %arg3[%c0_33, %66, %c0_34, %c0_35] : memref<1x16x15x16xf32, #tpu.memory_space<vmem>>, vector<1x11x15x16xf32>
    %68 = vector.shape_cast %67 : vector<1x11x15x16xf32> to vector<11x15x16xf32>
    %69 = arith.truncf %68 : vector<11x15x16xf32> to vector<11x15x16xbf16>
    %70 = vector.extract_strided_slice %69 {offsets = [0, 0, 0], sizes = [9, 13, 16], strides = [1, 1, 1]} : vector<11x15x16xbf16> to vector<9x13x16xbf16>
    %71 = vector.shape_cast %70 : vector<9x13x16xbf16> to vector<117x16xbf16>
    %c0_36 = arith.constant 0 : index
    %c0_37 = arith.constant 0 : index
    %c0_38 = arith.constant 0 : index
    %72 = vector.load %arg6[%c0_36, %c0_37, %c0_38] : memref<9x16x128xbf16, #tpu.memory_space<vmem>>, vector<1x16x128xbf16>
    %73 = vector.shape_cast %72 : vector<1x16x128xbf16> to vector<16x128xbf16>
    %cst_39 = arith.constant dense<0.000000e+00> : vector<117x128xf32>
    %74 = tpu.matmul %71, %73, %cst_39 {dimension_numbers = #tpu.dot_dimension_numbers<[1], [0], [0], [1], [0, 0, 1, 1], [], []>} : vector<117x16xbf16>, vector<16x128xbf16>, vector<117x128xf32> -> vector<117x128xf32>
    %75 = vector.extract_strided_slice %69 {offsets = [0, 1, 0], sizes = [9, 13, 16], strides = [1, 1, 1]} : vector<11x15x16xbf16> to vector<9x13x16xbf16>
    %76 = vector.shape_cast %75 : vector<9x13x16xbf16> to vector<117x16xbf16>
    %c1_40 = arith.constant 1 : index
    %c0_41 = arith.constant 0 : index
    %c0_42 = arith.constant 0 : index
    %77 = vector.load %arg6[%c1_40, %c0_41, %c0_42] : memref<9x16x128xbf16, #tpu.memory_space<vmem>>, vector<1x16x128xbf16>
    %78 = vector.shape_cast %77 : vector<1x16x128xbf16> to vector<16x128xbf16>
    %cst_43 = arith.constant dense<0.000000e+00> : vector<117x128xf32>
    %79 = tpu.matmul %76, %78, %cst_43 {dimension_numbers = #tpu.dot_dimension_numbers<[1], [0], [0], [1], [0, 0, 1, 1], [], []>} : vector<117x16xbf16>, vector<16x128xbf16>, vector<117x128xf32> -> vector<117x128xf32>
    %80 = arith.addf %74, %79 : vector<117x128xf32>
    %81 = vector.extract_strided_slice %69 {offsets = [0, 2, 0], sizes = [9, 13, 16], strides = [1, 1, 1]} : vector<11x15x16xbf16> to vector<9x13x16xbf16>
    %82 = vector.shape_cast %81 : vector<9x13x16xbf16> to vector<117x16xbf16>
    %c2_44 = arith.constant 2 : index
    %c0_45 = arith.constant 0 : index
    %c0_46 = arith.constant 0 : index
    %83 = vector.load %arg6[%c2_44, %c0_45, %c0_46] : memref<9x16x128xbf16, #tpu.memory_space<vmem>>, vector<1x16x128xbf16>
    %84 = vector.shape_cast %83 : vector<1x16x128xbf16> to vector<16x128xbf16>
    %cst_47 = arith.constant dense<0.000000e+00> : vector<117x128xf32>
    %85 = tpu.matmul %82, %84, %cst_47 {dimension_numbers = #tpu.dot_dimension_numbers<[1], [0], [0], [1], [0, 0, 1, 1], [], []>} : vector<117x16xbf16>, vector<16x128xbf16>, vector<117x128xf32> -> vector<117x128xf32>
    %86 = arith.addf %80, %85 : vector<117x128xf32>
    %87 = vector.extract_strided_slice %69 {offsets = [1, 0, 0], sizes = [9, 13, 16], strides = [1, 1, 1]} : vector<11x15x16xbf16> to vector<9x13x16xbf16>
    %88 = vector.shape_cast %87 : vector<9x13x16xbf16> to vector<117x16xbf16>
    %c3_48 = arith.constant 3 : index
    %c0_49 = arith.constant 0 : index
    %c0_50 = arith.constant 0 : index
    %89 = vector.load %arg6[%c3_48, %c0_49, %c0_50] : memref<9x16x128xbf16, #tpu.memory_space<vmem>>, vector<1x16x128xbf16>
    %90 = vector.shape_cast %89 : vector<1x16x128xbf16> to vector<16x128xbf16>
    %cst_51 = arith.constant dense<0.000000e+00> : vector<117x128xf32>
    %91 = tpu.matmul %88, %90, %cst_51 {dimension_numbers = #tpu.dot_dimension_numbers<[1], [0], [0], [1], [0, 0, 1, 1], [], []>} : vector<117x16xbf16>, vector<16x128xbf16>, vector<117x128xf32> -> vector<117x128xf32>
    %92 = arith.addf %86, %91 : vector<117x128xf32>
    %93 = vector.extract_strided_slice %69 {offsets = [1, 1, 0], sizes = [9, 13, 16], strides = [1, 1, 1]} : vector<11x15x16xbf16> to vector<9x13x16xbf16>
    %94 = vector.shape_cast %93 : vector<9x13x16xbf16> to vector<117x16xbf16>
    %c4_52 = arith.constant 4 : index
    %c0_53 = arith.constant 0 : index
    %c0_54 = arith.constant 0 : index
    %95 = vector.load %arg6[%c4_52, %c0_53, %c0_54] : memref<9x16x128xbf16, #tpu.memory_space<vmem>>, vector<1x16x128xbf16>
    %96 = vector.shape_cast %95 : vector<1x16x128xbf16> to vector<16x128xbf16>
    %cst_55 = arith.constant dense<0.000000e+00> : vector<117x128xf32>
    %97 = tpu.matmul %94, %96, %cst_55 {dimension_numbers = #tpu.dot_dimension_numbers<[1], [0], [0], [1], [0, 0, 1, 1], [], []>} : vector<117x16xbf16>, vector<16x128xbf16>, vector<117x128xf32> -> vector<117x128xf32>
    %98 = arith.addf %92, %97 : vector<117x128xf32>
    %99 = vector.extract_strided_slice %69 {offsets = [1, 2, 0], sizes = [9, 13, 16], strides = [1, 1, 1]} : vector<11x15x16xbf16> to vector<9x13x16xbf16>
    %100 = vector.shape_cast %99 : vector<9x13x16xbf16> to vector<117x16xbf16>
    %c5_56 = arith.constant 5 : index
    %c0_57 = arith.constant 0 : index
    %c0_58 = arith.constant 0 : index
    %101 = vector.load %arg6[%c5_56, %c0_57, %c0_58] : memref<9x16x128xbf16, #tpu.memory_space<vmem>>, vector<1x16x128xbf16>
    %102 = vector.shape_cast %101 : vector<1x16x128xbf16> to vector<16x128xbf16>
    %cst_59 = arith.constant dense<0.000000e+00> : vector<117x128xf32>
    %103 = tpu.matmul %100, %102, %cst_59 {dimension_numbers = #tpu.dot_dimension_numbers<[1], [0], [0], [1], [0, 0, 1, 1], [], []>} : vector<117x16xbf16>, vector<16x128xbf16>, vector<117x128xf32> -> vector<117x128xf32>
    %104 = arith.addf %98, %103 : vector<117x128xf32>
    %105 = vector.extract_strided_slice %69 {offsets = [2, 0, 0], sizes = [9, 13, 16], strides = [1, 1, 1]} : vector<11x15x16xbf16> to vector<9x13x16xbf16>
    %106 = vector.shape_cast %105 : vector<9x13x16xbf16> to vector<117x16xbf16>
    %c6_60 = arith.constant 6 : index
    %c0_61 = arith.constant 0 : index
    %c0_62 = arith.constant 0 : index
    %107 = vector.load %arg6[%c6_60, %c0_61, %c0_62] : memref<9x16x128xbf16, #tpu.memory_space<vmem>>, vector<1x16x128xbf16>
    %108 = vector.shape_cast %107 : vector<1x16x128xbf16> to vector<16x128xbf16>
    %cst_63 = arith.constant dense<0.000000e+00> : vector<117x128xf32>
    %109 = tpu.matmul %106, %108, %cst_63 {dimension_numbers = #tpu.dot_dimension_numbers<[1], [0], [0], [1], [0, 0, 1, 1], [], []>} : vector<117x16xbf16>, vector<16x128xbf16>, vector<117x128xf32> -> vector<117x128xf32>
    %110 = arith.addf %104, %109 : vector<117x128xf32>
    %111 = vector.extract_strided_slice %69 {offsets = [2, 1, 0], sizes = [9, 13, 16], strides = [1, 1, 1]} : vector<11x15x16xbf16> to vector<9x13x16xbf16>
    %112 = vector.shape_cast %111 : vector<9x13x16xbf16> to vector<117x16xbf16>
    %c7_64 = arith.constant 7 : index
    %c0_65 = arith.constant 0 : index
    %c0_66 = arith.constant 0 : index
    %113 = vector.load %arg6[%c7_64, %c0_65, %c0_66] : memref<9x16x128xbf16, #tpu.memory_space<vmem>>, vector<1x16x128xbf16>
    %114 = vector.shape_cast %113 : vector<1x16x128xbf16> to vector<16x128xbf16>
    %cst_67 = arith.constant dense<0.000000e+00> : vector<117x128xf32>
    %115 = tpu.matmul %112, %114, %cst_67 {dimension_numbers = #tpu.dot_dimension_numbers<[1], [0], [0], [1], [0, 0, 1, 1], [], []>} : vector<117x16xbf16>, vector<16x128xbf16>, vector<117x128xf32> -> vector<117x128xf32>
    %116 = arith.addf %110, %115 : vector<117x128xf32>
    %117 = vector.extract_strided_slice %69 {offsets = [2, 2, 0], sizes = [9, 13, 16], strides = [1, 1, 1]} : vector<11x15x16xbf16> to vector<9x13x16xbf16>
    %118 = vector.shape_cast %117 : vector<9x13x16xbf16> to vector<117x16xbf16>
    %c8_68 = arith.constant 8 : index
    %c0_69 = arith.constant 0 : index
    %c0_70 = arith.constant 0 : index
    %119 = vector.load %arg6[%c8_68, %c0_69, %c0_70] : memref<9x16x128xbf16, #tpu.memory_space<vmem>>, vector<1x16x128xbf16>
    %120 = vector.shape_cast %119 : vector<1x16x128xbf16> to vector<16x128xbf16>
    %cst_71 = arith.constant dense<0.000000e+00> : vector<117x128xf32>
    %121 = tpu.matmul %118, %120, %cst_71 {dimension_numbers = #tpu.dot_dimension_numbers<[1], [0], [0], [1], [0, 0, 1, 1], [], []>} : vector<117x16xbf16>, vector<16x128xbf16>, vector<117x128xf32> -> vector<117x128xf32>
    %122 = arith.addf %116, %121 : vector<117x128xf32>
    %c0_72 = arith.constant 0 : index
    %c0_73 = arith.constant 0 : index
    %123 = vector.load %arg7[%c0_72, %c0_73] : memref<1x128xf32, #tpu.memory_space<vmem>>, vector<1x128xf32>
    %124 = vector.shape_cast %123 : vector<1x128xf32> to vector<128xf32>
    %125 = vector.shape_cast %124 : vector<128xf32> to vector<1x128xf32>
    %126 = vector.broadcast %125 : vector<1x128xf32> to vector<117x128xf32>
    %127 = arith.addf %122, %126 : vector<117x128xf32>
    %cst_74 = arith.constant 0.000000e+00 : f32
    %128 = vector.broadcast %cst_74 : f32 to vector<117x128xf32>
    %129 = arith.maximumf %127, %128 : vector<117x128xf32>
    %130 = vector.shape_cast %129 : vector<117x128xf32> to vector<9x13x128xf32>
    %cst_75 = arith.constant 0.000000e+00 : f32
    %131 = vector.broadcast %cst_75 : f32 to vector<5x9x128xf32>
    %132 = vector.extract_strided_slice %130 {offsets = [0, 0, 0], sizes = [5, 13, 128], strides = [1, 1, 1]} : vector<9x13x128xf32> to vector<5x13x128xf32>
    %133 = vector.extract_strided_slice %63 {offsets = [0, 0, 0], sizes = [1, 5, 128], strides = [1, 1, 1]} : vector<5x5x128xf32> to vector<1x5x128xf32>
    %134 = vector.shape_cast %133 : vector<1x5x128xf32> to vector<5x128xf32>
    %135 = vector.extract_strided_slice %132 {offsets = [0, 0, 0], sizes = [5, 9, 128], strides = [1, 1, 1]} : vector<5x13x128xf32> to vector<5x9x128xf32>
    %136 = vector.extract_strided_slice %134 {offsets = [0, 0], sizes = [1, 128], strides = [1, 1]} : vector<5x128xf32> to vector<1x128xf32>
    %137 = vector.shape_cast %136 : vector<1x128xf32> to vector<128xf32>
    %138 = vector.shape_cast %137 : vector<128xf32> to vector<1x1x128xf32>
    %139 = vector.broadcast %138 : vector<1x1x128xf32> to vector<5x9x128xf32>
    %140 = arith.mulf %135, %139 : vector<5x9x128xf32>
    %141 = vector.extract_strided_slice %132 {offsets = [0, 1, 0], sizes = [5, 9, 128], strides = [1, 1, 1]} : vector<5x13x128xf32> to vector<5x9x128xf32>
    %142 = vector.extract_strided_slice %134 {offsets = [1, 0], sizes = [1, 128], strides = [1, 1]} : vector<5x128xf32> to vector<1x128xf32>
    %143 = vector.shape_cast %142 : vector<1x128xf32> to vector<128xf32>
    %144 = vector.shape_cast %143 : vector<128xf32> to vector<1x1x128xf32>
    %145 = vector.broadcast %144 : vector<1x1x128xf32> to vector<5x9x128xf32>
    %146 = arith.mulf %141, %145 : vector<5x9x128xf32>
    %147 = arith.addf %140, %146 : vector<5x9x128xf32>
    %148 = vector.extract_strided_slice %132 {offsets = [0, 2, 0], sizes = [5, 9, 128], strides = [1, 1, 1]} : vector<5x13x128xf32> to vector<5x9x128xf32>
    %149 = vector.extract_strided_slice %134 {offsets = [2, 0], sizes = [1, 128], strides = [1, 1]} : vector<5x128xf32> to vector<1x128xf32>
    %150 = vector.shape_cast %149 : vector<1x128xf32> to vector<128xf32>
    %151 = vector.shape_cast %150 : vector<128xf32> to vector<1x1x128xf32>
    %152 = vector.broadcast %151 : vector<1x1x128xf32> to vector<5x9x128xf32>
    %153 = arith.mulf %148, %152 : vector<5x9x128xf32>
    %154 = arith.addf %147, %153 : vector<5x9x128xf32>
    %155 = vector.extract_strided_slice %132 {offsets = [0, 3, 0], sizes = [5, 9, 128], strides = [1, 1, 1]} : vector<5x13x128xf32> to vector<5x9x128xf32>
    %156 = vector.extract_strided_slice %134 {offsets = [3, 0], sizes = [1, 128], strides = [1, 1]} : vector<5x128xf32> to vector<1x128xf32>
    %157 = vector.shape_cast %156 : vector<1x128xf32> to vector<128xf32>
    %158 = vector.shape_cast %157 : vector<128xf32> to vector<1x1x128xf32>
    %159 = vector.broadcast %158 : vector<1x1x128xf32> to vector<5x9x128xf32>
    %160 = arith.mulf %155, %159 : vector<5x9x128xf32>
    %161 = arith.addf %154, %160 : vector<5x9x128xf32>
    %162 = vector.extract_strided_slice %132 {offsets = [0, 4, 0], sizes = [5, 9, 128], strides = [1, 1, 1]} : vector<5x13x128xf32> to vector<5x9x128xf32>
    %163 = vector.extract_strided_slice %134 {offsets = [4, 0], sizes = [1, 128], strides = [1, 1]} : vector<5x128xf32> to vector<1x128xf32>
    %164 = vector.shape_cast %163 : vector<1x128xf32> to vector<128xf32>
    %165 = vector.shape_cast %164 : vector<128xf32> to vector<1x1x128xf32>
    %166 = vector.broadcast %165 : vector<1x1x128xf32> to vector<5x9x128xf32>
    %167 = arith.mulf %162, %166 : vector<5x9x128xf32>
    %168 = arith.addf %161, %167 : vector<5x9x128xf32>
    %169 = arith.addf %131, %168 : vector<5x9x128xf32>
    %170 = vector.extract_strided_slice %130 {offsets = [1, 0, 0], sizes = [5, 13, 128], strides = [1, 1, 1]} : vector<9x13x128xf32> to vector<5x13x128xf32>
    %171 = vector.extract_strided_slice %63 {offsets = [1, 0, 0], sizes = [1, 5, 128], strides = [1, 1, 1]} : vector<5x5x128xf32> to vector<1x5x128xf32>
    %172 = vector.shape_cast %171 : vector<1x5x128xf32> to vector<5x128xf32>
    %173 = vector.extract_strided_slice %170 {offsets = [0, 0, 0], sizes = [5, 9, 128], strides = [1, 1, 1]} : vector<5x13x128xf32> to vector<5x9x128xf32>
    %174 = vector.extract_strided_slice %172 {offsets = [0, 0], sizes = [1, 128], strides = [1, 1]} : vector<5x128xf32> to vector<1x128xf32>
    %175 = vector.shape_cast %174 : vector<1x128xf32> to vector<128xf32>
    %176 = vector.shape_cast %175 : vector<128xf32> to vector<1x1x128xf32>
    %177 = vector.broadcast %176 : vector<1x1x128xf32> to vector<5x9x128xf32>
    %178 = arith.mulf %173, %177 : vector<5x9x128xf32>
    %179 = vector.extract_strided_slice %170 {offsets = [0, 1, 0], sizes = [5, 9, 128], strides = [1, 1, 1]} : vector<5x13x128xf32> to vector<5x9x128xf32>
    %180 = vector.extract_strided_slice %172 {offsets = [1, 0], sizes = [1, 128], strides = [1, 1]} : vector<5x128xf32> to vector<1x128xf32>
    %181 = vector.shape_cast %180 : vector<1x128xf32> to vector<128xf32>
    %182 = vector.shape_cast %181 : vector<128xf32> to vector<1x1x128xf32>
    %183 = vector.broadcast %182 : vector<1x1x128xf32> to vector<5x9x128xf32>
    %184 = arith.mulf %179, %183 : vector<5x9x128xf32>
    %185 = arith.addf %178, %184 : vector<5x9x128xf32>
    %186 = vector.extract_strided_slice %170 {offsets = [0, 2, 0], sizes = [5, 9, 128], strides = [1, 1, 1]} : vector<5x13x128xf32> to vector<5x9x128xf32>
    %187 = vector.extract_strided_slice %172 {offsets = [2, 0], sizes = [1, 128], strides = [1, 1]} : vector<5x128xf32> to vector<1x128xf32>
    %188 = vector.shape_cast %187 : vector<1x128xf32> to vector<128xf32>
    %189 = vector.shape_cast %188 : vector<128xf32> to vector<1x1x128xf32>
    %190 = vector.broadcast %189 : vector<1x1x128xf32> to vector<5x9x128xf32>
    %191 = arith.mulf %186, %190 : vector<5x9x128xf32>
    %192 = arith.addf %185, %191 : vector<5x9x128xf32>
    %193 = vector.extract_strided_slice %170 {offsets = [0, 3, 0], sizes = [5, 9, 128], strides = [1, 1, 1]} : vector<5x13x128xf32> to vector<5x9x128xf32>
    %194 = vector.extract_strided_slice %172 {offsets = [3, 0], sizes = [1, 128], strides = [1, 1]} : vector<5x128xf32> to vector<1x128xf32>
    %195 = vector.shape_cast %194 : vector<1x128xf32> to vector<128xf32>
    %196 = vector.shape_cast %195 : vector<128xf32> to vector<1x1x128xf32>
    %197 = vector.broadcast %196 : vector<1x1x128xf32> to vector<5x9x128xf32>
    %198 = arith.mulf %193, %197 : vector<5x9x128xf32>
    %199 = arith.addf %192, %198 : vector<5x9x128xf32>
    %200 = vector.extract_strided_slice %170 {offsets = [0, 4, 0], sizes = [5, 9, 128], strides = [1, 1, 1]} : vector<5x13x128xf32> to vector<5x9x128xf32>
    %201 = vector.extract_strided_slice %172 {offsets = [4, 0], sizes = [1, 128], strides = [1, 1]} : vector<5x128xf32> to vector<1x128xf32>
    %202 = vector.shape_cast %201 : vector<1x128xf32> to vector<128xf32>
    %203 = vector.shape_cast %202 : vector<128xf32> to vector<1x1x128xf32>
    %204 = vector.broadcast %203 : vector<1x1x128xf32> to vector<5x9x128xf32>
    %205 = arith.mulf %200, %204 : vector<5x9x128xf32>
    %206 = arith.addf %199, %205 : vector<5x9x128xf32>
    %207 = arith.addf %169, %206 : vector<5x9x128xf32>
    %208 = vector.extract_strided_slice %130 {offsets = [2, 0, 0], sizes = [5, 13, 128], strides = [1, 1, 1]} : vector<9x13x128xf32> to vector<5x13x128xf32>
    %209 = vector.extract_strided_slice %63 {offsets = [2, 0, 0], sizes = [1, 5, 128], strides = [1, 1, 1]} : vector<5x5x128xf32> to vector<1x5x128xf32>
    %210 = vector.shape_cast %209 : vector<1x5x128xf32> to vector<5x128xf32>
    %211 = vector.extract_strided_slice %208 {offsets = [0, 0, 0], sizes = [5, 9, 128], strides = [1, 1, 1]} : vector<5x13x128xf32> to vector<5x9x128xf32>
    %212 = vector.extract_strided_slice %210 {offsets = [0, 0], sizes = [1, 128], strides = [1, 1]} : vector<5x128xf32> to vector<1x128xf32>
    %213 = vector.shape_cast %212 : vector<1x128xf32> to vector<128xf32>
    %214 = vector.shape_cast %213 : vector<128xf32> to vector<1x1x128xf32>
    %215 = vector.broadcast %214 : vector<1x1x128xf32> to vector<5x9x128xf32>
    %216 = arith.mulf %211, %215 : vector<5x9x128xf32>
    %217 = vector.extract_strided_slice %208 {offsets = [0, 1, 0], sizes = [5, 9, 128], strides = [1, 1, 1]} : vector<5x13x128xf32> to vector<5x9x128xf32>
    %218 = vector.extract_strided_slice %210 {offsets = [1, 0], sizes = [1, 128], strides = [1, 1]} : vector<5x128xf32> to vector<1x128xf32>
    %219 = vector.shape_cast %218 : vector<1x128xf32> to vector<128xf32>
    %220 = vector.shape_cast %219 : vector<128xf32> to vector<1x1x128xf32>
    %221 = vector.broadcast %220 : vector<1x1x128xf32> to vector<5x9x128xf32>
    %222 = arith.mulf %217, %221 : vector<5x9x128xf32>
    %223 = arith.addf %216, %222 : vector<5x9x128xf32>
    %224 = vector.extract_strided_slice %208 {offsets = [0, 2, 0], sizes = [5, 9, 128], strides = [1, 1, 1]} : vector<5x13x128xf32> to vector<5x9x128xf32>
    %225 = vector.extract_strided_slice %210 {offsets = [2, 0], sizes = [1, 128], strides = [1, 1]} : vector<5x128xf32> to vector<1x128xf32>
    %226 = vector.shape_cast %225 : vector<1x128xf32> to vector<128xf32>
    %227 = vector.shape_cast %226 : vector<128xf32> to vector<1x1x128xf32>
    %228 = vector.broadcast %227 : vector<1x1x128xf32> to vector<5x9x128xf32>
    %229 = arith.mulf %224, %228 : vector<5x9x128xf32>
    %230 = arith.addf %223, %229 : vector<5x9x128xf32>
    %231 = vector.extract_strided_slice %208 {offsets = [0, 3, 0], sizes = [5, 9, 128], strides = [1, 1, 1]} : vector<5x13x128xf32> to vector<5x9x128xf32>
    %232 = vector.extract_strided_slice %210 {offsets = [3, 0], sizes = [1, 128], strides = [1, 1]} : vector<5x128xf32> to vector<1x128xf32>
    %233 = vector.shape_cast %232 : vector<1x128xf32> to vector<128xf32>
    %234 = vector.shape_cast %233 : vector<128xf32> to vector<1x1x128xf32>
    %235 = vector.broadcast %234 : vector<1x1x128xf32> to vector<5x9x128xf32>
    %236 = arith.mulf %231, %235 : vector<5x9x128xf32>
    %237 = arith.addf %230, %236 : vector<5x9x128xf32>
    %238 = vector.extract_strided_slice %208 {offsets = [0, 4, 0], sizes = [5, 9, 128], strides = [1, 1, 1]} : vector<5x13x128xf32> to vector<5x9x128xf32>
    %239 = vector.extract_strided_slice %210 {offsets = [4, 0], sizes = [1, 128], strides = [1, 1]} : vector<5x128xf32> to vector<1x128xf32>
    %240 = vector.shape_cast %239 : vector<1x128xf32> to vector<128xf32>
    %241 = vector.shape_cast %240 : vector<128xf32> to vector<1x1x128xf32>
    %242 = vector.broadcast %241 : vector<1x1x128xf32> to vector<5x9x128xf32>
    %243 = arith.mulf %238, %242 : vector<5x9x128xf32>
    %244 = arith.addf %237, %243 : vector<5x9x128xf32>
    %245 = arith.addf %207, %244 : vector<5x9x128xf32>
    %246 = vector.extract_strided_slice %130 {offsets = [3, 0, 0], sizes = [5, 13, 128], strides = [1, 1, 1]} : vector<9x13x128xf32> to vector<5x13x128xf32>
    %247 = vector.extract_strided_slice %63 {offsets = [3, 0, 0], sizes = [1, 5, 128], strides = [1, 1, 1]} : vector<5x5x128xf32> to vector<1x5x128xf32>
    %248 = vector.shape_cast %247 : vector<1x5x128xf32> to vector<5x128xf32>
    %249 = vector.extract_strided_slice %246 {offsets = [0, 0, 0], sizes = [5, 9, 128], strides = [1, 1, 1]} : vector<5x13x128xf32> to vector<5x9x128xf32>
    %250 = vector.extract_strided_slice %248 {offsets = [0, 0], sizes = [1, 128], strides = [1, 1]} : vector<5x128xf32> to vector<1x128xf32>
    %251 = vector.shape_cast %250 : vector<1x128xf32> to vector<128xf32>
    %252 = vector.shape_cast %251 : vector<128xf32> to vector<1x1x128xf32>
    %253 = vector.broadcast %252 : vector<1x1x128xf32> to vector<5x9x128xf32>
    %254 = arith.mulf %249, %253 : vector<5x9x128xf32>
    %255 = vector.extract_strided_slice %246 {offsets = [0, 1, 0], sizes = [5, 9, 128], strides = [1, 1, 1]} : vector<5x13x128xf32> to vector<5x9x128xf32>
    %256 = vector.extract_strided_slice %248 {offsets = [1, 0], sizes = [1, 128], strides = [1, 1]} : vector<5x128xf32> to vector<1x128xf32>
    %257 = vector.shape_cast %256 : vector<1x128xf32> to vector<128xf32>
    %258 = vector.shape_cast %257 : vector<128xf32> to vector<1x1x128xf32>
    %259 = vector.broadcast %258 : vector<1x1x128xf32> to vector<5x9x128xf32>
    %260 = arith.mulf %255, %259 : vector<5x9x128xf32>
    %261 = arith.addf %254, %260 : vector<5x9x128xf32>
    %262 = vector.extract_strided_slice %246 {offsets = [0, 2, 0], sizes = [5, 9, 128], strides = [1, 1, 1]} : vector<5x13x128xf32> to vector<5x9x128xf32>
    %263 = vector.extract_strided_slice %248 {offsets = [2, 0], sizes = [1, 128], strides = [1, 1]} : vector<5x128xf32> to vector<1x128xf32>
    %264 = vector.shape_cast %263 : vector<1x128xf32> to vector<128xf32>
    %265 = vector.shape_cast %264 : vector<128xf32> to vector<1x1x128xf32>
    %266 = vector.broadcast %265 : vector<1x1x128xf32> to vector<5x9x128xf32>
    %267 = arith.mulf %262, %266 : vector<5x9x128xf32>
    %268 = arith.addf %261, %267 : vector<5x9x128xf32>
    %269 = vector.extract_strided_slice %246 {offsets = [0, 3, 0], sizes = [5, 9, 128], strides = [1, 1, 1]} : vector<5x13x128xf32> to vector<5x9x128xf32>
    %270 = vector.extract_strided_slice %248 {offsets = [3, 0], sizes = [1, 128], strides = [1, 1]} : vector<5x128xf32> to vector<1x128xf32>
    %271 = vector.shape_cast %270 : vector<1x128xf32> to vector<128xf32>
    %272 = vector.shape_cast %271 : vector<128xf32> to vector<1x1x128xf32>
    %273 = vector.broadcast %272 : vector<1x1x128xf32> to vector<5x9x128xf32>
    %274 = arith.mulf %269, %273 : vector<5x9x128xf32>
    %275 = arith.addf %268, %274 : vector<5x9x128xf32>
    %276 = vector.extract_strided_slice %246 {offsets = [0, 4, 0], sizes = [5, 9, 128], strides = [1, 1, 1]} : vector<5x13x128xf32> to vector<5x9x128xf32>
    %277 = vector.extract_strided_slice %248 {offsets = [4, 0], sizes = [1, 128], strides = [1, 1]} : vector<5x128xf32> to vector<1x128xf32>
    %278 = vector.shape_cast %277 : vector<1x128xf32> to vector<128xf32>
    %279 = vector.shape_cast %278 : vector<128xf32> to vector<1x1x128xf32>
    %280 = vector.broadcast %279 : vector<1x1x128xf32> to vector<5x9x128xf32>
    %281 = arith.mulf %276, %280 : vector<5x9x128xf32>
    %282 = arith.addf %275, %281 : vector<5x9x128xf32>
    %283 = arith.addf %245, %282 : vector<5x9x128xf32>
    %284 = vector.extract_strided_slice %130 {offsets = [4, 0, 0], sizes = [5, 13, 128], strides = [1, 1, 1]} : vector<9x13x128xf32> to vector<5x13x128xf32>
    %285 = vector.extract_strided_slice %63 {offsets = [4, 0, 0], sizes = [1, 5, 128], strides = [1, 1, 1]} : vector<5x5x128xf32> to vector<1x5x128xf32>
    %286 = vector.shape_cast %285 : vector<1x5x128xf32> to vector<5x128xf32>
    %287 = vector.extract_strided_slice %284 {offsets = [0, 0, 0], sizes = [5, 9, 128], strides = [1, 1, 1]} : vector<5x13x128xf32> to vector<5x9x128xf32>
    %288 = vector.extract_strided_slice %286 {offsets = [0, 0], sizes = [1, 128], strides = [1, 1]} : vector<5x128xf32> to vector<1x128xf32>
    %289 = vector.shape_cast %288 : vector<1x128xf32> to vector<128xf32>
    %290 = vector.shape_cast %289 : vector<128xf32> to vector<1x1x128xf32>
    %291 = vector.broadcast %290 : vector<1x1x128xf32> to vector<5x9x128xf32>
    %292 = arith.mulf %287, %291 : vector<5x9x128xf32>
    %293 = vector.extract_strided_slice %284 {offsets = [0, 1, 0], sizes = [5, 9, 128], strides = [1, 1, 1]} : vector<5x13x128xf32> to vector<5x9x128xf32>
    %294 = vector.extract_strided_slice %286 {offsets = [1, 0], sizes = [1, 128], strides = [1, 1]} : vector<5x128xf32> to vector<1x128xf32>
    %295 = vector.shape_cast %294 : vector<1x128xf32> to vector<128xf32>
    %296 = vector.shape_cast %295 : vector<128xf32> to vector<1x1x128xf32>
    %297 = vector.broadcast %296 : vector<1x1x128xf32> to vector<5x9x128xf32>
    %298 = arith.mulf %293, %297 : vector<5x9x128xf32>
    %299 = arith.addf %292, %298 : vector<5x9x128xf32>
    %300 = vector.extract_strided_slice %284 {offsets = [0, 2, 0], sizes = [5, 9, 128], strides = [1, 1, 1]} : vector<5x13x128xf32> to vector<5x9x128xf32>
    %301 = vector.extract_strided_slice %286 {offsets = [2, 0], sizes = [1, 128], strides = [1, 1]} : vector<5x128xf32> to vector<1x128xf32>
    %302 = vector.shape_cast %301 : vector<1x128xf32> to vector<128xf32>
    %303 = vector.shape_cast %302 : vector<128xf32> to vector<1x1x128xf32>
    %304 = vector.broadcast %303 : vector<1x1x128xf32> to vector<5x9x128xf32>
    %305 = arith.mulf %300, %304 : vector<5x9x128xf32>
    %306 = arith.addf %299, %305 : vector<5x9x128xf32>
    %307 = vector.extract_strided_slice %284 {offsets = [0, 3, 0], sizes = [5, 9, 128], strides = [1, 1, 1]} : vector<5x13x128xf32> to vector<5x9x128xf32>
    %308 = vector.extract_strided_slice %286 {offsets = [3, 0], sizes = [1, 128], strides = [1, 1]} : vector<5x128xf32> to vector<1x128xf32>
    %309 = vector.shape_cast %308 : vector<1x128xf32> to vector<128xf32>
    %310 = vector.shape_cast %309 : vector<128xf32> to vector<1x1x128xf32>
    %311 = vector.broadcast %310 : vector<1x1x128xf32> to vector<5x9x128xf32>
    %312 = arith.mulf %307, %311 : vector<5x9x128xf32>
    %313 = arith.addf %306, %312 : vector<5x9x128xf32>
    %314 = vector.extract_strided_slice %284 {offsets = [0, 4, 0], sizes = [5, 9, 128], strides = [1, 1, 1]} : vector<5x13x128xf32> to vector<5x9x128xf32>
    %315 = vector.extract_strided_slice %286 {offsets = [4, 0], sizes = [1, 128], strides = [1, 1]} : vector<5x128xf32> to vector<1x128xf32>
    %316 = vector.shape_cast %315 : vector<1x128xf32> to vector<128xf32>
    %317 = vector.shape_cast %316 : vector<128xf32> to vector<1x1x128xf32>
    %318 = vector.broadcast %317 : vector<1x1x128xf32> to vector<5x9x128xf32>
    %319 = arith.mulf %314, %318 : vector<5x9x128xf32>
    %320 = arith.addf %313, %319 : vector<5x9x128xf32>
    %321 = arith.addf %283, %320 : vector<5x9x128xf32>
    %322 = vector.shape_cast %321 : vector<5x9x128xf32> to vector<45x128xf32>
    %323 = arith.truncf %322 : vector<45x128xf32> to vector<45x128xbf16>
    %c0_76 = arith.constant 0 : index
    %c0_77 = arith.constant 0 : index
    %324 = vector.load %arg8[%c0_76, %c0_77] : memref<128x128xbf16, #tpu.memory_space<vmem>>, vector<128x128xbf16>
    %cst_78 = arith.constant dense<0.000000e+00> : vector<45x128xf32>
    %325 = tpu.matmul %323, %324, %cst_78 {dimension_numbers = #tpu.dot_dimension_numbers<[1], [0], [0], [1], [0, 0, 1, 1], [], []>} : vector<45x128xbf16>, vector<128x128xbf16>, vector<45x128xf32> -> vector<45x128xf32>
    %c0_79 = arith.constant 0 : index
    %c0_80 = arith.constant 0 : index
    %326 = vector.load %arg9[%c0_79, %c0_80] : memref<1x128xf32, #tpu.memory_space<vmem>>, vector<1x128xf32>
    %327 = vector.shape_cast %326 : vector<1x128xf32> to vector<128xf32>
    %328 = vector.shape_cast %327 : vector<128xf32> to vector<1x128xf32>
    %329 = vector.broadcast %328 : vector<1x128xf32> to vector<45x128xf32>
    %330 = arith.addf %325, %329 : vector<45x128xf32>
    %cst_81 = arith.constant 0.000000e+00 : f32
    %331 = vector.broadcast %cst_81 : f32 to vector<45x128xf32>
    %332 = arith.maximumf %330, %331 : vector<45x128xf32>
    %333 = arith.truncf %332 : vector<45x128xf32> to vector<45x128xbf16>
    %c0_82 = arith.constant 0 : index
    %c0_83 = arith.constant 0 : index
    %334 = vector.load %arg10[%c0_82, %c0_83] : memref<128x128xbf16, #tpu.memory_space<vmem>>, vector<128x128xbf16>
    %cst_84 = arith.constant dense<0.000000e+00> : vector<45x128xf32>
    %335 = tpu.matmul %333, %334, %cst_84 {dimension_numbers = #tpu.dot_dimension_numbers<[1], [0], [0], [1], [0, 0, 1, 1], [], []>} : vector<45x128xbf16>, vector<128x128xbf16>, vector<45x128xf32> -> vector<45x128xf32>
    %c0_85 = arith.constant 0 : index
    %c0_86 = arith.constant 0 : index
    %336 = vector.load %arg11[%c0_85, %c0_86] : memref<1x128xf32, #tpu.memory_space<vmem>>, vector<1x128xf32>
    %337 = vector.shape_cast %336 : vector<1x128xf32> to vector<128xf32>
    %338 = vector.shape_cast %337 : vector<128xf32> to vector<1x128xf32>
    %339 = vector.broadcast %338 : vector<1x128xf32> to vector<45x128xf32>
    %340 = arith.addf %335, %339 : vector<45x128xf32>
    %341 = vector.shape_cast %340 : vector<45x128xf32> to vector<5x9x128xf32>
    %c0_87 = arith.constant 0 : index
    %c0_88 = arith.constant 0 : index
    %c0_89 = arith.constant 0 : index
    %c0_90 = arith.constant 0 : index
    %342 = vector.load %arg12[%c0_87, %c0_88, %c0_89, %c0_90] : memref<1x5x9x128xf32, #tpu.memory_space<vmem>>, vector<1x5x9x128xf32>
    %343 = vector.shape_cast %342 : vector<1x5x9x128xf32> to vector<5x9x128xf32>
    %344 = vector.shape_cast %341 : vector<5x9x128xf32> to vector<1x5x9x128xf32>
    tpu.vector_store %arg12[%c0_87, %c0_88, %c0_89, %c0_90], %344 {strides = array<i32>} : memref<1x5x9x128xf32, #tpu.memory_space<vmem>>, vector<1x5x9x128xf32>,
    return
  }
  func.func @transform_0(%arg0: i32, %arg1: i32) -> (i32, i32, i32, i32) {
    %c0_i32 = arith.constant 0 : i32
    %c0_i32_0 = arith.constant 0 : i32
    %c0_i32_1 = arith.constant 0 : i32
    %c0_i32_2 = arith.constant 0 : i32
    return %arg0, %c0_i32, %c0_i32_0, %c0_i32_1 : i32, i32, i32, i32
  }
  func.func @transform_1(%arg0: i32, %arg1: i32) -> (i32, i32, i32, i32) {
    %c0_i32 = arith.constant 0 : i32
    %c0_i32_0 = arith.constant 0 : i32
    %c0_i32_1 = arith.constant 0 : i32
    %c0_i32_2 = arith.constant 0 : i32
    return %arg0, %c0_i32, %c0_i32_0, %c0_i32_1 : i32, i32, i32, i32
  }
  func.func @transform_2(%arg0: i32, %arg1: i32) -> (i32, i32, i32) {
    %c0_i32 = arith.constant 0 : i32
    %c0_i32_0 = arith.constant 0 : i32
    %c0_i32_1 = arith.constant 0 : i32
    %c0_i32_2 = arith.constant 0 : i32
    return %c0_i32, %c0_i32_0, %c0_i32_1 : i32, i32, i32
  }
  func.func @transform_3(%arg0: i32, %arg1: i32) -> (i32, i32) {
    %c0_i32 = arith.constant 0 : i32
    %c0_i32_0 = arith.constant 0 : i32
    %c0_i32_1 = arith.constant 0 : i32
    return %c0_i32, %c0_i32_0 : i32, i32
  }
  func.func @transform_4(%arg0: i32, %arg1: i32) -> (i32, i32, i32) {
    %c0_i32 = arith.constant 0 : i32
    %c0_i32_0 = arith.constant 0 : i32
    %c0_i32_1 = arith.constant 0 : i32
    %c0_i32_2 = arith.constant 0 : i32
    return %c0_i32, %c0_i32_0, %c0_i32_1 : i32, i32, i32
  }
  func.func @transform_5(%arg0: i32, %arg1: i32) -> (i32, i32) {
    %c0_i32 = arith.constant 0 : i32
    %c0_i32_0 = arith.constant 0 : i32
    %c0_i32_1 = arith.constant 0 : i32
    return %c0_i32, %c0_i32_0 : i32, i32
  }
  func.func @transform_6(%arg0: i32, %arg1: i32) -> (i32, i32) {
    %c0_i32 = arith.constant 0 : i32
    %c0_i32_0 = arith.constant 0 : i32
    %c0_i32_1 = arith.constant 0 : i32
    return %c0_i32, %c0_i32_0 : i32, i32
  }
  func.func @transform_7(%arg0: i32, %arg1: i32) -> (i32, i32) {
    %c0_i32 = arith.constant 0 : i32
    %c0_i32_0 = arith.constant 0 : i32
    %c0_i32_1 = arith.constant 0 : i32
    return %c0_i32, %c0_i32_0 : i32, i32
  }
  func.func @transform_8(%arg0: i32, %arg1: i32) -> (i32, i32) {
    %c0_i32 = arith.constant 0 : i32
    %c0_i32_0 = arith.constant 0 : i32
    %c0_i32_1 = arith.constant 0 : i32
    return %c0_i32, %c0_i32_0 : i32, i32
  }
  func.func @transform_9(%arg0: i32, %arg1: i32) -> (i32, i32) {
    %c0_i32 = arith.constant 0 : i32
    %c0_i32_0 = arith.constant 0 : i32
    %c0_i32_1 = arith.constant 0 : i32
    return %c0_i32, %c0_i32_0 : i32, i32
  }
  func.func @transform_10(%arg0: i32, %arg1: i32) -> (i32, i32, i32, i32) {
    %c0_i32 = arith.constant 0 : i32
    %c0_i32_0 = arith.constant 0 : i32
    %c0_i32_1 = arith.constant 0 : i32
    return %arg0, %arg1, %c0_i32, %c0_i32_0 : i32, i32, i32, i32
  }
}

</mosaic_0001>

<bundles_post_ra>
// kernel: tpu_custom_call.1
= control target key start
LH: loop header
LB: loop body
LE: loop exit
PB: predicated region body
PF: predicated region fallthrough
CT: control target
= control target key end

     0   :  { %s13936_s13 = smov 0   ;;  %s13938_s14 = smov 0   ;;  %s20838_s0 = inlined_call_operand.vmem [shape: f32[2,7,7,16], index: 0, kind: input, shape index: {}]   ;;  %s20839_s1 = inlined_call_operand.vmem [shape: f32[2,16,15,16], index: 1, kind: input, shape index: {}]   ;;  %s20840_s2 = inlined_call_operand.vmem [shape: bf16[9,16,128], index: 2, kind: input, shape index: {}]   ;;  %s20841_s3 = inlined_call_operand.vmem [shape: f32[1,128], index: 3, kind: input, shape index: {}]   ;;  %s20842_s4 = inlined_call_operand.vmem [shape: bf16[9,16,128], index: 4, kind: input, shape index: {}]   ;;  %s20843_s5 = inlined_call_operand.vmem [shape: f32[1,128], index: 5, kind: input, shape index: {}]   ;;  %s20844_s6 = inlined_call_operand.vmem [shape: bf16[128,128], index: 6, kind: input, shape index: {}]   ;;  %s20845_s7 = inlined_call_operand.vmem [shape: f32[1,128], index: 7, kind: input, shape index: {}]   ;;  %s20846_s8 = inlined_call_operand.vmem [shape: bf16[128,128], index: 8, kind: input, shape index: {}]   ;;  %s20847_s9 = inlined_call_operand.vmem [shape: f32[1,128], index: 9, kind: input, shape index: {}]   ;;  %s20848_s10 = inlined_call_operand.vmem [shape: f32[2,10,9,128], index: 10, kind: output, shape index: {}]  }
   0x1   :  { %s13940_s15 = smov 0   ;;  %s13942_s16 = smov 0  }
   0x2   :  { %s13944_s17 = smov 0  }
   0x3 LB: > { %s29_s18 = sadd.s32 1, %s13868_s15  ;;  %s32_s19 = sadd.s32 1, %s13872_s16  ;;  %s13876_s17 = sphi %s13944_s17, %s20_s17   ;;  %s13872_s16 = sphi %s13942_s16, %s23911_s16   ;;  %s13868_s15 = sphi %s13940_s15, %s23910_s15   ;;  %s13864_s14 = sphi %s13938_s14, %s23909_s14   ;;  %s13860_s13 = sphi %s13936_s13, %s23908_s13  }
   0x4   : > { %p30_p0 = scmp.ge.s32.totalorder %s29_s18, 2  ;;  %p12903_p1 = scmp.ge.s32.totalorder %s13876_s17, 1 }
   0x5   : > { %p336_p2 = scmp.lt.s32.totalorder %s13876_s17, 5 }
   0x6   : > { %s23913_s18 = smov (%p30_p0, %s29_s18), 0  ;;  %s23915_s19 = smov (!%p30_p0, %s32_s19), %s13872_s16 }
   0x7   : > { %p337_p3 = pnand %p12903_p1, %p336_p2  ;;  %p34_p4 = scmp.ge.s32.totalorder %s23915_s19, 2 }
   0x9   : > { %s23917_s19 = smov (%p34_p4, %s23915_s19), 0  ;;  %340 = sbr.rel (%p337_p3) target bundleno = 1746 (0x6d2), region = 60 }
  0x10   : > { %v13803_v0 = vld [vmem:[%s20840_s2 + $0x8] sm:$0xff]   ;;  %p384_p5 = scmp.lt.s32.totalorder %s13864_s14, 1  ;;  %v428_v1 = vlaneseq  ;;  %v13804_v2 = vld [vmem:[%s20842_s4 + $0x10] sm:$0xff]   ;;  %v13878_v4 = vmov 1966171168   ;;  %s12982_s24 = smul.u32 80, %s13860_s13 }
  0x11   : > { %13358 = vmatprep.subr.bf16.mxu0 %v13803_v0  ;;  %13448 = vmatprep.subr.bf16.mxu1 %v13804_v2  ;;  %v426_v5 = vunpack.c.l.s4 %v13878_v4  ;;  %v13982_v6 = vld [vmem:[%s20842_s4 + $0x18] sm:$0xff]   ;;  %v13989_v7 = vld [vmem:[%s20840_s2] sm:$0xff]   ;;  %vm682_vm0 = vcmask 130048   ;;  %vm13880_vm1 = vmmov 0   ;;  %s394_s29 = smul.u32 5, %s13860_s13 }
  0x12   : > { %s23919_s14 = smov (!%p384_p5, %s13864_s14), 1  ;;  %v13976_v3 = vshrl.u32 %v428_v1, 7  ;;  %13359 = vmatpush3.bf16.msra.mxu0 %v13803_v0  ;;  %13449 = vmatpush3.bf16.msra.mxu1 %v13804_v2 }
  0x13   : > { %s13758_s27 = smul.u32 56, %s23919_s14  ;;  %s13227_s28 = sshll.u32 %s23919_s14, 8  ;;  %v427_v8 = vunpack.c.0.s8 %v426_v5  ;;  %13466 = vmatprep.subr.bf16.mxu1 %v13982_v6  ;;  %13364 = vmatprep.subr.bf16.mxu0 %v13989_v7 }
  0x14   : > { %21903 = vst [vmem:[#allocation2_spill] sm:$0xff] %v13976_v3  ;;  %s393_s20 = scalar_lea.vmem %s20839_s1, %s13227_s28  ;;  %p397_p6 = scmp.lt.s32.totalorder %s394_s29, 9 }
  0x15   : > { %s13998_s23 = scalar_lea.vmem %s20838_s0, %s13758_s27  ;;  %v14005_v12 = vsub.s32 %v427_v8, %v13976_v3  ;;  %s14007_s25 = scalar_lea.vmem %s393_s20, %s12982_s24 }
  0x16   : > { %v406_v9 = vld [vmem:[%s13998_s23] sm:$0x7f]  ;;  %v407_v10 = vld [vmem:[%s13998_s23 + $0x8] sm:$0x7f]  ;;  %v408_v11 = vld [vmem:[%s13998_s23 + $0x10] sm:$0x7f] }
  0x17   : > { %21904 = vst [vmem:[#allocation3_spill] sm:$0xff] %v14005_v12  ;;  %v409_v13 = vld [vmem:[%s13998_s23 + $0x18] sm:$0x7f]  ;;  %v413_v14 = vpack.c.bf16 %v406_v9, %v406_v9  ;;  %v414_v15 = vpack.c.bf16 %v407_v10, %v407_v10  ;;  %v415_v16 = vpack.c.bf16 %v408_v11, %v408_v11  ;;  %v410_v17 = vld [vmem:[%s13998_s23 + $0x20] sm:$0x7f]  ;;  %v14024_v29 = vld [vmem:[%s14007_s25 + $0x10] sm:$0xff] }
  0x18   : > { %v411_v18 = vld [vmem:[%s13998_s23 + $0x28] sm:$0x7f]  ;;  %v416_v19 = vpack.c.bf16 %v409_v13, %v409_v13  ;;  %v417_v20 = vpack.c.bf16 %v410_v17, %v410_v17  ;;  %v14013_v22 = vld [vmem:[%s14007_s25] sm:$0xff]  ;;  %v14027_v30 = vld [vmem:[%s14007_s25 + $0x18] sm:$0x7f]  ;;  %s23921_s29 = smov (!%p397_p6, %s394_s29), 9 }
  0x19   : > { %v418_v21 = vpack.c.bf16 %v411_v18, %v411_v18  ;;  %v431_v23 = vrot.slane %v413_v14, %v14005_v12  ;;  %v454_v24 = vrot.slane %v414_v15, %v14005_v12  ;;  %v477_v25 = vrot.slane %v415_v16, %v14005_v12  ;;  %v14019_v26 = vld [vmem:[%s14007_s25 + $0x8] sm:$0x7f]  ;;  %s13759_s12 = smul.u32 20, %s23919_s14  ;;  %s12907_s20 = sshll.u32 %s23921_s29, 1 }
  0x1a   : > { %v500_v27 = vrot.slane %v416_v19, %v14005_v12  ;;  %v523_v28 = vrot.slane %v417_v20, %v14005_v12  ;;  %v2112_v31 = vpack.c.bf16 %v14019_v26, %v14013_v22  ;;  %v2113_v43 = vpack.c.bf16 %v14027_v30, %v14024_v29 }
  0x1b   : > { %v432_v32 = vcombine.high %v431_v23, %v431_v23  ;;  %v14032_v33 = vrot.slane %v431_v23, %v14005_v12  ;;  %v455_v34 = vcombine.high %v454_v24, %v454_v24  ;;  %v14035_v35 = vrot.slane %v454_v24, %v14005_v12  ;;  %s401_s13 = sadd.s32 %s13759_s12, %s12907_s20 }
  0x1c   : > { %v478_v36 = vcombine.high %v477_v25, %v477_v25  ;;  %v14038_v37 = vrot.slane %v477_v25, %v14005_v12  ;;  %v14041_v38 = vrot.slane %v500_v27, %v14005_v12  ;;  %v1081_v39 = vrot.slane %v418_v21, %v14005_v12  ;;  %s12908_s21 = sshll.u32 %s401_s13, 3 }
  0x1d   : > { %v14045_v40 = vrot.slane %v432_v32, %v14005_v12  ;;  %v14049_v41 = vcombine.high %v14032_v33, %v14032_v33  ;;  %v501_v42 = vcombine.high %v500_v27, %v500_v27  ;;  %v14054_v44 = vrot.slane %v455_v34, %v14005_v12  ;;  %s20743_s24 = scalar_lea.vmem %s20848_s10, %s12908_s21 }
  0x1e   : > { %v14058_v45 = vcombine.high %v14035_v35, %v14035_v35  ;;  %v14061_v46 = vrot.slane %v478_v36, %v14005_v12  ;;  %v14065_v47 = vcombine.high %v14038_v37, %v14038_v37  ;;  %v541_v48 = vunpack.i.h.s16 %v14032_v33 }
  0x1f   : > { %v543_v49 = vunpack.i.h.s16 %v14045_v40  ;;  %v546_v50 = vunpack.i.h.s16 %v14035_v35  ;;  %v20850_v51 = vunpack.i.h.s16 %v14038_v37  ;;  %v556_v53 = vunpack.i.h.s16 %v14041_v38 }
  0x20   : > { %v553_v52 = vunpack.i.h.s16 %v14061_v46  ;;  %v567_v54 = vunpack.i.h.s16 %v14049_v41  ;;  %v569_v55 = vunpack.i.h.s16 %v14065_v47  ;;  %v14076_v56 = vrot.slane %v501_v42, %v14005_v12 }
  0x21   : > { %v12911_v57 = vpack.i.b16 %v14045_v40, %v541_v48  ;;  %v12912_v58 = vpack.i.b16 %v14049_v41, %v543_v49  ;;  %v14083_v59 = vpack.i.b16 %v14061_v46, %v20850_v51  ;;  %v14087_v60 = vcombine.high %v14041_v38, %v14041_v38 }
  0x22   : > { %v577_v61 = vpack.i.b16 %v546_v50, %v567_v54  ;;  %v14090_v62 = vpack.i.b16 %v14065_v47, %v553_v52  ;;  %v14092_v63 = vpack.i.b16 %v556_v53, %v569_v55  ;;  %v14097_v2 = vpack.i.b16 %v14054_v44, %v546_v50 }
  0x23   : > { %v588_v0 = vcombine.low %v12911_v57, %v12912_v58  ;;  %v590_v1 = vcombine.low %v14058_v45, %v14083_v59  ;;  %v524_v4 = vcombine.high %v523_v28, %v523_v28  ;;  %v14103_v9 = vpack.i.b16 %v14076_v56, %v556_v53 }
  0x24   : > { %21905 = vst [vmem:[#allocation4_spill] sm:$0xff] %v14092_v63  ;;  %21906 = vst [vmem:[#allocation5_spill] sm:$0xff] %v14097_v2  ;;  %v589_v5 = vcombine.low %v577_v61, %v14054_v44  ;;  %v591_v8 = vcombine.low %v14090_v62, %v14092_v63  ;;  %v14106_v10 = vrot.slane %v523_v28, %v14005_v12 }
  0x25   : > { %21907 = vst [vmem:[#allocation6_spill] sm:$0xff] %v14103_v9  ;;  %v598_v11 = vrot.slane %v588_v0, %v14005_v12  ;;  %v612_v13 = vrot.slane %v590_v1, %v14005_v12  ;;  %v14112_v14 = vcombine.high %v14061_v46, %v14061_v46  ;;  %v14115_v15 = vrot.slane %v524_v4, %v14005_v12 }
  0x26   : > { %v605_v16 = vrot.slane %v589_v5, %v14005_v12  ;;  %v619_v17 = vrot.slane %v591_v8, %v14005_v12  ;;  %v14121_v18 = vcombine.high %v14106_v10, %v14106_v10  ;;  %v20849_v19 = vunpack.i.h.s16 %v14106_v10 }
  0x27   : > { %21908 = vst [vmem:[#allocation7_spill] sm:$0xff] %v14115_v15  ;;  %v563_v21 = vunpack.i.h.s16 %v14115_v15  ;;  %v637_v23 = vcombine.low %v14076_v56, %v14087_v60  ;;  %v1082_v24 = vcombine.high %v1081_v39, %v1081_v39  ;;  %v14138_v32 = vpack.i.b16 %v14112_v14, %v569_v55 }
  0x28   : > { %21909 = vst [vmem:[#allocation8_spill] sm:$0xff] %v14121_v18  ;;  %v620_v25 = vcombine.low %v598_v11, %v605_v16  ;;  %v621_v27 = vcombine.low %v612_v13, %v619_v17  ;;  %v14130_v28 = vunpack.i.h.s16 %v14121_v18  ;;  %v14135_v29 = vpack.i.b16 %v14115_v15, %v20849_v19  ;;  %v2094_v11 = vld [vmem:[%s14007_s25 + $0x20] sm:$0xff] }
  0x29   : > { %21912 = vst [vmem:[#allocation11_spill] sm:$0xff] %v14138_v32  ;;  %v14141_v34 = vpack.i.b16 %v14121_v18, %v563_v21  ;;  %v14144_v36 = vrot.slane %v1081_v39, %v14005_v12  ;;  %v14147_v42 = vrot.slane %v1082_v24, %v14005_v12  ;;  %v645_v50 = vrot.slane %v637_v23, %v14005_v12 }
  0x2a   : > { %21910 = vst [vmem:[#allocation9_spill] sm:$0xff] %v14130_v28  ;;  %21911 = vst [vmem:[#allocation10_spill] sm:$0xff] %v14135_v29  ;;  %v628_v48 = vrot.slane %v620_v25, %v14005_v12  ;;  %v635_v49 = vrot.slane %v621_v27, %v14005_v12  ;;  %v659_v52 = vrot.slane %v14130_v28, %v14005_v12 }
  0x2b   : > { %21913 = vst [vmem:[#allocation12_spill] sm:$0xff] %v14141_v34  ;;  %21914 = vst [vmem:[#allocation13_spill] sm:$0xff] %v14147_v42  ;;  %v638_v53 = vcombine.low %v14135_v29, %v14141_v34  ;;  %v1162_v39 = vcombine.low %v14144_v36, %v14147_v42  ;;  %v12983_v54 = vpack.c.bf16 %v14019_v26, %v14019_v26 }
  0x2c   : > { %v2139_v55 = vrot.slane %v2112_v31, %v14005_v12  ;;  %v636_v57 = vcombine.low %v628_v48, %v635_v49  ;;  %v674_v58 = vrot.slane %v659_v52, %v14005_v12  ;;  %v14167_v61 = vcombine.high %v14115_v15, %v14115_v15 }
  0x2d   : > { %v2187_v0 = vrot.slane %v2113_v43, %v14005_v12  ;;  %v14171_v1 = vrot.slane %v638_v53, %v14005_v12  ;;  %v14174_v4 = vrot.slane %v1162_v39, %v14005_v12  ;;  %v2146_v5 = vrot.slane %v12983_v54, %v14005_v12  ;;  %v14186_v43 = vld [vmem:[%s14007_s25 + $0x28] sm:$0x7f] }
  0x2e   : > { %21915 = vst [vmem:[#allocation14_spill] sm:$0xff] %v14167_v61  ;;  %v2147_v8 = vcombine.high %v2139_v55, %v2139_v55  ;;  %13360 = vmatprep.mubr.msk.bf16.mxu0 %vm682_vm0, %v636_v57  ;;  %v14179_v22 = vrot.slane %v2139_v55, %v14005_v12  ;;  %v12984_v13 = vpack.c.bf16 %v14027_v30, %v14027_v30 }
  0x2f   : > { %v2195_v26 = vcombine.high %v2187_v0, %v2187_v0  ;;  %v14182_v31 = vrot.slane %v2187_v0, %v14005_v12  ;;  %v660_v16 = vcombine.low %v645_v50, %v14171_v1  ;;  %v2148_v21 = vcombine.high %v2146_v5, %v2146_v5 }
  0x30   : > { %21916 = vst [vmem:[#allocation15_spill] sm:$0xff] %v14179_v22  ;;  %v14194_v23 = vrot.slane %v2146_v5, %v14005_v12  ;;  %v14197_v24 = vrot.slane %v2147_v8, %v14005_v12  ;;  %v14201_v25 = vcombine.high %v14179_v22, %v14179_v22  ;;  %v2194_v52 = vrot.slane %v12984_v13, %v14005_v12 }
  0x31   : > { %21917 = vst [vmem:[#allocation16_spill] sm:$0xff] %v14182_v31  ;;  %v14204_v27 = vrot.slane %v2195_v26, %v14005_v12  ;;  %v14208_v30 = vcombine.high %v14182_v31, %v14182_v31  ;;  %v667_v48 = vrot.slane %v660_v16, %v14005_v12  ;;  %v14212_v49 = vrot.slane %v2148_v21, %v14005_v12  ;;  %v14234_v26 = vld [vmem:[%s20840_s2 + $0x10] sm:$0xff]  }
  0x32   : > { %21918 = vst [vmem:[#allocation17_spill] sm:$0xff] %v14194_v23  ;;  %21919 = vst [vmem:[#allocation18_spill] sm:$0xff] %v14197_v24  ;;  %v14216_v50 = vcombine.high %v14194_v23, %v14194_v23  ;;  %v14221_v53 = vcombine.high %v14197_v24, %v14197_v24  ;;  %v3832_v54 = vcombine.low %v14197_v24, %v14201_v25 }
  0x33   : > { %21920 = vst [vmem:[#allocation19_spill] sm:$0xff] %v14201_v25  ;;  %21921 = vst [vmem:[#allocation20_spill] sm:$0xff] %v14204_v27  ;;  %v2580_v39 = vunpack.i.h.s16 %v14204_v27  ;;  %v2114_v55 = vpack.c.bf16 %v14186_v43, %v2094_v11  ;;  %v675_v57 = vcombine.low %v667_v48, %v674_v58  ;;  %v3797_v0 = vcombine.high %v14212_v49, %v14212_v49  ;;  %v14296_v25 = vld [vmem:[%s14007_s25 + $0x48] sm:$0x7f] }
  0x34   : > { %21922 = vst [vmem:[#allocation21_spill] sm:$0xff] %v14208_v30  ;;  %21923 = vst [vmem:[#allocation22_spill] sm:$0xff] %v14212_v49  ;;  %v3834_v5 = vcombine.low %v14212_v49, %v14216_v50  ;;  %v2196_v8 = vcombine.high %v2194_v52, %v2194_v52  ;;  %v3833_v58 = vcombine.low %v14221_v53, %v14194_v23  ;;  %v2096_v49 = vld [vmem:[%s14007_s25 + $0x30] sm:$0xff]  ;;  %v2097_v23 = vld [vmem:[%s14007_s25 + $0x38] sm:$0x7f] }
  0x35   : > { %21924 = vst [vmem:[#allocation23_spill] sm:$0xff] %v14216_v50  ;;  %21925 = vst [vmem:[#allocation24_spill] sm:$0xff] %v14221_v53  ;;  %v14239_v16 = vpack.i.b16 %v14208_v30, %v2580_v39  ;;  %v3842_v11 = vrot.slane %v3832_v54, %v14005_v12  ;;  %13361 = vmatmul.mubr.msk.bf16.vlgmr.msra.gmra.mrb[0].mxu0 %vm682_vm0, %v675_v57  ;;  %v13077_v21 = vpack.i.b16 %v14204_v27, %v3797_v0 }
  0x36   : > { %v3856_v48 = vrot.slane %v3834_v5, %v14005_v12  ;;  %v14248_v20 = vrot.slane %v2194_v52, %v14005_v12  ;;  %v14251_v19 = vrot.slane %v2196_v8, %v14005_v12  ;;  %v3849_v39 = vrot.slane %v3833_v58, %v14005_v12  ;;  %13365 = vmatpush3.bf16.msra.mxu0 %v13989_v7 }
  0x37   : > { %21926 = vst [vmem:[#allocation25_spill] sm:$0xff] %v14239_v16  ;;  %v14256_v13 = vcombine.high %v14204_v27, %v14204_v27  ;;  %v2235_v54 = vrot.slane %v2114_v55, %v14005_v12  ;;  %v2582_v57 = vunpack.i.h.s16 %v14208_v30  ;;  %v3835_v52 = vcombine.low %v13077_v21, %v14239_v16  ;;  %13370 = vmatprep.subr.bf16.mxu0 %v14234_v26 }
  0x38   : > { %21927 = vst [vmem:[#allocation26_spill] sm:$0xff] %v14248_v20  ;;  %21928 = vst [vmem:[#allocation27_spill] sm:$0xff] %v14251_v19  ;;  %v14264_v0 = vcombine.high %v14248_v20, %v14248_v20  ;;  %v2586_v5 = vunpack.i.h.s16 %v14248_v20  ;;  %v2588_v8 = vunpack.i.h.s16 %v14251_v19  ;;  %v3864_v58 = vcombine.low %v3842_v11, %v3849_v39 }
  0x39   : > { %21929 = vst [vmem:[#allocation28_spill] sm:$0xff] %v14256_v13  ;;  %v2243_v55 = vcombine.high %v2235_v54, %v2235_v54  ;;  %v14270_v51 = vrot.slane %v2235_v54, %v14005_v12  ;;  %v2584_v17 = vunpack.i.h.s16 %v14256_v13  ;;  %v3863_v7 = vrot.slane %v3835_v52, %v14005_v12 }
  0x3a   : > { %21930 = vst [vmem:[#allocation29_spill] sm:$0xff] %v14264_v0  ;;  %v13038_v3 = vpack.i.b16 %v14256_v13, %v2582_v57  ;;  %v13040_v50 = vpack.i.b16 %v14251_v19, %v2586_v5  ;;  %v14285_v24 = vpack.i.b16 %v14264_v0, %v2588_v8  ;;  %v3872_v21 = vrot.slane %v3864_v58, %v14005_v12 }
  0x3b   : > { %21931 = vst [vmem:[#allocation30_spill] sm:$0xff] %v14270_v51  ;;  %v14281_v39 = vrot.slane %v2243_v55, %v14005_v12  ;;  %v13039_v54 = vpack.i.b16 %v14248_v20, %v2584_v17  ;;  %v3865_v52 = vcombine.low %v3856_v48, %v3863_v7  ;;  %v14291_v5 = vcombine.high %v14251_v19, %v14251_v19  ;;  %v2098_v55 = vld [vmem:[%s14007_s25 + $0x40] sm:$0xff] }
  0x3c   : > { %21932 = vst [vmem:[#allocation31_spill] sm:$0xff] %v14285_v24  ;;  %v3354_v57 = vcombine.low %v14239_v16, %v13038_v3  ;;  %v3882_v11 = vcombine.low %v13040_v50, %v14285_v24  ;;  %v2115_v17 = vpack.c.bf16 %v2097_v23, %v2096_v49  ;;  %v21934_v58 = vunpack.i.h.s16 %v14264_v0 }
  0x3d   : > { %21933 = vst [vmem:[#allocation32_spill] sm:$0xff] %v14291_v5  ;;  %v3355_v22 = vcombine.low %v13039_v54, %v13040_v50  ;;  %v3881_v13 = vcombine.low %v13038_v3, %v13039_v54  ;;  %v3879_v48 = vrot.slane %v3865_v52, %v14005_v12  ;;  %v13085_v30 = vcombine.high %v14270_v51, %v14281_v39 }
  0x3e   : > { %v13078_v7 = vpack.i.b16 %v14291_v5, %v21934_v58  ;;  %v14308_v50 = vrot.slane %v3354_v57, %v14005_v12  ;;  %v14314_v49 = vrot.slane %v3882_v11, %v14005_v12  ;;  %v2116_v53 = vpack.c.bf16 %v14296_v25, %v2098_v55 }
  0x3f   : > { %v14311_v54 = vrot.slane %v3881_v13, %v14005_v12  ;;  %v3880_v52 = vcombine.low %v3872_v21, %v3879_v48  ;;  %v14318_v58 = vrot.slane %v13085_v30, %v14005_v12  ;;  %v12985_v57 = vpack.c.bf16 %v14186_v43, %v14186_v43 }
  0x40   : > { %21935 = vst [vmem:[#allocation33_spill] sm:$0xff] %v14308_v50  ;;  %21937 = vst [vmem:[#allocation35_spill] sm:$0xff] %v14314_v49  ;;  %v3883_v8 = vcombine.low %v13078_v7, %v14281_v39  ;;  %v12986_v50 = vpack.c.bf16 %v2097_v23, %v2097_v23  ;;  %v2283_v13 = vrot.slane %v2115_v17, %v14005_v12 }
  0x41   : > { %21936 = vst [vmem:[#allocation34_spill] sm:$0xff] %v14311_v54  ;;  %21938 = vst [vmem:[#allocation36_spill] sm:$0xff] %v14318_v58  ;;  %v3913_v3 = vcombine.low %v14311_v54, %v14314_v49  ;;  %13450 = vmatprep.mubr.msk.bf16.mxu1 %vm682_vm0, %v3880_v52  ;;  %v14328_v21 = vrot.slane %v3355_v22, %v14005_v12  ;;  %v2331_v30 = vrot.slane %v2116_v53, %v14005_v12 }
  0x42   : > { %v3905_v11 = vrot.slane %v3883_v8, %v14005_v12  ;;  %v12987_v55 = vpack.c.bf16 %v14296_v25, %v14296_v25  ;;  %v2242_v7 = vrot.slane %v12985_v57, %v14005_v12  ;;  %v2290_v43 = vrot.slane %v12986_v50, %v14005_v12 }
  0x43   : > { %21939 = vst [vmem:[#allocation37_spill] sm:$0xff] %v14328_v21  ;;  %v3921_v48 = vrot.slane %v3913_v3, %v14005_v12  ;;  %v2291_v23 = vcombine.high %v2283_v13, %v2283_v13  ;;  %v14339_v52 = vrot.slane %v2283_v13, %v14005_v12  ;;  %v2339_v22 = vcombine.high %v2331_v30, %v2331_v30 }
  0x44   : > { %v3914_v17 = vcombine.low %v3905_v11, %v14318_v58  ;;  %v14342_v8 = vrot.slane %v2331_v30, %v14005_v12  ;;  %v2244_v53 = vcombine.high %v2242_v7, %v2242_v7  ;;  %v14345_v21 = vrot.slane %v2242_v7, %v14005_v12 }
  0x45   : > { %21940 = vst [vmem:[#allocation38_spill] sm:$0xff] %v14339_v52  ;;  %v2292_v25 = vcombine.high %v2290_v43, %v2290_v43  ;;  %v14348_v3 = vrot.slane %v2290_v43, %v14005_v12  ;;  %v14352_v57 = vrot.slane %v2291_v23, %v14005_v12  ;;  %v14356_v13 = vcombine.high %v14339_v52, %v14339_v52 }
  0x46   : > { %21941 = vst [vmem:[#allocation39_spill] sm:$0xff] %v14342_v8  ;;  %21942 = vst [vmem:[#allocation40_spill] sm:$0xff] %v14345_v21  ;;  %v3928_v50 = vrot.slane %v3914_v17, %v14005_v12  ;;  %v14359_v11 = vrot.slane %v2339_v22, %v14005_v12  ;;  %v14362_v30 = vrot.slane %v2244_v53, %v14005_v12  ;;  %v20880_v53 = vunpack.i.h.s16 %v14339_v52 }
  0x47   : > { %21943 = vst [vmem:[#allocation41_spill] sm:$0xff] %v14348_v3  ;;  %21944 = vst [vmem:[#allocation42_spill] sm:$0xff] %v14352_v57  ;;  %v14366_v7 = vcombine.high %v14345_v21, %v14345_v21  ;;  %v14369_v43 = vrot.slane %v2292_v25, %v14005_v12  ;;  %v14373_v23 = vcombine.high %v14348_v3, %v14348_v3  ;;  %v14387_v25 = vld [vmem:[%s20842_s4 + $0x20] sm:$0xff]   ;;  %v2606_v5 = vunpack.i.h.s16 %v14352_v57 }
  0x48   : > { %21945 = vst [vmem:[#allocation43_spill] sm:$0xff] %v14359_v11  ;;  %21946 = vst [vmem:[#allocation44_spill] sm:$0xff] %v14362_v30  ;;  %v3929_v17 = vcombine.low %v3921_v48, %v3928_v50  ;;  %v14377_v24 = vcombine.high %v14352_v57, %v14352_v57  ;;  %v14381_v22 = vcombine.high %v14342_v8, %v14342_v8  ;;  %v2608_v63 = vunpack.i.h.s16 %v14356_v13 }
  0x49   : > { %21947 = vst [vmem:[#allocation45_spill] sm:$0xff] %v14366_v7  ;;  %21948 = vst [vmem:[#allocation46_spill] sm:$0xff] %v14369_v43  ;;  %v2612_v48 = vunpack.i.h.s16 %v14348_v3  ;;  %v2614_v50 = vunpack.i.h.s16 %v14369_v43  ;;  %v14399_v49 = vpack.i.b16 %v14352_v57, %v20880_v53  ;;  %v3799_v16 = vcombine.high %v14362_v30, %v14362_v30 }
  0x4a   : > { %21949 = vst [vmem:[#allocation47_spill] sm:$0xff] %v14373_v23  ;;  %21950 = vst [vmem:[#allocation48_spill] sm:$0xff] %v14377_v24  ;;  %13451 = vmatmul.mubr.msk.bf16.vlgmr.msra.gmra.mrb[0].mxu1 %vm682_vm0, %v3929_v17  ;;  %v2610_v29 = vunpack.i.h.s16 %v14377_v24  ;;  %v14405_v34 = vpack.i.b16 %v14356_v13, %v2606_v5  ;;  %v14408_v28 = vpack.i.b16 %v14377_v24, %v2608_v63 }
  0x4b   : > { %21951 = vst [vmem:[#allocation49_spill] sm:$0xff] %v14381_v22  ;;  %21952 = vst [vmem:[#allocation50_spill] sm:$0xff] %v14387_v25  ;;  %13467 = vmatpush3.bf16.msra.mxu1 %v13982_v6  ;;  %v14411_v17 = vpack.i.b16 %v14369_v43, %v2612_v48  ;;  %v14414_v54 = vpack.i.b16 %v14373_v23, %v2614_v50  ;;  %v14420_v32 = vpack.i.b16 %v14352_v57, %v3799_v16 }
  0x4c   : > { %21953 = vst [vmem:[#allocation51_spill] sm:$0xff] %v14399_v49  ;;  %21954 = vst [vmem:[#allocation52_spill] sm:$0xff] %v14405_v34  ;;  %v14417_v53 = vpack.i.b16 %v14348_v3, %v2610_v29  ;;  %v3930_v6 = vcombine.low %v14345_v21, %v14362_v30  ;;  %v3980_v5 = vcombine.low %v14359_v11, %v14381_v22  ;;  %13484 = vmatprep.subr.bf16.mxu1 %v14387_v25 }
  0x4d   : > { %21955 = vst [vmem:[#allocation53_spill] sm:$0xff] %v14408_v28  ;;  %21956 = vst [vmem:[#allocation54_spill] sm:$0xff] %v14411_v17  ;;  %v3932_v63 = vcombine.low %v14405_v34, %v14408_v28  ;;  %v4830_v48 = vcombine.low %v14366_v7, %v14399_v49  ;;  %v21960_v29 = vunpack.i.h.s16 %v14366_v7  ;;  %v5788_v42 = vcombine.low %v14414_v54, %v14342_v8 }
  0x4e   : > { %21957 = vst [vmem:[#allocation55_spill] sm:$0xff] %v14414_v54  ;;  %21958 = vst [vmem:[#allocation56_spill] sm:$0xff] %v14417_v53  ;;  %v3931_v24 = vcombine.low %v14366_v7, %v14420_v32  ;;  %v3933_v3 = vcombine.low %v14417_v53, %v14411_v17  ;;  %v14442_v25 = vrot.slane %v3930_v6, %v14005_v12  ;;  %v548_v28 = vunpack.i.h.s16 %v14054_v44 }
  0x4f   : > { %21959 = vst [vmem:[#allocation57_spill] sm:$0xff] %v14420_v32  ;;  %v14433_v50 = vpack.i.b16 %v3799_v16, %v21960_v29  ;;  %v3954_v34 = vrot.slane %v3932_v63, %v14005_v12  ;;  %v14447_v49 = vrot.slane %v3980_v5, %v14005_v12  ;;  %v4837_v16 = vrot.slane %v4830_v48, %v14005_v12 }
  0x50   : > { %21962 = vst [vmem:[#allocation59_spill] sm:$0xff] %v14442_v25  ;;  %v5795_v29 = vrot.slane %v5788_v42, %v14005_v12  ;;  %v3947_v22 = vrot.slane %v3931_v24, %v14005_v12  ;;  %v14453_v32 = vrot.slane %v3933_v3, %v14005_v12  ;;  %v2338_v17 = vrot.slane %v12987_v55, %v14005_v12 }
  0x51   : > { %21961 = vst [vmem:[#allocation58_spill] sm:$0xff] %v14433_v50  ;;  %21963 = vst [vmem:[#allocation60_spill] sm:$0xff] %v14447_v49  ;;  %v4839_v53 = vcombine.low %v4837_v16, %v3954_v34  ;;  %v14461_v5 = vcombine.high %v14359_v11, %v14359_v11  ;;  %v20901_v48 = vunpack.i.h.s16 %v14373_v23  ;;  %v12920_v6 = vpack.i.b16 %v14035_v35, %v14049_v41 }
  0x52   : > { %21964 = vst [vmem:[#allocation61_spill] sm:$0xff] %v14453_v32  ;;  %v5796_v63 = vcombine.low %v5795_v29, %v14447_v49  ;;  %v3962_v42 = vcombine.low %v14442_v25, %v3947_v22  ;;  %v3963_v24 = vcombine.low %v3954_v34, %v14453_v32  ;;  %v2340_v3 = vcombine.high %v2338_v17, %v2338_v17 }
  0x53   : > { %21965 = vst [vmem:[#allocation62_spill] sm:$0xff] %v14461_v5  ;;  %v14467_v8 = vrot.slane %v2338_v17, %v14005_v12  ;;  %v14472_v16 = vrot.slane %v4839_v53, %v14005_v12  ;;  %v14476_v29 = vcombine.high %v14369_v43, %v14369_v43  ;;  %v752_v25 = vcombine.low %v12920_v6, %v14097_v2  ;;  %v2102_v2 = vld [vmem:[%s14007_s25 + $0x60] sm:$0xff] }
  0x54   : > { %v3970_v22 = vrot.slane %v3962_v42, %v14005_v12  ;;  %v14482_v34 = vrot.slane %v3963_v24, %v14005_v12  ;;  %v14485_v17 = vrot.slane %v2340_v3, %v14005_v12  ;;  %v14499_v42 = vpack.i.b16 %v14058_v45, %v548_v28 }
  0x55   : > { %21966 = vst [vmem:[#allocation63_spill] sm:$0xff] %v14467_v8  ;;  %21967 = vst [vmem:[#allocation64_spill] sm:$0xff] %v14472_v16  ;;  %v14489_v55 = vcombine.high %v14467_v8, %v14467_v8  ;;  %v14494_v53 = vpack.i.b16 %v14476_v29, %v20901_v48  ;;  %v3981_v50 = vcombine.low %v14461_v5, %v14467_v8  ;;  %v14553_v5 = vld [vmem:[%s14007_s25 + $0x78] sm:$0x7f] }
  0x56   : > { %21968 = vst [vmem:[#allocation65_spill] sm:$0xff] %v14476_v29  ;;  %21969 = vst [vmem:[#allocation66_spill] sm:$0xff] %v14482_v34  ;;  %v14503_v24 = vpack.i.b16 %v14041_v38, %v14065_v47  ;;  %v3978_v3 = vcombine.low %v3970_v22, %v14482_v34  ;;  %v14507_v32 = vrot.slane %v5796_v63, %v14005_v12 }
  0x57   : > { %21970 = vst [vmem:[#allocation67_spill] sm:$0xff] %v14485_v17  ;;  %21971 = vst [vmem:[#allocation68_spill] sm:$0xff] %v14489_v55  ;;  %v3982_v48 = vcombine.low %v14485_v17, %v14489_v55  ;;  %v751_v29 = vcombine.low %v14032_v33, %v14045_v40  ;;  %v3979_v28 = vcombine.low %v14414_v54, %v14494_v53 }
  0x58   : > { %21972 = vst [vmem:[#allocation69_spill] sm:$0xff] %v14494_v53  ;;  %21973 = vst [vmem:[#allocation70_spill] sm:$0xff] %v14503_v24  ;;  %v14516_v16 = vrot.slane %v3981_v50, %v14005_v12  ;;  %v753_v22 = vcombine.low %v14499_v42, %v14038_v37  ;;  %13454 = vmatprep.mubr.msk.bf16.mxu1 %vm682_vm0, %v3978_v3  ;;  %v754_v33 = vcombine.low %v14061_v46, %v14503_v24  ;;  %v2100_v50 = vld [vmem:[%s14007_s25 + $0x50] sm:$0xff] }
  0x59   : > { %21974 = vst [vmem:[#allocation71_spill] sm:$0xff] %v14507_v32  ;;  %v14523_v63 = vrot.slane %v3982_v48, %v14005_v12  ;;  %v761_v34 = vrot.slane %v751_v29, %v14005_v12  ;;  %v558_v53 = vunpack.i.h.s16 %v14076_v56  ;;  %v2101_v32 = vld [vmem:[%s14007_s25 + $0x58] sm:$0x7f]  ;;  %v3989_v6 = vrot.slane %v3979_v28, %v14005_v12 }
  0x5a   : > { %21975 = vst [vmem:[#allocation72_spill] sm:$0xff] %v14516_v16  ;;  %v768_v54 = vrot.slane %v752_v25, %v14005_v12  ;;  %v775_v58 = vrot.slane %v753_v22, %v14005_v12  ;;  %v564_v48 = vunpack.i.l.s16 %v14121_v18  ;;  %v782_v29 = vrot.slane %v754_v33, %v14005_v12 }
  0x5b   : > { %21976 = vst [vmem:[#allocation73_spill] sm:$0xff] %v14523_v63  ;;  %v4012_v3 = vcombine.low %v14516_v16, %v14523_v63  ;;  %v14539_v24 = vpack.i.b16 %v14087_v60, %v558_v53  ;;  %v801_v28 = vcombine.low %v14106_v10, %v14115_v15  ;;  %v4011_v25 = vcombine.low %v3989_v6, %v14447_v49  ;;  %v2103_v53 = vld [vmem:[%s14007_s25 + $0x68] sm:$0x7f]  ;;  %v2104_v16 = vld [vmem:[%s14007_s25 + $0x70] sm:$0xff] }
  0x5c   : > { %v783_v55 = vcombine.low %v761_v34, %v768_v54  ;;  %v822_v22 = vrot.slane %v564_v48, %v14005_v12  ;;  %v2117_v43 = vpack.c.bf16 %v2101_v32, %v2100_v50  ;;  %v784_v8 = vcombine.low %v775_v58, %v782_v29 }
  0x5d   : > { %v4026_v23 = vrot.slane %v4012_v3, %v14005_v12  ;;  %v800_v63 = vcombine.low %v14103_v9, %v14539_v24  ;;  %v815_v33 = vrot.slane %v801_v28, %v14005_v12  ;;  %v4019_v11 = vrot.slane %v4011_v25, %v14005_v12 }
  0x5e   : > { %v791_v6 = vrot.slane %v783_v55, %v14005_v12  ;;  %v837_v54 = vrot.slane %v822_v22, %v14005_v12  ;;  %v2118_v34 = vpack.c.bf16 %v2103_v53, %v2102_v2  ;;  %v798_v50 = vrot.slane %v784_v8, %v14005_v12 }
  0x5f   : > { %v808_v58 = vrot.slane %v800_v63, %v14005_v12  ;;  %v12988_v48 = vpack.c.bf16 %v2101_v32, %v2101_v32  ;;  %v2379_v3 = vrot.slane %v2117_v43, %v14005_v12  ;;  %v4027_v29 = vcombine.low %v4019_v11, %v4026_v23 }
  0x60   : > { %v2427_v28 = vrot.slane %v2118_v34, %v14005_v12  ;;  %v14564_v49 = vcombine.high %v14485_v17, %v14485_v17  ;;  %v2119_v25 = vpack.c.bf16 %v14553_v5, %v2104_v16  ;;  %v799_v55 = vcombine.low %v791_v6, %v798_v50 }
  0x61   : > { %v823_v9 = vcombine.low %v808_v58, %v815_v33  ;;  %v2386_v2 = vrot.slane %v12988_v48, %v14005_v12  ;;  %v2387_v22 = vcombine.high %v2379_v3, %v2379_v3  ;;  %13455 = vmatmul.mubr.msk.bf16.gmra.mrb[4].mxu1 %vm682_vm0, %v4027_v29  ;;  %v14570_v32 = vrot.slane %v2379_v3, %v14005_v12  ;;  %v14606_v29 = vld [vmem:[%s20840_s2 + $0x18] sm:$0xff]  }
  0x62   : > { %21977 = vst [vmem:[#allocation74_spill] sm:$0xff] %v14564_v49  ;;  %v2435_v8 = vcombine.high %v2427_v28, %v2427_v28  ;;  %v12989_v11 = vpack.c.bf16 %v2103_v53, %v2103_v53  ;;  %v14573_v43 = vrot.slane %v2427_v28, %v14005_v12  ;;  %13366 = vmatprep.mubr.msk.bf16.mxu0 %vm682_vm0, %v799_v55 }
  0x63   : > { %21978 = vst [vmem:[#allocation75_spill] sm:$0xff] %v14570_v32  ;;  %v830_v23 = vrot.slane %v823_v9, %v14005_v12  ;;  %v2388_v16 = vcombine.high %v2386_v2, %v2386_v2  ;;  %v14578_v63 = vrot.slane %v2386_v2, %v14005_v12  ;;  %v14581_v33 = vrot.slane %v2387_v22, %v14005_v12 }
  0x64   : > { %21979 = vst [vmem:[#allocation76_spill] sm:$0xff] %v14573_v43  ;;  %v14585_v6 = vcombine.high %v14570_v32, %v14570_v32  ;;  %v14588_v53 = vrot.slane %v2435_v8, %v14005_v12  ;;  %v2434_v34 = vrot.slane %v12989_v11, %v14005_v12  ;;  %v2475_v50 = vrot.slane %v2119_v25, %v14005_v12 }
  0x65   : > { %21980 = vst [vmem:[#allocation77_spill] sm:$0xff] %v14578_v63  ;;  %21981 = vst [vmem:[#allocation78_spill] sm:$0xff] %v14581_v33  ;;  %v838_v58 = vcombine.low %v830_v23, %v837_v54  ;;  %v14593_v9 = vrot.slane %v2388_v16, %v14005_v12  ;;  %v14597_v48 = vcombine.high %v14578_v63, %v14578_v63  ;;  %v2632_v28 = vunpack.i.h.s16 %v14581_v33 }
  0x66   : > { %21982 = vst [vmem:[#allocation79_spill] sm:$0xff] %v14585_v6  ;;  %21983 = vst [vmem:[#allocation80_spill] sm:$0xff] %v14588_v53  ;;  %v14601_v3 = vcombine.high %v14581_v33, %v14581_v33  ;;  %v2634_v54 = vunpack.i.h.s16 %v14585_v6  ;;  %v2638_v25 = vunpack.i.h.s16 %v14578_v63  ;;  %v14613_v55 = vpack.i.b16 %v14581_v33, %v14564_v49 }
  0x67   : > { %21984 = vst [vmem:[#allocation81_spill] sm:$0xff] %v14593_v9  ;;  %21985 = vst [vmem:[#allocation82_spill] sm:$0xff] %v14597_v48  ;;  %13367 = vmatmul.mubr.msk.bf16.vlgmr.msra.gmra.mrb[0].mxu0 %vm682_vm0, %v838_v58  ;;  %v2640_v22 = vunpack.i.h.s16 %v14593_v9  ;;  %v14621_v11 = vcombine.high %v14593_v9, %v14593_v9  ;;  %v14624_v23 = vpack.i.b16 %v14585_v6, %v2632_v28  ;;  %v21994_v33 = vunpack.i.h.s16 %v14597_v48 }
  0x68   : > { %21986 = vst [vmem:[#allocation83_spill] sm:$0xff] %v14601_v3  ;;  %21987 = vst [vmem:[#allocation84_spill] sm:$0xff] %v14613_v55  ;;  %v2636_v2 = vunpack.i.h.s16 %v14601_v3  ;;  %v14627_v16 = vpack.i.b16 %v14601_v3, %v2634_v54  ;;  %v14630_v49 = vpack.i.b16 %v14593_v9, %v2638_v25  ;;  %v2436_v58 = vcombine.high %v2434_v34, %v2434_v34 }
  0x69   : > { %21988 = vst [vmem:[#allocation85_spill] sm:$0xff] %v14621_v11  ;;  %21989 = vst [vmem:[#allocation86_spill] sm:$0xff] %v14624_v23  ;;  %13371 = vmatpush3.bf16.msra.mxu0 %v14234_v26  ;;  %v14637_v8 = vpack.i.b16 %v14597_v48, %v2640_v22  ;;  %v14642_v28 = vpack.i.b16 %v14621_v11, %v21994_v33  ;;  %v14645_v54 = vrot.slane %v2434_v34, %v14005_v12 }
  0x6a   : > { %21990 = vst [vmem:[#allocation87_spill] sm:$0xff] %v14627_v16  ;;  %21991 = vst [vmem:[#allocation88_spill] sm:$0xff] %v14630_v49  ;;  %v14634_v32 = vpack.i.b16 %v14578_v63, %v2636_v2  ;;  %13376 = vmatprep.subr.bf16.mxu0 %v14606_v29  ;;  %v4028_v25 = vcombine.low %v14613_v55, %v14624_v23  ;;  %v14651_v26 = vrot.slane %v2436_v58, %v14005_v12 }
  0x6b   : > { %21993 = vst [vmem:[#allocation90_spill] sm:$0xff] %v14637_v8  ;;  %21995 = vst [vmem:[#allocation91_spill] sm:$0xff] %v14642_v28  ;;  %v2483_v2 = vcombine.high %v2475_v50, %v2475_v50  ;;  %v14654_v22 = vrot.slane %v2475_v50, %v14005_v12  ;;  %v4030_v33 = vcombine.low %v14630_v49, %v14637_v8 }
  0x6c   : > { %21992 = vst [vmem:[#allocation89_spill] sm:$0xff] %v14634_v32  ;;  %21996 = vst [vmem:[#allocation92_spill] sm:$0xff] %v14645_v54  ;;  %v4029_v3 = vcombine.low %v14627_v16, %v14634_v32  ;;  %v4031_v34 = vcombine.low %v14642_v28, %v14588_v53  ;;  %v14664_v11 = vcombine.high %v14645_v54, %v14645_v54 }
  0x6d   : > { %21997 = vst [vmem:[#allocation93_spill] sm:$0xff] %v14651_v26  ;;  %21998 = vst [vmem:[#allocation94_spill] sm:$0xff] %v14654_v22  ;;  %v4038_v58 = vrot.slane %v4028_v25, %v14005_v12  ;;  %v14668_v55 = vrot.slane %v2483_v2, %v14005_v12  ;;  %v14672_v50 = vcombine.high %v14654_v22, %v14654_v22 }
  0x6e   : > { %v14676_v32 = vcombine.high %v14651_v26, %v14651_v26  ;;  %v14679_v8 = vrot.slane %v4029_v3, %v14005_v12  ;;  %v14682_v28 = vrot.slane %v4030_v33, %v14005_v12  ;;  %v4059_v49 = vrot.slane %v4031_v34, %v14005_v12 }
  0x6f   : > { %21999 = vst [vmem:[#allocation95_spill] sm:$0xff] %v14668_v55  ;;  %22000 = vst [vmem:[#allocation96_spill] sm:$0xff] %v14672_v50  ;;  %v13086_v25 = vcombine.high %v14573_v43, %v14588_v53  ;;  %v14689_v2 = vcombine.high %v14668_v55, %v14668_v55  ;;  %v2658_v16 = vunpack.i.h.s16 %v14668_v55  ;;  %v2660_v6 = vunpack.i.h.s16 %v14672_v50 }
  0x70   : > { %22001 = vst [vmem:[#allocation97_spill] sm:$0xff] %v14676_v32  ;;  %22002 = vst [vmem:[#allocation98_spill] sm:$0xff] %v14679_v8  ;;  %v14695_v3 = vpack.i.b16 %v14668_v55, %v14676_v32  ;;  %v4060_v33 = vcombine.low %v4038_v58, %v14679_v8  ;;  %v4061_v23 = vcombine.low %v14682_v28, %v4059_v49 }
  0x71   : > { %22003 = vst [vmem:[#allocation99_spill] sm:$0xff] %v14682_v28  ;;  %v4078_v34 = vcombine.low %v14645_v54, %v14651_v26  ;;  %v14702_v22 = vrot.slane %v13086_v25, %v14005_v12  ;;  %v14705_v48 = vpack.i.b16 %v14672_v50, %v2658_v16  ;;  %v14708_v53 = vpack.i.b16 %v14689_v2, %v2660_v6  ;;  %v2107_v50 = vld [vmem:[%s14007_s25 + $0x88] sm:$0x7f] }
  0x72   : > { %22004 = vst [vmem:[#allocation100_spill] sm:$0xff] %v14695_v3  ;;  %v4079_v32 = vcombine.low %v14664_v11, %v14695_v3  ;;  %v4068_v58 = vrot.slane %v4060_v33, %v14005_v12  ;;  %v4075_v49 = vrot.slane %v4061_v23, %v14005_v12  ;;  %v900_v16 = vcombine.high %v14045_v40, %v14045_v40 }
  0x73   : > { %22005 = vst [vmem:[#allocation101_spill] sm:$0xff] %v14702_v22  ;;  %22006 = vst [vmem:[#allocation102_spill] sm:$0xff] %v14705_v48  ;;  %v14716_v25 = vrot.slane %v4078_v34, %v14005_v12  ;;  %v4080_v6 = vcombine.low %v14705_v48, %v14708_v53  ;;  %v14725_v55 = vcombine.high %v14054_v44, %v14054_v44 }
  0x74   : > { %22007 = vst [vmem:[#allocation103_spill] sm:$0xff] %v14708_v53  ;;  %v4101_v8 = vrot.slane %v4079_v32, %v14005_v12  ;;  %v14729_v33 = vpack.i.b16 %v14076_v56, %v14112_v14  ;;  %v4076_v23 = vcombine.low %v4068_v58, %v4075_v49  ;;  %v12931_v3 = vpack.i.b16 %v14054_v44, %v900_v16  ;;  %v2106_v49 = vld [vmem:[%s14007_s25 + $0x80] sm:$0xff] }
  0x75   : > { %22008 = vst [vmem:[#allocation104_spill] sm:$0xff] %v14716_v25  ;;  %22009 = vst [vmem:[#allocation105_spill] sm:$0xff] %v14725_v55  ;;  %v4109_v34 = vcombine.low %v14702_v22, %v14716_v25  ;;  %v921_v28 = vcombine.low %v14045_v40, %v14049_v41  ;;  %v14737_v53 = vrot.slane %v4080_v6, %v14005_v12  ;;  %v22012_v32 = vunpack.i.h.s16 %v14058_v45 }
  0x76   : > { %22010 = vst [vmem:[#allocation106_spill] sm:$0xff] %v14729_v33  ;;  %v924_v14 = vcombine.low %v14065_v47, %v14729_v33  ;;  %13458 = vmatprep.mubr.msk.bf16.mxu1 %vm682_vm0, %v4076_v23  ;;  %v922_v40 = vcombine.low %v12931_v3, %v14499_v42  ;;  %v14755_v6 = vcombine.high %v14076_v56, %v14076_v56  ;;  %v909_v25 = vunpack.i.l.s16 %v14167_v61 }
  0x77   : > { %22011 = vst [vmem:[#allocation107_spill] sm:$0xff] %v14737_v53  ;;  %v12932_v48 = vpack.i.b16 %v14725_v55, %v22012_v32  ;;  %v14749_v16 = vrot.slane %v4109_v34, %v14005_v12  ;;  %v931_v41 = vrot.slane %v921_v28, %v14005_v12  ;;  %v4110_v32 = vcombine.low %v4101_v8, %v14737_v53 }
  0x78   : > { %22014 = vst [vmem:[#allocation109_spill] sm:$0xff] %v14755_v6  ;;  %v952_v58 = vrot.slane %v924_v14, %v14005_v12  ;;  %v938_v23 = vrot.slane %v922_v40, %v14005_v12  ;;  %v22015_v34 = vunpack.i.h.s16 %v14087_v60  ;;  %v971_v28 = vcombine.low %v14115_v15, %v14121_v18 }
  0x79   : > { %22013 = vst [vmem:[#allocation108_spill] sm:$0xff] %v14749_v16  ;;  %v923_v33 = vcombine.low %v12932_v48, %v14061_v46  ;;  %v2120_v22 = vpack.c.bf16 %v2107_v50, %v2106_v49  ;;  %v4124_v55 = vrot.slane %v4110_v32, %v14005_v12  ;;  %v992_v48 = vrot.slane %v909_v25, %v14005_v12 }
  0x7a   : > { %v14765_v3 = vpack.i.b16 %v14755_v6, %v22015_v34  ;;  %v12990_v14 = vpack.c.bf16 %v14553_v5, %v14553_v5  ;;  %v953_v53 = vcombine.low %v931_v41, %v938_v23  ;;  %v14777_v34 = vrot.slane %v971_v28, %v14005_v12 }
  0x7b   : > { %v945_v8 = vrot.slane %v923_v33, %v14005_v12  ;;  %v12991_v61 = vpack.c.bf16 %v2107_v50, %v2107_v50  ;;  %v4125_v18 = vcombine.low %v14749_v16, %v4124_v55  ;;  %v1007_v32 = vrot.slane %v992_v48, %v14005_v12 }
  0x7c   : > { %22016 = vst [vmem:[#allocation110_spill] sm:$0xff] %v14765_v3  ;;  %v970_v40 = vcombine.low %v14539_v24, %v14765_v3  ;;  %v2482_v33 = vrot.slane %v12990_v14, %v14005_v12  ;;  %v961_v25 = vrot.slane %v953_v53, %v14005_v12  ;;  %v2523_v5 = vrot.slane %v2120_v22, %v14005_v12 }
  0x7d   : > { %v954_v49 = vcombine.low %v945_v8, %v952_v58  ;;  %v2530_v41 = vrot.slane %v12991_v61, %v14005_v12  ;;  %13459 = vmatmul.mubr.msk.bf16.gmra.mrb[8].mxu1 %vm682_vm0, %v4125_v18  ;;  %v2662_v58 = vunpack.i.h.s16 %v14689_v2 }
  0x7e   : > { %v978_v15 = vrot.slane %v970_v40, %v14005_v12  ;;  %v2484_v50 = vcombine.high %v2482_v33, %v2482_v33  ;;  %v14789_v55 = vrot.slane %v2482_v33, %v14005_v12  ;;  %v2531_v8 = vcombine.high %v2523_v5, %v2523_v5 }
  0x7f   : > { %v968_v23 = vrot.slane %v954_v49, %v14005_v12  ;;  %v2532_v53 = vcombine.high %v2530_v41, %v2530_v41  ;;  %v14794_v48 = vrot.slane %v2523_v5, %v14005_v12  ;;  %v14804_v14 = vrot.slane %v2530_v41, %v14005_v12 }
  0x80   : > { %22017 = vst [vmem:[#allocation111_spill] sm:$0xff] %v14789_v55  ;;  %v993_v28 = vcombine.low %v978_v15, %v14777_v34  ;;  %v14797_v61 = vrot.slane %v2484_v50, %v14005_v12  ;;  %v14801_v18 = vcombine.high %v14789_v55, %v14789_v55  ;;  %v14808_v15 = vrot.slane %v2531_v8, %v14005_v12 }
  0x81   : > { %22018 = vst [vmem:[#allocation112_spill] sm:$0xff] %v14794_v48  ;;  %v969_v22 = vcombine.low %v961_v25, %v968_v23  ;;  %22020 = vst [vmem:[#allocation114_spill] sm:$0xff] %v14804_v14  ;;  %v14812_v49 = vcombine.high %v14794_v48, %v14794_v48  ;;  %v2664_v33 = vunpack.i.h.s16 %v14789_v55  ;;  %v14819_v41 = vpack.i.b16 %v14789_v55, %v2662_v58  ;;  %v14837_v58 = vld [vmem:[%s20840_s2 + $0x20] sm:$0xff]  }
  0x82   : > { %22019 = vst [vmem:[#allocation113_spill] sm:$0xff] %v14797_v61  ;;  %v1000_v40 = vrot.slane %v993_v28, %v14005_v12  ;;  %22021 = vst [vmem:[#allocation115_spill] sm:$0xff] %v14808_v15  ;;  %v2666_v25 = vunpack.i.h.s16 %v14797_v61  ;;  %v14823_v23 = vcombine.high %v14797_v61, %v14797_v61  ;;  %v14827_v28 = vcombine.high %v14808_v15, %v14808_v15 }
  0x83   : > { %13372 = vmatprep.mubr.msk.bf16.mxu0 %vm682_vm0, %v969_v22  ;;  %22022 = vst [vmem:[#allocation116_spill] sm:$0xff] %v14819_v41  ;;  %v14830_v8 = vpack.i.b16 %v14797_v61, %v2664_v33  ;;  %v4128_v22 = vcombine.low %v14808_v15, %v14812_v49  ;;  %v14848_v16 = vrot.slane %v2532_v53, %v14005_v12 }
  0x84   : > { %22023 = vst [vmem:[#allocation117_spill] sm:$0xff] %v14823_v23  ;;  %v1008_v50 = vcombine.low %v1000_v40, %v1007_v32  ;;  %v14840_v5 = vpack.i.b16 %v14801_v18, %v2666_v25  ;;  %v22026_v32 = vunpack.i.h.s16 %v14801_v18  ;;  %v14852_v33 = vcombine.high %v14804_v14, %v14804_v14 }
  0x85   : > { %22024 = vst [vmem:[#allocation118_spill] sm:$0xff] %v14830_v8  ;;  %22028 = vst [vmem:[#allocation121_spill] sm:$0xff] %v14848_v16  ;;  %v4126_v3 = vcombine.low %v14819_v41, %v14830_v8  ;;  %v4129_v25 = vcombine.low %v14827_v28, %v14804_v14  ;;  %v14860_v6 = vrot.slane %v4128_v22, %v14005_v12 }
  0x86   : > { %22025 = vst [vmem:[#allocation119_spill] sm:$0xff] %v14840_v5  ;;  %v14845_v40 = vpack.i.b16 %v14823_v23, %v22026_v32  ;;  %22029 = vst [vmem:[#allocation122_spill] sm:$0xff] %v14852_v33  ;;  %13373 = vmatmul.mubr.msk.bf16.vlgmr.msra.gmra.mrb[0].mxu0 %vm682_vm0, %v1008_v50  ;;  %v14867_v23 = vcombine.high %v14848_v16, %v14848_v16  ;;  %v4175_v50 = vcombine.low %v14848_v16, %v14852_v33 }
  0x87   : > { %22030 = vst [vmem:[#allocation123_spill] sm:$0xff] %v14860_v6  ;;  %v13024_v8 = vcombine.high %v14182_v31, %v14204_v27  ;;  %13377 = vmatpush3.bf16.msra.mxu0 %v14606_v29  ;;  %v14875_v22 = vrot.slane %v4126_v3, %v14005_v12  ;;  %v14878_v32 = vrot.slane %v4129_v25, %v14005_v12 }
  0x88   : > { %22027 = vst [vmem:[#allocation120_spill] sm:$0xff] %v14845_v40  ;;  %v4127_v53 = vcombine.low %v14840_v5, %v14845_v40  ;;  %22031 = vst [vmem:[#allocation124_spill] sm:$0xff] %v14867_v23  ;;  %v22034_v40 = vunpack.i.h.s16 %v14270_v51  ;;  %v2804_v5 = vcombine.low %v14248_v20, %v14251_v19  ;;  %13382 = vmatprep.subr.bf16.mxu0 %v14837_v58  ;;  %v3814_v29 = vunpack.i.l.s16 %v14867_v23 }
  0x89   : > { %22032 = vst [vmem:[#allocation125_spill] sm:$0xff] %v14875_v22  ;;  %22033 = vst [vmem:[#allocation126_spill] sm:$0xff] %v14878_v32  ;;  %v14891_v3 = vrot.slane %v4175_v50, %v14005_v12  ;;  %v14894_v25 = vrot.slane %v13024_v8, %v14005_v12  ;;  %v4159_v16 = vcombine.low %v14860_v6, %v14878_v32  ;;  %v2599_v32 = vunpack.i.h.s16 %v14345_v21 }
  0x8a   : > { %v14883_v41 = vpack.i.b16 %v14281_v39, %v22034_v40  ;;  %v4143_v33 = vrot.slane %v4127_v53, %v14005_v12  ;;  %v14899_v40 = vrot.slane %v2804_v5, %v14005_v12  ;;  %v13099_v19 = vpack.i.b16 %v14270_v51, %v14264_v0 }
  0x8b   : > { %22036 = vst [vmem:[#allocation128_spill] sm:$0xff] %v14891_v3  ;;  %22037 = vst [vmem:[#allocation129_spill] sm:$0xff] %v14894_v25  ;;  %v4419_v53 = vcombine.low %v14182_v31, %v14204_v27  ;;  %v4189_v50 = vrot.slane %v3814_v29, %v14005_v12  ;;  %v14909_v8 = vcombine.high %v14270_v51, %v14270_v51  ;;  %v2593_v27 = vunpack.i.h.s16 %v14281_v39 }
  0x8c   : > { %22035 = vst [vmem:[#allocation127_spill] sm:$0xff] %v14883_v41  ;;  %22038 = vst [vmem:[#allocation130_spill] sm:$0xff] %v14899_v40  ;;  %v4158_v23 = vcombine.low %v14875_v22, %v4143_v33  ;;  %v14913_v20 = vcombine.high %v14281_v39, %v14281_v39  ;;  %v14916_v5 = vrot.slane %v4159_v16, %v14005_v12 }
  0x8d   : > { %22039 = vst [vmem:[#allocation131_spill] sm:$0xff] %v14909_v8  ;;  %v4420_v6 = vcombine.low %v13099_v19, %v14883_v41  ;;  %v4427_v33 = vrot.slane %v4419_v53, %v14005_v12  ;;  %v4190_v22 = vcombine.low %v14891_v3, %v4189_v50  ;;  %v2595_v51 = vunpack.i.h.s16 %v14909_v8 }
  0x8e   : > { %22040 = vst [vmem:[#allocation132_spill] sm:$0xff] %v14913_v20  ;;  %22041 = vst [vmem:[#allocation133_spill] sm:$0xff] %v14916_v5  ;;  %v4166_v29 = vrot.slane %v4158_v23, %v14005_v12  ;;  %v2597_v31 = vunpack.i.h.s16 %v14913_v20  ;;  %v2601_v23 = vunpack.i.h.s16 %v14362_v30  ;;  %v14934_v50 = vpack.i.b16 %v14909_v8, %v2593_v27 }
  0x8f   : > { %v4434_v0 = vrot.slane %v4420_v6, %v14005_v12  ;;  %v4435_v16 = vcombine.low %v4427_v33, %v14894_v25  ;;  %v4197_v53 = vrot.slane %v4190_v22, %v14005_v12  ;;  %v14939_v6 = vpack.i.b16 %v14913_v20, %v2595_v51 }
  0x90   : > { %v4174_v19 = vcombine.low %v4166_v29, %v14916_v5  ;;  %22042 = vst [vmem:[#allocation134_spill] sm:$0xff] %v14934_v50  ;;  %v14942_v33 = vpack.i.b16 %v14345_v21, %v2597_v31  ;;  %v14946_v29 = vpack.i.b16 %v14362_v30, %v2599_v32  ;;  %v14949_v22 = vpack.i.b16 %v14366_v7, %v2601_v23 }
  0x91   : > { %v4436_v41 = vcombine.low %v14899_v40, %v4434_v0  ;;  %v4443_v3 = vrot.slane %v4435_v16, %v14005_v12  ;;  %22043 = vst [vmem:[#allocation135_spill] sm:$0xff] %v14939_v6  ;;  %v2854_v27 = vcombine.low %v14352_v57, %v14356_v13  ;;  %v12940_v0 = vpack.i.b16 %v14038_v37, %v14058_v45  ;;  %v22053_v40 = vld [vmem:[#allocation49_spill] sm:$0xff] }
  0x92   : > { %22044 = vst [vmem:[#allocation136_spill] sm:$0xff] %v14942_v33  ;;  %13462 = vmatprep.mubr.msk.bf16.mxu1 %vm682_vm0, %v4174_v19  ;;  %22045 = vst [vmem:[#allocation137_spill] sm:$0xff] %v14946_v29  ;;  %v2806_v31 = vcombine.low %v14934_v50, %v14939_v6  ;;  %v12941_v32 = vpack.i.b16 %v14106_v10, %v14087_v60  ;;  %v1113_v16 = vcombine.low %v14035_v35, %v14054_v44 }
  0x93   : > { %22046 = vst [vmem:[#allocation138_spill] sm:$0xff] %v14949_v22  ;;  %13463 = vmatmul.mubr.msk.bf16.gmra.mrb[12].mxu1 %vm682_vm0, %v4197_v53  ;;  %v4450_v51 = vrot.slane %v4436_v41, %v14005_v12  ;;  %v2852_v19 = vcombine.low %v14942_v33, %v14946_v29  ;;  %v14966_v13 = vrot.slane %v2854_v27, %v14005_v12  ;;  %v2621_v25 = vunpack.i.h.s16 %v22053_v40  ;;  %v22128_v33 = vld [vmem:[#allocation59_spill] sm:$0xff] }
  0x94   : > { %v4452_v53 = vcombine.low %v14949_v22, %v14339_v52  ;;  %v1114_v41 = vcombine.low %v12940_v0, %v14083_v59  ;;  %v14972_v5 = vrot.slane %v2806_v31, %v14005_v12  ;;  %v1115_v30 = vcombine.low %v14090_v62, %v14041_v38  ;;  %v2108_v22 = vld [vmem:[%s14007_s25 + $0x90] sm:$0xff] }
  0x95   : > { %22047 = vst [vmem:[#allocation139_spill] sm:$0xff] %v14966_v13  ;;  %v4451_v23 = vcombine.low %v4443_v3, %v4450_v51  ;;  %v1116_v35 = vcombine.low %v14076_v56, %v12941_v32  ;;  %v14978_v20 = vrot.slane %v2852_v19, %v14005_v12  ;;  %v1123_v21 = vrot.slane %v1113_v16, %v14005_v12 }
  0x96   : > { %22048 = vst [vmem:[#allocation140_spill] sm:$0xff] %v14972_v5  ;;  %v4459_v27 = vrot.slane %v4452_v53, %v14005_v12  ;;  %v1130_v8 = vrot.slane %v1114_v41, %v14005_v12  ;;  %v1137_v3 = vrot.slane %v1115_v30, %v14005_v12  ;;  %v14988_v38 = vcombine.high %v14144_v36, %v14144_v36  ;;  %v22051_v53 = vld [vmem:[#allocation39_spill] sm:$0xff] }
  0x97   : > { %22049 = vst [vmem:[#allocation141_spill] sm:$0xff] %v14978_v20  ;;  %13468 = vmatprep.mubr.msk.bf16.mxu1 %vm682_vm0, %v4451_v23  ;;  %v1144_v0 = vrot.slane %v1116_v35, %v14005_v12  ;;  %v22050_v51 = vcombine.low %v14171_v1, %v14174_v4  ;;  %v4460_v32 = vcombine.low %v14972_v5, %v14978_v20  ;;  %v21028_v41 = vunpack.i.h.s16 %v22051_v53  ;;  %v22052_v35 = vld [vmem:[#allocation43_spill] sm:$0xff]  ;;  %v22061_v5 = vld [vmem:[#allocation48_spill] sm:$0xff] }
  0x98   : > { %v4461_v16 = vcombine.low %v4459_v27, %v14966_v13  ;;  %v1145_v19 = vcombine.low %v1123_v21, %v1130_v8  ;;  %v1102_v23 = vunpack.i.l.s16 %v14988_v38  ;;  %v2619_v7 = vunpack.i.h.s16 %v22052_v35  ;;  %v22060_v13 = vld [vmem:[#allocation41_spill] sm:$0xff] }
  0x99   : > { %v1184_v31 = vrot.slane %v22050_v51, %v14005_v12  ;;  %v1146_v30 = vcombine.low %v1137_v3, %v1144_v0  ;;  %v4468_v52 = vrot.slane %v4460_v32, %v14005_v12  ;;  %v22054_v51 = vld [vmem:[#allocation62_spill] sm:$0xff]  ;;  %v15010_v8 = vpack.i.b16 %v22052_v35, %v21028_v41 }
  0x9a   : > { %v4475_v1 = vrot.slane %v4461_v16, %v14005_v12  ;;  %v1153_v4 = vrot.slane %v1145_v19, %v14005_v12  ;;  %v2623_v20 = vunpack.i.h.s16 %v22054_v51  ;;  %v1176_v21 = vrot.slane %v1102_v23, %v14005_v12  ;;  %v22058_v16 = vld [vmem:[#allocation63_spill] sm:$0xff] }
  0x9b   : > { %v1160_v27 = vrot.slane %v1146_v30, %v14005_v12  ;;  %22055 = vst [vmem:[#allocation49_spill] sm:$0xff] %v15010_v8  ;;  %v15013_v3 = vpack.i.b16 %v22053_v40, %v2619_v7  ;;  %v15016_v32 = vpack.i.b16 %v22054_v51, %v2621_v25  ;;  %v2855_v30 = vcombine.low %v22061_v5, %v22060_v13  ;;  %v15026_v23 = vld [vmem:[%s20842_s4 + $0x28] sm:$0xff]  }
  0x9c   : > { %v4476_v0 = vcombine.low %v4468_v52, %v4475_v1  ;;  %v15019_v19 = vpack.i.b16 %v22058_v16, %v2623_v20  ;;  %v1191_v35 = vrot.slane %v1176_v21, %v14005_v12  ;;  %v22062_v7 = vld [vmem:[#allocation47_spill] sm:$0xff]  ;;  %v2625_v5 = vunpack.i.h.s16 %v22058_v16  ;;  %v22066_v21 = vld [vmem:[#allocation46_spill] sm:$0xff] }
  0x9d   : > { %22056 = vst [vmem:[#allocation62_spill] sm:$0xff] %v15013_v3  ;;  %22057 = vst [vmem:[#allocation142_spill] sm:$0xff] %v15016_v32  ;;  %v1161_v41 = vcombine.low %v1153_v4, %v1160_v27  ;;  %v2902_v52 = vcombine.low %v15010_v8, %v15013_v3  ;;  %v13100_v25 = vpack.i.b16 %v22051_v53, %v22062_v7  ;;  %v2627_v1 = vunpack.i.h.s16 %v14485_v17  ;;  %v22064_v4 = vld [vmem:[#allocation50_spill] sm:$0xff]  ;;  %v15051_v8 = vld [vmem:[%s20840_s2 + $0x28] sm:$0xff]  }
  0x9e   : > { %22059 = vst [vmem:[#allocation143_spill] sm:$0xff] %v15019_v19  ;;  %13469 = vmatmul.mubr.msk.bf16.vlgmr.msra.gmra.mrb[0].mxu1 %vm682_vm0, %v4476_v0  ;;  %v15035_v20 = vrot.slane %v2855_v30, %v14005_v12  ;;  %v2903_v40 = vcombine.low %v15016_v32, %v15019_v19  ;;  %v1192_v51 = vcombine.low %v1184_v31, %v1191_v35  ;;  %v22071_v35 = vld [vmem:[#allocation78_spill] sm:$0xff] }
  0x9f   : > { %13485 = vmatpush3.bf16.msra.mxu1 %v22064_v4  ;;  %13378 = vmatprep.mubr.msk.bf16.mxu0 %vm682_vm0, %v1161_v41  ;;  %v15044_v27 = vrot.slane %v2902_v52, %v14005_v12  ;;  %v4477_v0 = vcombine.low %v22066_v21, %v13100_v25  ;;  %v15057_v4 = vpack.i.b16 %v14485_v17, %v2625_v5  ;;  %v22069_v41 = vld [vmem:[#allocation68_spill] sm:$0xff]  ;;  %v22072_v52 = vld [vmem:[#allocation75_spill] sm:$0xff]  ;;  %v22073_v5 = vunpack.i.h.s16 %v14058_v45 }
  0xa0   : > { %22063 = vst [vmem:[#allocation48_spill] sm:$0xff] %v15035_v20  ;;  %v15054_v16 = vrot.slane %v2903_v40, %v14005_v12  ;;  %v15060_v31 = vpack.i.b16 %v22069_v41, %v2627_v1  ;;  %v13025_v19 = vcombine.high %v22072_v52, %v22071_v35  ;;  %13502 = vmatprep.subr.bf16.mxu1 %v15026_v23  ;;  %v22074_v1 = vunpack.i.h.s16 %v14038_v37 }
  0xa1   : > { %22065 = vst [vmem:[#allocation47_spill] sm:$0xff] %v15044_v27  ;;  %22068 = vst [vmem:[#allocation144_spill] sm:$0xff] %v15057_v4  ;;  %13379 = vmatmul.mubr.msk.bf16.vlgmr.msra.gmra.mrb[0].mxu0 %vm682_vm0, %v1192_v51  ;;  %v4484_v25 = vrot.slane %v4477_v0, %v14005_v12  ;;  %v2952_v30 = vcombine.low %v14578_v63, %v14593_v9  ;;  %v4502_v40 = vcombine.low %v22072_v52, %v22071_v35 }
  0xa2   : > { %22067 = vst [vmem:[#allocation50_spill] sm:$0xff] %v15054_v16  ;;  %22070 = vst [vmem:[#allocation145_spill] sm:$0xff] %v15060_v31  ;;  %v1262_v17 = vpack.i.b16 %v22074_v1, %v22073_v5  ;;  %v4486_v41 = vcombine.low %v15044_v27, %v15054_v16  ;;  %v2904_v3 = vcombine.low %v15057_v4, %v15060_v31  ;;  %13383 = vmatpush3.bf16.msra.mxu0 %v14837_v58  ;;  %v22079_v27 = vld [vmem:[#allocation5_spill] sm:$0xff] }
  0xa3   : > { %v15080_v51 = vrot.slane %v13025_v19, %v14005_v12  ;;  %v22076_v0 = vunpack.i.h.s16 %v14087_v60  ;;  %v22077_v9 = vunpack.i.h.s16 %v14106_v10  ;;  %v4485_v32 = vcombine.low %v15035_v20, %v4484_v25  ;;  %13388 = vmatprep.subr.bf16.mxu0 %v15051_v8  ;;  %v22082_v20 = vld [vmem:[#allocation13_spill] sm:$0xff] }
  0xa4   : > { %v15089_v5 = vrot.slane %v2952_v30, %v14005_v12  ;;  %v4509_v1 = vrot.slane %v4502_v40, %v14005_v12  ;;  %v1267_v16 = vcombine.low %v22079_v27, %v14499_v42  ;;  %v4500_v19 = vrot.slane %v4486_v41, %v14005_v12 }
  0xa5   : > { %22075 = vst [vmem:[#allocation78_spill] sm:$0xff] %v15080_v51  ;;  %v1263_v63 = vpack.i.b16 %v22077_v9, %v22076_v0  ;;  %v15097_v58 = vrot.slane %v2904_v3, %v14005_v12  ;;  %v1268_v31 = vcombine.low %v1262_v17, %v14061_v46  ;;  %v22081_v9 = vld [vmem:[#allocation6_spill] sm:$0xff]  ;;  %v4493_v30 = vrot.slane %v4485_v32, %v14005_v12 }
  0xa6   : > { %22078 = vst [vmem:[#allocation75_spill] sm:$0xff] %v15089_v5  ;;  %v1269_v25 = vcombine.low %v14065_v47, %v22081_v9  ;;  %v4511_v40 = vcombine.low %v15080_v51, %v15089_v5  ;;  %v1277_v42 = vrot.slane %v1267_v16, %v14005_v12  ;;  %v1101_v17 = vunpack.i.h.s16 %v22082_v20 }
  0xa7   : > { %22080 = vst [vmem:[#allocation5_spill] sm:$0xff] %v15097_v58  ;;  %v1270_v0 = vcombine.low %v14539_v24, %v1263_v63  ;;  %v4510_v27 = vcombine.low %v15097_v58, %v4509_v1  ;;  %v1284_v41 = vrot.slane %v1268_v31, %v14005_v12  ;;  %v4501_v4 = vcombine.low %v4493_v30, %v4500_v19 }
  0xa8   : > { %v1291_v3 = vrot.slane %v1269_v25, %v14005_v12  ;;  %v4525_v13 = vrot.slane %v4511_v40, %v14005_v12  ;;  %v1258_v21 = vunpack.i.h.s16 %v14988_v38  ;;  %v22083_v16 = vunpack.i.h.s16 %v14144_v36 }
  0xa9   : > { %v1298_v32 = vrot.slane %v1270_v0, %v14005_v12  ;;  %v4518_v51 = vrot.slane %v4510_v27, %v14005_v12  ;;  %v1299_v63 = vcombine.low %v1277_v42, %v1284_v41  ;;  %v15119_v31 = vpack.i.b16 %v14988_v38, %v1101_v17  ;;  %13472 = vmatprep.mubr.msk.bf16.mxu1 %vm682_vm0, %v4501_v4  ;;  %v22086_v41 = vld [vmem:[#allocation80_spill] sm:$0xff] }
  0xaa   : > { %v12947_v1 = vpack.i.b16 %v22082_v20, %v22083_v16  ;;  %v1330_v19 = vrot.slane %v1258_v21, %v14005_v12  ;;  %v15125_v30 = vcombine.high %v22082_v20, %v22082_v20  ;;  %v15129_v40 = vcombine.high %v14573_v43, %v14573_v43 }
  0xab   : > { %22084 = vst [vmem:[#allocation6_spill] sm:$0xff] %v15119_v31  ;;  %v1300_v25 = vcombine.low %v1291_v3, %v1298_v32  ;;  %v4526_v0 = vcombine.low %v4518_v51, %v4525_v13  ;;  %v1307_v42 = vrot.slane %v1299_v63, %v14005_v12  ;;  %v15135_v17 = vcombine.high %v22086_v41, %v22086_v41 }
  0xac   : > { %22085 = vst [vmem:[#allocation13_spill] sm:$0xff] %v15129_v40  ;;  %v1316_v27 = vcombine.low %v12947_v1, %v15119_v31  ;;  %v1345_v3 = vrot.slane %v1330_v19, %v14005_v12  ;;  %v15140_v32 = vpack.i.b16 %v15125_v30, %v1258_v21  ;;  %v21048_v16 = vunpack.i.h.s16 %v14573_v43  ;;  %v22134_v31 = vld [vmem:[#allocation8_spill] sm:$0xff] }
  0xad   : > { %22087 = vst [vmem:[#allocation80_spill] sm:$0xff] %v15135_v17  ;;  %v1314_v4 = vrot.slane %v1300_v25, %v14005_v12  ;;  %13473 = vmatmul.mubr.msk.bf16.gmra.mrb[4].mxu1 %vm682_vm0, %v4526_v0  ;;  %v2645_v51 = vunpack.i.h.s16 %v22086_v41  ;;  %v2647_v63 = vunpack.i.h.s16 %v15129_v40  ;;  %v2649_v1 = vunpack.i.h.s16 %v15135_v17 }
  0xae   : > { %v15145_v13 = vrot.slane %v1316_v27, %v14005_v12  ;;  %v2651_v25 = vunpack.i.h.s16 %v14645_v54  ;;  %v2653_v19 = vunpack.i.h.s16 %v14651_v26  ;;  %v15155_v21 = vpack.i.b16 %v22086_v41, %v21048_v16 }
  0xaf   : > { %v1315_v5 = vcombine.low %v1307_v42, %v1314_v4  ;;  %v15160_v27 = vpack.i.b16 %v15129_v40, %v2645_v51  ;;  %v15163_v58 = vpack.i.b16 %v15135_v17, %v2647_v63  ;;  %v15166_v42 = vpack.i.b16 %v14645_v54, %v2649_v1  ;;  %v22095_v54 = vld [vmem:[#allocation96_spill] sm:$0xff] }
  0xb0   : > { %22088 = vst [vmem:[#allocation146_spill] sm:$0xff] %v15155_v21  ;;  %v1331_v0 = vcombine.low %v14777_v34, %v15145_v13  ;;  %v15170_v4 = vpack.i.b16 %v14651_v26, %v2651_v25  ;;  %v15173_v16 = vpack.i.b16 %v14664_v11, %v2653_v19  ;;  %v22094_v34 = vld [vmem:[#allocation82_spill] sm:$0xff]  ;;  %v21064_v40 = vunpack.i.h.s16 %v14794_v48 }
  0xb1   : > { %22089 = vst [vmem:[#allocation147_spill] sm:$0xff] %v15160_v27  ;;  %22090 = vst [vmem:[#allocation148_spill] sm:$0xff] %v15163_v58  ;;  %13384 = vmatprep.mubr.msk.bf16.mxu0 %vm682_vm0, %v1315_v5  ;;  %v13101_v51 = vpack.i.b16 %v14573_v43, %v22094_v34  ;;  %v2999_v17 = vcombine.low %v15160_v27, %v15163_v58  ;;  %v2671_v1 = vunpack.i.h.s16 %v14808_v15  ;;  %v22096_v5 = vld [vmem:[#allocation95_spill] sm:$0xff]  ;;  %v22097_v26 = vld [vmem:[#allocation94_spill] sm:$0xff] }
  0xb2   : > { %22091 = vst [vmem:[#allocation149_spill] sm:$0xff] %v15166_v42  ;;  %22092 = vst [vmem:[#allocation150_spill] sm:$0xff] %v15170_v4  ;;  %v1338_v63 = vrot.slane %v1331_v0, %v14005_v12  ;;  %v3002_v57 = vcombine.low %v22096_v5, %v22095_v54  ;;  %v3000_v25 = vcombine.low %v15166_v42, %v15170_v4  ;;  %v2109_v27 = vld [vmem:[%s14007_s25 + $0x98] sm:$0x7f] }
  0xb3   : > { %22093 = vst [vmem:[#allocation151_spill] sm:$0xff] %v15173_v16  ;;  %v4527_v19 = vcombine.low %v13101_v51, %v15155_v21  ;;  %v4528_v29 = vcombine.low %v15173_v16, %v22097_v26  ;;  %v15192_v0 = vpack.i.b16 %v14808_v15, %v21064_v40  ;;  %v15197_v6 = vrot.slane %v2999_v17, %v14005_v12  ;;  %v15208_v51 = vld [vmem:[%s20840_s2 + $0x30] sm:$0xff]  }
  0xb4   : > { %v1346_v58 = vcombine.low %v1338_v63, %v1345_v3  ;;  %v15200_v54 = vpack.i.b16 %v14812_v49, %v2671_v1  ;;  %v15203_v4 = vrot.slane %v3002_v57, %v14005_v12  ;;  %v15211_v40 = vrot.slane %v3000_v25, %v14005_v12 }
  0xb5   : > { %22098 = vst [vmem:[#allocation82_spill] sm:$0xff] %v15192_v0  ;;  %22099 = vst [vmem:[#allocation96_spill] sm:$0xff] %v15197_v6  ;;  %v4535_v21 = vrot.slane %v4527_v19, %v14005_v12  ;;  %v4542_v3 = vrot.slane %v4528_v29, %v14005_v12  ;;  %v3048_v17 = vcombine.low %v14689_v2, %v14789_v55  ;;  %v2673_v15 = vunpack.i.h.s16 %v14812_v49 }
  0xb6   : > { %22100 = vst [vmem:[#allocation94_spill] sm:$0xff] %v15200_v54  ;;  %22101 = vst [vmem:[#allocation152_spill] sm:$0xff] %v15203_v4  ;;  %13385 = vmatmul.mubr.msk.bf16.vlgmr.msra.gmra.mrb[0].mxu0 %vm682_vm0, %v1346_v58  ;;  %v3050_v57 = vcombine.low %v15192_v0, %v15200_v54  ;;  %v13102_v63 = vpack.i.b16 %v14794_v48, %v14801_v18  ;;  %v2121_v1 = vpack.c.bf16 %v2109_v27, %v2108_v22  ;;  %v22105_v54 = vld [vmem:[#allocation121_spill] sm:$0xff] }
  0xb7   : > { %22102 = vst [vmem:[#allocation153_spill] sm:$0xff] %v15211_v40  ;;  %v4543_v25 = vcombine.low %v4535_v21, %v15197_v6  ;;  %v4544_v19 = vcombine.low %v15211_v40, %v4542_v3  ;;  %v15226_v29 = vrot.slane %v3048_v17, %v14005_v12  ;;  %v2675_v2 = vunpack.i.h.s16 %v14827_v28  ;;  %13389 = vmatpush3.bf16.msra.mxu0 %v15051_v8  ;;  %v22109_v40 = vld [vmem:[#allocation122_spill] sm:$0xff] }
  0xb8   : > { %v15231_v58 = vrot.slane %v3050_v57, %v14005_v12  ;;  %v4560_v0 = vcombine.low %v14797_v61, %v13102_v63  ;;  %v2677_v22 = vunpack.i.h.s16 %v14804_v14  ;;  %v2679_v49 = vunpack.i.h.s16 %v22105_v54  ;;  %13394 = vmatprep.subr.bf16.mxu0 %v15208_v51 }
  0xb9   : > { %22103 = vst [vmem:[#allocation154_spill] sm:$0xff] %v15226_v29  ;;  %v4551_v21 = vrot.slane %v4543_v25, %v14005_v12  ;;  %v4558_v3 = vrot.slane %v4544_v19, %v14005_v12  ;;  %v4568_v17 = vcombine.low %v15203_v4, %v15226_v29  ;;  %v15242_v8 = vpack.i.b16 %v14827_v28, %v2673_v15 }
  0xba   : > { %22104 = vst [vmem:[#allocation155_spill] sm:$0xff] %v15231_v58  ;;  %v4567_v57 = vrot.slane %v4560_v0, %v14005_v12  ;;  %v15246_v63 = vpack.i.b16 %v14804_v14, %v2675_v2  ;;  %v15249_v6 = vpack.i.b16 %v22105_v54, %v2677_v22  ;;  %v15252_v55 = vpack.i.b16 %v22109_v40, %v2679_v49  ;;  %v22111_v2 = vld [vmem:[#allocation105_spill] sm:$0xff] }
  0xbb   : > { %22106 = vst [vmem:[#allocation156_spill] sm:$0xff] %v15242_v8  ;;  %v4559_v25 = vcombine.low %v4551_v21, %v4558_v3  ;;  %v4576_v19 = vrot.slane %v4568_v17, %v14005_v12  ;;  %v4347_v61 = vrot.slane %v2121_v1, %v14005_v12  ;;  %v13096_v29 = vpack.c.bf16 %v2109_v27, %v2109_v27  ;;  %v22112_v27 = vld [vmem:[#allocation109_spill] sm:$0xff]  ;;  %v22113_v3 = vld [vmem:[#allocation7_spill] sm:$0xff] }
  0xbc   : > { %22107 = vst [vmem:[#allocation157_spill] sm:$0xff] %v15246_v63  ;;  %22108 = vst [vmem:[#allocation158_spill] sm:$0xff] %v15249_v6  ;;  %v4569_v15 = vcombine.low %v4567_v57, %v15231_v58  ;;  %v3051_v28 = vcombine.low %v15242_v8, %v15246_v63  ;;  %v3097_v0 = vcombine.low %v15249_v6, %v15252_v55  ;;  %v22118_v63 = vld [vmem:[#allocation14_spill] sm:$0xff] }
  0xbd   : > { %22110 = vst [vmem:[#allocation159_spill] sm:$0xff] %v15252_v55  ;;  %v12954_v22 = vpack.i.b16 %v14061_v46, %v22111_v2  ;;  %13476 = vmatprep.mubr.msk.bf16.mxu1 %vm682_vm0, %v4559_v25  ;;  %v4355_v49 = vcombine.high %v4347_v61, %v4347_v61  ;;  %v15265_v21 = vrot.slane %v4347_v61, %v14005_v12 }
  0xbe   : > { %v4354_v1 = vrot.slane %v13096_v29, %v14005_v12  ;;  %v12956_v17 = vpack.i.b16 %v22113_v3, %v22112_v27  ;;  %v4583_v57 = vrot.slane %v4569_v15, %v14005_v12  ;;  %v15272_v14 = vrot.slane %v3051_v28, %v14005_v12  ;;  %v22117_v28 = vld [vmem:[#allocation11_spill] sm:$0xff] }
  0xbf   : > { %v15275_v54 = vrot.slane %v3097_v0, %v14005_v12  ;;  %v1423_v25 = vcombine.low %v14054_v44, %v14058_v45  ;;  %v15280_v2 = vrot.slane %v4355_v49, %v14005_v12  ;;  %v1424_v27 = vcombine.low %v12954_v22, %v14090_v62 }
  0xc0   : > { %22114 = vst [vmem:[#allocation105_spill] sm:$0xff] %v15272_v14  ;;  %v4356_v61 = vcombine.high %v4354_v1, %v4354_v1  ;;  %v15283_v29 = vrot.slane %v4354_v1, %v14005_v12  ;;  %v4584_v58 = vcombine.low %v4576_v19, %v4583_v57  ;;  %v1425_v0 = vcombine.low %v22117_v28, %v14076_v56 }
  0xc1   : > { %22115 = vst [vmem:[#allocation109_spill] sm:$0xff] %v15275_v54  ;;  %22116 = vst [vmem:[#allocation7_spill] sm:$0xff] %v15280_v2  ;;  %v4601_v15 = vcombine.low %v15272_v14, %v15275_v54  ;;  %v1426_v55 = vcombine.low %v14087_v60, %v12956_v17  ;;  %v4585_v44 = vcombine.low %v15265_v21, %v15280_v2 }
  0xc2   : > { %v13103_v45 = vcombine.high %v15265_v21, %v15280_v2  ;;  %v15296_v49 = vrot.slane %v4356_v61, %v14005_v12  ;;  %v15300_v19 = vcombine.high %v15283_v29, %v15283_v29  ;;  %13477 = vmatmul.mubr.msk.bf16.gmra.mrb[8].mxu1 %vm682_vm0, %v4584_v58  ;;  %v1433_v1 = vrot.slane %v1423_v25, %v14005_v12  ;;  %v22119_v25 = vld [vmem:[#allocation9_spill] sm:$0xff] }
  0xc3   : > { %v4609_v22 = vrot.slane %v4601_v15, %v14005_v12  ;;  %v1440_v17 = vrot.slane %v1424_v27, %v14005_v12  ;;  %v1447_v57 = vrot.slane %v1425_v0, %v14005_v12  ;;  %v4593_v28 = vrot.slane %v4585_v44, %v14005_v12  ;;  %v22121_v27 = vld [vmem:[#allocation12_spill] sm:$0xff] }
  0xc4   : > { %v4600_v54 = vrot.slane %v13103_v45, %v14005_v12  ;;  %v4400_v61 = vunpack.i.l.s16 %v15300_v19  ;;  %v4618_v14 = vcombine.low %v15283_v29, %v15296_v49  ;;  %v1454_v4 = vrot.slane %v1426_v55, %v14005_v12 }
  0xc5   : > { %v1455_v58 = vcombine.low %v1433_v1, %v1440_v17  ;;  %v1413_v15 = vunpack.i.l.s16 %v15125_v30  ;;  %v22120_v6 = vpack.i.b16 %v22118_v63, %v22119_v25  ;;  %v1473_v8 = vcombine.low %v22082_v20, %v14988_v38  ;;  %v22123_v38 = vld [vmem:[#allocation29_spill] sm:$0xff] }
  0xc6   : > { %v4602_v0 = vcombine.low %v4593_v28, %v4600_v54  ;;  %v4625_v44 = vrot.slane %v4618_v14, %v14005_v12  ;;  %v4632_v45 = vrot.slane %v4400_v61, %v14005_v12  ;;  %v1456_v16 = vcombine.low %v1447_v57, %v1454_v4  ;;  %v22122_v54 = vld [vmem:[#allocation16_spill] sm:$0xff]  ;;  %v22125_v57 = vld [vmem:[#allocation30_spill] sm:$0xff] }
  0xc7   : > { %v1472_v40 = vcombine.low %v22121_v27, %v22120_v6  ;;  %v1463_v42 = vrot.slane %v1455_v58, %v14005_v12  ;;  %v1494_v30 = vrot.slane %v1413_v15, %v14005_v12  ;;  %v15327_v6 = vrot.slane %v1473_v8, %v14005_v12  ;;  %v22127_v15 = vld [vmem:[#allocation36_spill] sm:$0xff] }
  0xc8   : > { %v4616_v1 = vrot.slane %v4602_v0, %v14005_v12  ;;  %v4633_v17 = vcombine.low %v4625_v44, %v4632_v45  ;;  %v1470_v28 = vrot.slane %v1456_v16, %v14005_v12  ;;  %v22124_v4 = vunpack.i.h.s16 %v22123_v38 }
  0xc9   : > { %v1480_v55 = vrot.slane %v1472_v40, %v14005_v12  ;;  %v1509_v61 = vrot.slane %v1494_v30, %v14005_v12  ;;  %v22126_v58 = vunpack.i.h.s16 %v22125_v57  ;;  %v22129_v0 = vcombine.low %v22127_v15, %v22128_v33  ;;  %v22131_v30 = vld [vmem:[#allocation20_spill] sm:$0xff] }
  0xca   : > { %v4617_v8 = vcombine.low %v4609_v22, %v4616_v1  ;;  %v4640_v45 = vrot.slane %v4633_v17, %v14005_v12  ;;  %v22130_v16 = vunpack.i.h.s16 %v22122_v54  ;;  %v1471_v38 = vcombine.low %v1463_v42, %v1470_v28  ;;  %v22135_v1 = vld [vmem:[#allocation25_spill] sm:$0xff]  ;;  %v22136_v42 = vld [vmem:[#allocation70_spill] sm:$0xff]  ;;  %v22141_v33 = vld [vmem:[#allocation72_spill] sm:$0xff] }
  0xcb   : > { %v4786_v40 = vpack.i.b16 %v22126_v58, %v22124_v4  ;;  %v15340_v44 = vrot.slane %v22129_v0, %v14005_v12  ;;  %v1495_v14 = vcombine.low %v1480_v55, %v15327_v6  ;;  %v22133_v4 = vld [vmem:[#allocation64_spill] sm:$0xff]  ;;  %v12963_v0 = vpack.i.b16 %v14144_v36, %v22134_v31 }
  0xcc   : > { %v15347_v50 = vpack.i.b16 %v22131_v30, %v22130_v16  ;;  %13480 = vmatprep.mubr.msk.bf16.mxu1 %vm682_vm0, %v4617_v8  ;;  %v1612_v17 = vcombine.low %v14038_v37, %v14061_v46  ;;  %v1613_v28 = vcombine.low %v22136_v42, %v22081_v9  ;;  %13390 = vmatprep.mubr.msk.bf16.mxu0 %vm682_vm0, %v1471_v38  ;;  %v15376_v38 = vld [vmem:[%s20840_s2 + $0x38] sm:$0xff]  }
  0xcd   : > { %v4798_v57 = vcombine.low %v4786_v40, %v14281_v39  ;;  %v4854_v58 = vcombine.low %v15340_v44, %v22133_v4  ;;  %v1502_v22 = vrot.slane %v1495_v14, %v14005_v12  ;;  %v412_v40 = vld [vmem:[%s13998_s23 + $0x30] sm:$0x7f]  ;;  %13481 = vmatmul.mubr.msk.bf16.gmra.mrb[16].mxu1 %vm682_vm0, %v4640_v45  ;;  %v1614_v8 = vcombine.low %v14539_v24, %v14106_v10 }
  0xce   : > { %22132 = vst [vmem:[#allocation11_spill] sm:$0xff] %v15347_v50  ;;  %v4797_v55 = vcombine.low %v15347_v50, %v22135_v1  ;;  %v1615_v14 = vcombine.low %v22113_v3, %v12963_v0  ;;  %v1622_v1 = vrot.slane %v1612_v17, %v14005_v12  ;;  %v1629_v9 = vrot.slane %v1613_v28, %v14005_v12  ;;  %v22142_v50 = vld [vmem:[#allocation60_spill] sm:$0xff] }
  0xcf   : > { %v4812_v44 = vrot.slane %v4798_v57, %v14005_v12  ;;  %v1510_v4 = vcombine.low %v1502_v22, %v1509_v61  ;;  %v22137_v57 = vld [vmem:[#allocation35_spill] sm:$0xff]  ;;  %v1636_v10 = vrot.slane %v1614_v8, %v14005_v12  ;;  %v419_v42 = vpack.c.bf16 %v412_v40, %v412_v40  ;;  %v22138_v61 = vld [vmem:[#allocation34_spill] sm:$0xff] }
  0xd0   : > { %v4805_v37 = vrot.slane %v4797_v55, %v14005_v12  ;;  %v1643_v0 = vrot.slane %v1615_v14, %v14005_v12  ;;  %v1644_v55 = vcombine.low %v1622_v1, %v1629_v9  ;;  %v22139_v17 = vunpack.i.h.s16 %v22062_v7  ;;  %v22145_v9 = vld [vmem:[#allocation55_spill] sm:$0xff] }
  0xd1   : > { %v4814_v45 = vcombine.low %v22137_v57, %v4812_v44  ;;  %13391 = vmatmul.mubr.msk.bf16.vlgmr.msra.gmra.mrb[0].mxu0 %vm682_vm0, %v1510_v4  ;;  %v22140_v28 = vunpack.i.h.s16 %v22051_v53  ;;  %v4864_v15 = vcombine.low %v22142_v50, %v22141_v33  ;;  %v1583_v40 = vrot.slane %v419_v42, %v14005_v12 }
  0xd2   : > { %v4813_v22 = vcombine.low %v4805_v37, %v22138_v61  ;;  %13395 = vmatpush3.bf16.msra.mxu0 %v15208_v51  ;;  %v1645_v8 = vcombine.low %v1636_v10, %v1643_v0  ;;  %v22143_v14 = vunpack.i.h.s16 %v22072_v52  ;;  %v1652_v1 = vrot.slane %v1644_v55, %v14005_v12  ;;  %v22146_v0 = vld [vmem:[#allocation86_spill] sm:$0xff] }
  0xd3   : > { %v4787_v16 = vpack.i.b16 %v22140_v28, %v22139_v17  ;;  %v4828_v44 = vrot.slane %v4814_v45, %v14005_v12  ;;  %v4878_v50 = vrot.slane %v4864_v15, %v14005_v12  ;;  %13400 = vmatprep.subr.bf16.mxu0 %v15376_v38  ;;  %v1584_v45 = vcombine.high %v1583_v40, %v1583_v40  ;;  %v22147_v17 = vld [vmem:[#allocation99_spill] sm:$0xff]  ;;  %v22148_v55 = vld [vmem:[#allocation98_spill] sm:$0xff] }
  0xd4   : > { %v15395_v4 = vpack.i.b16 %v22071_v35, %v22143_v14  ;;  %v4821_v37 = vrot.slane %v4813_v22, %v14005_v12  ;;  %v1659_v51 = vrot.slane %v1645_v8, %v14005_v12  ;;  %v15404_v10 = vrot.slane %v1583_v40, %v14005_v12 }
  0xd5   : > { %v4855_v57 = vcombine.low %v22145_v9, %v4787_v16  ;;  %v4889_v28 = vcombine.low %v22148_v55, %v22147_v17  ;;  %v21096_v16 = vunpack.i.h.s16 %v22097_v26  ;;  %v15413_v14 = vrot.slane %v1584_v45, %v14005_v12  ;;  %v22157_v9 = vld [vmem:[#allocation107_spill] sm:$0xff] }
  0xd6   : > { %22144 = vst [vmem:[#allocation14_spill] sm:$0xff] %v15395_v4  ;;  %v4880_v42 = vcombine.low %v15395_v4, %v22146_v0  ;;  %v4829_v61 = vcombine.low %v4821_v37, %v4828_v44  ;;  %v1660_v15 = vcombine.low %v1652_v1, %v1659_v51  ;;  %v15417_v8 = vcombine.high %v15404_v10, %v15404_v10  ;;  %v15425_v44 = vld [vmem:[%s20842_s4 + $0x30] sm:$0xff]   ;;  %v22149_v37 = vld [vmem:[#allocation61_spill] sm:$0xff] }
  0xd7   : > { %v4862_v22 = vrot.slane %v4855_v57, %v14005_v12  ;;  %v4903_v1 = vrot.slane %v4889_v28, %v14005_v12  ;;  %v15433_v51 = vpack.i.b16 %v22096_v5, %v21096_v16  ;;  %v22151_v45 = vunpack.i.h.s16 %v22094_v34  ;;  %v22153_v28 = vld [vmem:[#allocation73_spill] sm:$0xff] }
  0xd8   : > { %v15420_v40 = vrot.slane %v4880_v42, %v14005_v12  ;;  %13486 = vmatprep.mubr.msk.bf16.mxu1 %vm682_vm0, %v4829_v61  ;;  %v22152_v42 = vunpack.i.h.s16 %v14573_v43  ;;  %13396 = vmatprep.mubr.msk.bf16.mxu0 %vm682_vm0, %v1660_v15  ;;  %v1604_v61 = vunpack.i.l.s16 %v15417_v8  ;;  %v22154_v16 = vunpack.i.h.s16 %v14801_v18 }
  0xd9   : > { %v4863_v57 = vcombine.low %v22149_v37, %v4862_v22  ;;  %22150 = vst [vmem:[#allocation9_spill] sm:$0xff] %v15433_v51  ;;  %13487 = vmatmul.mubr.msk.bf16.vlgmr.msra.gmra.mrb[0].mxu1 %vm682_vm0, %v4854_v58  ;;  %v1661_v22 = vcombine.low %v15404_v10, %v15413_v14  ;;  %v22155_v4 = vunpack.i.h.s16 %v14794_v48  ;;  %v4906_v15 = vcombine.low %v14664_v11, %v15433_v51  ;;  %v22158_v48 = vld [vmem:[#allocation119_spill] sm:$0xff] }
  0xda   : > { %v4788_v0 = vpack.i.b16 %v22152_v42, %v22151_v45  ;;  %v4888_v37 = vcombine.low %v22153_v28, %v15420_v40  ;;  %13503 = vmatpush3.bf16.msra.mxu1 %v15026_v23  ;;  %v22156_v42 = vld [vmem:[#allocation125_spill] sm:$0xff]  ;;  %v1675_v28 = vrot.slane %v1604_v61, %v14005_v12 }
  0xdb   : > { %v4789_v53 = vpack.i.b16 %v22155_v4, %v22154_v16  ;;  %v4871_v45 = vrot.slane %v4863_v57, %v14005_v12  ;;  %v4946_v33 = vcombine.low %v22157_v9, %v22156_v42  ;;  %v1668_v17 = vrot.slane %v1661_v22, %v14005_v12  ;;  %13520 = vmatprep.subr.bf16.mxu1 %v15425_v44  ;;  %v22160_v42 = vld [vmem:[#allocation104_spill] sm:$0xff] }
  0xdc   : > { %v4905_v58 = vcombine.low %v4788_v0, %v22086_v41  ;;  %v4896_v43 = vrot.slane %v4888_v37, %v14005_v12  ;;  %v4920_v0 = vrot.slane %v4906_v15, %v14005_v12  ;;  %v1690_v9 = vrot.slane %v1675_v28, %v14005_v12  ;;  %v22159_v37 = vld [vmem:[#allocation101_spill] sm:$0xff]  ;;  %v22164_v15 = vld [vmem:[#allocation4_spill] sm:$0xff] }
  0xdd   : > { %v4938_v4 = vcombine.low %v22158_v48, %v4789_v53  ;;  %v4879_v23 = vcombine.low %v4871_v45, %v4878_v50  ;;  %v4954_v57 = vrot.slane %v4946_v33, %v14005_v12  ;;  %v1676_v51 = vcombine.low %v15145_v13, %v1668_v17  ;;  %v22162_v17 = vld [vmem:[#allocation123_spill] sm:$0xff] }
  0xde   : > { %v4913_v16 = vrot.slane %v4905_v58, %v14005_v12  ;;  %v4904_v22 = vcombine.low %v4896_v43, %v4903_v1  ;;  %v4922_v48 = vcombine.low %v22160_v42, %v4920_v0  ;;  %v22161_v50 = vunpack.i.h.s16 %v14144_v36  ;;  %v22163_v43 = vld [vmem:[#allocation10_spill] sm:$0xff] }
  0xdf   : > { %v4945_v61 = vrot.slane %v4938_v4, %v14005_v12  ;;  %13490 = vmatprep.mubr.msk.bf16.mxu1 %vm682_vm0, %v4879_v23  ;;  %v1765_v33 = vcombine.low %v14083_v59, %v14090_v62  ;;  %v1683_v13 = vrot.slane %v1676_v51, %v14005_v12  ;;  %v1767_v1 = vcombine.low %v14087_v60, %v22163_v43 }
  0xe0   : > { %v4921_v53 = vcombine.low %v4913_v16, %v22159_v37  ;;  %v1761_v45 = vpack.i.b16 %v22161_v50, %v22119_v25  ;;  %v22165_v28 = vcombine.low %v22164_v15, %v14076_v56  ;;  %v4936_v36 = vrot.slane %v4922_v48, %v14005_v12  ;;  %v15495_v56 = vld [vmem:[%s20840_s2 + $0x40] sm:$0xff]  }
  0xe1   : > { %v4947_v58 = vcombine.low %v4945_v61, %v22162_v17  ;;  %v1775_v59 = vrot.slane %v1765_v33, %v14005_v12  ;;  %v1691_v62 = vcombine.low %v1683_v13, %v1690_v9  ;;  %13491 = vmatmul.mubr.msk.bf16.gmra.mrb[4].mxu1 %vm682_vm0, %v4904_v22  ;;  %v1789_v60 = vrot.slane %v1767_v1, %v14005_v12  ;;  %v22166_v1 = vld [vmem:[#allocation128_spill] sm:$0xff]  ;;  %v22167_v15 = vld [vmem:[#allocation126_spill] sm:$0xff] }
  0xe2   : > { %v1782_v4 = vrot.slane %v22165_v28, %v14005_v12  ;;  %v4929_v42 = vrot.slane %v4921_v53, %v14005_v12  ;;  %v1768_v25 = vcombine.low %v22121_v27, %v1761_v45  ;;  %v1601_v23 = vunpack.i.h.s16 %v15404_v10 }
  0xe3   : > { %v4961_v51 = vrot.slane %v4947_v58, %v14005_v12  ;;  %v1603_v0 = vunpack.i.h.s16 %v15413_v14  ;;  %13397 = vmatmul.mubr.msk.bf16.vlgmr.msra.gmra.mrb[0].mxu0 %vm682_vm0, %v1691_v62  ;;  %v1757_v22 = vunpack.i.h.s16 %v15417_v8  ;;  %v15504_v10 = vcombine.high %v15265_v21, %v15265_v21 }
  0xe4   : > { %v4937_v16 = vcombine.low %v4929_v42, %v4936_v36  ;;  %v1796_v48 = vrot.slane %v1768_v25, %v14005_v12  ;;  %v1797_v27 = vcombine.low %v1775_v59, %v1782_v4  ;;  %v12969_v61 = vpack.i.b16 %v15413_v14, %v1601_v23  ;;  %13401 = vmatpush3.bf16.msra.mxu0 %v15376_v38 }
  0xe5   : > { %v4962_v9 = vcombine.low %v4954_v57, %v4961_v51  ;;  %v12970_v50 = vpack.i.b16 %v15417_v8, %v1603_v0  ;;  %v21105_v45 = vunpack.i.h.s16 %v15265_v21  ;;  %v1828_v57 = vrot.slane %v1757_v22, %v14005_v12  ;;  %13406 = vmatprep.subr.bf16.mxu0 %v15495_v56 }
  0xe6   : > { %13494 = vmatprep.mubr.msk.bf16.mxu1 %vm682_vm0, %v4937_v16  ;;  %v1798_v37 = vcombine.low %v1789_v60, %v1796_v48  ;;  %v1805_v53 = vrot.slane %v1797_v27, %v14005_v12  ;;  %v15514_v33 = vcombine.high %v15280_v2, %v15280_v2  ;;  %v4391_v13 = vunpack.i.h.s16 %v15280_v2 }
  0xe7   : > { %v4393_v17 = vunpack.i.h.s16 %v15504_v10  ;;  %v1814_v58 = vcombine.low %v12969_v61, %v12970_v50  ;;  %v13115_v43 = vpack.i.b16 %v15280_v2, %v21105_v45  ;;  %v4979_v28 = vcombine.low %v22167_v15, %v22166_v1 }
  0xe8   : > { %v1812_v38 = vrot.slane %v1798_v37, %v14005_v12  ;;  %v1843_v4 = vrot.slane %v1828_v57, %v14005_v12  ;;  %v4395_v42 = vunpack.i.h.s16 %v15514_v33  ;;  %v15528_v36 = vpack.i.b16 %v15504_v10, %v4391_v13 }
  0xe9   : > { %v15531_v25 = vpack.i.b16 %v15514_v33, %v4393_v17  ;;  %v1821_v62 = vrot.slane %v1814_v58, %v14005_v12  ;;  %v4987_v51 = vrot.slane %v4979_v28, %v14005_v12  ;;  %v4397_v60 = vunpack.i.h.s16 %v15283_v29  ;;  %13495 = vmatmul.mubr.msk.bf16.gmra.mrb[8].mxu1 %vm682_vm0, %v4962_v9 }
  0xea   : > { %22168 = vst [vmem:[#allocation12_spill] sm:$0xff] %v15528_v36  ;;  %v1813_v59 = vcombine.low %v1805_v53, %v1812_v38  ;;  %v15538_v23 = vpack.i.b16 %v15283_v29, %v4395_v42  ;;  %v4963_v16 = vcombine.low %v13115_v43, %v15528_v36  ;;  %v4399_v48 = vunpack.i.h.s16 %v15296_v49  ;;  %v22177_v43 = vld [vmem:[#allocation110_spill] sm:$0xff] }
  0xeb   : > { %22169 = vst [vmem:[#allocation16_spill] sm:$0xff] %v15531_v25  ;;  %v4782_v27 = vunpack.i.h.s16 %v15300_v19  ;;  %v1829_v0 = vcombine.low %v15327_v6, %v1821_v62  ;;  %v15546_v22 = vpack.i.b16 %v15296_v49, %v4397_v60  ;;  %v15550_v61 = vcombine.high %v15296_v49, %v15296_v49 }
  0xec   : > { %22170 = vst [vmem:[#allocation20_spill] sm:$0xff] %v15538_v23  ;;  %13402 = vmatprep.mubr.msk.bf16.mxu0 %vm682_vm0, %v1813_v59  ;;  %v12976_v9 = vpack.i.b16 %v22082_v20, %v22118_v63  ;;  %v4964_v37 = vcombine.low %v15531_v25, %v15538_v23  ;;  %v15557_v53 = vrot.slane %v4963_v16, %v14005_v12  ;;  %v22175_v20 = vld [vmem:[#allocation106_spill] sm:$0xff] }
  0xed   : > { %22171 = vst [vmem:[#allocation64_spill] sm:$0xff] %v15546_v22  ;;  %v15560_v50 = vpack.i.b16 %v15300_v19, %v4399_v48  ;;  %v5010_v6 = vrot.slane %v4782_v27, %v14005_v12  ;;  %v1836_v57 = vrot.slane %v1829_v0, %v14005_v12  ;;  %v15565_v13 = vpack.i.b16 %v15550_v61, %v4782_v27  ;;  %v22179_v16 = vld [vmem:[#allocation6_spill] sm:$0xff] }
  0xee   : > { %22172 = vst [vmem:[#allocation8_spill] sm:$0xff] %v15557_v53  ;;  %v1919_v17 = vcombine.low %v14061_v46, %v14065_v47  ;;  %v1920_v63 = vcombine.low %v22175_v20, %v14539_v24  ;;  %v15572_v38 = vrot.slane %v4964_v37, %v14005_v12  ;;  %v1921_v1 = vcombine.low %v22177_v43, %v22113_v3  ;;  %v15586_v47 = vld [vmem:[%s20842_s4 + $0x8] sm:$0xff]  }
  0xef   : > { %22173 = vst [vmem:[#allocation25_spill] sm:$0xff] %v15560_v50  ;;  %22174 = vst [vmem:[#allocation70_spill] sm:$0xff] %v15565_v13  ;;  %v4996_v58 = vcombine.low %v15546_v22, %v15560_v50  ;;  %v1922_v15 = vcombine.low %v22134_v31, %v12976_v9  ;;  %v1844_v28 = vcombine.low %v1836_v57, %v1843_v4  ;;  %v22180_v57 = vld [vmem:[#allocation32_spill] sm:$0xff] }
  0xf0   : > { %22176 = vst [vmem:[#allocation35_spill] sm:$0xff] %v15572_v38  ;;  %v1929_v42 = vrot.slane %v1919_v17, %v14005_v12  ;;  %v1936_v59 = vrot.slane %v1920_v63, %v14005_v12  ;;  %v1910_v46 = vcombine.high %v15413_v14, %v15413_v14  ;;  %v4980_v24 = vcombine.low %v15557_v53, %v15572_v38  ;;  %v22204_v13 = vld [vmem:[#allocation24_spill] sm:$0xff]  ;;  %v22240_v38 = vld [vmem:[#allocation139_spill] sm:$0xff] }
  0xf1   : > { %v15591_v3 = vrot.slane %v4996_v58, %v14005_v12  ;;  %v1943_v31 = vrot.slane %v1921_v1, %v14005_v12  ;;  %v1950_v4 = vrot.slane %v1922_v15, %v14005_v12  ;;  %13403 = vmatmul.mubr.msk.bf16.vlgmr.msra.gmra.mrb[0].mxu0 %vm682_vm0, %v1844_v28  ;;  %v1968_v48 = vcombine.low %v22179_v16, %v15140_v32  ;;  %v22182_v28 = vld [vmem:[#allocation26_spill] sm:$0xff]  ;;  %v22187_v16 = vld [vmem:[#allocation136_spill] sm:$0xff] }
  0xf2   : > { %v1951_v62 = vcombine.low %v1929_v42, %v1936_v59  ;;  %v1911_v60 = vunpack.i.l.s16 %v1910_v46  ;;  %v1969_v27 = vcombine.low %v15413_v14, %v15417_v8  ;;  %v4994_v0 = vrot.slane %v4980_v24, %v14005_v12  ;;  %13407 = vmatpush3.bf16.msra.mxu0 %v15495_v56  ;;  %v22181_v56 = vld [vmem:[#allocation21_spill] sm:$0xff]  ;;  %v22183_v42 = vld [vmem:[#allocation28_spill] sm:$0xff]  ;;  %v22185_v24 = vld [vmem:[#allocation27_spill] sm:$0xff] }
  0xf3   : > { %22178 = vst [vmem:[#allocation34_spill] sm:$0xff] %v15591_v3  ;;  %v5011_v9 = vcombine.low %v15591_v3, %v5010_v6  ;;  %v1952_v37 = vcombine.low %v1943_v31, %v1950_v4  ;;  %v13132_v17 = vpack.i.b16 %v14281_v39, %v22180_v57  ;;  %v1976_v63 = vrot.slane %v1968_v48, %v14005_v12  ;;  %v22184_v46 = vld [vmem:[#allocation29_spill] sm:$0xff]  ;;  %v22188_v48 = vld [vmem:[#allocation135_spill] sm:$0xff]  ;;  %v22189_v57 = vld [vmem:[#allocation138_spill] sm:$0xff] }
  0xf4   : > { %v1959_v20 = vrot.slane %v1951_v62, %v14005_v12  ;;  %v1983_v58 = vrot.slane %v1969_v27, %v14005_v12  ;;  %v1990_v32 = vrot.slane %v1911_v60, %v14005_v12  ;;  %13412 = vmatprep.subr.bf16.mxu0 %v15586_v47  ;;  %v4995_v14 = vcombine.low %v4987_v51, %v4994_v0  ;;  %v22186_v51 = vld [vmem:[#allocation134_spill] sm:$0xff] }
  0xf5   : > { %v5018_v8 = vrot.slane %v5011_v9, %v14005_v12  ;;  %v1966_v6 = vrot.slane %v1952_v37, %v14005_v12  ;;  %v5175_v43 = vcombine.low %v22131_v30, %v22181_v56  ;;  %v5176_v59 = vcombine.low %v22183_v42, %v22182_v28 }
  0xf6   : > { %v1991_v1 = vcombine.low %v1976_v63, %v1983_v58  ;;  %v2005_v15 = vrot.slane %v1990_v32, %v14005_v12  ;;  %v5177_v31 = vcombine.low %v22185_v24, %v22184_v46  ;;  %13498 = vmatprep.mubr.msk.bf16.mxu1 %vm682_vm0, %v4995_v14  ;;  %v5178_v62 = vcombine.low %v13132_v17, %v22186_v51  ;;  %v22190_v63 = vld [vmem:[#allocation137_spill] sm:$0xff]  ;;  %v22192_v32 = vld [vmem:[#allocation38_spill] sm:$0xff] }
  0xf7   : > { %v1967_v4 = vcombine.low %v1959_v20, %v1966_v6  ;;  %v5185_v60 = vrot.slane %v5175_v43, %v14005_v12  ;;  %v5224_v27 = vcombine.low %v22188_v48, %v22187_v16  ;;  %13499 = vmatmul.mubr.msk.bf16.gmra.mrb[20].mxu1 %vm682_vm0, %v5018_v8  ;;  %v5192_v9 = vrot.slane %v5176_v59, %v14005_v12  ;;  %v22191_v20 = vld [vmem:[#allocation42_spill] sm:$0xff]  ;;  %v22197_v59 = vld [vmem:[#allocation15_spill] sm:$0xff]  ;;  %v22199_v48 = vld [vmem:[#allocation17_spill] sm:$0xff] }
  0xf8   : > { %v1998_v0 = vrot.slane %v1991_v1, %v14005_v12  ;;  %v5199_v37 = vrot.slane %v5177_v31, %v14005_v12  ;;  %v5225_v58 = vcombine.low %v22190_v63, %v22189_v57  ;;  %v5206_v17 = vrot.slane %v5178_v62, %v14005_v12  ;;  %v22194_v8 = vld [vmem:[#allocation58_spill] sm:$0xff] }
  0xf9   : > { %13408 = vmatprep.mubr.msk.bf16.mxu0 %vm682_vm0, %v1967_v4  ;;  %v13140_v14 = vcombine.high %v22192_v32, %v22191_v20  ;;  %v15635_v6 = vrot.slane %v5224_v27, %v14005_v12  ;;  %v22195_v56 = vcombine.low %v22194_v8, %v22191_v20  ;;  %v5207_v28 = vcombine.low %v5185_v60, %v5192_v9  ;;  %v22198_v62 = vld [vmem:[#allocation18_spill] sm:$0xff] }
  0xfa   : > { %v2006_v1 = vcombine.low %v1998_v0, %v2005_v15  ;;  %v15642_v42 = vrot.slane %v5225_v58, %v14005_v12  ;;  %v2565_v24 = vunpack.i.h.s16 %v22197_v59  ;;  %v5208_v31 = vcombine.low %v5199_v37, %v5206_v17  ;;  %v22200_v15 = vld [vmem:[#allocation22_spill] sm:$0xff]  ;;  %v22201_v0 = vld [vmem:[#allocation23_spill] sm:$0xff] }
  0xfb   : > { %22193 = vst [vmem:[#allocation60_spill] sm:$0xff] %v15635_v6  ;;  %v5248_v43 = vrot.slane %v22195_v56, %v14005_v12  ;;  %v15646_v4 = vrot.slane %v13140_v14, %v14005_v12  ;;  %v2567_v16 = vunpack.i.h.s16 %v22198_v62  ;;  %v2573_v27 = vunpack.i.h.s16 %v22199_v48  ;;  %v15658_v37 = vld [vmem:[%s20842_s4] sm:$0xff]   ;;  %v22202_v56 = vld [vmem:[#allocation19_spill] sm:$0xff] }
  0xfc   : > { %22196 = vst [vmem:[#allocation98_spill] sm:$0xff] %v15642_v42  ;;  %v5215_v63 = vrot.slane %v5207_v28, %v14005_v12  ;;  %v5256_v8 = vcombine.low %v15635_v6, %v15642_v42  ;;  %v2575_v60 = vunpack.i.h.s16 %v22200_v15  ;;  %v2683_v9 = vunpack.i.h.s16 %v22201_v0  ;;  %v22207_v42 = vld [vmem:[#allocation127_spill] sm:$0xff]  ;;  %v22229_v20 = vld [vmem:[#allocation74_spill] sm:$0xff] }
  0xfd   : > { %v5222_v58 = vrot.slane %v5208_v31, %v14005_v12  ;;  %v5257_v17 = vcombine.low %v5248_v43, %v15646_v4  ;;  %v12994_v14 = vpack.i.b16 %v22198_v62, %v2565_v24  ;;  %v12995_v28 = vpack.i.b16 %v22202_v56, %v2567_v16  ;;  %13409 = vmatmul.mubr.msk.bf16.vlgmr.msra.gmra.mrb[0].mxu0 %vm682_vm0, %v2006_v1 }
  0xfe   : > { %v5264_v45 = vrot.slane %v5256_v8, %v14005_v12  ;;  %v22203_v50 = vunpack.i.h.s16 %v22202_v56  ;;  %v22205_v22 = vunpack.i.h.s16 %v22204_v13  ;;  %v12998_v31 = vpack.i.b16 %v22200_v15, %v2573_v27  ;;  %13413 = vmatpush3.bf16.msra.mxu0 %v15586_v47 }
  0xff   : > { %v5223_v25 = vcombine.low %v5215_v63, %v5222_v58  ;;  %v5271_v43 = vrot.slane %v5257_v17, %v14005_v12  ;;  %v12999_v24 = vpack.i.b16 %v22201_v0, %v2575_v60  ;;  %v22206_v1 = vunpack.i.h.s16 %v22122_v54  ;;  %13430 = vmatprep.subr.bf16.mxu0 %v15658_v37  ;;  %v22211_v58 = vld [vmem:[#allocation65_spill] sm:$0xff] }
 0x100   : > { %v12996_v23 = vpack.i.b16 %v22204_v13, %v22203_v50  ;;  %v12997_v36 = vpack.i.b16 %v22199_v48, %v22205_v22  ;;  %v2754_v8 = vcombine.low %v12994_v14, %v12995_v28  ;;  %v2805_v50 = vcombine.low %v22184_v46, %v22207_v42  ;;  %v22208_v13 = vld [vmem:[#allocation129_spill] sm:$0xff]  ;;  %v22209_v22 = vld [vmem:[#allocation130_spill] sm:$0xff] }
 0x101   : > { %v2701_v16 = vpack.i.b16 %v22206_v1, %v2683_v9  ;;  %v22210_v6 = vcombine.low %v22208_v13, %v22209_v22  ;;  %13504 = vmatprep.mubr.msk.bf16.mxu1 %vm682_vm0, %v5223_v25  ;;  %v5272_v47 = vcombine.low %v5264_v45, %v5271_v43  ;;  %v2756_v63 = vcombine.low %v12998_v31, %v12999_v24  ;;  %v22212_v9 = vld [vmem:[#allocation43_spill] sm:$0xff]  ;;  %v22213_v14 = vld [vmem:[#allocation46_spill] sm:$0xff]  ;;  %v22214_v25 = vld [vmem:[#allocation41_spill] sm:$0xff] }
 0x102   : > { %v2755_v56 = vcombine.low %v12996_v23, %v12997_v36  ;;  %v13134_v17 = vpack.i.b16 %v22212_v9, %v22211_v58  ;;  %v15692_v36 = vld [vmem:[%s20842_s4 + $0x38] sm:$0xff]   ;;  %v2764_v23 = vrot.slane %v2754_v8, %v14005_v12  ;;  %v5273_v45 = vcombine.low %v22214_v25, %v22213_v14  ;;  %v22215_v43 = vld [vmem:[#allocation142_spill] sm:$0xff]  ;;  %v22217_v8 = vld [vmem:[#allocation140_spill] sm:$0xff] }
 0x103   : > { %v2843_v27 = vrot.slane %v22210_v6, %v14005_v12  ;;  %v2757_v60 = vcombine.low %v2701_v16, %v22131_v30  ;;  %v2827_v6 = vrot.slane %v2805_v50, %v14005_v12  ;;  %13505 = vmatmul.mubr.msk.bf16.vlgmr.msra.gmra.mrb[0].mxu1 %vm682_vm0, %v5272_v47  ;;  %v2778_v30 = vrot.slane %v2756_v63, %v14005_v12  ;;  %v22216_v24 = vld [vmem:[#allocation62_spill] sm:$0xff]  ;;  %v22218_v50 = vld [vmem:[#allocation144_spill] sm:$0xff]  ;;  %v22219_v13 = vld [vmem:[#allocation143_spill] sm:$0xff] }
 0x104   : > { %v2771_v46 = vrot.slane %v2755_v56, %v14005_v12  ;;  %v5274_v31 = vcombine.low %v22062_v7, %v13134_v17  ;;  %v5275_v1 = vcombine.low %v22216_v24, %v22215_v43  ;;  %13521 = vmatpush3.bf16.msra.mxu1 %v15425_v44  ;;  %v5276_v22 = vcombine.low %v22219_v13, %v22218_v50  ;;  %v22220_v17 = vld [vmem:[#allocation49_spill] sm:$0xff]  ;;  %v22223_v24 = vld [vmem:[#allocation31_spill] sm:$0xff] }
 0x105   : > { %v2785_v28 = vrot.slane %v2757_v60, %v14005_v12  ;;  %v2836_v56 = vcombine.low %v2827_v6, %v22217_v8  ;;  %v15710_v58 = vrot.slane %v5273_v45, %v14005_v12  ;;  %v6139_v25 = vcombine.low %v22062_v7, %v22220_v17  ;;  %13538 = vmatprep.subr.bf16.mxu1 %v15692_v36  ;;  %v22226_v13 = vld [vmem:[#allocation79_spill] sm:$0xff]  ;;  %v22235_v17 = vld [vmem:[#allocation45_spill] sm:$0xff] }
 0x106   : > { %v2786_v16 = vcombine.low %v2764_v23, %v2771_v46  ;;  %v5290_v63 = vrot.slane %v5274_v31, %v14005_v12  ;;  %v15714_v60 = vrot.slane %v5275_v1, %v14005_v12  ;;  %v15722_v46 = vrot.slane %v5276_v22, %v14005_v12  ;;  %v22222_v31 = vld [vmem:[#allocation68_spill] sm:$0xff]  ;;  %v22224_v1 = vld [vmem:[#allocation30_spill] sm:$0xff] }
 0x107   : > { %v2787_v47 = vcombine.low %v2778_v30, %v2785_v28  ;;  %v2850_v23 = vrot.slane %v2836_v56, %v14005_v12  ;;  %v15729_v28 = vrot.slane %v6139_v25, %v14005_v12  ;;  %v21115_v43 = vunpack.i.h.s16 %v22222_v31 }
 0x108   : > { %v2794_v44 = vrot.slane %v2786_v16, %v14005_v12  ;;  %22221 = vst [vmem:[#allocation61_spill] sm:$0xff] %v15722_v46  ;;  %v5305_v30 = vcombine.low %v15710_v58, %v5290_v63  ;;  %v22225_v16 = vcombine.low %v22223_v24, %v22224_v1  ;;  %v5306_v50 = vcombine.low %v15714_v60, %v15722_v46  ;;  %v22228_v63 = vld [vmem:[#allocation66_spill] sm:$0xff] }
 0x109   : > { %v2801_v45 = vrot.slane %v2787_v47, %v14005_v12  ;;  %v2851_v56 = vcombine.low %v2843_v27, %v2850_v23  ;;  %v5323_v22 = vcombine.low %v22071_v35, %v22226_v13  ;;  %v22227_v47 = vld [vmem:[#allocation71_spill] sm:$0xff]  ;;  %v13135_v42 = vpack.i.b16 %v22229_v20, %v21115_v43  ;;  %v22230_v23 = vld [vmem:[#allocation77_spill] sm:$0xff]  ;;  %v22239_v27 = vld [vmem:[#allocation48_spill] sm:$0xff] }
 0x10a   : > { %v15736_v8 = vrot.slane %v22225_v16, %v14005_v12  ;;  %v5313_v6 = vrot.slane %v5305_v30, %v14005_v12  ;;  %v5320_v24 = vrot.slane %v5306_v50, %v14005_v12  ;;  %v22231_v16 = vld [vmem:[#allocation83_spill] sm:$0xff]  ;;  %v22232_v13 = vld [vmem:[#allocation81_spill] sm:$0xff]  ;;  %v22236_v20 = vunpack.i.h.s16 %v22235_v17 }
 0x10b   : > { %v2802_v25 = vcombine.low %v2794_v44, %v2801_v45  ;;  %v5324_v46 = vcombine.low %v22231_v16, %v22230_v23  ;;  %v5325_v51 = vcombine.low %v22232_v13, %v22094_v34  ;;  %v22233_v44 = vld [vmem:[#allocation145_spill] sm:$0xff]  ;;  %v15758_v30 = vrot.slane %v5323_v22, %v14005_v12 }
 0x10c   : > { %v5322_v45 = vcombine.low %v22233_v44, %v13135_v42  ;;  %v22237_v50 = vunpack.i.h.s16 %v22192_v32  ;;  %v2885_v3 = vcombine.low %v22240_v38, %v22239_v27  ;;  %v5321_v23 = vcombine.low %v5313_v6, %v5320_v24  ;;  %v22243_v38 = vld [vmem:[#allocation5_spill] sm:$0xff]  ;;  %v22244_v27 = vld [vmem:[#allocation50_spill] sm:$0xff] }
 0x10d   : > { %13414 = vmatprep.mubr.msk.bf16.mxu0 %vm682_vm0, %v2802_v25  ;;  %22234 = vst [vmem:[#allocation73_spill] sm:$0xff] %v15758_v30  ;;  %v15770_v16 = vrot.slane %v5324_v46, %v14005_v12  ;;  %v15773_v42 = vrot.slane %v5325_v51, %v14005_v12  ;;  %v2901_v22 = vcombine.low %v22213_v14, %v22062_v7  ;;  %v2689_v7 = vunpack.i.h.s16 %v14664_v11  ;;  %v22245_v14 = vld [vmem:[#allocation85_spill] sm:$0xff] }
 0x10e   : > { %v15764_v43 = vpack.i.b16 %v22237_v50, %v22236_v20  ;;  %13415 = vmatmul.mubr.msk.bf16.vlgmr.msra.gmra.mrb[4].mxu0 %vm682_vm0, %v2851_v56  ;;  %v5332_v25 = vrot.slane %v5322_v45, %v14005_v12  ;;  %v2899_v20 = vrot.slane %v2885_v3, %v14005_v12  ;;  %v2934_v56 = vcombine.low %v22244_v27, %v22243_v38  ;;  %v22246_v45 = vld [vmem:[#allocation149_spill] sm:$0xff]  ;;  %v22248_v38 = vld [vmem:[#allocation47_spill] sm:$0xff] }
 0x10f   : > { %22241 = vst [vmem:[#allocation104_spill] sm:$0xff] %v15770_v16  ;;  %22242 = vst [vmem:[#allocation123_spill] sm:$0xff] %v15773_v42  ;;  %13431 = vmatpush3.bf16.msra.mxu0 %v15658_v37  ;;  %13508 = vmatprep.mubr.msk.bf16.mxu1 %vm682_vm0, %v5321_v23  ;;  %v5355_v51 = vcombine.low %v15770_v16, %v15773_v42  ;;  %v2911_v46 = vrot.slane %v2901_v22, %v14005_v12  ;;  %v22247_v37 = vld [vmem:[#allocation148_spill] sm:$0xff]  ;;  %v22249_v42 = vld [vmem:[#allocation97_spill] sm:$0xff] }
 0x110   : > { %22238 = vst [vmem:[#allocation101_spill] sm:$0xff] %v15764_v43  ;;  %v2853_v13 = vcombine.low %v22189_v57, %v15764_v43  ;;  %v13136_v6 = vpack.i.b16 %v22086_v41, %v22245_v14  ;;  %v5354_v57 = vcombine.low %v5332_v25, %v15758_v30  ;;  %v2948_v24 = vrot.slane %v2934_v56, %v14005_v12  ;;  %v22250_v16 = vld [vmem:[#allocation147_spill] sm:$0xff]  ;;  %v22251_v14 = vld [vmem:[#allocation141_spill] sm:$0xff]  ;;  %v22253_v30 = vld [vmem:[#allocation150_spill] sm:$0xff] }
 0x111   : > { %v5372_v50 = vcombine.low %v22247_v37, %v22246_v45  ;;  %v5369_v23 = vrot.slane %v5355_v51, %v14005_v12  ;;  %v2933_v27 = vcombine.low %v2911_v46, %v22248_v38  ;;  %v13137_v22 = vpack.i.b16 %v22249_v42, %v2689_v7  ;;  %v22252_v25 = vld [vmem:[#allocation151_spill] sm:$0xff]  ;;  %v22254_v37 = vld [vmem:[#allocation117_spill] sm:$0xff] }
 0x112   : > { %v2869_v3 = vrot.slane %v2853_v13, %v14005_v12  ;;  %v5371_v44 = vcombine.low %v13136_v6, %v22250_v16  ;;  %v5362_v43 = vrot.slane %v5354_v57, %v14005_v12  ;;  %v5373_v13 = vcombine.low %v22253_v30, %v22252_v25  ;;  %v22255_v42 = vld [vmem:[#allocation115_spill] sm:$0xff] }
 0x113   : > { %v15805_v56 = vrot.slane %v5372_v50, %v14005_v12  ;;  %v2941_v45 = vrot.slane %v2933_v27, %v14005_v12  ;;  %v5374_v51 = vcombine.low %v13137_v22, %v22096_v5  ;;  %v13138_v38 = vpack.i.b16 %v22255_v42, %v22254_v37  ;;  %v22256_v22 = vld [vmem:[#allocation113_spill] sm:$0xff]  ;;  %v22257_v16 = vld [vmem:[#allocation111_spill] sm:$0xff] }
 0x114   : > { %v2884_v53 = vcombine.low %v22251_v14, %v2869_v3  ;;  %v5381_v46 = vrot.slane %v5371_v44, %v14005_v12  ;;  %v5370_v6 = vcombine.low %v5362_v43, %v5369_v23  ;;  %v15814_v3 = vrot.slane %v5373_v13, %v14005_v12  ;;  %v22259_v23 = vld [vmem:[#allocation94_spill] sm:$0xff] }
 0x115   : > { %v13141_v30 = vcombine.high %v22097_v26, %v22096_v5  ;;  %v2949_v50 = vcombine.low %v2941_v45, %v2948_v24  ;;  %v5402_v14 = vrot.slane %v5374_v51, %v14005_v12  ;;  %v5421_v44 = vcombine.low %v22257_v16, %v22256_v22  ;;  %v22277_v5 = vld [vmem:[#allocation159_spill] sm:$0xff] }
 0x116   : > { %v2892_v57 = vrot.slane %v2884_v53, %v14005_v12  ;;  %v5403_v27 = vcombine.low %v5381_v46, %v15805_v56  ;;  %13509 = vmatmul.mubr.msk.bf16.gmra.mrb[4].mxu1 %vm682_vm0, %v5370_v6  ;;  %v5422_v43 = vcombine.low %v14801_v18, %v13138_v38  ;;  %v22258_v53 = vld [vmem:[#allocation156_spill] sm:$0xff]  ;;  %v22262_v16 = vunpack.i.h.s16 %v22222_v31 }
 0x117   : > { %v5423_v13 = vcombine.low %v22259_v23, %v22258_v53  ;;  %v15827_v42 = vrot.slane %v13141_v30, %v14005_v12  ;;  %v5404_v24 = vcombine.low %v15814_v3, %v5402_v14  ;;  %v15832_v51 = vrot.slane %v5421_v44, %v14005_v12  ;;  %v22269_v23 = vld [vmem:[#allocation96_spill] sm:$0xff] }
 0x118   : > { %v2900_v37 = vcombine.low %v2892_v57, %v2899_v20  ;;  %v5411_v45 = vrot.slane %v5403_v27, %v14005_v12  ;;  %v22263_v46 = vunpack.i.h.s16 %v22072_v52  ;;  %v5444_v38 = vrot.slane %v5422_v43, %v14005_v12  ;;  %v22265_v57 = vld [vmem:[#allocation146_spill] sm:$0xff]  ;;  %v22268_v43 = vld [vmem:[#allocation153_spill] sm:$0xff] }
 0x119   : > { %22260 = vst [vmem:[#allocation10_spill] sm:$0xff] %v15827_v42  ;;  %22261 = vst [vmem:[#allocation4_spill] sm:$0xff] %v15832_v51  ;;  %v15843_v6 = vrot.slane %v5423_v13, %v14005_v12  ;;  %v2953_v30 = vcombine.low %v22094_v34, %v22265_v57  ;;  %v22266_v14 = vunpack.i.h.s16 %v22097_v26  ;;  %v5418_v44 = vrot.slane %v5404_v24, %v14005_v12 }
 0x11a   : > { %v15838_v20 = vpack.i.b16 %v22263_v46, %v22262_v16  ;;  %13418 = vmatprep.mubr.msk.bf16.mxu0 %vm682_vm0, %v2900_v37  ;;  %v5452_v53 = vcombine.low %v15827_v42, %v15832_v51  ;;  %v3031_v13 = vcombine.low %v22269_v23, %v22268_v43  ;;  %v22270_v46 = vld [vmem:[#allocation122_spill] sm:$0xff]  ;;  %v22271_v43 = vld [vmem:[#allocation75_spill] sm:$0xff] }
 0x11b   : > { %22264 = vst [vmem:[#allocation128_spill] sm:$0xff] %v15843_v6  ;;  %v15849_v27 = vpack.i.b16 %v22266_v14, %v2689_v7  ;;  %13419 = vmatmul.mubr.msk.bf16.gmra.mrb[8].mxu0 %vm682_vm0, %v2949_v50  ;;  %v5453_v16 = vcombine.low %v5444_v38, %v15843_v6  ;;  %v2981_v34 = vrot.slane %v2953_v30, %v14005_v12  ;;  %v15864_v50 = vunpack.i.h.s16 %v22270_v46  ;;  %v22272_v30 = vld [vmem:[#allocation124_spill] sm:$0xff] }
 0x11c   : > { %v2950_v37 = vcombine.low %v15838_v20, %v22071_v35  ;;  %v5419_v24 = vcombine.low %v5411_v45, %v5418_v44  ;;  %v5460_v14 = vrot.slane %v5452_v53, %v14005_v12  ;;  %v3039_v35 = vrot.slane %v3031_v13, %v14005_v12  ;;  %v22274_v45 = vld [vmem:[#allocation158_spill] sm:$0xff]  ;;  %v22275_v44 = vld [vmem:[#allocation157_spill] sm:$0xff] }
 0x11d   : > { %22267 = vst [vmem:[#allocation126_spill] sm:$0xff] %v15849_v27  ;;  %v3001_v7 = vcombine.low %v22252_v25, %v15849_v27  ;;  %v5467_v42 = vrot.slane %v5453_v16, %v14005_v12  ;;  %v2983_v23 = vcombine.low %v22271_v43, %v2981_v34  ;;  %v13139_v6 = vpack.i.b16 %v22272_v30, %v15864_v50  ;;  %v22273_v25 = vld [vmem:[#allocation78_spill] sm:$0xff] }
 0x11e   : > { %v2960_v51 = vrot.slane %v2950_v37, %v14005_v12  ;;  %13512 = vmatprep.mubr.msk.bf16.mxu1 %vm682_vm0, %v5419_v24  ;;  %v5469_v53 = vcombine.low %v22275_v44, %v22274_v45  ;;  %v5471_v37 = vcombine.low %v15280_v2, %v15504_v10  ;;  %v5472_v13 = vcombine.low %v15514_v33, %v15283_v29  ;;  %v22279_v45 = vld [vmem:[#allocation155_spill] sm:$0xff] }
 0x11f   : > { %v3023_v38 = vrot.slane %v3001_v7, %v14005_v12  ;;  %v5468_v16 = vcombine.low %v5460_v14, %v5467_v42  ;;  %v2997_v34 = vrot.slane %v2983_v23, %v14005_v12  ;;  %v22276_v7 = vld [vmem:[#allocation152_spill] sm:$0xff]  ;;  %v5470_v30 = vcombine.low %v22277_v5, %v13139_v6 }
 0x120   : > { %v2982_v27 = vcombine.low %v2960_v51, %v22273_v25  ;;  %v15887_v51 = vrot.slane %v5469_v53, %v14005_v12  ;;  %v15890_v25 = vrot.slane %v5471_v37, %v14005_v12  ;;  %v15893_v10 = vrot.slane %v5472_v13, %v14005_v12 }
 0x121   : > { %v3032_v43 = vcombine.low %v3023_v38, %v22276_v7  ;;  %13513 = vmatmul.mubr.msk.bf16.gmra.mrb[8].mxu1 %vm682_vm0, %v5468_v16  ;;  %v5486_v33 = vrot.slane %v5470_v30, %v14005_v12  ;;  %v5161_v42 = vunpack.i.l.s16 %v15550_v61  ;;  %v5518_v6 = vcombine.low %v15296_v49, %v15300_v19  ;;  %v22278_v38 = vld [vmem:[#allocation105_spill] sm:$0xff] }
 0x122   : > { %v2990_v24 = vrot.slane %v2982_v27, %v14005_v12  ;;  %v5502_v14 = vcombine.low %v15890_v25, %v15893_v10  ;;  %v3049_v23 = vcombine.low %v22256_v22, %v14801_v18  ;;  %v3081_v44 = vcombine.low %v22279_v45, %v22278_v38 }
 0x123   : > { %v3046_v29 = vrot.slane %v3032_v43, %v14005_v12  ;;  %v5501_v37 = vcombine.low %v15887_v51, %v5486_v33  ;;  %v15909_v30 = vrot.slane %v5518_v6, %v14005_v12  ;;  %v5532_v61 = vrot.slane %v5161_v42, %v14005_v12  ;;  %v22280_v43 = vld [vmem:[#allocation154_spill] sm:$0xff] }
 0x124   : > { %v2998_v27 = vcombine.low %v2990_v24, %v2997_v34  ;;  %v5516_v49 = vrot.slane %v5502_v14, %v14005_v12  ;;  %v3065_v19 = vrot.slane %v3049_v23, %v14005_v12  ;;  %v3095_v13 = vrot.slane %v3081_v44, %v14005_v12  ;;  %v22282_v23 = vld [vmem:[#allocation51_spill] sm:$0xff] }
 0x125   : > { %v3047_v53 = vcombine.low %v3039_v35, %v3046_v29  ;;  %v3111_v22 = vrot.slane %v15864_v50, %v14005_v12  ;;  %v5509_v35 = vrot.slane %v5501_v37, %v14005_v12  ;;  %v5533_v16 = vcombine.low %v15909_v30, %v5532_v61  ;;  %v22281_v29 = vld [vmem:[#allocation109_spill] sm:$0xff]  ;;  %v22284_v61 = vld [vmem:[#allocation11_spill] sm:$0xff] }
 0x126   : > { %13422 = vmatprep.mubr.msk.bf16.mxu0 %vm682_vm0, %v2998_v27  ;;  %v13042_v34 = vpack.i.b16 %v22192_v32, %v22235_v17  ;;  %v5755_v7 = vcombine.low %v22224_v1, %v14281_v39  ;;  %v3080_v24 = vcombine.low %v22280_v43, %v3065_v19  ;;  %v13035_v42 = vpack.i.b16 %v22122_v54, %v22201_v0 }
 0x127   : > { %13423 = vmatmul.mubr.msk.bf16.gmra.mrb[12].mxu0 %vm682_vm0, %v3047_v53  ;;  %v3112_v33 = vcombine.low %v22281_v29, %v3111_v22  ;;  %v3305_v6 = vcombine.low %v22197_v59, %v22198_v62  ;;  %v5517_v27 = vcombine.low %v5509_v35, %v5516_v49  ;;  %v5540_v14 = vrot.slane %v5533_v16, %v14005_v12  ;;  %v22283_v53 = vld [vmem:[#allocation36_spill] sm:$0xff]  ;;  %v22288_v29 = vld [vmem:[#allocation33_spill] sm:$0xff] }
 0x128   : > { %v5756_v38 = vcombine.low %v13042_v34, %v22282_v23  ;;  %v5763_v32 = vrot.slane %v5755_v7, %v14005_v12  ;;  %v3088_v45 = vrot.slane %v3080_v24, %v14005_v12  ;;  %v13063_v44 = vcombine.high %v22197_v59, %v22198_v62  ;;  %v22285_v62 = vld [vmem:[#allocation131_spill] sm:$0xff]  ;;  %v22287_v24 = vld [vmem:[#allocation37_spill] sm:$0xff] }
 0x129   : > { %v3119_v1 = vrot.slane %v3112_v33, %v14005_v12  ;;  %v3307_v54 = vcombine.low %v22199_v48, %v22200_v15  ;;  %13516 = vmatprep.mubr.msk.bf16.mxu1 %vm682_vm0, %v5517_v27  ;;  %v3308_v49 = vcombine.low %v13035_v42, %v22284_v61  ;;  %v3315_v19 = vrot.slane %v3305_v6, %v14005_v12  ;;  %v22286_v15 = vld [vmem:[#allocation59_spill] sm:$0xff]  ;;  %v22292_v61 = vld [vmem:[#allocation132_spill] sm:$0xff] }
 0x12a   : > { %v5770_v0 = vrot.slane %v5756_v38, %v14005_v12  ;;  %v5771_v37 = vcombine.low %v5763_v32, %v22283_v53  ;;  %13517 = vmatmul.mubr.msk.bf16.gmra.mrb[24].mxu1 %vm682_vm0, %v5540_v14  ;;  %v3096_v22 = vcombine.low %v3088_v45, %v3095_v13  ;;  %v3322_v35 = vrot.slane %v13063_v44, %v14005_v12  ;;  %v22289_v32 = vld [vmem:[#allocation76_spill] sm:$0xff] }
 0x12b   : > { %v3329_v59 = vrot.slane %v3307_v54, %v14005_v12  ;;  %v3357_v48 = vcombine.low %v14281_v39, %v22285_v62  ;;  %v3336_v43 = vrot.slane %v3308_v49, %v14005_v12  ;;  %v3386_v33 = vcombine.low %v22288_v29, %v22287_v24  ;;  %v22297_v24 = vld [vmem:[#allocation53_spill] sm:$0xff] }
 0x12c   : > { %v5772_v16 = vcombine.low %v22286_v15, %v5770_v0  ;;  %v5779_v7 = vrot.slane %v5771_v37, %v14005_v12  ;;  %13426 = vmatprep.mubr.msk.bf16.mxu0 %vm682_vm0, %v3096_v22  ;;  %v3337_v42 = vcombine.low %v3315_v19, %v3322_v35  ;;  %v15961_v6 = vpack.i.b16 %v22072_v52, %v22222_v31  ;;  %v22290_v52 = vld [vmem:[#allocation67_spill] sm:$0xff]  ;;  %v22291_v37 = vld [vmem:[#allocation40_spill] sm:$0xff] }
 0x12d   : > { %v15957_v13 = vrot.slane %v3357_v48, %v14005_v12  ;;  %v5814_v39 = vcombine.low %v15420_v40, %v22148_v55  ;;  %v3338_v14 = vcombine.low %v3329_v59, %v3336_v43  ;;  %v3394_v38 = vrot.slane %v3386_v33, %v14005_v12  ;;  %v22293_v35 = vld [vmem:[#allocation44_spill] sm:$0xff]  ;;  %v15988_v48 = vld [vmem:[%s20842_s4 + $0x40] sm:$0xff]  }
 0x12e   : > { %v5786_v27 = vrot.slane %v5772_v16, %v14005_v12  ;;  %v5830_v45 = vcombine.low %v22289_v32, %v22086_v41  ;;  %v3345_v44 = vrot.slane %v3337_v42, %v14005_v12  ;;  %v5805_v0 = vcombine.low %v22290_v52, %v15961_v6  ;;  %v22295_v16 = vld [vmem:[#allocation99_spill] sm:$0xff]  ;;  %v22296_v43 = vld [vmem:[#allocation56_spill] sm:$0xff] }
 0x12f   : > { %13427 = vmatmul.mubr.msk.bf16.gmra.mrb[16].mxu0 %vm682_vm0, %v3119_v1  ;;  %v3387_v54 = vcombine.low %v15736_v8, %v15957_v13  ;;  %v5828_v55 = vrot.slane %v5814_v39, %v14005_v12  ;;  %v3352_v1 = vrot.slane %v3338_v14, %v14005_v12  ;;  %v3403_v49 = vcombine.low %v22292_v61, %v22291_v37  ;;  %v22294_v8 = vld [vmem:[#allocation52_spill] sm:$0xff] }
 0x130   : > { %v5787_v40 = vcombine.low %v5779_v7, %v5786_v27  ;;  %v5837_v53 = vrot.slane %v5830_v45, %v14005_v12  ;;  %v5812_v22 = vrot.slane %v5805_v0, %v14005_v12  ;;  %v3404_v59 = vcombine.low %v22293_v35, %v13042_v34  ;;  %v22299_v42 = vld [vmem:[#allocation72_spill] sm:$0xff] }
 0x131   : > { %v3401_v19 = vrot.slane %v3387_v54, %v14005_v12  ;;  %v3405_v62 = vcombine.low %v22282_v23, %v22294_v8  ;;  %v3353_v15 = vcombine.low %v3345_v44, %v3352_v1  ;;  %v3406_v29 = vcombine.low %v22297_v24, %v22296_v43  ;;  %v22300_v54 = vld [vmem:[#allocation55_spill] sm:$0xff] }
 0x132   : > { %13522 = vmatprep.mubr.msk.bf16.mxu1 %vm682_vm0, %v5787_v40  ;;  %v5838_v7 = vcombine.low %v22295_v16, %v5837_v53  ;;  %v15995_v33 = vrot.slane %v3403_v49, %v14005_v12  ;;  %v22298_v34 = vcombine.low %v22228_v63, %v22227_v47  ;;  %v5813_v39 = vcombine.low %v22299_v42, %v5812_v22  ;;  %v22301_v47 = vld [vmem:[#allocation54_spill] sm:$0xff]  ;;  %v22302_v40 = vld [vmem:[#allocation39_spill] sm:$0xff]  ;;  %v22303_v53 = vld [vmem:[#allocation108_spill] sm:$0xff] }
 0x133   : > { %v3402_v23 = vcombine.low %v3394_v38, %v3401_v19  ;;  %v3420_v27 = vrot.slane %v3404_v59, %v14005_v12  ;;  %v3427_v14 = vrot.slane %v3405_v62, %v14005_v12  ;;  %13432 = vmatprep.mubr.msk.bf16.mxu0 %vm682_vm0, %v3353_v15  ;;  %v16008_v44 = vrot.slane %v3406_v29, %v14005_v12  ;;  %v22304_v49 = vld [vmem:[#allocation63_spill] sm:$0xff]  ;;  %v22305_v29 = vld [vmem:[#allocation112_spill] sm:$0xff] }
 0x134   : > { %13523 = vmatmul.mubr.msk.bf16.vlgmr.msra.gmra.mrb[0].mxu1 %vm682_vm0, %v22298_v34  ;;  %v5845_v45 = vrot.slane %v5838_v7, %v14005_v12  ;;  %v3452_v63 = vcombine.low %v22301_v47, %v22300_v54  ;;  %v5821_v38 = vrot.slane %v5813_v39, %v14005_v12  ;;  %v3453_v1 = vcombine.low %v22302_v40, %v22212_v9  ;;  %v22306_v34 = vld [vmem:[#allocation119_spill] sm:$0xff] }
 0x135   : > { %13539 = vmatpush3.bf16.msra.mxu1 %v15692_v36  ;;  %v3435_v0 = vcombine.low %v15995_v33, %v3420_v27  ;;  %v13064_v36 = vcombine.high %v22302_v40, %v22212_v9  ;;  %v3436_v61 = vcombine.low %v3427_v14, %v16008_v44  ;;  %v3455_v19 = vcombine.low %v22304_v49, %v22290_v52  ;;  %v22314_v49 = vld [vmem:[#allocation125_spill] sm:$0xff]  ;;  %v22330_v24 = vld [vmem:[#allocation35_spill] sm:$0xff] }
 0x136   : > { %13556 = vmatprep.subr.bf16.mxu1 %v15988_v48  ;;  %v5846_v37 = vcombine.low %v5845_v45, %v22303_v53  ;;  %v16025_v22 = vrot.slane %v3452_v63, %v14005_v12  ;;  %v5829_v59 = vcombine.low %v5821_v38, %v5828_v55  ;;  %v3469_v15 = vrot.slane %v3453_v1, %v14005_v12  ;;  %v22309_v63 = vld [vmem:[#allocation9_spill] sm:$0xff]  ;;  %v22312_v1 = vld [vmem:[#allocation87_spill] sm:$0xff] }
 0x137   : > { %13433 = vmatmul.mubr.msk.bf16.vlgmr.msra.gmra.mrb[4].mxu0 %vm682_vm0, %v3402_v23  ;;  %v3443_v62 = vrot.slane %v3435_v0, %v14005_v12  ;;  %v16030_v16 = vrot.slane %v13064_v36, %v14005_v12  ;;  %v3450_v7 = vrot.slane %v3436_v61, %v14005_v12  ;;  %v16034_v43 = vrot.slane %v3455_v19, %v14005_v12  ;;  %v22313_v36 = vld [vmem:[#allocation86_spill] sm:$0xff] }
 0x138   : > { %13526 = vmatprep.mubr.msk.bf16.mxu1 %vm682_vm0, %v5829_v59  ;;  %v3484_v52 = vcombine.low %v16025_v22, %v3469_v15  ;;  %v13056_v55 = vpack.i.b16 %v22097_v26, %v14664_v11  ;;  %v5848_v23 = vcombine.low %v22306_v34, %v22305_v29  ;;  %v13154_v42 = vpack.i.b16 %v15265_v21, %v22270_v46  ;;  %v22316_v15 = vld [vmem:[#allocation89_spill] sm:$0xff] }
 0x139   : > { %v22307_v39 = vcombine.low %v15646_v4, %v15710_v58  ;;  %v22308_v14 = vcombine.low %v15729_v28, %v15714_v60  ;;  %v3451_v54 = vcombine.low %v3443_v62, %v3450_v7  ;;  %v3485_v26 = vcombine.low %v16030_v16, %v16034_v43  ;;  %v22310_v58 = vld [vmem:[#allocation121_spill] sm:$0xff]  ;;  %v22311_v28 = vld [vmem:[#allocation14_spill] sm:$0xff]  ;;  %v22315_v62 = vld [vmem:[#allocation88_spill] sm:$0xff] }
 0x13a   : > { %v3492_v47 = vrot.slane %v3484_v52, %v14005_v12  ;;  %v5847_v38 = vcombine.low %v13056_v55, %v22309_v63  ;;  %v5862_v4 = vrot.slane %v5848_v23, %v14005_v12  ;;  %v5880_v0 = vcombine.low %v22310_v58, %v13154_v42  ;;  %v22317_v23 = vld [vmem:[#allocation69_spill] sm:$0xff] }
 0x13b   : > { %v16050_v27 = vrot.slane %v22307_v39, %v14005_v12  ;;  %v16056_v45 = vrot.slane %v22308_v14, %v14005_v12  ;;  %13436 = vmatprep.mubr.msk.bf16.mxu0 %vm682_vm0, %v3451_v54  ;;  %v3499_v60 = vrot.slane %v3485_v26, %v14005_v12  ;;  %v3501_v40 = vcombine.low %v15961_v6, %v22311_v28  ;;  %v22318_v6 = vld [vmem:[#allocation90_spill] sm:$0xff]  ;;  %v22319_v54 = vld [vmem:[#allocation107_spill] sm:$0xff] }
 0x13c   : > { %13527 = vmatmul.mubr.msk.bf16.gmra.mrb[4].mxu1 %vm682_vm0, %v5846_v37  ;;  %v3502_v53 = vcombine.low %v22313_v36, %v22312_v1  ;;  %v2680_v37 = vunpack.i.l.s16 %v22270_v46  ;;  %v5855_v61 = vrot.slane %v5847_v38, %v14005_v12  ;;  %v5864_v19 = vcombine.low %v22314_v49, %v5862_v4  ;;  %v22320_v4 = vld [vmem:[#allocation8_spill] sm:$0xff] }
 0x13d   : > { %v5887_v59 = vrot.slane %v5880_v0, %v14005_v12  ;;  %v3503_v7 = vcombine.low %v22316_v15, %v22315_v62  ;;  %v3500_v52 = vcombine.low %v3492_v47, %v3499_v60  ;;  %v3504_v39 = vcombine.low %v22318_v6, %v22289_v32  ;;  %v22321_v32 = vld [vmem:[#allocation13_spill] sm:$0xff]  ;;  %v22323_v36 = vld [vmem:[#allocation80_spill] sm:$0xff]  ;;  %v2110_v15 = vld [vmem:[%s14007_s25 + $0xa0] sm:$0xff] }
 0x13e   : > { %v3511_v14 = vrot.slane %v3501_v40, %v14005_v12  ;;  %v5863_v26 = vcombine.low %v5855_v61, %v22319_v54  ;;  %v5878_v38 = vrot.slane %v5864_v19, %v14005_v12  ;;  %v16086_v28 = vrot.slane %v3502_v53, %v14005_v12  ;;  %v22322_v40 = vld [vmem:[#allocation92_spill] sm:$0xff]  ;;  %v22325_v54 = vld [vmem:[#allocation102_spill] sm:$0xff] }
 0x13f   : > { %v5888_v0 = vcombine.low %v5887_v59, %v22320_v4  ;;  %13437 = vmatmul.mubr.msk.bf16.gmra.mrb[8].mxu0 %vm682_vm0, %v3500_v52  ;;  %v16090_v47 = vrot.slane %v3503_v7, %v14005_v12  ;;  %v3532_v60 = vrot.slane %v3504_v39, %v14005_v12  ;;  %v3550_v1 = vcombine.low %v22086_v41, %v22321_v32  ;;  %v22324_v59 = vld [vmem:[#allocation93_spill] sm:$0xff]  ;;  %v2111_v52 = vld [vmem:[%s14007_s25 + $0xa8] sm:$0x7f] }
 0x140   : > { %v3551_v61 = vcombine.low %v22323_v36, %v22322_v40  ;;  %v5871_v49 = vrot.slane %v5863_v26, %v14005_v12  ;;  %v3533_v53 = vcombine.low %v3511_v14, %v16086_v28  ;;  %v3552_v62 = vcombine.low %v22324_v59, %v13056_v55  ;;  %v22328_v32 = vld [vmem:[#allocation133_spill] sm:$0xff] }
 0x141   : > { %v5895_v19 = vrot.slane %v5888_v0, %v14005_v12  ;;  %v3534_v7 = vcombine.low %v16090_v47, %v3532_v60  ;;  %v3553_v39 = vcombine.low %v22309_v63, %v22325_v54  ;;  %v16107_v41 = vrot.slane %v3550_v1, %v14005_v12 }
 0x142   : > { %v16110_v4 = vrot.slane %v3551_v61, %v14005_v12  ;;  %v5879_v26 = vcombine.low %v5871_v49, %v5878_v38  ;;  %v3541_v14 = vrot.slane %v3533_v53, %v14005_v12  ;;  %v3574_v55 = vrot.slane %v3552_v62, %v14005_v12  ;;  %v22329_v61 = vld [vmem:[#allocation34_spill] sm:$0xff]  ;;  %v22331_v49 = vld [vmem:[#allocation116_spill] sm:$0xff] }
 0x143   : > { %22326 = vst [vmem:[#allocation106_spill] sm:$0xff] %v16107_v41  ;;  %v5896_v0 = vcombine.low %v22328_v32, %v5895_v19  ;;  %v3548_v40 = vrot.slane %v3534_v7, %v14005_v12  ;;  %v3581_v60 = vrot.slane %v3553_v39, %v14005_v12  ;;  %v2122_v36 = vpack.c.bf16 %v2111_v52, %v2110_v15  ;;  %v22332_v19 = vld [vmem:[#allocation103_spill] sm:$0xff]  ;;  %v22333_v53 = vld [vmem:[#allocation118_spill] sm:$0xff] }
 0x144   : > { %22327 = vst [vmem:[#allocation110_spill] sm:$0xff] %v16110_v4  ;;  %v3582_v63 = vcombine.low %v16107_v41, %v16110_v4  ;;  %13530 = vmatprep.mubr.msk.bf16.mxu1 %vm682_vm0, %v5879_v26  ;;  %v13151_v1 = vpack.c.bf16 %v2111_v52, %v2111_v52  ;;  %v5913_v38 = vcombine.low %v22330_v24, %v22329_v61  ;;  %v22334_v24 = vld [vmem:[#allocation115_spill] sm:$0xff] }
 0x145   : > { %v3599_v32 = vcombine.low %v22332_v19, %v22331_v49  ;;  %v3600_v62 = vcombine.low %v22333_v53, %v22306_v34  ;;  %13531 = vmatmul.mubr.msk.bf16.gmra.mrb[8].mxu1 %vm682_vm0, %v5896_v0  ;;  %v3549_v7 = vcombine.low %v3541_v14, %v3548_v40  ;;  %v3583_v39 = vcombine.low %v3574_v55, %v3581_v60  ;;  %v22338_v19 = vld [vmem:[#allocation114_spill] sm:$0xff] }
 0x146   : > { %v3590_v42 = vrot.slane %v3582_v63, %v14005_v12  ;;  %v5690_v15 = vrot.slane %v2122_v36, %v14005_v12  ;;  %v16130_v26 = vrot.slane %v5913_v38, %v14005_v12  ;;  %v5697_v52 = vrot.slane %v13151_v1, %v14005_v12 }
 0x147   : > { %v3601_v61 = vcombine.low %v22305_v29, %v22334_v24  ;;  %v13065_v49 = vcombine.high %v22305_v29, %v22334_v24  ;;  %13440 = vmatprep.mubr.msk.bf16.mxu0 %vm682_vm0, %v3549_v7  ;;  %v3597_v34 = vrot.slane %v3583_v39, %v14005_v12  ;;  %v16143_v55 = vrot.slane %v3599_v32, %v14005_v12 }
 0x148   : > { %v5698_v0 = vcombine.high %v5690_v15, %v5690_v15  ;;  %v16140_v14 = vrot.slane %v5690_v15, %v14005_v12  ;;  %v5699_v40 = vcombine.high %v5697_v52, %v5697_v52  ;;  %v16146_v60 = vrot.slane %v5697_v52, %v14005_v12 }
 0x149   : > { %22335 = vst [vmem:[#allocation6_spill] sm:$0xff] %v16143_v55  ;;  %v16149_v63 = vrot.slane %v3600_v62, %v14005_v12  ;;  %v3623_v29 = vrot.slane %v3601_v61, %v14005_v12  ;;  %v3598_v36 = vcombine.low %v3590_v42, %v3597_v34  ;;  %v16156_v38 = vrot.slane %v13065_v49, %v14005_v12  ;;  %v22340_v34 = vld [vmem:[#allocation134_spill] sm:$0xff] }
 0x14a   : > { %v16153_v1 = vrot.slane %v5698_v0, %v14005_v12  ;;  %v3648_v32 = vcombine.low %v22338_v19, %v22310_v58  ;;  %v16161_v53 = vrot.slane %v5699_v40, %v14005_v12  ;;  %v16165_v7 = vcombine.high %v16146_v60, %v16146_v60  ;;  %v22341_v0 = vld [vmem:[#allocation127_spill] sm:$0xff] }
 0x14b   : > { %22336 = vst [vmem:[#allocation32_spill] sm:$0xff] %v16149_v63  ;;  %22337 = vst [vmem:[#allocation21_spill] sm:$0xff] %v16156_v38  ;;  %v3631_v62 = vcombine.low %v16143_v55, %v16149_v63  ;;  %v3662_v42 = vrot.slane %v2680_v37, %v14005_v12  ;;  %13441 = vmatmul.mubr.msk.bf16.gmra.mrb[12].mxu0 %vm682_vm0, %v3598_v36  ;;  %v3632_v15 = vcombine.low %v3623_v29, %v16156_v38  ;;  %v22342_v63 = vld [vmem:[#allocation42_spill] sm:$0xff]  ;;  %v22343_v55 = vld [vmem:[#allocation101_spill] sm:$0xff] }
 0x14c   : > { %v5897_v39 = vcombine.low %v16140_v14, %v16153_v1  ;;  %v13155_v58 = vcombine.high %v16140_v14, %v16153_v1  ;;  %v16179_v52 = vrot.slane %v3648_v32, %v14005_v12  ;;  %v5743_v61 = vunpack.i.l.s16 %v16165_v7 }
 0x14d   : > { %v5930_v49 = vcombine.low %v16146_v60, %v16161_v53  ;;  %v3639_v37 = vrot.slane %v3631_v62, %v14005_v12  ;;  %v6106_v40 = vcombine.low %v22341_v0, %v22340_v34  ;;  %v3646_v46 = vrot.slane %v3632_v15, %v14005_v12 }
 0x14e   : > { %22339 = vst [vmem:[#allocation26_spill] sm:$0xff] %v16179_v52  ;;  %v5905_v36 = vrot.slane %v5897_v39, %v14005_v12  ;;  %v5912_v19 = vrot.slane %v13155_v58, %v14005_v12  ;;  %v3663_v29 = vcombine.low %v16179_v52, %v3662_v42  ;;  %v5944_v38 = vrot.slane %v5743_v61, %v14005_v12  ;;  %v22344_v42 = vld [vmem:[#allocation60_spill] sm:$0xff] }
 0x14f   : > { %v5937_v32 = vrot.slane %v5930_v49, %v14005_v12  ;;  %v6107_v4 = vcombine.low %v22343_v55, %v22342_v63  ;;  %v6114_v62 = vrot.slane %v6106_v40, %v14005_v12  ;;  %v3647_v2 = vcombine.low %v3639_v37, %v3646_v46  ;;  %v22345_v49 = vld [vmem:[#allocation145_spill] sm:$0xff]  ;;  %v22346_v55 = vld [vmem:[#allocation104_spill] sm:$0xff]  ;;  %v22348_v37 = vld [vmem:[#allocation147_spill] sm:$0xff] }
 0x150   : > { %v5914_v41 = vcombine.low %v5905_v36, %v5912_v19  ;;  %v3670_v34 = vrot.slane %v3663_v29, %v14005_v12  ;;  %v6163_v39 = vcombine.low %v16050_v27, %v16056_v45  ;;  %v6164_v61 = vcombine.low %v22345_v49, %v15838_v20  ;;  %v22347_v63 = vld [vmem:[#allocation73_spill] sm:$0xff] }
 0x151   : > { %v5945_v58 = vcombine.low %v5937_v32, %v5944_v38  ;;  %v6121_v15 = vrot.slane %v6107_v4, %v14005_v12  ;;  %v6122_v0 = vcombine.low %v6114_v62, %v22344_v42  ;;  %13444 = vmatprep.mubr.msk.bf16.mxu0 %vm682_vm0, %v3647_v2  ;;  %v6173_v46 = vcombine.low %v22347_v63, %v22346_v55  ;;  %v22349_v4 = vld [vmem:[#allocation98_spill] sm:$0xff]  ;;  %v22351_v29 = vld [vmem:[#allocation61_spill] sm:$0xff]  ;;  %v22352_v62 = vld [vmem:[#allocation95_spill] sm:$0xff] }
 0x152   : > { %v5928_v52 = vrot.slane %v5914_v41, %v14005_v12  ;;  %v6189_v40 = vcombine.low %v22265_v57, %v22348_v37  ;;  %v6198_v27 = vcombine.low %v15805_v56, %v15814_v3  ;;  %v6171_v20 = vrot.slane %v6164_v61, %v14005_v12  ;;  %v22354_v42 = vld [vmem:[#allocation82_spill] sm:$0xff] }
 0x153   : > { %v5952_v45 = vrot.slane %v5945_v58, %v14005_v12  ;;  %v6123_v38 = vcombine.low %v22349_v4, %v6121_v15  ;;  %v6130_v36 = vrot.slane %v6122_v0, %v14005_v12  ;;  %v22350_v2 = vcombine.low %v22317_v23, %v22212_v9  ;;  %13445 = vmatmul.mubr.msk.bf16.gmra.mrb[20].mxu0 %vm682_vm0, %v3670_v34  ;;  %v22353_v58 = vld [vmem:[#allocation126_spill] sm:$0xff]  ;;  %v22359_v4 = vld [vmem:[#allocation4_spill] sm:$0xff] }
 0x154   : > { %v5929_v19 = vcombine.low %v16130_v26, %v5928_v52  ;;  %v6187_v57 = vrot.slane %v6173_v46, %v14005_v12  ;;  %v6196_v56 = vrot.slane %v6189_v40, %v14005_v12  ;;  %v6172_v32 = vcombine.low %v22351_v29, %v6171_v20  ;;  %v22356_v26 = vld [vmem:[#allocation128_spill] sm:$0xff]  ;;  %v22358_v40 = vld [vmem:[#allocation10_spill] sm:$0xff] }
 0x155   : > { %v6518_v41 = vrot.slane %v22350_v2, %v14005_v12  ;;  %v6137_v3 = vrot.slane %v6123_v38, %v14005_v12  ;;  %v6214_v15 = vcombine.low %v22353_v58, %v22352_v62  ;;  %v6215_v0 = vcombine.low %v14801_v18, %v22354_v42 }
 0x156   : > { %13534 = vmatprep.mubr.msk.bf16.mxu1 %vm682_vm0, %v5929_v19  ;;  %v22355_v9 = vunpack.i.h.s16 %v15265_v21  ;;  %v6255_v52 = vcombine.low %v22356_v26, %v15887_v51  ;;  %v16237_v34 = vcombine.high %v16140_v14, %v16140_v14  ;;  %v6180_v61 = vrot.slane %v6172_v32, %v14005_v12  ;;  %v22357_v21 = vld [vmem:[#allocation123_spill] sm:$0xff] }
 0x157   : > { %13535 = vmatmul.mubr.msk.bf16.gmra.mrb[28].mxu1 %vm682_vm0, %v5952_v45  ;;  %v6138_v49 = vcombine.low %v6130_v36, %v6137_v3  ;;  %v6222_v18 = vrot.slane %v6214_v15, %v14005_v12  ;;  %v6229_v55 = vrot.slane %v6215_v0, %v14005_v12  ;;  %v6520_v63 = vcombine.low %v6518_v41, %v16030_v16 }
 0x158   : > { %v6098_v23 = vpack.i.b16 %v22355_v9, %v15864_v50  ;;  %v6197_v50 = vcombine.low %v22357_v21, %v6196_v56  ;;  %v16248_v51 = vcombine.high %v16153_v1, %v16153_v1  ;;  %v6188_v37 = vcombine.low %v6180_v61, %v6187_v57 }
 0x159   : > { %13540 = vmatprep.mubr.msk.bf16.mxu1 %vm682_vm0, %v6138_v49  ;;  %v6230_v45 = vcombine.low %v6222_v18, %v22358_v40  ;;  %v6231_v38 = vcombine.low %v22359_v4, %v6229_v55  ;;  %v5732_v36 = vunpack.i.h.s16 %v16140_v14  ;;  %v6263_v16 = vrot.slane %v6255_v52, %v14005_v12 }
 0x15a   : > { %v6247_v46 = vcombine.low %v22277_v5, %v6098_v23  ;;  %v5734_v2 = vunpack.i.h.s16 %v16153_v1  ;;  %v5736_v5 = vunpack.i.h.s16 %v16237_v34  ;;  %v5738_v57 = vunpack.i.h.s16 %v16248_v51 }
 0x15b   : > { %v6238_v41 = vrot.slane %v6230_v45, %v14005_v12  ;;  %v6245_v19 = vrot.slane %v6231_v38, %v14005_v12  ;;  %v13167_v56 = vpack.i.b16 %v16153_v1, %v5732_v36  ;;  %v6288_v32 = vcombine.low %v15893_v10, %v15909_v30 }
 0x15c   : > { %v6254_v20 = vrot.slane %v6247_v46, %v14005_v12  ;;  %v13168_v14 = vpack.i.b16 %v16237_v34, %v5734_v2  ;;  %v13169_v29 = vpack.i.b16 %v16248_v51, %v5736_v5  ;;  %v22360_v62 = vcombine.low %v16008_v44, %v16025_v22 }
 0x15d   : > { %v6246_v15 = vcombine.low %v6238_v41, %v6245_v19  ;;  %v13170_v42 = vpack.i.b16 %v16146_v60, %v5738_v57  ;;  %v16275_v0 = vrot.slane %v6520_v63, %v14005_v12  ;;  %v6205_v10 = vrot.slane %v6197_v50, %v14005_v12 }
 0x15e   : > { %v6256_v3 = vcombine.low %v6254_v20, %v15890_v25  ;;  %v16271_v58 = vrot.slane %v22360_v62, %v14005_v12  ;;  %v6212_v25 = vrot.slane %v6198_v27, %v14005_v12  ;;  %v6272_v23 = vcombine.low %v13167_v56, %v13168_v14 }
 0x15f   : > { %13541 = vmatmul.mubr.msk.bf16.vlgmr.msra.gmra.mrb[0].mxu1 %vm682_vm0, %v6163_v39  ;;  %v6273_v30 = vcombine.low %v13169_v29, %v13170_v42  ;;  %v5740_v44 = vunpack.i.h.s16 %v16146_v60  ;;  %v5742_v22 = vunpack.i.h.s16 %v16161_v53  ;;  %v6478_v63 = vcombine.low %v22293_v35, %v22235_v17  ;;  %v22365_v42 = vld [vmem:[#allocation120_spill] sm:$0xff] }
 0x160   : > { %v6270_v9 = vrot.slane %v6256_v3, %v14005_v12  ;;  %13557 = vmatpush3.bf16.msra.mxu1 %v15988_v48  ;;  %13544 = vmatprep.mubr.msk.bf16.mxu1 %vm682_vm0, %v6188_v37  ;;  %v6280_v52 = vrot.slane %v6272_v23, %v14005_v12  ;;  %v6535_v49 = vcombine.low %v16271_v58, %v16275_v0  ;;  %v22361_v48 = vld [vmem:[#allocation57_spill] sm:$0xff]  ;;  %v6094_v50 = vunpack.i.h.s16 %v16165_v7  ;;  %v22364_v58 = vld [vmem:[#allocation100_spill] sm:$0xff]  ;;  %v22367_v23 = vld [vmem:[#allocation7_spill] sm:$0xff] }
 0x161   : > { %v6287_v27 = vrot.slane %v6273_v30, %v14005_v12  ;;  %v6213_v39 = vcombine.low %v6205_v10, %v6212_v25  ;;  %v13171_v61 = vpack.i.b16 %v16161_v53, %v5740_v44  ;;  %v13172_v18 = vpack.i.b16 %v16165_v7, %v5742_v22  ;;  %v22368_v10 = vld [vmem:[#allocation106_spill] sm:$0xff] }
 0x162   : > { %v6271_v26 = vcombine.low %v6263_v16, %v6270_v9  ;;  %v6479_v21 = vcombine.low %v22361_v48, %v22294_v8  ;;  %v6296_v37 = vrot.slane %v6288_v32, %v14005_v12  ;;  %v6486_v45 = vrot.slane %v6478_v63, %v14005_v12  ;;  %v22362_v8 = vld [vmem:[#allocation84_spill] sm:$0xff]  ;;  %v22369_v44 = vld [vmem:[#allocation110_spill] sm:$0xff] }
 0x163   : > { %v6289_v55 = vcombine.low %v6280_v52, %v6287_v27  ;;  %v6305_v46 = vcombine.low %v13171_v61, %v13172_v18  ;;  %v6319_v35 = vrot.slane %v6094_v50, %v14005_v12  ;;  %v6536_v38 = vcombine.low %v22222_v31, %v22362_v8  ;;  %v22366_v9 = vld [vmem:[#allocation124_spill] sm:$0xff]  ;;  %v22372_v61 = vld [vmem:[#allocation6_spill] sm:$0xff] }
 0x164   : > { %v6493_v4 = vrot.slane %v6479_v21, %v14005_v12  ;;  %v6494_v20 = vcombine.low %v15957_v13, %v15995_v33  ;;  %v6709_v41 = vcombine.low %v16161_v53, %v16165_v7  ;;  %v6545_v13 = vcombine.low %v16086_v28, %v16090_v47  ;;  %v22363_v33 = vld [vmem:[#allocation91_spill] sm:$0xff]  ;;  %v22371_v52 = vld [vmem:[#allocation12_spill] sm:$0xff]  ;;  %v22374_v48 = vld [vmem:[#allocation122_spill] sm:$0xff] }
 0x165   : > { %v6303_v40 = vrot.slane %v6289_v55, %v14005_v12  ;;  %v6312_v17 = vrot.slane %v6305_v46, %v14005_v12  ;;  %v6543_v5 = vrot.slane %v6536_v38, %v14005_v12  ;;  %v6561_v3 = vcombine.low %v22318_v6, %v22363_v33  ;;  %v22373_v55 = vld [vmem:[#allocation32_spill] sm:$0xff] }
 0x166   : > { %v6495_v16 = vcombine.low %v6486_v45, %v6493_v4  ;;  %v6502_v19 = vrot.slane %v6494_v20, %v14005_v12  ;;  %v16315_v31 = vpop.f32.mrb[12].mxu1  ;;  %v6562_v14 = vcombine.low %v22324_v59, %v14664_v11  ;;  %v6595_v0 = vcombine.low %v22365_v42, %v22334_v24  ;;  %v22375_v50 = vld [vmem:[#allocation64_spill] sm:$0xff]  ;;  %v22378_v45 = vld [vmem:[#allocation25_spill] sm:$0xff] }
 0x167   : > { %13545 = vmatmul.mubr.msk.bf16.gmra.mrb[4].mxu1 %vm682_vm0, %v6213_v39  ;;  %v6304_v36 = vcombine.low %v6296_v37, %v6303_v40  ;;  %v6320_v2 = vcombine.low %v6312_v17, %v6319_v35  ;;  %v16317_v56 = vpop.f32.mrb[13].mxu1  ;;  %v6544_v62 = vcombine.low %v16034_v43, %v6543_v5  ;;  %v6559_v47 = vrot.slane %v6545_v13, %v14005_v12  ;;  %v22376_v46 = vld [vmem:[#allocation20_spill] sm:$0xff]  ;;  %v22377_v40 = vld [vmem:[#allocation70_spill] sm:$0xff] }
 0x168   : > { %13548 = vmatprep.mubr.msk.bf16.mxu1 %vm682_vm0, %v6246_v15  ;;  %v6509_v57 = vrot.slane %v6495_v16, %v14005_v12  ;;  %v13465_v29 = vpop.f32.mrb[14].mxu1  ;;  %v6594_v15 = vcombine.low %v22364_v58, %v22325_v54  ;;  %v6569_v6 = vrot.slane %v6561_v3, %v14005_v12  ;;  %v6576_v11 = vrot.slane %v6562_v14, %v14005_v12 }
 0x169   : > { %v6327_v32 = vrot.slane %v6320_v2, %v14005_v12  ;;  %v16331_v25 = vpop.f32.mrb[15].mxu1  ;;  %v6552_v59 = vrot.slane %v6544_v62, %v14005_v12  ;;  %v6609_v54 = vrot.slane %v6595_v0, %v14005_v12  ;;  %v13184_v24 = vpack.i.b16 %v22367_v23, %v22366_v9 }
 0x16a   : > { %v6510_v28 = vcombine.low %v6502_v19, %v6509_v57  ;;  %v6602_v43 = vrot.slane %v6594_v15, %v14005_v12  ;;  %v6577_v30 = vcombine.low %v6569_v6, %v22368_v10  ;;  %v6578_v22 = vcombine.low %v22369_v44, %v6576_v11  ;;  %v22380_v19 = vld [vmem:[#allocation21_spill] sm:$0xff] }
 0x16b   : > { %v6560_v39 = vcombine.low %v6552_v59, %v6559_v47  ;;  %v6611_v63 = vcombine.low %v22373_v55, %v6609_v54  ;;  %v6627_v21 = vcombine.low %v22374_v48, %v13184_v24  ;;  %v6660_v37 = vcombine.low %v22376_v46, %v22375_v50 }
 0x16c   : > { %v6610_v18 = vcombine.low %v6602_v43, %v22372_v61  ;;  %v6661_v4 = vcombine.low %v22378_v45, %v22377_v40  ;;  %v6662_v17 = vcombine.low %v16153_v1, %v16237_v34  ;;  %v6663_v35 = vcombine.low %v16248_v51, %v16146_v60 }
 0x16d   : > { %v6585_v8 = vrot.slane %v6577_v30, %v14005_v12  ;;  %v6592_v38 = vrot.slane %v6578_v22, %v14005_v12  ;;  %v6625_v20 = vrot.slane %v6611_v63, %v14005_v12  ;;  %v6635_v16 = vrot.slane %v6627_v21, %v14005_v12 }
 0x16e   : > { %v6670_v1 = vrot.slane %v6660_v37, %v14005_v12  ;;  %v6677_v60 = vrot.slane %v6661_v4, %v14005_v12  ;;  %v6684_v34 = vrot.slane %v6662_v17, %v14005_v12  ;;  %v6691_v51 = vrot.slane %v6663_v35, %v14005_v12 }
 0x16f   : > { %13549 = vmatmul.mubr.msk.bf16.gmra.mrb[8].mxu1 %vm682_vm0, %v6271_v26  ;;  %v22370_v26 = vld [vmem:[#allocation16_spill] sm:$0xff]  ;;  %v6593_v5 = vcombine.low %v6585_v8, %v6592_v38  ;;  %v6469_v33 = vcombine.high %v16161_v53, %v16161_v53 }
 0x170   : > { %13552 = vmatprep.mubr.msk.bf16.mxu1 %vm682_vm0, %v6304_v36  ;;  %v6628_v27 = vcombine.low %v22371_v52, %v22370_v26  ;;  %v6618_v36 = vrot.slane %v6610_v18, %v14005_v12  ;;  %v6692_v14 = vcombine.low %v6670_v1, %v6677_v60  ;;  %v6693_v29 = vcombine.low %v6684_v34, %v6691_v51  ;;  %v12981_v26 = vld [vmem:[%s20841_s3] ss:$0 sm:$0xff] }
 0x171   : > { %v6470_v58 = vunpack.i.l.s16 %v6469_v33 }
 0x172   : > { %v6642_v2 = vrot.slane %v6628_v27, %v14005_v12  ;;  %v6626_v3 = vcombine.low %v6618_v36, %v6625_v20  ;;  %v6700_v15 = vrot.slane %v6692_v14, %v14005_v12  ;;  %v6707_v42 = vrot.slane %v6693_v29, %v14005_v12 }
 0x173   : > { %v6723_v47 = vrot.slane %v6470_v58, %v14005_v12 }
 0x174   : > { %v6644_v13 = vcombine.low %v6635_v16, %v6642_v2  ;;  %v6708_v6 = vcombine.low %v6700_v15, %v6707_v42 }
 0x176   : > { %v6658_v62 = vrot.slane %v6644_v13, %v14005_v12 }
 0x177   : > { %13553 = vmatmul.mubr.msk.bf16.gmra.mrb[32].mxu1 %vm682_vm0, %v6327_v32 }
 0x178   : > { %13558 = vmatprep.mubr.msk.bf16.mxu1 %vm682_vm0, %v6510_v28  ;;  %v6716_v28 = vrot.slane %v6709_v41, %v14005_v12 }
 0x17a   : > { %v6724_v11 = vcombine.low %v6716_v28, %v6723_v47 }
 0x17c   : > { %v6731_v59 = vrot.slane %v6724_v11, %v14005_v12 }
 0x17f   : > { %13559 = vmatmul.mubr.msk.bf16.vlgmr.msra.gmra.mrb[0].mxu1 %vm682_vm0, %v6535_v49  ;;  %v22379_v49 = vld [vmem:[#allocation26_spill] sm:$0xff] }
 0x180   : > { %13562 = vmatprep.mubr.msk.bf16.mxu1 %vm682_vm0, %v6560_v39  ;;  %v6643_v57 = vcombine.low %v22380_v19, %v22379_v49  ;;  %v22381_v39 = vld [vmem:[#allocation2_spill] sm:$0xff] }
 0x181   : > { %v16407_v61 = vsub.s32 1, %v22381_v39  ;;  %v16410_v18 = vsub.s32 2, %v22381_v39  ;;  %v16413_v55 = vsub.s32 3, %v22381_v39  ;;  %v16420_v21 = vsub.s32 4, %v22381_v39 }
 0x182   : > { %v6651_v32 = vrot.slane %v6643_v57, %v14005_v12  ;;  %v16427_v4 = vsub.s32 5, %v22381_v39  ;;  %v16430_v17 = vsub.s32 6, %v22381_v39  ;;  %v16434_v38 = vsub.s32 7, %v22381_v39 }
 0x183   : > { %v16445_v51 = vsub.s32 0, %v22381_v39 }
 0x184   : > { %v6659_v0 = vcombine.low %v6651_v32, %v6658_v62 }
 0x187   : > { %13563 = vmatmul.mubr.msk.bf16.gmra.mrb[4].mxu1 %vm682_vm0, %v6593_v5 }
 0x188   : > { %13566 = vmatprep.mubr.msk.bf16.mxu1 %vm682_vm0, %v6626_v3 }
 0x18f   : > { %13567 = vmatmul.mubr.msk.bf16.gmra.mrb[8].mxu1 %vm682_vm0, %v6659_v0 }
 0x190   : > { %13570 = vmatprep.mubr.msk.bf16.mxu1 %vm682_vm0, %v6708_v6 }
 0x197   : > { %13571 = vmatmul.mubr.msk.bf16.gmra.mrb[36].mxu1 %vm682_vm0, %v6731_v59 }
 0x1a0   : > { %v16389_v43 = vpop.f32.mrb[16].mxu1 }
 0x1a1   : > { %v16391_v54 = vpop.f32.mrb[17].mxu1 }
 0x1a2   : > { %v13483_v9 = vpop.f32.mrb[18].mxu1 }
 0x1a3   : > { %v16393_v23 = vpop.f32.mrb[19].mxu1 }
 0x1ca   : > { %v16395_v53 = vpop.f32.mrb[20].mxu1 }
 0x1cb   : > { %v16397_v7 = vpop.f32.mrb[21].mxu1 }
 0x1cc   : > { %v13501_v41 = vpop.f32.mrb[22].mxu1 }
 0x1cd   : > { %v16399_v24 = vpop.f32.mrb[23].mxu1 }
 0x1d0   : > { %v13410_v10 = vpop.f32.mrb[0].mxu0 }
 0x1d1   : > { %v2053_v30 = vpop.f32.mrb[1].mxu0  ;;  %v2081_v52 = vadd.f32 %v13410_v10, %v12981_v26 }
 0x1d2   : > { %v13411_v44 = vpop.f32.mrb[2].mxu0  ;;  %v2079_v40 = vadd.f32 %v12981_v26, %v2053_v30 }
 0x1d3   : > { %v2056_v22 = vpop.f32.mrb[3].mxu0  ;;  %v16404_v27 = vmax.f32 %v2081_v52, 0.0  ;;  %v16442_v34 = vadd.f32 %v13411_v44, %v12981_v26 }
 0x1d4   : > { %v16439_v2 = vmax.f32 %v2079_v40, 0.0  ;;  %v16456_v29 = vadd.f32 %v12981_v26, %v2056_v22 }
 0x1d5   : > { %v10309_v63 = vrot.slane %v16404_v27, %v16407_v61  ;;  %v10461_v48 = vrot.slane %v16404_v27, %v16410_v18  ;;  %v10613_v50 = vrot.slane %v16404_v27, %v16413_v55  ;;  %v10810_v45 = vrot.slane %v16404_v27, %v16420_v21 }
 0x1d6   : > { %v10917_v19 = vrot.slane %v16404_v27, %v16427_v4  ;;  %v11069_v57 = vrot.slane %v16404_v27, %v16430_v17  ;;  %v11221_v14 = vrot.slane %v16404_v27, %v16434_v38  ;;  %v7877_v42 = vrot.slane %v16439_v2, %v16407_v61 }
 0x1d7   : > { %v10311_v46 = vcombine.high %v10309_v63, %v10309_v63  ;;  %v10463_v37 = vcombine.high %v10461_v48, %v10461_v48  ;;  %v10318_v35 = vrot.slane %v10309_v63, %v14005_v12  ;;  %v10615_v8 = vcombine.high %v10613_v50, %v10613_v50 }
 0x1d8   : > { %v10470_v20 = vrot.slane %v10461_v48, %v14005_v12  ;;  %v10622_v1 = vrot.slane %v10613_v50, %v14005_v12  ;;  %v10812_v60 = vcombine.high %v10810_v45, %v10810_v45  ;;  %v10819_v15 = vrot.slane %v10810_v45, %v14005_v12 }
 0x1d9   : > { %v10325_v36 = vrot.slane %v10311_v46, %v14005_v12  ;;  %v10477_v16 = vrot.slane %v10463_v37, %v14005_v12  ;;  %v10326_v5 = vcombine.high %v10318_v35, %v10318_v35  ;;  %v10629_v49 = vrot.slane %v10615_v8, %v14005_v12 }
 0x1da   : > { %v10478_v3 = vcombine.high %v10470_v20, %v10470_v20  ;;  %v16461_v62 = vrot.slane %v10318_v35, %v14005_v12  ;;  %v16470_v47 = vrot.slane %v10470_v20, %v14005_v12  ;;  %v10630_v6 = vcombine.high %v10622_v1, %v10622_v1 }
 0x1db   : > { %v10327_v33 = vcombine.high %v10325_v36, %v10325_v36  ;;  %v10479_v58 = vcombine.high %v10477_v16, %v10477_v16  ;;  %v16467_v28 = vrot.slane %v10325_v36, %v14005_v12  ;;  %v10826_v11 = vrot.slane %v10812_v60, %v14005_v12 }
 0x1dc   : > { %22382 = vst [vmem:[#allocation28_spill] sm:$0xff] %v16461_v62  ;;  %22384 = vst [vmem:[#allocation27_spill] sm:$0xff] %v16470_v47  ;;  %v16478_v41 = vrot.slane %v10326_v5, %v14005_v12  ;;  %v10631_v10 = vcombine.high %v10629_v49, %v10629_v49  ;;  %v10919_v30 = vcombine.high %v10917_v19, %v10917_v19 }
 0x1dd   : > { %22383 = vst [vmem:[#allocation29_spill] sm:$0xff] %v16467_v28  ;;  %v11071_v44 = vcombine.high %v11069_v57, %v11069_v57  ;;  %v16483_v26 = vrot.slane %v10327_v33, %v14005_v12  ;;  %v16486_v52 = vrot.slane %v10477_v16, %v14005_v12  ;;  %v16489_v39 = vrot.slane %v10478_v3, %v14005_v12 }
 0x1de   : > { %22385 = vst [vmem:[#allocation136_spill] sm:$0xff] %v16478_v41  ;;  %v16492_v63 = vrot.slane %v10622_v1, %v14005_v12  ;;  %v16495_v50 = vrot.slane %v10479_v58, %v14005_v12  ;;  %v10827_v46 = vcombine.high %v10819_v15, %v10819_v15  ;;  %v10926_v37 = vrot.slane %v10917_v19, %v14005_v12 }
 0x1df   : > { %22386 = vst [vmem:[#allocation135_spill] sm:$0xff] %v16483_v26  ;;  %22387 = vst [vmem:[#allocation138_spill] sm:$0xff] %v16486_v52  ;;  %v11223_v40 = vcombine.high %v11221_v14, %v11221_v14  ;;  %v16501_v35 = vrot.slane %v10629_v49, %v14005_v12  ;;  %v16504_v8 = vrot.slane %v10630_v6, %v14005_v12 }
 0x1e0   : > { %22388 = vst [vmem:[#allocation137_spill] sm:$0xff] %v16489_v39  ;;  %22389 = vst [vmem:[#allocation38_spill] sm:$0xff] %v16492_v63  ;;  %v10828_v36 = vcombine.high %v10826_v11, %v10826_v11  ;;  %v16507_v20 = vrot.slane %v11069_v57, %v14005_v12  ;;  %v16510_v16 = vrot.slane %v10631_v10, %v14005_v12 }
 0x1e1   : > { %22390 = vst [vmem:[#allocation58_spill] sm:$0xff] %v16495_v50  ;;  %22391 = vst [vmem:[#allocation15_spill] sm:$0xff] %v16501_v35  ;;  %v10933_v1 = vrot.slane %v10919_v30, %v14005_v12  ;;  %v11085_v60 = vrot.slane %v11071_v44, %v14005_v12  ;;  %v8029_v5 = vrot.slane %v16439_v2, %v16410_v18 }
 0x1e2   : > { %22392 = vst [vmem:[#allocation18_spill] sm:$0xff] %v16504_v8  ;;  %22393 = vst [vmem:[#allocation17_spill] sm:$0xff] %v16507_v20  ;;  %v16517_v49 = vrot.slane %v10819_v15, %v14005_v12  ;;  %v11230_v19 = vrot.slane %v11221_v14, %v14005_v12  ;;  %v7879_v33 = vcombine.high %v7877_v42, %v7877_v42 }
 0x1e3   : > { %22394 = vst [vmem:[#allocation22_spill] sm:$0xff] %v16510_v16  ;;  %v8181_v57 = vrot.slane %v16439_v2, %v16413_v55  ;;  %v16523_v3 = vrot.slane %v10826_v11, %v14005_v12  ;;  %v16526_v58 = vrot.slane %v10827_v46, %v14005_v12  ;;  %v11237_v6 = vrot.slane %v11223_v40, %v14005_v12 }
 0x1e4   : > { %22395 = vst [vmem:[#allocation23_spill] sm:$0xff] %v16517_v49  ;;  %v16530_v10 = vrot.slane %v10828_v36, %v14005_v12  ;;  %v16533_v15 = vrot.slane %v10926_v37, %v14005_v12  ;;  %v16539_v30 = vrot.slane %v16507_v20, %v14005_v12  ;;  %v10935_v44 = vcombine.high %v10933_v1, %v10933_v1 }
 0x1e5   : > { %22396 = vst [vmem:[#allocation19_spill] sm:$0xff] %v16523_v3  ;;  %22397 = vst [vmem:[#allocation24_spill] sm:$0xff] %v16526_v58  ;;  %v8031_v46 = vcombine.high %v8029_v5, %v8029_v5  ;;  %v8333_v40 = vrot.slane %v16439_v2, %v16420_v21  ;;  %v7893_v14 = vrot.slane %v7879_v33, %v14005_v12 }
 0x1e6   : > { %22398 = vst [vmem:[#allocation129_spill] sm:$0xff] %v16530_v10  ;;  %22399 = vst [vmem:[#allocation130_spill] sm:$0xff] %v16533_v15  ;;  %v11238_v10 = vcombine.high %v11230_v19, %v11230_v19  ;;  %v8183_v3 = vcombine.high %v8181_v57, %v8181_v57  ;;  %v16557_v35 = vrot.slane %v11085_v60, %v14005_v12 }
 0x1e7   : > { %22400 = vst [vmem:[#allocation65_spill] sm:$0xff] %v16539_v30  ;;  %v11239_v63 = vcombine.high %v11237_v6, %v11237_v6  ;;  %v16560_v50 = vrot.slane %v7877_v42, %v14005_v12  ;;  %v16568_v33 = vrot.slane %v8029_v5, %v14005_v12  ;;  %v8045_v42 = vrot.slane %v8031_v46, %v14005_v12 }
 0x1e8   : > { %22406 = vst [vmem:[#allocation140_spill] sm:$0xff] %v16557_v35  ;;  %v16584_v5 = vrot.slane %v11238_v10, %v14005_v12  ;;  %v7895_v52 = vcombine.high %v7893_v14, %v7893_v14  ;;  %v8342_v46 = vrot.slane %v8333_v40, %v14005_v12 }
 0x1e9   : > { %v16588_v47 = vrot.slane %v11239_v63, %v14005_v12  ;;  %v16602_v10 = vrot.slane %v16568_v33, %v14005_v12  ;;  %v8047_v63 = vcombine.high %v8045_v42, %v8045_v42 }
 0x1ea   : > { %22412 = vst [vmem:[#allocation30_spill] sm:$0xff] %v16584_v5  ;;  %v16609_v26 = vrot.slane %v7895_v52, %v14005_v12 }
 0x1eb   : > { %22413 = vst [vmem:[#allocation79_spill] sm:$0xff] %v16588_v47  ;;  %22416 = vst [vmem:[#allocation74_spill] sm:$0xff] %v16602_v10 }
 0x1ec   : > { %22417 = vst [vmem:[#allocation77_spill] sm:$0xff] %v16609_v26 }
 0x1fd   : > { %v16452_v13 = vpop.f32.mrb[24].mxu1 }
 0x1fe   : > { %v16458_v32 = vpop.f32.mrb[25].mxu1 }
 0x1ff   : > { %v13519_v0 = vpop.f32.mrb[26].mxu1 }
 0x200   : > { %v16473_v59 = vpop.f32.mrb[27].mxu1  ;;  %v10934_v0 = vcombine.high %v10926_v37, %v10926_v37  ;;  %v16548_v37 = vrot.slane %v10933_v1, %v14005_v12  ;;  %v16565_v1 = vrot.slane %v11230_v19, %v14005_v12  ;;  %v16581_v19 = vrot.slane %v11237_v6, %v14005_v12 }
 0x202   : > { %v16475_v9 = vpop.f32.mrb[16].mxu0  ;;  %22403 = vst [vmem:[#allocation41_spill] sm:$0xff] %v16548_v37  ;;  %v16554_v8 = vrot.slane %v10934_v0, %v14005_v12  ;;  %22408 = vst [vmem:[#allocation143_spill] sm:$0xff] %v16565_v1  ;;  %v8190_v37 = vrot.slane %v8181_v57, %v14005_v12  ;;  %v8530_v0 = vrot.slane %v16439_v2, %v16427_v4 }
 0x203   : > { %v16480_v22 = vpop.f32.mrb[17].mxu0  ;;  %22411 = vst [vmem:[#allocation31_spill] sm:$0xff] %v16581_v19  ;;  %v8197_v57 = vrot.slane %v8183_v3, %v14005_v12 }
 0x204   : > { %v13429_v48 = vpop.f32.mrb[18].mxu0  ;;  %22405 = vst [vmem:[#allocation62_spill] sm:$0xff] %v16554_v8  ;;  %v8198_v3 = vcombine.high %v8190_v37, %v8190_v37  ;;  %v8532_v5 = vcombine.high %v8530_v0, %v8530_v0  ;;  %v16615_v41 = vrot.slane %v8190_v37, %v14005_v12  ;;  %v8539_v62 = vrot.slane %v8530_v0, %v14005_v12 }
 0x205   : > { %v16498_v45 = vpop.f32.mrb[19].mxu0  ;;  %v11087_v48 = vcombine.high %v11085_v60, %v11085_v60  ;;  %v16574_v60 = vrot.slane %v10935_v44, %v14005_v12  ;;  %v16592_v44 = vrot.slane %v16560_v50, %v14005_v12  ;;  %v8199_v6 = vcombine.high %v8197_v57, %v8197_v57 }
 0x206   : > { %22419 = vst [vmem:[#allocation81_spill] sm:$0xff] %v16615_v41  ;;  %v7770_v37 = vrot.slane %v16439_v2, %v16445_v51  ;;  %v16638_v0 = vrot.slane %v8047_v63, %v14005_v12 }
 0x207   : > { %22409 = vst [vmem:[#allocation49_spill] sm:$0xff] %v16574_v60  ;;  %v16577_v35 = vrot.slane %v11087_v48, %v14005_v12  ;;  %22414 = vst [vmem:[#allocation71_spill] sm:$0xff] %v16592_v44  ;;  %v16595_v48 = vrot.slane %v7893_v14, %v14005_v12  ;;  %v2086_v14 = vmax.f32 %v16442_v34, 0.0  ;;  %v8789_v34 = vrot.slane %v16439_v2, %v16434_v38 }
 0x208   : > { %22425 = vst [vmem:[#allocation85_spill] sm:$0xff] %v16638_v0  ;;  %v7772_v15 = vcombine.high %v7770_v37, %v7770_v37 }
 0x209   : > { %22410 = vst [vmem:[#allocation68_spill] sm:$0xff] %v16577_v35  ;;  %22415 = vst [vmem:[#allocation66_spill] sm:$0xff] %v16595_v48  ;;  %v8791_v8 = vcombine.high %v8789_v34, %v8789_v34 }
 0x20a   : > { %v16541_v11 = vpop.f32.mrb[4].mxu0 }
 0x20b   : > { %22401 = vst [vmem:[#allocation43_spill] sm:$0xff] %v16541_v11  ;;  %v16545_v36 = vpop.f32.mrb[5].mxu0  ;;  %v8546_v11 = vrot.slane %v8532_v5, %v14005_v12  ;;  %v16647_v5 = vrot.slane %v8342_v46, %v14005_v12 }
 0x20c   : > { %22402 = vst [vmem:[#allocation46_spill] sm:$0xff] %v16545_v36  ;;  %v16551_v16 = vpop.f32.mrb[6].mxu0  ;;  %v16620_v36 = vrot.slane %v8197_v57, %v14005_v12  ;;  %v10157_v57 = vrot.slane %v16404_v27, %v16445_v51 }
 0x20d   : > { %22404 = vst [vmem:[#allocation142_spill] sm:$0xff] %v16551_v16  ;;  %v16562_v39 = vpop.f32.mrb[7].mxu0  ;;  %v8637_v16 = vrot.slane %v16439_v2, %v16430_v17  ;;  %22428 = vst [vmem:[#allocation47_spill] sm:$0xff] %v16647_v5  ;;  %v16669_v19 = vrot.slane %v8546_v11, %v14005_v12 }
 0x20e   : > { %22407 = vst [vmem:[#allocation144_spill] sm:$0xff] %v16562_v39  ;;  %v8335_v39 = vcombine.high %v8333_v40, %v8333_v40  ;;  %v16612_v40 = vrot.slane %v8045_v42, %v14005_v12  ;;  %22421 = vst [vmem:[#allocation48_spill] sm:$0xff] %v16620_v36  ;;  %v16628_v42 = vrot.slane %v8198_v3, %v14005_v12 }
 0x20f   : > { %v8639_v30 = vcombine.high %v8637_v16, %v8637_v16  ;;  %v16644_v3 = vrot.slane %v8199_v6, %v14005_v12  ;;  %v8646_v27 = vrot.slane %v8637_v16, %v14005_v12  ;;  %v7779_v6 = vrot.slane %v7770_v37, %v14005_v12  ;;  %22433 = vst [vmem:[#allocation117_spill] sm:$0xff] %v16669_v19 }
 0x210   : > { %v8349_v47 = vrot.slane %v8335_v39, %v14005_v12  ;;  %22418 = vst [vmem:[#allocation83_spill] sm:$0xff] %v16612_v40  ;;  %v8350_v39 = vcombine.high %v8342_v46, %v8342_v46  ;;  %22423 = vst [vmem:[#allocation5_spill] sm:$0xff] %v16628_v42  ;;  %v10159_v58 = vcombine.high %v10157_v57, %v10157_v57 }
 0x211   : > { %22427 = vst [vmem:[#allocation148_spill] sm:$0xff] %v16644_v3  ;;  %v8798_v16 = vrot.slane %v8789_v34, %v14005_v12  ;;  %v10166_v35 = vrot.slane %v10157_v57, %v14005_v12  ;;  %v16685_v57 = vrot.slane %v8646_v27, %v14005_v12 }
 0x212   : > { %v16617_v28 = vpop.f32.mrb[8].mxu0  ;;  %v8351_v1 = vcombine.high %v8349_v47, %v8349_v47  ;;  %v16650_v2 = vrot.slane %v8349_v47, %v14005_v12  ;;  %v16654_v63 = vrot.slane %v8350_v39, %v14005_v12  ;;  %v8653_v47 = vrot.slane %v8639_v30, %v14005_v12 }
 0x213   : > { %22420 = vst [vmem:[#allocation45_spill] sm:$0xff] %v16617_v28  ;;  %v16625_v52 = vpop.f32.mrb[9].mxu0  ;;  %v16666_v39 = vrot.slane %v8539_v62, %v14005_v12  ;;  %v10173_v19 = vrot.slane %v10159_v58, %v14005_v12  ;;  %22436 = vst [vmem:[#allocation156_spill] sm:$0xff] %v16685_v57 }
 0x214   : > { %22422 = vst [vmem:[#allocation139_spill] sm:$0xff] %v16625_v52  ;;  %v16635_v28 = vpop.f32.mrb[10].mxu0  ;;  %v11373_v52 = vrot.slane %v2086_v14, %v16445_v51  ;;  %22429 = vst [vmem:[#allocation97_spill] sm:$0xff] %v16650_v2  ;;  %v16657_v14 = vmax.f32 %v16456_v29, 0.0  ;;  %v16661_v46 = vrot.slane %v8351_v1, %v14005_v12  ;;  %v8654_v29 = vcombine.high %v8646_v27, %v8646_v27 }
 0x215   : > { %22424 = vst [vmem:[#allocation50_spill] sm:$0xff] %v16635_v28  ;;  %v16641_v20 = vpop.f32.mrb[11].mxu0  ;;  %22430 = vst [vmem:[#allocation141_spill] sm:$0xff] %v16654_v63  ;;  %v8547_v28 = vcombine.high %v8539_v62, %v8539_v62  ;;  %v8805_v1 = vrot.slane %v8791_v8, %v14005_v12  ;;  %v7786_v62 = vrot.slane %v7772_v15, %v14005_v12 }
 0x216   : > { %22426 = vst [vmem:[#allocation149_spill] sm:$0xff] %v16641_v20  ;;  %v8548_v20 = vcombine.high %v8546_v11, %v8546_v11  ;;  %22431 = vst [vmem:[#allocation151_spill] sm:$0xff] %v16661_v46  ;;  %v11375_v49 = vcombine.high %v11373_v52, %v11373_v52  ;;  %v11382_v60 = vrot.slane %v11373_v52, %v14005_v12 }
 0x217   : > { %22432 = vst [vmem:[#allocation150_spill] sm:$0xff] %v16666_v39  ;;  %v16673_v37 = vrot.slane %v8547_v28, %v14005_v12  ;;  %v8941_v30 = vrot.slane %v16657_v14, %v16445_v51  ;;  %v7787_v11 = vcombine.high %v7779_v6, %v7779_v6  ;;  %v8655_v39 = vcombine.high %v8653_v47, %v8653_v47 }
 0x218   : > { %v16680_v34 = vrot.slane %v8548_v20, %v14005_v12  ;;  %v8806_v28 = vcombine.high %v8798_v16, %v8798_v16  ;;  %v11389_v8 = vrot.slane %v11375_v49, %v14005_v12  ;;  %v16689_v52 = vrot.slane %v8653_v47, %v14005_v12 }
 0x219   : > { %22434 = vst [vmem:[#allocation113_spill] sm:$0xff] %v16673_v37  ;;  %v16692_v51 = vrot.slane %v8654_v29, %v14005_v12  ;;  %v16695_v20 = vrot.slane %v8798_v16, %v14005_v12  ;;  %v10174_v15 = vcombine.high %v10166_v35, %v10166_v35  ;;  %v8807_v58 = vcombine.high %v8805_v1, %v8805_v1 }
 0x21a   : > { %22435 = vst [vmem:[#allocation111_spill] sm:$0xff] %v16680_v34  ;;  %22437 = vst [vmem:[#allocation94_spill] sm:$0xff] %v16689_v52  ;;  %v16700_v2 = vrot.slane %v8805_v1, %v14005_v12  ;;  %v11390_v27 = vcombine.high %v11382_v60, %v11382_v60  ;;  %v8943_v57 = vcombine.high %v8941_v30, %v8941_v30 }
 0x21b   : > { %22438 = vst [vmem:[#allocation146_spill] sm:$0xff] %v16692_v51  ;;  %22439 = vst [vmem:[#allocation153_spill] sm:$0xff] %v16695_v20  ;;  %v7788_v49 = vcombine.high %v7786_v62, %v7786_v62  ;;  %v16705_v47 = vrot.slane %v7779_v6, %v14005_v12  ;;  %v16708_v29 = vrot.slane %v7787_v11, %v14005_v12 }
 0x21c   : > { %22441 = vst [vmem:[#allocation75_spill] sm:$0xff] %v16700_v2  ;;  %v10175_v16 = vcombine.high %v10173_v19, %v10173_v19  ;;  %v16716_v1 = vrot.slane %v8806_v28, %v14005_v12  ;;  %v16719_v51 = vrot.slane %v10173_v19, %v14005_v12  ;;  %v16724_v6 = vrot.slane %v10174_v15, %v14005_v12 }
 0x21d   : > { %22443 = vst [vmem:[#allocation158_spill] sm:$0xff] %v16705_v47  ;;  %22444 = vst [vmem:[#allocation157_spill] sm:$0xff] %v16708_v29  ;;  %v16727_v11 = vrot.slane %v11389_v8, %v14005_v12  ;;  %v16733_v28 = vrot.slane %v8807_v58, %v14005_v12  ;;  %v16736_v19 = vrot.slane %v7786_v62, %v14005_v12 }
 0x21e   : > { %v16697_v37 = vpop.f32.mrb[12].mxu0  ;;  %22447 = vst [vmem:[#allocation105_spill] sm:$0xff] %v16716_v1  ;;  %22448 = vst [vmem:[#allocation155_spill] sm:$0xff] %v16719_v51  ;;  %v16739_v1 = vrot.slane %v11390_v27, %v14005_v12  ;;  %v8957_v15 = vrot.slane %v8943_v57, %v14005_v12  ;;  %v16757_v62 = vrot.slane %v10166_v35, %v14005_v12 }
 0x21f   : > { %22440 = vst [vmem:[#allocation96_spill] sm:$0xff] %v16697_v37  ;;  %v16702_v36 = vpop.f32.mrb[13].mxu0  ;;  %v16713_v37 = vrot.slane %v8655_v39, %v14005_v12  ;;  %22450 = vst [vmem:[#allocation109_spill] sm:$0xff] %v16724_v6  ;;  %v9093_v39 = vrot.slane %v16657_v14, %v16407_v61  ;;  %v16750_v61 = vcombine.high %v16705_v47, %v16705_v47 }
 0x220   : > { %22442 = vst [vmem:[#allocation78_spill] sm:$0xff] %v16702_v36  ;;  %v16710_v20 = vpop.f32.mrb[14].mxu0  ;;  %v11391_v36 = vcombine.high %v11389_v8, %v11389_v8  ;;  %22451 = vst [vmem:[#allocation51_spill] sm:$0xff] %v16727_v11  ;;  %v16746_v8 = vrot.slane %v10175_v16, %v14005_v12  ;;  %v16761_v57 = vcombine.high %v16719_v51, %v16719_v51 }
 0x221   : > { %22445 = vst [vmem:[#allocation152_spill] sm:$0xff] %v16710_v20  ;;  %22446 = vst [vmem:[#allocation159_spill] sm:$0xff] %v16713_v37  ;;  %v16721_v2 = vpop.f32.mrb[15].mxu0  ;;  %v8950_v20 = vrot.slane %v8941_v30, %v14005_v12  ;;  %v16754_v30 = vcombine.high %v16708_v29, %v16708_v29  ;;  %v16764_v58 = vrot.slane %v11382_v60, %v14005_v12 }
 0x222   : > { %22449 = vst [vmem:[#allocation154_spill] sm:$0xff] %v16721_v2  ;;  %22452 = vst [vmem:[#allocation36_spill] sm:$0xff] %v16733_v28  ;;  %v16743_v2 = vrot.slane %v7788_v49, %v14005_v12  ;;  %v16767_v27 = vrot.slane %v11391_v36, %v14005_v12  ;;  %v16771_v49 = vcombine.high %v16724_v6, %v16724_v6 }
 0x223   : > { %22453 = vst [vmem:[#allocation11_spill] sm:$0xff] %v16736_v19  ;;  %22454 = vst [vmem:[#allocation131_spill] sm:$0xff] %v16739_v1  ;;  %v16775_v16 = vcombine.high %v16727_v11, %v16727_v11  ;;  %v8958_v35 = vcombine.high %v8950_v20, %v8950_v20  ;;  %v8959_v60 = vcombine.high %v8957_v15, %v8957_v15 }
 0x224   : > { %22455 = vst [vmem:[#allocation59_spill] sm:$0xff] %v16743_v2  ;;  %22456 = vst [vmem:[#allocation37_spill] sm:$0xff] %v16746_v8  ;;  %v9102_v51 = vrot.slane %v9093_v39, %v14005_v12  ;;  %v16788_v11 = vrot.slane %v8950_v20, %v14005_v12 }
 0x225   : > { %22457 = vst [vmem:[#allocation33_spill] sm:$0xff] %v16750_v61  ;;  %22458 = vst [vmem:[#allocation76_spill] sm:$0xff] %v16754_v30  ;;  %v9095_v30 = vcombine.high %v9093_v39, %v9093_v39  ;;  %v9397_v39 = vrot.slane %v16657_v14, %v16413_v55  ;;  %v9549_v55 = vrot.slane %v16657_v14, %v16420_v21 }
 0x226   : > { %22459 = vst [vmem:[#allocation67_spill] sm:$0xff] %v16757_v62  ;;  %22460 = vst [vmem:[#allocation40_spill] sm:$0xff] %v16761_v57  ;;  %v13446_v61 = vpop.f32.mrb[20].mxu0  ;;  %v16779_v57 = vcombine.high %v16739_v1, %v16739_v1 }
 0x227   : > { %22461 = vst [vmem:[#allocation132_spill] sm:$0xff] %v16764_v58  ;;  %22462 = vst [vmem:[#allocation44_spill] sm:$0xff] %v16767_v27  ;;  %v3792_v36 = vadd.f32 %v13446_v61, %v16475_v9  ;;  %v3783_v58 = vpop.f32.mrb[21].mxu0  ;;  %v16798_v9 = vrot.slane %v8957_v15, %v14005_v12  ;;  %v16810_v15 = vrot.slane %v8959_v60, %v14005_v12 }
 0x228   : > { %22463 = vst [vmem:[#allocation52_spill] sm:$0xff] %v16771_v49  ;;  %22464 = vst [vmem:[#allocation99_spill] sm:$0xff] %v16775_v16  ;;  %v16785_v49 = vcombine.high %v16746_v8, %v16746_v8  ;;  %v9290_v16 = vrot.slane %v16657_v14, %v16410_v18  ;;  %v3784_v6 = vadd.f32 %v3783_v58, %v16480_v22  ;;  %v13447_v1 = vpop.f32.mrb[22].mxu0 }
 0x229   : > { %22465 = vst [vmem:[#allocation56_spill] sm:$0xff] %v16779_v57  ;;  %22467 = vst [vmem:[#allocation72_spill] sm:$0xff] %v16788_v11  ;;  %v16795_v57 = vcombine.high %v16767_v27, %v16767_v27  ;;  %v4338_v20 = vadd.f32 %v16315_v31, %v3792_v36  ;;  %v16804_v8 = vrot.slane %v8958_v35, %v14005_v12 }
 0x22a   : > { %22466 = vst [vmem:[#allocation53_spill] sm:$0xff] %v16785_v49  ;;  %22469 = vst [vmem:[#allocation54_spill] sm:$0xff] %v16798_v9  ;;  %v13536_v61 = vpop.f32.mrb[28].mxu1  ;;  %v3786_v49 = vpop.f32.mrb[23].mxu0  ;;  %v9109_v18 = vrot.slane %v9095_v30, %v14005_v12  ;;  %v4336_v1 = vadd.f32 %v16317_v56, %v3784_v6  ;;  %v16816_v35 = vrot.slane %v9102_v51, %v14005_v12 }
 0x22b   : > { %22468 = vst [vmem:[#allocation55_spill] sm:$0xff] %v16795_v57  ;;  %22470 = vst [vmem:[#allocation39_spill] sm:$0xff] %v16804_v8  ;;  %v6065_v22 = vpop.f32.mrb[29].mxu1  ;;  %v3787_v58 = vadd.f32 %v3786_v49, %v16498_v45  ;;  %v9110_v57 = vcombine.high %v9102_v51, %v9102_v51  ;;  %v4781_v31 = vadd.f32 %v16389_v43, %v4338_v20 }
 0x22c   : > { %22471 = vst [vmem:[#allocation108_spill] sm:$0xff] %v16810_v15  ;;  %v13537_v27 = vpop.f32.mrb[30].mxu1  ;;  %22472 = vst [vmem:[#allocation63_spill] sm:$0xff] %v16816_v35  ;;  %v9292_v36 = vcombine.high %v9290_v16, %v9290_v16  ;;  %v4779_v29 = vadd.f32 %v16391_v54, %v4336_v1  ;;  %v9299_v45 = vrot.slane %v9290_v16, %v14005_v12 }
 0x22d   : > { %v6068_v30 = vpop.f32.mrb[31].mxu1  ;;  %v4337_v56 = vadd.f32 %v16331_v25, %v3787_v58  ;;  %v9399_v6 = vcombine.high %v9397_v39, %v9397_v39  ;;  %v9701_v49 = vrot.slane %v16657_v14, %v16427_v4  ;;  %v5159_v21 = vadd.f32 %v16395_v53, %v4781_v31 }
 0x22e   : > { %v9111_v27 = vcombine.high %v9109_v18, %v9109_v18  ;;  %v9406_v43 = vrot.slane %v9397_v39, %v14005_v12  ;;  %v5157_v60 = vadd.f32 %v16397_v7, %v4779_v29  ;;  %v16828_v20 = vrot.slane %v9109_v18, %v14005_v12 }
 0x22f   : > { %v4780_v51 = vadd.f32 %v16393_v23, %v4337_v56  ;;  %v9551_v54 = vcombine.high %v9549_v55, %v9549_v55  ;;  %v9853_v25 = vrot.slane %v16657_v14, %v16430_v17  ;;  %v5681_v16 = vadd.f32 %v16452_v13, %v5159_v21 }
 0x230   : > { %22473 = vst [vmem:[#allocation112_spill] sm:$0xff] %v16828_v20  ;;  %v9306_v4 = vrot.slane %v9292_v36, %v14005_v12  ;;  %v10050_v53 = vrot.slane %v16657_v14, %v16434_v38  ;;  %v5679_v39 = vadd.f32 %v16458_v32, %v5157_v60  ;;  %v16839_v7 = vrot.slane %v9110_v57, %v14005_v12 }
 0x231   : > { %v5158_v23 = vadd.f32 %v16399_v24, %v4780_v51  ;;  %v9413_v29 = vrot.slane %v9399_v6, %v14005_v12  ;;  %v9703_v18 = vcombine.high %v9701_v49, %v9701_v49  ;;  %v16842_v1 = vadd.f32 %v13536_v61, %v5681_v16 }
 0x232   : > { %22474 = vst [vmem:[#allocation119_spill] sm:$0xff] %v16839_v7  ;;  %v9307_v17 = vcombine.high %v9299_v45, %v9299_v45  ;;  %v9558_v13 = vrot.slane %v9549_v55, %v14005_v12  ;;  %v16845_v58 = vadd.f32 %v6065_v22, %v5679_v39  ;;  %v16849_v38 = vrot.slane %v9111_v27, %v14005_v12 }
 0x233   : > { %v5680_v31 = vadd.f32 %v16473_v59, %v5158_v23  ;;  %v16852_v24 = vrot.slane %v9299_v45, %v14005_v12  ;;  %v9565_v32 = vrot.slane %v9551_v54, %v14005_v12  ;;  %v9855_v14 = vcombine.high %v9853_v25, %v9853_v25 }
 0x234   : > { %22475 = vst [vmem:[#allocation9_spill] sm:$0xff] %v16849_v38  ;;  %v9308_v57 = vcombine.high %v9306_v4, %v9306_v4  ;;  %v9414_v36 = vcombine.high %v9406_v43, %v9406_v43  ;;  %v10052_v61 = vcombine.high %v10050_v53, %v10050_v53  ;;  %v9415_v6 = vcombine.high %v9413_v29, %v9413_v29 }
 0x235   : > { %22476 = vst [vmem:[#allocation121_spill] sm:$0xff] %v16852_v24  ;;  %v16855_v56 = vadd.f32 %v6068_v30, %v5680_v31  ;;  %v16858_v22 = vrot.slane %v9406_v43, %v14005_v12  ;;  %v9710_v59 = vrot.slane %v9701_v49, %v14005_v12  ;;  %v9717_v55 = vrot.slane %v9703_v18, %v14005_v12 }
 0x236   : > { %v16863_v21 = vrot.slane %v9306_v4, %v14005_v12  ;;  %v9566_v45 = vcombine.high %v9558_v13, %v9558_v13  ;;  %v9862_v27 = vrot.slane %v9853_v25, %v14005_v12  ;;  %v7894_v51 = vcombine.high %v16560_v50, %v16560_v50 }
 0x237   : > { %22477 = vst [vmem:[#allocation14_spill] sm:$0xff] %v16858_v22  ;;  %v16869_v30 = vrot.slane %v9307_v17, %v14005_v12  ;;  %v9567_v60 = vcombine.high %v9565_v32, %v9565_v32  ;;  %v9869_v43 = vrot.slane %v9855_v14, %v14005_v12  ;;  %v10059_v54 = vrot.slane %v10050_v53, %v14005_v12 }
 0x238   : > { %22478 = vst [vmem:[#allocation87_spill] sm:$0xff] %v16863_v21  ;;  %v16874_v49 = vrot.slane %v9308_v57, %v14005_v12  ;;  %v16877_v16 = vrot.slane %v9413_v29, %v14005_v12  ;;  %v16880_v4 = vrot.slane %v9414_v36, %v14005_v12  ;;  %v10066_v25 = vrot.slane %v10052_v61, %v14005_v12 }
 0x239   : > { %22479 = vst [vmem:[#allocation86_spill] sm:$0xff] %v16869_v30  ;;  %v16884_v50 = vrot.slane %v9415_v6, %v14005_v12  ;;  %v16887_v39 = vrot.slane %v9558_v13, %v14005_v12  ;;  %v9718_v23 = vcombine.high %v9710_v59, %v9710_v59  ;;  %v9719_v18 = vcombine.high %v9717_v55, %v9717_v55 }
 0x23a   : > { %22480 = vst [vmem:[#allocation125_spill] sm:$0xff] %v16874_v49  ;;  %22481 = vst [vmem:[#allocation88_spill] sm:$0xff] %v16877_v16  ;;  %v16890_v53 = vrot.slane %v9565_v32, %v14005_v12  ;;  %v16893_v17 = vrot.slane %v9566_v45, %v14005_v12  ;;  %v9870_v29 = vcombine.high %v9862_v27, %v9862_v27 }
 0x23b   : > { %22482 = vst [vmem:[#allocation89_spill] sm:$0xff] %v16880_v4  ;;  %22483 = vst [vmem:[#allocation69_spill] sm:$0xff] %v16884_v50  ;;  %v16896_v31 = vrot.slane %v7894_v51, %v14005_v12  ;;  %v16899_v14 = vrot.slane %v9567_v60, %v14005_v12  ;;  %v9871_v57 = vcombine.high %v9869_v43, %v9869_v43 }
 0x23c   : > { %22484 = vst [vmem:[#allocation90_spill] sm:$0xff] %v16887_v39  ;;  %22485 = vst [vmem:[#allocation107_spill] sm:$0xff] %v16890_v53  ;;  %v10067_v36 = vcombine.high %v10059_v54, %v10059_v54  ;;  %v22489_v13 = vcombine.high %v16568_v33, %v16568_v33  ;;  %v16908_v32 = vrot.slane %v9710_v59, %v14005_v12 }
 0x23d   : > { %22486 = vst [vmem:[#allocation8_spill] sm:$0xff] %v16893_v17  ;;  %22487 = vst [vmem:[#allocation13_spill] sm:$0xff] %v16896_v31  ;;  %v16911_v6 = vrot.slane %v9717_v55, %v14005_v12  ;;  %v10068_v45 = vcombine.high %v10066_v25, %v10066_v25  ;;  %v16915_v51 = vcombine.high %v16592_v44, %v16592_v44 }
 0x23e   : > { %22488 = vst [vmem:[#allocation92_spill] sm:$0xff] %v16899_v14  ;;  %v16905_v61 = vrot.slane %v22489_v13, %v14005_v12  ;;  %22491 = vst [vmem:[#allocation93_spill] sm:$0xff] %v16908_v32  ;;  %v16918_v60 = vrot.slane %v9718_v23, %v14005_v12  ;;  %v16921_v47 = vrot.slane %v9719_v18, %v14005_v12 }
 0x23f   : > { %22492 = vst [vmem:[#allocation102_spill] sm:$0xff] %v16911_v6  ;;  %22493 = vst [vmem:[#allocation133_spill] sm:$0xff] %v16915_v51  ;;  %v16924_v33 = vrot.slane %v9862_v27, %v14005_v12  ;;  %v16927_v59 = vrot.slane %v10059_v54, %v14005_v12  ;;  %v16930_v55 = vrot.slane %v9869_v43, %v14005_v12 }
 0x240   : > { %22490 = vst [vmem:[#allocation80_spill] sm:$0xff] %v16905_v61  ;;  %22494 = vst [vmem:[#allocation34_spill] sm:$0xff] %v16918_v60  ;;  %v16933_v13 = vrot.slane %v9870_v29, %v14005_v12  ;;  %v16936_v51 = vrot.slane %v10066_v25, %v14005_v12  ;;  %v16940_v23 = vcombine.high %v16896_v31, %v16896_v31 }
 0x241   : > { %22495 = vst [vmem:[#allocation35_spill] sm:$0xff] %v16921_v47  ;;  %22496 = vst [vmem:[#allocation116_spill] sm:$0xff] %v16924_v33  ;;  %v16943_v18 = vrot.slane %v9871_v57, %v14005_v12  ;;  %v16946_v27 = vrot.slane %v10067_v36, %v14005_v12  ;;  %v16950_v43 = vcombine.high %v16602_v10, %v16602_v10 }
 0x242   : > { %22497 = vst [vmem:[#allocation103_spill] sm:$0xff] %v16927_v59  ;;  %22498 = vst [vmem:[#allocation118_spill] sm:$0xff] %v16930_v55  ;;  %v16954_v54 = vcombine.high %v16905_v61, %v16905_v61  ;;  %v16957_v25 = vrot.slane %v10068_v45, %v14005_v12  ;;  %v16961_v29 = vcombine.high %v16615_v41, %v16615_v41 }
 0x243   : > { %22499 = vst [vmem:[#allocation115_spill] sm:$0xff] %v16933_v13  ;;  %22500 = vst [vmem:[#allocation114_spill] sm:$0xff] %v16936_v51  ;;  %v16965_v57 = vcombine.high %v16628_v42, %v16628_v42  ;;  %v16969_v36 = vcombine.high %v16647_v5, %v16647_v5  ;;  %v16977_v45 = vcombine.high %v16743_v2, %v16743_v2 }
 0x244   : > { %22501 = vst [vmem:[#allocation134_spill] sm:$0xff] %v16940_v23  ;;  %22502 = vst [vmem:[#allocation127_spill] sm:$0xff] %v16943_v18  ;;  %v16981_v41 = vcombine.high %v16609_v26, %v16609_v26  ;;  %v16989_v5 = vcombine.high %v16644_v3, %v16644_v3  ;;  %v17001_v26 = vcombine.high %v16713_v37, %v16713_v37 }
 0x245   : > { %22503 = vst [vmem:[#allocation42_spill] sm:$0xff] %v16946_v27  ;;  %22504 = vst [vmem:[#allocation101_spill] sm:$0xff] %v16950_v43  ;;  %v16973_v43 = vcombine.high %v16654_v63, %v16654_v63  ;;  %v17009_v3 = vcombine.high %v16810_v15, %v16810_v15  ;;  %v17021_v37 = vcombine.high %v16595_v48, %v16595_v48 }
 0x246   : > { %22505 = vst [vmem:[#allocation60_spill] sm:$0xff] %v16954_v54  ;;  %22506 = vst [vmem:[#allocation145_spill] sm:$0xff] %v16957_v25 }
 0x247   : > { %22507 = vst [vmem:[#allocation104_spill] sm:$0xff] %v16961_v29  ;;  %22508 = vst [vmem:[#allocation73_spill] sm:$0xff] %v16965_v57  ;;  %v16985_v29 = vcombine.high %v16638_v0, %v16638_v0  ;;  %v17005_v0 = vcombine.high %v16733_v28, %v16733_v28  ;;  %v17025_v28 = vcombine.high %v16612_v40, %v16612_v40 }
 0x248   : > { %22509 = vst [vmem:[#allocation147_spill] sm:$0xff] %v16969_v36  ;;  %22510 = vst [vmem:[#allocation98_spill] sm:$0xff] %v16973_v43  ;;  %v16993_v36 = vcombine.high %v16661_v46, %v16661_v46  ;;  %v16997_v43 = vcombine.high %v16680_v34, %v16680_v34  ;;  %v17013_v46 = vcombine.high %v16849_v38, %v16849_v38 }
 0x249   : > { %22511 = vst [vmem:[#allocation61_spill] sm:$0xff] %v16977_v45  ;;  %22512 = vst [vmem:[#allocation95_spill] sm:$0xff] %v16981_v41  ;;  %v17017_v34 = vcombine.high %v16736_v19, %v16736_v19 }
 0x24a   : > { %22513 = vst [vmem:[#allocation126_spill] sm:$0xff] %v16985_v29  ;;  %22514 = vst [vmem:[#allocation82_spill] sm:$0xff] %v16989_v5 }
 0x24b   : > { %22515 = vst [vmem:[#allocation128_spill] sm:$0xff] %v16993_v36  ;;  %22516 = vst [vmem:[#allocation123_spill] sm:$0xff] %v16997_v43 }
 0x24c   : > { %22517 = vst [vmem:[#allocation10_spill] sm:$0xff] %v17001_v26  ;;  %22518 = vst [vmem:[#allocation4_spill] sm:$0xff] %v17005_v0  ;;  %v22524_v0 = vld [vmem:[#allocation48_spill] sm:$0xff] }
 0x24d   : > { %22519 = vst [vmem:[#allocation57_spill] sm:$0xff] %v17009_v3  ;;  %22520 = vst [vmem:[#allocation84_spill] sm:$0xff] %v17013_v46  ;;  %v17029_v15 = vcombine.high %v22524_v0, %v22524_v0  ;;  %v22526_v3 = vld [vmem:[#allocation97_spill] sm:$0xff]  ;;  %v22528_v46 = vld [vmem:[#allocation150_spill] sm:$0xff]  ;;  %v17049_v0 = vcombine.high %v16689_v52, %v16689_v52 }
 0x24e   : > { %22521 = vst [vmem:[#allocation91_spill] sm:$0xff] %v17017_v34  ;;  %22522 = vst [vmem:[#allocation100_spill] sm:$0xff] %v17021_v37  ;;  %v17033_v38 = vcombine.high %v22526_v3, %v22526_v3  ;;  %v17037_v26 = vcombine.high %v22528_v46, %v22528_v46  ;;  %v22530_v34 = vld [vmem:[#allocation117_spill] sm:$0xff]  ;;  %v22532_v37 = vld [vmem:[#allocation156_spill] sm:$0xff] }
 0x24f   : > { %22523 = vst [vmem:[#allocation120_spill] sm:$0xff] %v17025_v28  ;;  %22525 = vst [vmem:[#allocation124_spill] sm:$0xff] %v17029_v15  ;;  %v17041_v43 = vcombine.high %v22530_v34, %v22530_v34  ;;  %v17045_v40 = vcombine.high %v22532_v37, %v22532_v37  ;;  %v22535_v15 = vld [vmem:[#allocation75_spill] sm:$0xff]  ;;  %v17061_v34 = vcombine.high %v16828_v20, %v16828_v20  ;;  %v13554_v28 = vpop.f32.mrb[32].mxu1 }
 0x250   : > { %22527 = vst [vmem:[#allocation7_spill] sm:$0xff] %v17033_v38  ;;  %22529 = vst [vmem:[#allocation106_spill] sm:$0xff] %v17037_v26  ;;  %v17053_v3 = vcombine.high %v22535_v15, %v22535_v15  ;;  %v17057_v38 = vcombine.high %v16798_v9, %v16798_v9  ;;  %v22545_v9 = vld [vmem:[#allocation23_spill] sm:$0xff] }
 0x251   : > { %22531 = vst [vmem:[#allocation110_spill] sm:$0xff] %v17041_v43  ;;  %22533 = vst [vmem:[#allocation16_spill] sm:$0xff] %v17045_v40  ;;  %v22539_v43 = vld [vmem:[#allocation49_spill] sm:$0xff]  ;;  %v22541_v40 = vld [vmem:[#allocation68_spill] sm:$0xff]  ;;  %v17080_v20 = vcombine.high %v22545_v9, %v22545_v9 }
 0x252   : > { %22534 = vst [vmem:[#allocation12_spill] sm:$0xff] %v17049_v0  ;;  %22536 = vst [vmem:[#allocation6_spill] sm:$0xff] %v17053_v3  ;;  %v17065_v26 = vcombine.high %v22539_v43, %v22539_v43  ;;  %v17069_v52 = vcombine.high %v22541_v40, %v22541_v40  ;;  %v22543_v0 = vld [vmem:[#allocation31_spill] sm:$0xff]  ;;  %v22547_v43 = vld [vmem:[#allocation24_spill] sm:$0xff] }
 0x253   : > { %22537 = vst [vmem:[#allocation32_spill] sm:$0xff] %v17057_v38  ;;  %22538 = vst [vmem:[#allocation122_spill] sm:$0xff] %v17061_v34  ;;  %v17073_v15 = vcombine.high %v22543_v0, %v22543_v0  ;;  %v13821_v38 = vld [vmem:[%s20844_s6] sm:$0xff]   ;;  %v21256_v34 = vmov 0.0   ;;  %v22553_v3 = vld [vmem:[#allocation17_spill] sm:$0xff] }
 0x254   : > { %22540 = vst [vmem:[#allocation64_spill] sm:$0xff] %v17065_v26  ;;  %22542 = vst [vmem:[#allocation20_spill] sm:$0xff] %v17069_v52  ;;  %13574 = vmatprep.subr.bf16.mxu0 %v21256_v34  ;;  %v17085_v26 = vcombine.high %v22547_v43, %v22547_v43  ;;  %v22549_v40 = vld [vmem:[#allocation130_spill] sm:$0xff]  ;;  %v22554_v9 = vcombine.high %v22553_v3, %v22553_v3  ;;  %v22556_v34 = vld [vmem:[#allocation65_spill] sm:$0xff]  ;;  %v17118_v3 = vadd.f32 %v13554_v28, %v16842_v1 }
 0x255   : > { %22544 = vst [vmem:[#allocation70_spill] sm:$0xff] %v17073_v15  ;;  %22546 = vst [vmem:[#allocation25_spill] sm:$0xff] %v17080_v20  ;;  %v17089_v52 = vcombine.high %v22549_v40, %v22549_v40  ;;  %v22551_v0 = vld [vmem:[#allocation62_spill] sm:$0xff]  ;;  %13575 = vmatpush3.bf16.msra.mxu0 %v13821_v38  ;;  %v17103_v43 = vcombine.high %v22556_v34, %v22556_v34  ;;  %v22565_v38 = vmov 0.0   ;;  %v22568_v34 = vld [vmem:[#allocation105_spill] sm:$0xff]  ;;  %v17138_v1 = vcombine.high %v16804_v8, %v16804_v8 }
 0x256   : > { %22548 = vst [vmem:[#allocation26_spill] sm:$0xff] %v17085_v26  ;;  %v17093_v15 = vcombine.high %v22551_v0, %v22551_v0  ;;  %v17099_v20 = vrot.slane %v22554_v9, %v14005_v12  ;;  %v22558_v26 = vld [vmem:[#allocation143_spill] sm:$0xff]  ;;  %22564 = vst [vmem:[#allocation164_spill] sm:$0xff] %v17118_v3  ;;  %v6440_v9 = vpop.f32.mrb[33].mxu1  ;;  %13576 = vmatprep.subr.bf16.mxu0 %v22565_v38  ;;  %v17142_v3 = vcombine.high %v16816_v35, %v16816_v35 }
 0x257   : > { %22550 = vst [vmem:[#allocation21_spill] sm:$0xff] %v17089_v52  ;;  %22557 = vst [vmem:[#allocation160_spill] sm:$0xff] %v17103_v43  ;;  %v17107_v40 = vcombine.high %v22558_v26, %v22558_v26  ;;  %v22560_v52 = vld [vmem:[#allocation113_spill] sm:$0xff]  ;;  %v13555_v28 = vpop.f32.mrb[34].mxu1 }
 0x258   : > { %22552 = vst [vmem:[#allocation2_spill] sm:$0xff] %v17093_v15  ;;  %22555 = vst [vmem:[#allocation17_spill] sm:$0xff] %v17099_v20  ;;  %v17111_v0 = vcombine.high %v22560_v52, %v22560_v52  ;;  %v22562_v15 = vld [vmem:[#allocation146_spill] sm:$0xff]  ;;  %v22566_v20 = vld [vmem:[#allocation153_spill] sm:$0xff]  ;;  %v17162_v28 = vcombine.high %v16874_v49, %v16874_v49 }
 0x259   : > { %22559 = vst [vmem:[#allocation161_spill] sm:$0xff] %v17107_v40  ;;  %v17115_v37 = vcombine.high %v22562_v15, %v22562_v15  ;;  %v17123_v43 = vcombine.high %v22566_v20, %v22566_v20  ;;  %v17127_v40 = vcombine.high %v22568_v34, %v22568_v34  ;;  %22572 = vst [vmem:[#allocation169_spill] sm:$0xff] %v17138_v1 }
 0x25a   : > { %22561 = vst [vmem:[#allocation162_spill] sm:$0xff] %v17111_v0  ;;  %v17131_v0 = vcombine.high %v16788_v11, %v16788_v11  ;;  %22573 = vst [vmem:[#allocation170_spill] sm:$0xff] %v17142_v3 }
 0x25b   : > { %22563 = vst [vmem:[#allocation163_spill] sm:$0xff] %v17115_v37  ;;  %22567 = vst [vmem:[#allocation165_spill] sm:$0xff] %v17123_v43  ;;  %v17134_v37 = vadd.f32 %v6440_v9, %v16845_v58  ;;  %v17146_v43 = vcombine.high %v16839_v7, %v16839_v7  ;;  %v17154_v58 = vcombine.high %v16863_v21, %v16863_v21  ;;  %v22649_v7 = vld [vmem:[#allocation133_spill] sm:$0xff] }
 0x25c   : > { %22569 = vst [vmem:[#allocation166_spill] sm:$0xff] %v17127_v40  ;;  %22570 = vst [vmem:[#allocation167_spill] sm:$0xff] %v17131_v0  ;;  %v6443_v40 = vpop.f32.mrb[35].mxu1  ;;  %v17150_v0 = vcombine.high %v16852_v24, %v16852_v24  ;;  %v17158_v9 = vcombine.high %v16869_v30, %v16869_v30  ;;  %v17181_v21 = vcombine.high %v16884_v50, %v16884_v50 }
 0x25d   : > { %22571 = vst [vmem:[#allocation168_spill] sm:$0xff] %v17134_v37  ;;  %22574 = vst [vmem:[#allocation171_spill] sm:$0xff] %v17146_v43  ;;  %v17165_v3 = vadd.f32 %v6443_v40, %v16855_v56  ;;  %v17169_v43 = vcombine.high %v16858_v22, %v16858_v22  ;;  %v17185_v40 = vcombine.high %v16887_v39, %v16887_v39 }
 0x25e   : > { %22575 = vst [vmem:[#allocation172_spill] sm:$0xff] %v17150_v0  ;;  %22576 = vst [vmem:[#allocation173_spill] sm:$0xff] %v17154_v58  ;;  %v17173_v0 = vcombine.high %v16877_v16, %v16877_v16  ;;  %v17177_v58 = vcombine.high %v16880_v4, %v16880_v4  ;;  %v17189_v56 = vcombine.high %v16890_v53, %v16890_v53 }
 0x25f   : > { %22577 = vst [vmem:[#allocation174_spill] sm:$0xff] %v17158_v9  ;;  %22578 = vst [vmem:[#allocation175_spill] sm:$0xff] %v17162_v28  ;;  %v17193_v16 = vcombine.high %v16893_v17, %v16893_v17  ;;  %v17201_v50 = vcombine.high %v16908_v32, %v16908_v32  ;;  %v17209_v53 = vcombine.high %v16918_v60, %v16918_v60  ;;  %v22612_v17 = vld [vmem:[#allocation142_spill] sm:$0xff] }
 0x260   : > { %22579 = vst [vmem:[#allocation176_spill] sm:$0xff] %v17165_v3  ;;  %22580 = vst [vmem:[#allocation177_spill] sm:$0xff] %v17169_v43  ;;  %v17254_v60 = vcombine.high %v16957_v25, %v16957_v25  ;;  %v22644_v3 = vld [vmem:[#allocation158_spill] sm:$0xff] }
 0x261   : > { %22581 = vst [vmem:[#allocation178_spill] sm:$0xff] %v17173_v0  ;;  %22582 = vst [vmem:[#allocation179_spill] sm:$0xff] %v17177_v58  ;;  %v17197_v0 = vcombine.high %v16899_v14, %v16899_v14  ;;  %v17217_v14 = vcombine.high %v16924_v33, %v16924_v33 }
 0x262   : > { %22583 = vst [vmem:[#allocation180_spill] sm:$0xff] %v17181_v21  ;;  %22584 = vst [vmem:[#allocation181_spill] sm:$0xff] %v17185_v40  ;;  %v17205_v21 = vcombine.high %v16911_v6, %v16911_v6  ;;  %v17225_v6 = vcombine.high %v16933_v13, %v16933_v13  ;;  %v22600_v13 = vld [vmem:[#allocation43_spill] sm:$0xff] }
 0x263   : > { %22585 = vst [vmem:[#allocation182_spill] sm:$0xff] %v17189_v56  ;;  %22586 = vst [vmem:[#allocation183_spill] sm:$0xff] %v17193_v16  ;;  %v17213_v56 = vcombine.high %v16921_v47, %v16921_v47 }
 0x264   : > { %22587 = vst [vmem:[#allocation184_spill] sm:$0xff] %v17197_v0  ;;  %22588 = vst [vmem:[#allocation185_spill] sm:$0xff] %v17201_v50  ;;  %v17221_v0 = vcombine.high %v16930_v55, %v16930_v55  ;;  %v17245_v55 = vcombine.high %v16936_v51, %v16936_v51 }
 0x265   : > { %22589 = vst [vmem:[#allocation186_spill] sm:$0xff] %v17205_v21  ;;  %22590 = vst [vmem:[#allocation187_spill] sm:$0xff] %v17209_v53  ;;  %v13560_v21 = vpop.f32.mrb[0].mxu1  ;;  %v17230_v53 = vld [vmem:[%s20843_s5] ss:$0 sm:$0xff] }
 0x266   : > { %22591 = vst [vmem:[#allocation188_spill] sm:$0xff] %v17213_v56  ;;  %22592 = vst [vmem:[#allocation189_spill] sm:$0xff] %v17217_v14  ;;  %v13822_v56 = vld [vmem:[%s20844_s6 + $0x8] sm:$0xff]   ;;  %v17237_v14 = vcombine.high %v16943_v18, %v16943_v18  ;;  %v13630_v47 = vadd.f32 %v13560_v21, %v22600_v13  ;;  %v6796_v50 = vpop.f32.mrb[1].mxu1  ;;  %v22608_v13 = vld [vmem:[#allocation136_spill] sm:$0xff] }
 0x267   : > { %22593 = vst [vmem:[#allocation190_spill] sm:$0xff] %v17221_v0  ;;  %22594 = vst [vmem:[#allocation191_spill] sm:$0xff] %v17225_v6  ;;  %v17241_v0 = vcombine.high %v16927_v59, %v16927_v59  ;;  %v17249_v6 = vcombine.high %v16946_v27, %v16946_v27  ;;  %v13561_v16 = vpop.f32.mrb[2].mxu1  ;;  %13577 = vmatpush3.bf16.msra.mxu0 %v13822_v56  ;;  %v17271_v25 = vcombine.high %v22608_v13, %v22608_v13  ;;  %v22615_v56 = vld [vmem:[#allocation138_spill] sm:$0xff] }
 0x268   : > { %22595 = vst [vmem:[#allocation192_spill] sm:$0xff] %v17230_v53  ;;  %22596 = vst [vmem:[#allocation193_spill] sm:$0xff] %v17237_v14  ;;  %v17258_v14 = vcombine.high %v16757_v62, %v16757_v62  ;;  %v6799_v58 = vpop.f32.mrb[3].mxu1  ;;  %13578 = vmatprep.subr.bf16.mxu0 %v22565_v38  ;;  %v22645_v62 = vld [vmem:[#allocation157_spill] sm:$0xff] }
 0x269   : > { %22597 = vst [vmem:[#allocation194_spill] sm:$0xff] %v17241_v0  ;;  %22598 = vst [vmem:[#allocation195_spill] sm:$0xff] %v17245_v55  ;;  %v22603_v0 = vld [vmem:[#allocation28_spill] sm:$0xff]  ;;  %v22605_v55 = vld [vmem:[#allocation46_spill] sm:$0xff] }
 0x26a   : > { %22599 = vst [vmem:[#allocation196_spill] sm:$0xff] %v17249_v6  ;;  %22601 = vst [vmem:[#allocation43_spill] sm:$0xff] %v17254_v60  ;;  %v17262_v18 = vcombine.high %v22603_v0, %v22603_v0  ;;  %v13631_v51 = vadd.f32 %v6796_v50, %v22605_v55  ;;  %v22606_v6 = vld [vmem:[#allocation29_spill] sm:$0xff]  ;;  %v22610_v60 = vld [vmem:[#allocation135_spill] sm:$0xff] }
 0x26b   : > { %22602 = vst [vmem:[#allocation197_spill] sm:$0xff] %v17258_v14  ;;  %v17267_v21 = vcombine.high %v22606_v6, %v22606_v6  ;;  %22609 = vst [vmem:[#allocation199_spill] sm:$0xff] %v17271_v25  ;;  %v17275_v40 = vcombine.high %v22610_v60, %v22610_v60  ;;  %v6882_v14 = vadd.f32 %v13630_v47, %v17230_v53  ;;  %v22613_v50 = vld [vmem:[#allocation27_spill] sm:$0xff]  ;;  %v22617_v25 = vld [vmem:[#allocation144_spill] sm:$0xff] }
 0x26c   : > { %22604 = vst [vmem:[#allocation198_spill] sm:$0xff] %v17262_v18  ;;  %v13632_v18 = vadd.f32 %v13561_v16, %v22612_v17  ;;  %v17282_v55 = vcombine.high %v22613_v50, %v22613_v50  ;;  %v6880_v6 = vadd.f32 %v13631_v51, %v17230_v53  ;;  %v13633_v60 = vadd.f32 %v6799_v58, %v22617_v25  ;;  %v13823_v47 = vld [vmem:[%s20844_s6 + $0x10] sm:$0xff]   ;;  %v22618_v16 = vld [vmem:[#allocation137_spill] sm:$0xff]  ;;  %v22624_v25 = vld [vmem:[#allocation15_spill] sm:$0xff] }
 0x26d   : > { %22607 = vst [vmem:[#allocation46_spill] sm:$0xff] %v17267_v21  ;;  %22611 = vst [vmem:[#allocation200_spill] sm:$0xff] %v17275_v40  ;;  %v17286_v21 = vcombine.high %v22615_v56, %v22615_v56  ;;  %v17295_v17 = vcombine.high %v22618_v16, %v22618_v16  ;;  %v22620_v40 = vld [vmem:[#allocation58_spill] sm:$0xff]  ;;  %v17308_v58 = vcombine.high %v22624_v25, %v22624_v25  ;;  %13579 = vmatpush3.bf16.msra.mxu0 %v13823_v47 }
 0x26e   : > { %22614 = vst [vmem:[#allocation142_spill] sm:$0xff] %v17282_v55  ;;  %v17299_v50 = vcombine.high %v22620_v40, %v22620_v40  ;;  %v6897_v55 = vmax.f32 %v6882_v14, 0.0  ;;  %v6883_v56 = vadd.f32 %v13632_v18, %v17230_v53  ;;  %v6895_v13 = vmax.f32 %v6880_v6, 0.0  ;;  %13580 = vmatprep.subr.bf16.mxu0 %v22565_v38 }
 0x26f   : > { %22616 = vst [vmem:[#allocation201_spill] sm:$0xff] %v17286_v21  ;;  %22619 = vst [vmem:[#allocation144_spill] sm:$0xff] %v17295_v17  ;;  %v22622_v21 = vld [vmem:[#allocation38_spill] sm:$0xff]  ;;  %v6881_v43 = vadd.f32 %v13633_v60, %v17230_v53 }
 0x270   : > { %22621 = vst [vmem:[#allocation202_spill] sm:$0xff] %v17299_v50  ;;  %v17304_v51 = vcombine.high %v22622_v21, %v22622_v21  ;;  %22625 = vst [vmem:[#allocation204_spill] sm:$0xff] %v17308_v58  ;;  %v22626_v17 = vld [vmem:[#allocation18_spill] sm:$0xff]  ;;  %v7023_v18 = vcombine.high %v6897_v55, %v6897_v55  ;;  %v7030_v21 = vrot.slane %v6897_v55, %v14005_v12  ;;  %v22630_v58 = vld [vmem:[#allocation19_spill] sm:$0xff] }
 0x271   : > { %v17313_v16 = vcombine.high %v22626_v17, %v22626_v17  ;;  %v22628_v50 = vld [vmem:[#allocation22_spill] sm:$0xff]  ;;  %v17325_v6 = vcombine.high %v22630_v58, %v22630_v58  ;;  %v6925_v60 = vcombine.high %v6895_v13, %v6895_v13  ;;  %v6932_v47 = vrot.slane %v6895_v13, %v14005_v12  ;;  %v22633_v55 = vld [vmem:[#allocation129_spill] sm:$0xff] }
 0x272   : > { %22623 = vst [vmem:[#allocation203_spill] sm:$0xff] %v17304_v51  ;;  %v17317_v14 = vcombine.high %v22628_v50, %v22628_v50  ;;  %v17320_v51 = vmax.f32 %v6883_v56, 0.0  ;;  %v17328_v25 = vmax.f32 %v6881_v43, 0.0  ;;  %v17337_v56 = vcombine.high %v22633_v55, %v22633_v55 }
 0x273   : > { %22627 = vst [vmem:[#allocation205_spill] sm:$0xff] %v17313_v16  ;;  %22631 = vst [vmem:[#allocation207_spill] sm:$0xff] %v17325_v6  ;;  %v17330_v16 = vpop.f32.mrb[4].mxu1  ;;  %v7037_v50 = vrot.slane %v7023_v18, %v14005_v12  ;;  %v7038_v17 = vcombine.high %v7030_v21, %v7030_v21  ;;  %v17341_v6 = vrot.slane %v7030_v21, %v14005_v12 }
 0x274   : > { %22629 = vst [vmem:[#allocation206_spill] sm:$0xff] %v17317_v14  ;;  %22632 = vst [vmem:[#allocation208_spill] sm:$0xff] %v17330_v16  ;;  %v13824_v14 = vld [vmem:[%s20844_s6 + $0x18] sm:$0xff]   ;;  %v17345_v13 = vpop.f32.mrb[5].mxu1  ;;  %v6939_v58 = vrot.slane %v6925_v60, %v14005_v12  ;;  %v6940_v40 = vcombine.high %v6932_v47, %v6932_v47  ;;  %v6948_v28 = vrot.slane %v6932_v47, %v14005_v12  ;;  %v22647_v16 = vld [vmem:[#allocation76_spill] sm:$0xff] }
 0x275   : > { %22634 = vst [vmem:[#allocation209_spill] sm:$0xff] %v17337_v56  ;;  %22635 = vst [vmem:[#allocation210_spill] sm:$0xff] %v17341_v6  ;;  %v17351_v55 = vrot.slane %v17320_v51, %v14005_v12  ;;  %v17353_v56 = vpop.f32.mrb[6].mxu1  ;;  %13581 = vmatpush3.bf16.msra.mxu0 %v13824_v14  ;;  %v7039_v18 = vcombine.high %v7037_v50, %v7037_v50  ;;  %v17356_v21 = vrot.slane %v7037_v50, %v14005_v12  ;;  %v13825_v50 = vld [vmem:[%s20844_s6 + $0x20] sm:$0xff]  }
 0x276   : > { %22636 = vst [vmem:[#allocation211_spill] sm:$0xff] %v17345_v13  ;;  %22637 = vst [vmem:[#allocation212_spill] sm:$0xff] %v17353_v56  ;;  %v17359_v43 = vrot.slane %v7038_v17, %v14005_v12  ;;  %v17363_v60 = vcombine.high %v17341_v6, %v17341_v6  ;;  %v17365_v49 = vpop.f32.mrb[7].mxu1  ;;  %13582 = vmatprep.subr.bf16.mxu0 %v22565_v38  ;;  %v6941_v47 = vcombine.high %v6939_v58, %v6939_v58  ;;  %v22652_v6 = vld [vmem:[#allocation101_spill] sm:$0xff] }
 0x277   : > { %22638 = vst [vmem:[#allocation213_spill] sm:$0xff] %v17356_v21  ;;  %22641 = vst [vmem:[#allocation216_spill] sm:$0xff] %v17365_v49  ;;  %v6955_v9 = vrot.slane %v6939_v58, %v14005_v12  ;;  %v6962_v14 = vrot.slane %v6940_v40, %v14005_v12  ;;  %v6970_v1 = vcombine.high %v6948_v28, %v6948_v28 }
 0x278   : > { %22639 = vst [vmem:[#allocation214_spill] sm:$0xff] %v17359_v43  ;;  %22640 = vst [vmem:[#allocation215_spill] sm:$0xff] %v17363_v60  ;;  %v17374_v17 = vrot.slane %v7039_v18, %v14005_v12  ;;  %v17378_v27 = vcombine.high %v17359_v43, %v17359_v43  ;;  %v7829_v37 = vmul.f32 %v22644_v3, %v6948_v28  ;;  %v22646_v18 = vld [vmem:[#allocation33_spill] sm:$0xff] }
 0x279   : > { %v17383_v26 = vcombine.high %v17356_v21, %v17356_v21  ;;  %v6969_v40 = vrot.slane %v6941_v47, %v14005_v12  ;;  %v17386_v58 = vcombine.high %v6955_v9, %v6955_v9  ;;  %v6972_v0 = vcombine.high %v6962_v14, %v6962_v14  ;;  %13583 = vmatpush3.bf16.msra.mxu0 %v13825_v50  ;;  %v13826_v47 = vld [vmem:[%s20844_s6 + $0x28] sm:$0xff]  }
 0x27a   : > { %22642 = vst [vmem:[#allocation217_spill] sm:$0xff] %v17374_v17  ;;  %22643 = vst [vmem:[#allocation218_spill] sm:$0xff] %v17378_v27  ;;  %v7830_v59 = vmul.f32 %v22645_v62, %v6962_v14  ;;  %v7831_v53 = vmul.f32 %v22646_v18, %v6970_v1  ;;  %v7833_v49 = vmul.f32 %v16736_v19, %v6955_v9  ;;  %13584 = vmatprep.subr.bf16.mxu0 %v22565_v38  ;;  %v17404_v19 = vpop.f32.mrb[8].mxu1 }
 0x27b   : > { %v7936_v56 = vmul.f32 %v16592_v44, %v6962_v14  ;;  %v7937_v28 = vmul.f32 %v16896_v31, %v6970_v1  ;;  %v17397_v13 = vcombine.high %v6969_v40, %v6969_v40  ;;  %v7832_v33 = vmul.f32 %v22647_v16, %v6972_v0  ;;  %22650 = vst [vmem:[#allocation220_spill] sm:$0xff] %v17404_v19  ;;  %v17408_v43 = vpop.f32.mrb[9].mxu1 }
 0x27c   : > { %v17401_v50 = vmul.f32 %v16743_v2, %v6969_v40  ;;  %v7938_v8 = vmul.f32 %v22649_v7, %v6972_v0  ;;  %v7939_v14 = vmul.f32 %v16940_v23, %v6955_v9  ;;  %v7940_v34 = vmul.f32 %v16595_v48, %v6969_v40  ;;  %22651 = vst [vmem:[#allocation221_spill] sm:$0xff] %v17408_v43  ;;  %v13827_v23 = vld [vmem:[%s20844_s6 + $0x30] sm:$0xff]  }
 0x27d   : > { %v7981_v27 = vadd.f32 %v7936_v56, %v7829_v37  ;;  %v7982_v60 = vadd.f32 %v7937_v28, %v7830_v59  ;;  %v8088_v18 = vmul.f32 %v16602_v10, %v6970_v1  ;;  %v8089_v16 = vmul.f32 %v16905_v61, %v6972_v0  ;;  %13585 = vmatpush3.bf16.msra.mxu0 %v13826_v47  ;;  %v22655_v59 = vld [vmem:[#allocation81_spill] sm:$0xff] }
 0x27e   : > { %22648 = vst [vmem:[#allocation219_spill] sm:$0xff] %v17401_v50  ;;  %v7983_v31 = vadd.f32 %v7938_v8, %v7831_v53  ;;  %v8090_v2 = vmul.f32 %v22652_v6, %v6955_v9  ;;  %v17413_v50 = vpop.f32.mrb[10].mxu1  ;;  %v7984_v19 = vadd.f32 %v7939_v14, %v7832_v33  ;;  %v17418_v48 = vadd.f32 %v7940_v34, %v7833_v49  ;;  %v22658_v49 = vld [vmem:[#allocation47_spill] sm:$0xff] }
 0x27f   : > { %22653 = vst [vmem:[#allocation222_spill] sm:$0xff] %v17413_v50  ;;  %v8091_v37 = vmul.f32 %v16954_v54, %v6969_v40  ;;  %v8240_v8 = vmul.f32 %v22655_v59, %v6972_v0  ;;  %v17422_v53 = vpop.f32.mrb[11].mxu1  ;;  %13586 = vmatprep.subr.bf16.mxu0 %v22565_v38  ;;  %v8133_v1 = vadd.f32 %v8088_v18, %v7981_v27  ;;  %v22657_v50 = vld [vmem:[#allocation104_spill] sm:$0xff]  ;;  %v22660_v27 = vld [vmem:[#allocation98_spill] sm:$0xff] }
 0x280   : > { %22654 = vst [vmem:[#allocation223_spill] sm:$0xff] %v17418_v48  ;;  %22656 = vst [vmem:[#allocation224_spill] sm:$0xff] %v17422_v53  ;;  %v8134_v56 = vadd.f32 %v8089_v16, %v7982_v60  ;;  %v8135_v28 = vadd.f32 %v8090_v2, %v7983_v31  ;;  %v8241_v47 = vmul.f32 %v16628_v42, %v6955_v9  ;;  %v22659_v53 = vld [vmem:[#allocation147_spill] sm:$0xff]  ;;  %v13828_v2 = vld [vmem:[%s20844_s6 + $0x38] sm:$0xff]  }
 0x281   : > { %v8136_v6 = vadd.f32 %v8091_v37, %v7984_v19  ;;  %v8242_v43 = vmul.f32 %v22657_v50, %v6969_v40  ;;  %v8243_v34 = vmul.f32 %v16965_v57, %v17386_v58  ;;  %v8392_v33 = vmul.f32 %v22658_v49, %v6955_v9  ;;  %13587 = vmatpush3.bf16.msra.mxu0 %v13827_v23 }
 0x282   : > { %v8285_v14 = vadd.f32 %v8240_v8, %v8133_v1  ;;  %v8286_v54 = vadd.f32 %v8241_v47, %v8134_v56  ;;  %v8393_v0 = vmul.f32 %v16654_v63, %v6969_v40  ;;  %v8394_v48 = vmul.f32 %v22659_v53, %v17386_v58  ;;  %13588 = vmatprep.subr.bf16.mxu0 %v22565_v38 }
 0x283   : > { %v8287_v19 = vadd.f32 %v8242_v43, %v8135_v28  ;;  %v8288_v31 = vadd.f32 %v8243_v34, %v8136_v6  ;;  %v8395_v16 = vmul.f32 %v22660_v27, %v17397_v13  ;;  %v17440_v9 = vcombine.high %v17374_v17, %v17374_v17  ;;  %v17453_v43 = vpop.f32.mrb[36].mxu1 }
 0x284   : > { %v17443_v60 = vadd.f32 %v8392_v33, %v8285_v14  ;;  %v17445_v40 = vadd.f32 %v8393_v0, %v8286_v54  ;;  %v22663_v23 = vcombine.high %v17320_v51, %v17320_v51  ;;  %v7087_v6 = vcombine.high %v17351_v55, %v17351_v55  ;;  %22664 = vst [vmem:[#allocation227_spill] sm:$0xff] %v17453_v43  ;;  %v17463_v56 = vpop.f32.mrb[37].mxu1 }
 0x285   : > { %v17455_v37 = vadd.f32 %v8394_v48, %v8287_v19  ;;  %v17457_v8 = vadd.f32 %v8395_v16, %v8288_v31  ;;  %v7095_v1 = vrot.slane %v17351_v55, %v14005_v12  ;;  %v7845_v54 = vmul.f32 %v16977_v45, %v17356_v21  ;;  %22667 = vst [vmem:[#allocation230_spill] sm:$0xff] %v17463_v56  ;;  %v13573_v34 = vpop.f32.mrb[38].mxu1 }
 0x286   : > { %22661 = vst [vmem:[#allocation225_spill] sm:$0xff] %v17443_v60  ;;  %22662 = vst [vmem:[#allocation226_spill] sm:$0xff] %v17445_v40  ;;  %v7086_v18 = vrot.slane %v22663_v23, %v14005_v12  ;;  %v7109_v47 = vrot.slane %v7087_v6, %v14005_v12  ;;  %v7846_v48 = vmul.f32 %v22644_v3, %v17374_v17  ;;  %13589 = vmatpush3.bf16.msra.mxu0 %v13828_v2  ;;  %v17477_v19 = vpop.f32.mrb[39].mxu1 }
 0x287   : > { %22665 = vst [vmem:[#allocation228_spill] sm:$0xff] %v17455_v37  ;;  %22666 = vst [vmem:[#allocation229_spill] sm:$0xff] %v17457_v8  ;;  %v7117_v33 = vcombine.high %v7095_v1, %v7095_v1  ;;  %v7952_v55 = vmul.f32 %v16981_v41, %v17374_v17  ;;  %v7953_v14 = vmul.f32 %v16592_v44, %v17383_v26  ;;  %13602 = vmatprep.subr.bf16.mxu0 %v22565_v38 }
 0x288   : > { %v7088_v28 = vcombine.high %v7086_v18, %v7086_v18  ;;  %v17466_v51 = vrot.slane %v7086_v18, %v14005_v12  ;;  %v8104_v0 = vmul.f32 %v16985_v29, %v17383_v26  ;;  %22669 = vst [vmem:[#allocation232_spill] sm:$0xff] %v17477_v19  ;;  %v7119_v16 = vcombine.high %v7109_v47, %v7109_v47 }
 0x289   : > { %v8105_v23 = vmul.f32 %v16602_v10, %v17440_v9  ;;  %v7847_v18 = vmul.f32 %v22644_v3, %v7117_v33  ;;  %v7997_v6 = vadd.f32 %v7952_v55, %v7845_v54  ;;  %v7998_v34 = vadd.f32 %v7953_v14, %v7846_v48  ;;  %v22675_v55 = vld [vmem:[#allocation123_spill] sm:$0xff] }
 0x28a   : > { %22668 = vst [vmem:[#allocation231_spill] sm:$0xff] %v17466_v51  ;;  %v17481_v31 = vrot.slane %v7088_v28, %v14005_v12  ;;  %v17485_v2 = vcombine.high %v17466_v51, %v17466_v51  ;;  %v8256_v8 = vmul.f32 %v16989_v5, %v17440_v9  ;;  %v17497_v28 = vmul.f32 %v22645_v62, %v7119_v16 }
 0x28b   : > { %v7954_v27 = vmul.f32 %v16592_v44, %v7119_v16  ;;  %v8257_v53 = vmul.f32 %v22655_v59, %v7095_v1  ;;  %v8149_v57 = vadd.f32 %v8104_v0, %v7997_v6  ;;  %v8150_v50 = vadd.f32 %v8105_v23, %v7998_v34  ;;  %v22676_v0 = vld [vmem:[#allocation10_spill] sm:$0xff]  ;;  %v22677_v6 = vld [vmem:[#allocation156_spill] sm:$0xff] }
 0x28c   : > { %22670 = vst [vmem:[#allocation233_spill] sm:$0xff] %v17481_v31  ;;  %22671 = vst [vmem:[#allocation234_spill] sm:$0xff] %v17485_v2  ;;  %v17494_v37 = vcombine.high %v17481_v31, %v17481_v31  ;;  %v8408_v38 = vmul.f32 %v16993_v36, %v7095_v1  ;;  %v8409_v54 = vmul.f32 %v22658_v49, %v7109_v47 }
 0x28d   : > { %22673 = vst [vmem:[#allocation236_spill] sm:$0xff] %v17497_v28  ;;  %v17503_v48 = vadd.f32 %v7954_v27, %v7847_v18  ;;  %v8596_v14 = vmul.f32 %v22675_v55, %v17356_v21  ;;  %v8597_v19 = vmul.f32 %v22528_v46, %v17374_v17  ;;  %v8598_v28 = vmul.f32 %v22528_v46, %v7117_v33  ;;  %v22678_v55 = vld [vmem:[#allocation4_spill] sm:$0xff]  ;;  %v22681_v21 = vld [vmem:[#allocation57_spill] sm:$0xff] }
 0x28e   : > { %22672 = vst [vmem:[#allocation235_spill] sm:$0xff] %v17494_v37  ;;  %v8301_v56 = vadd.f32 %v8256_v8, %v8149_v57  ;;  %v8302_v43 = vadd.f32 %v8257_v53, %v8150_v50  ;;  %v8599_v40 = vmul.f32 %v22560_v52, %v7119_v16  ;;  %v8703_v23 = vmul.f32 %v22676_v0, %v17374_v17 }
 0x28f   : > { %22674 = vst [vmem:[#allocation237_spill] sm:$0xff] %v17503_v48  ;;  %v8704_v34 = vmul.f32 %v22677_v6, %v17383_v26  ;;  %v8705_v27 = vmul.f32 %v22677_v6, %v7119_v16  ;;  %v8706_v18 = vmul.f32 %v22562_v15, %v17466_v51  ;;  %v8855_v48 = vmul.f32 %v22678_v55, %v17383_v26 }
 0x290   : > { %v17520_v60 = vadd.f32 %v8408_v38, %v8301_v56  ;;  %v17522_v57 = vadd.f32 %v8409_v54, %v8302_v43  ;;  %v8748_v50 = vadd.f32 %v8703_v23, %v8596_v14  ;;  %v8856_v53 = vmul.f32 %v22566_v20, %v17440_v9  ;;  %v22682_v56 = vld [vmem:[#allocation84_spill] sm:$0xff] }
 0x291   : > { %v8749_v8 = vadd.f32 %v8704_v34, %v8597_v19  ;;  %v8750_v0 = vadd.f32 %v8705_v27, %v8598_v28  ;;  %v17526_v37 = vadd.f32 %v8706_v18, %v8599_v40  ;;  %v8857_v2 = vmul.f32 %v22566_v20, %v17466_v51 }
 0x292   : > { %22679 = vst [vmem:[#allocation238_spill] sm:$0xff] %v17520_v60  ;;  %22680 = vst [vmem:[#allocation239_spill] sm:$0xff] %v17522_v57  ;;  %v8900_v17 = vadd.f32 %v8855_v48, %v8748_v50  ;;  %v9007_v15 = vmul.f32 %v22681_v21, %v17440_v9  ;;  %v9008_v38 = vmul.f32 %v16788_v11, %v7095_v1  ;;  %v22684_v50 = vld [vmem:[#allocation91_spill] sm:$0xff] }
 0x293   : > { %v9159_v43 = vmul.f32 %v22682_v56, %v7095_v1  ;;  %v8901_v54 = vadd.f32 %v8856_v53, %v8749_v8  ;;  %v17534_v14 = vadd.f32 %v8857_v2, %v8750_v0  ;;  %v9160_v23 = vmul.f32 %v16816_v35, %v7109_v47 }
 0x294   : > { %v9349_v19 = vmul.f32 %v16852_v24, %v7117_v33  ;;  %v9052_v40 = vadd.f32 %v9007_v15, %v8900_v17  ;;  %v9350_v28 = vmul.f32 %v16869_v30, %v7119_v16  ;;  %v9456_v34 = vmul.f32 %v16858_v22, %v7119_v16  ;;  %v22691_v30 = vld [vmem:[#allocation120_spill] sm:$0xff] }
 0x295   : > { %v9457_v48 = vmul.f32 %v16880_v4, %v17466_v51  ;;  %v9053_v27 = vadd.f32 %v9008_v38, %v8901_v54  ;;  %v9608_v18 = vmul.f32 %v16887_v39, %v17466_v51  ;;  %v9760_v1 = vmul.f32 %v16908_v32, %v17481_v31  ;;  %v22693_v51 = vld [vmem:[#allocation13_spill] sm:$0xff] }
 0x296   : > { %v6974_v47 = vcombine.high %v17328_v25, %v17328_v25  ;;  %v17548_v2 = vadd.f32 %v9159_v43, %v9052_v40  ;;  %v9501_v15 = vadd.f32 %v9456_v34, %v9349_v19  ;;  %v6981_v33 = vrot.slane %v17328_v25, %v14005_v12  ;;  %v22685_v19 = vld [vmem:[#allocation77_spill] sm:$0xff] }
 0x297   : > { %v17550_v17 = vadd.f32 %v9457_v48, %v9350_v28  ;;  %v17554_v16 = vadd.f32 %v9160_v23, %v9053_v27  ;;  %v7835_v53 = vmul.f32 %v22684_v50, %v17386_v58  ;;  %v7836_v8 = vmul.f32 %v16977_v45, %v17397_v13  ;;  %v22686_v23 = vld [vmem:[#allocation100_spill] sm:$0xff]  ;;  %v22687_v48 = vld [vmem:[#allocation210_spill] sm:$0xff] }
 0x298   : > { %v6988_v0 = vrot.slane %v6974_v47, %v14005_v12  ;;  %v9653_v38 = vadd.f32 %v9608_v18, %v9501_v15  ;;  %v6989_v54 = vcombine.high %v6981_v33, %v6981_v33  ;;  %v6997_v43 = vrot.slane %v6981_v33, %v14005_v12 }
 0x299   : > { %22683 = vst [vmem:[#allocation240_spill] sm:$0xff] %v17550_v17  ;;  %v7941_v40 = vmul.f32 %v22685_v19, %v17386_v58  ;;  %v7942_v34 = vmul.f32 %v22686_v23, %v17397_v13  ;;  %v7947_v27 = vmul.f32 %v22649_v7, %v22687_v48 }
 0x29a   : > { %v6990_v28 = vcombine.high %v6988_v0, %v6988_v0  ;;  %v7004_v25 = vrot.slane %v6988_v0, %v14005_v12  ;;  %v17569_v47 = vadd.f32 %v9760_v1, %v9653_v38  ;;  %v7011_v57 = vrot.slane %v6989_v54, %v14005_v12  ;;  %v22688_v0 = vld [vmem:[#allocation219_spill] sm:$0xff] }
 0x29b   : > { %v7019_v18 = vcombine.high %v6997_v43, %v6997_v43  ;;  %v7837_v15 = vmul.f32 %v22644_v3, %v6997_v43  ;;  %v7943_v56 = vmul.f32 %v16981_v41, %v6997_v43  ;;  %v7986_v21 = vadd.f32 %v7941_v40, %v22688_v0  ;;  %v22689_v1 = vld [vmem:[#allocation83_spill] sm:$0xff]  ;;  %v22690_v40 = vld [vmem:[#allocation85_spill] sm:$0xff] }
 0x29c   : > { %v7018_v33 = vrot.slane %v6990_v28, %v14005_v12  ;;  %v17574_v60 = vcombine.high %v7004_v25, %v7004_v25  ;;  %v7021_v55 = vcombine.high %v7011_v57, %v7011_v57  ;;  %v7944_v45 = vmul.f32 %v16592_v44, %v7011_v57 }
 0x29d   : > { %v7987_v32 = vadd.f32 %v7942_v34, %v7835_v53  ;;  %v8092_v38 = vmul.f32 %v22689_v1, %v17386_v58  ;;  %v7988_v41 = vadd.f32 %v7943_v56, %v7836_v8  ;;  %v8093_v0 = vmul.f32 %v22690_v40, %v17397_v13  ;;  %v22692_v34 = vld [vmem:[#allocation33_spill] sm:$0xff]  ;;  %v22694_v8 = vld [vmem:[#allocation223_spill] sm:$0xff] }
 0x29e   : > { %v17581_v7 = vcombine.high %v7018_v33, %v7018_v33  ;;  %v7838_v54 = vmul.f32 %v22644_v3, %v7018_v33  ;;  %v7839_v28 = vmul.f32 %v22645_v62, %v17574_v60  ;;  %v7945_v17 = vmul.f32 %v16592_v44, %v17574_v60  ;;  %v22696_v44 = vld [vmem:[#allocation148_spill] sm:$0xff] }
 0x29f   : > { %v7989_v4 = vadd.f32 %v7944_v45, %v7837_v15  ;;  %v8094_v53 = vmul.f32 %v22691_v30, %v6997_v43  ;;  %v8095_v19 = vmul.f32 %v16985_v29, %v7011_v57  ;;  %v8096_v62 = vmul.f32 %v16602_v10, %v7019_v18 }
 0x2a0   : > { %v7840_v58 = vmul.f32 %v22692_v34, %v17581_v7  ;;  %v7946_v1 = vmul.f32 %v22693_v51, %v17581_v7  ;;  %v7990_v23 = vadd.f32 %v7945_v17, %v7838_v54  ;;  %v8097_v56 = vmul.f32 %v16602_v10, %v17581_v7  ;;  %v22695_v54 = vld [vmem:[#allocation48_spill] sm:$0xff] }
 0x2a1   : > { %v8098_v45 = vmul.f32 %v16905_v61, %v22687_v48  ;;  %v8137_v15 = vadd.f32 %v8092_v38, %v22694_v8  ;;  %v8138_v34 = vadd.f32 %v8093_v0, %v7986_v21  ;;  %v8139_v50 = vadd.f32 %v8094_v53, %v7987_v32  ;;  %v22697_v10 = vld [vmem:[#allocation124_spill] sm:$0xff]  ;;  %v22698_v21 = vld [vmem:[#allocation214_spill] sm:$0xff]  ;;  %v22700_v0 = vld [vmem:[#allocation151_spill] sm:$0xff] }
 0x2a2   : > { %v7991_v30 = vadd.f32 %v7946_v1, %v7839_v28  ;;  %v17602_v40 = vadd.f32 %v7947_v27, %v7840_v58  ;;  %v8140_v39 = vadd.f32 %v8095_v19, %v7988_v41  ;;  %v8141_v51 = vadd.f32 %v8096_v62, %v7989_v4  ;;  %v22701_v58 = vld [vmem:[#allocation7_spill] sm:$0xff] }
 0x2a3   : > { %v8142_v17 = vadd.f32 %v8097_v56, %v7990_v23  ;;  %v8244_v29 = vmul.f32 %v22695_v54, %v17397_v13  ;;  %v8245_v24 = vmul.f32 %v22696_v44, %v6997_v43  ;;  %v8246_v3 = vmul.f32 %v22697_v10, %v7011_v57  ;;  %v22699_v13 = vld [vmem:[#allocation97_spill] sm:$0xff] }
 0x2a4   : > { %v8143_v22 = vadd.f32 %v8098_v45, %v7991_v30  ;;  %v8247_v61 = vmul.f32 %v16989_v5, %v7019_v18  ;;  %v8248_v38 = vmul.f32 %v22655_v59, %v7021_v55  ;;  %v8249_v27 = vmul.f32 %v22655_v59, %v22687_v48  ;;  %v22716_v59 = vld [vmem:[#allocation75_spill] sm:$0xff] }
 0x2a5   : > { %v8250_v41 = vmul.f32 %v16628_v42, %v22698_v21  ;;  %v8289_v62 = vadd.f32 %v8244_v29, %v8137_v15  ;;  %v8290_v4 = vadd.f32 %v8245_v24, %v8138_v34  ;;  %v8291_v32 = vadd.f32 %v8246_v3, %v8139_v50  ;;  %v22702_v29 = vld [vmem:[#allocation215_spill] sm:$0xff]  ;;  %v22704_v34 = vld [vmem:[#allocation117_spill] sm:$0xff] }
 0x2a6   : > { %v8292_v19 = vadd.f32 %v8247_v61, %v8140_v39  ;;  %v8396_v30 = vmul.f32 %v22699_v13, %v6997_v43  ;;  %v8293_v23 = vadd.f32 %v8248_v38, %v8141_v51  ;;  %v8294_v1 = vadd.f32 %v8249_v27, %v8142_v17  ;;  %v22706_v38 = vld [vmem:[#allocation218_spill] sm:$0xff] }
 0x2a7   : > { %v8295_v28 = vadd.f32 %v8250_v41, %v8143_v22  ;;  %v8397_v53 = vmul.f32 %v22700_v0, %v7011_v57  ;;  %v8398_v56 = vmul.f32 %v22701_v58, %v7019_v18  ;;  %v8399_v45 = vmul.f32 %v16993_v36, %v7021_v55  ;;  %v22707_v27 = vld [vmem:[#allocation110_spill] sm:$0xff] }
 0x2a8   : > { %v8400_v8 = vmul.f32 %v22658_v49, %v7004_v25  ;;  %v8401_v5 = vmul.f32 %v22658_v49, %v22698_v21  ;;  %v8402_v24 = vmul.f32 %v16654_v63, %v22702_v29  ;;  %v17623_v39 = vadd.f32 %v8396_v30, %v8289_v62  ;;  %v22703_v25 = vld [vmem:[#allocation106_spill] sm:$0xff] }
 0x2a9   : > { %v17625_v61 = vadd.f32 %v8397_v53, %v8290_v4  ;;  %v8589_v22 = vmul.f32 %v22528_v46, %v7018_v33  ;;  %v17628_v3 = vadd.f32 %v8398_v56, %v8291_v32  ;;  %v8444_v51 = vadd.f32 %v8399_v45, %v8292_v19  ;;  %v22705_v33 = vld [vmem:[#allocation111_spill] sm:$0xff]  ;;  %v22708_v62 = vld [vmem:[#allocation146_spill] sm:$0xff]  ;;  %v22709_v32 = vld [vmem:[#allocation16_spill] sm:$0xff] }
 0x2aa   : > { %v17630_v57 = vadd.f32 %v8400_v8, %v8293_v23  ;;  %v17632_v55 = vadd.f32 %v8401_v5, %v8294_v1  ;;  %v17634_v50 = vadd.f32 %v8402_v24, %v8295_v28  ;;  %v8590_v43 = vmul.f32 %v22560_v52, %v17574_v60  ;;  %v22710_v30 = vld [vmem:[#allocation94_spill] sm:$0xff]  ;;  %v22711_v1 = vld [vmem:[#allocation159_spill] sm:$0xff]  ;;  %v22712_v53 = vld [vmem:[#allocation213_spill] sm:$0xff] }
 0x2ab   : > { %v8591_v18 = vmul.f32 %v22703_v25, %v17581_v7  ;;  %v8593_v15 = vmul.f32 %v22704_v34, %v22698_v21  ;;  %v8594_v17 = vmul.f32 %v22705_v33, %v22702_v29  ;;  %v8595_v41 = vmul.f32 %v22707_v27, %v22706_v38  ;;  %v22713_v56 = vld [vmem:[#allocation12_spill] sm:$0xff]  ;;  %v22714_v52 = vld [vmem:[#allocation105_spill] sm:$0xff] }
 0x2ac   : > { %v8696_v5 = vmul.f32 %v22677_v6, %v17574_v60  ;;  %v8697_v4 = vmul.f32 %v22708_v62, %v17581_v7  ;;  %v8698_v19 = vmul.f32 %v22709_v32, %v22687_v48  ;;  %v8700_v23 = vmul.f32 %v22710_v30, %v22702_v29 }
 0x2ad   : > { %v8701_v28 = vmul.f32 %v22711_v1, %v22706_v38  ;;  %v8702_v45 = vmul.f32 %v22713_v56, %v22712_v53  ;;  %v8848_v60 = vmul.f32 %v22566_v20, %v17581_v7  ;;  %v8849_v62 = vmul.f32 %v22714_v52, %v22687_v48  ;;  %v22717_v1 = vld [vmem:[#allocation36_spill] sm:$0xff]  ;;  %v22718_v56 = vld [vmem:[#allocation217_spill] sm:$0xff] }
 0x2ae   : > { %v8741_v8 = vadd.f32 %v8696_v5, %v8589_v22  ;;  %v8742_v24 = vadd.f32 %v8697_v4, %v8590_v43  ;;  %v17662_v36 = vadd.f32 %v8698_v19, %v8591_v18  ;;  %v8745_v63 = vadd.f32 %v8700_v23, %v8593_v15  ;;  %v22719_v22 = vld [vmem:[#allocation6_spill] sm:$0xff]  ;;  %v22720_v15 = vld [vmem:[#allocation39_spill] sm:$0xff] }
 0x2af   : > { %v8746_v49 = vadd.f32 %v8701_v28, %v8594_v17  ;;  %v8747_v42 = vadd.f32 %v8702_v45, %v8595_v41  ;;  %v8852_v30 = vmul.f32 %v22716_v59, %v22706_v38  ;;  %v8853_v32 = vmul.f32 %v22717_v1, %v22712_v53  ;;  %v22721_v45 = vld [vmem:[#allocation54_spill] sm:$0xff]  ;;  %v22727_v59 = vld [vmem:[#allocation9_spill] sm:$0xff] }
 0x2b0   : > { %22715 = vst [vmem:[#allocation210_spill] sm:$0xff] %v17662_v36  ;;  %v8854_v43 = vmul.f32 %v22719_v22, %v22718_v56  ;;  %v8858_v7 = vmul.f32 %v22714_v52, %v17481_v31  ;;  %v8893_v5 = vadd.f32 %v8848_v60, %v8741_v8  ;;  %v8894_v4 = vadd.f32 %v8849_v62, %v8742_v24  ;;  %v22722_v22 = vld [vmem:[#allocation108_spill] sm:$0xff]  ;;  %v22724_v60 = vld [vmem:[#allocation234_spill] sm:$0xff] }
 0x2b1   : > { %v9000_v18 = vmul.f32 %v16788_v11, %v22687_v48  ;;  %v9001_v17 = vmul.f32 %v22720_v15, %v22698_v21  ;;  %v8897_v41 = vadd.f32 %v8852_v30, %v8745_v63  ;;  %v8898_v19 = vadd.f32 %v8853_v32, %v8746_v49  ;;  %v22723_v8 = vld [vmem:[#allocation32_spill] sm:$0xff] }
 0x2b2   : > { %v8899_v23 = vadd.f32 %v8854_v43, %v8747_v42  ;;  %v8903_v28 = vadd.f32 %v8858_v7, %v17526_v37  ;;  %v9004_v36 = vmul.f32 %v22721_v45, %v22712_v53  ;;  %v9005_v1 = vmul.f32 %v22722_v22, %v22718_v56  ;;  %v22725_v22 = vld [vmem:[#allocation119_spill] sm:$0xff]  ;;  %v22726_v45 = vld [vmem:[#allocation112_spill] sm:$0xff] }
 0x2b3   : > { %v9006_v62 = vmul.f32 %v22723_v8, %v17383_v26  ;;  %v9009_v24 = vmul.f32 %v16788_v11, %v17481_v31  ;;  %v9010_v52 = vmul.f32 %v22720_v15, %v22724_v60  ;;  %v9045_v63 = vadd.f32 %v9000_v18, %v8893_v5  ;;  %v22728_v5 = vld [vmem:[#allocation122_spill] sm:$0xff] }
 0x2b4   : > { %v9046_v49 = vadd.f32 %v9001_v17, %v8894_v4  ;;  %v9152_v42 = vmul.f32 %v16816_v35, %v22698_v21  ;;  %v9049_v37 = vadd.f32 %v9004_v36, %v8897_v41  ;;  %v9050_v32 = vadd.f32 %v9005_v1, %v8898_v19  ;;  %v22729_v1 = vld [vmem:[#allocation235_spill] sm:$0xff] }
 0x2b5   : > { %v9051_v30 = vadd.f32 %v9006_v62, %v8899_v23  ;;  %v9054_v43 = vadd.f32 %v9009_v24, %v17534_v14  ;;  %v9055_v7 = vadd.f32 %v9010_v52, %v8903_v28  ;;  %v9153_v8 = vmul.f32 %v22725_v22, %v22702_v29  ;;  %v22731_v24 = vld [vmem:[#allocation225_spill] sm:$0xff] }
 0x2b6   : > { %v9156_v11 = vmul.f32 %v22726_v45, %v22718_v56  ;;  %v9157_v15 = vmul.f32 %v22727_v59, %v17383_v26  ;;  %v9158_v4 = vmul.f32 %v22728_v5, %v17440_v9  ;;  %v9161_v36 = vmul.f32 %v16816_v35, %v22724_v60  ;;  %v22732_v45 = vld [vmem:[#allocation226_spill] sm:$0xff] }
 0x2b7   : > { %v9162_v18 = vmul.f32 %v22725_v22, %v22729_v1  ;;  %v9197_v14 = vadd.f32 %v9152_v42, %v9045_v63  ;;  %v9198_v52 = vadd.f32 %v9153_v8, %v9046_v49  ;;  %v17703_v19 = vadd.f32 %v17548_v2, %v8444_v51  ;;  %v22741_v8 = vld [vmem:[#allocation45_spill] sm:$0xff]  ;;  %v22742_v63 = vld [vmem:[#allocation208_spill] sm:$0xff]  ;;  %v22743_v49 = vld [vmem:[#allocation139_spill] sm:$0xff] }
 0x2b8   : > { %v9201_v17 = vadd.f32 %v9156_v11, %v9049_v37  ;;  %v9202_v41 = vadd.f32 %v9157_v15, %v9050_v32  ;;  %v9203_v23 = vadd.f32 %v9158_v4, %v9051_v30  ;;  %v9206_v28 = vadd.f32 %v9161_v36, %v9054_v43  ;;  %v22744_v42 = vld [vmem:[#allocation211_spill] sm:$0xff]  ;;  %v22748_v30 = vld [vmem:[#allocation216_spill] sm:$0xff]  ;;  %v22751_v36 = vld [vmem:[#allocation78_spill] sm:$0xff] }
 0x2b9   : > { %22730 = vst [vmem:[#allocation219_spill] sm:$0xff] %v17703_v19  ;;  %v9207_v62 = vadd.f32 %v9162_v18, %v9055_v7  ;;  %v9242_v59 = vadd.f32 %v9197_v14, %v22731_v24  ;;  %v17707_v5 = vadd.f32 %v9198_v52, %v22732_v45  ;;  %v17717_v11 = vadd.f32 %v17554_v16, %v17630_v57  ;;  %v22740_v45 = vld [vmem:[#allocation116_spill] sm:$0xff]  ;;  %v22745_v16 = vld [vmem:[#allocation50_spill] sm:$0xff]  ;;  %v22752_v18 = vld [vmem:[#allocation221_spill] sm:$0xff] }
 0x2ba   : > { %v17710_v27 = vadd.f32 %v9201_v17, %v17623_v39  ;;  %v17713_v22 = vadd.f32 %v9202_v41, %v17625_v61  ;;  %v17720_v2 = vadd.f32 %v9203_v23, %v17628_v3  ;;  %v17723_v51 = vadd.f32 %v9206_v28, %v17632_v55  ;;  %v22746_v57 = vld [vmem:[#allocation212_spill] sm:$0xff]  ;;  %v22747_v3 = vld [vmem:[#allocation149_spill] sm:$0xff]  ;;  %v22754_v17 = vld [vmem:[#allocation222_spill] sm:$0xff] }
 0x2bb   : > { %22733 = vst [vmem:[#allocation223_spill] sm:$0xff] %v17707_v5  ;;  %22736 = vst [vmem:[#allocation218_spill] sm:$0xff] %v17717_v11  ;;  %v17726_v15 = vadd.f32 %v9207_v62, %v17634_v50  ;;  %v9912_v39 = vmul.f32 %v22740_v45, %v22724_v60  ;;  %v13634_v61 = vadd.f32 %v22742_v63, %v22741_v8  ;;  %v22749_v7 = vld [vmem:[#allocation96_spill] sm:$0xff]  ;;  %v22774_v19 = vld [vmem:[#allocation71_spill] sm:$0xff] }
 0x2bc   : > { %22734 = vst [vmem:[#allocation214_spill] sm:$0xff] %v17710_v27  ;;  %22735 = vst [vmem:[#allocation215_spill] sm:$0xff] %v17713_v22  ;;  %v13635_v37 = vadd.f32 %v22744_v42, %v22743_v49  ;;  %v13636_v32 = vadd.f32 %v22746_v57, %v22745_v16  ;;  %v13637_v43 = vadd.f32 %v22748_v30, %v22747_v3  ;;  %v22750_v50 = vld [vmem:[#allocation220_spill] sm:$0xff]  ;;  %v22775_v22 = vld [vmem:[#allocation67_spill] sm:$0xff] }
 0x2bd   : > { %22737 = vst [vmem:[#allocation213_spill] sm:$0xff] %v17720_v2  ;;  %22738 = vst [vmem:[#allocation217_spill] sm:$0xff] %v17723_v51  ;;  %v9957_v55 = vadd.f32 %v9912_v39, %v17569_v47  ;;  %v13638_v4 = vadd.f32 %v22750_v50, %v22749_v7  ;;  %v13639_v14 = vadd.f32 %v22752_v18, %v22751_v36  ;;  %v22753_v52 = vld [vmem:[#allocation152_spill] sm:$0xff] }
 0x2be   : > { %22739 = vst [vmem:[#allocation225_spill] sm:$0xff] %v17726_v15  ;;  %v13640_v41 = vadd.f32 %v22754_v17, %v22753_v52  ;;  %v22755_v23 = vld [vmem:[#allocation192_spill] sm:$0xff]  ;;  %v22771_v15 = vld [vmem:[#allocation23_spill] sm:$0xff] }
 0x2bf   : > { %v6886_v28 = vadd.f32 %v13634_v61, %v22755_v23  ;;  %v6884_v62 = vadd.f32 %v13635_v37, %v22755_v23  ;;  %v6887_v24 = vadd.f32 %v13636_v32, %v22755_v23  ;;  %v6885_v8 = vadd.f32 %v13637_v43, %v22755_v23  ;;  %v22757_v32 = vld [vmem:[#allocation154_spill] sm:$0xff]  ;;  %v22758_v43 = vld [vmem:[#allocation224_spill] sm:$0xff] }
 0x2c0   : > { %v17749_v63 = vadd.f32 %v9957_v55, %v9242_v59  ;;  %v6890_v47 = vadd.f32 %v13638_v4, %v22755_v23  ;;  %v6888_v39 = vadd.f32 %v13639_v14, %v22755_v23  ;;  %v6891_v49 = vadd.f32 %v13640_v41, %v22755_v23  ;;  %v22776_v27 = vld [vmem:[#allocation28_spill] sm:$0xff] }
 0x2c1   : > { %v6901_v42 = vmax.f32 %v6886_v28, 0.0  ;;  %v6899_v16 = vmax.f32 %v6884_v62, 0.0  ;;  %v6902_v57 = vmax.f32 %v6887_v24, 0.0  ;;  %v6900_v3 = vmax.f32 %v6885_v8, 0.0 }
 0x2c2   : > { %22756 = vst [vmem:[#allocation226_spill] sm:$0xff] %v17749_v63  ;;  %v17754_v30 = vmax.f32 %v6890_v47, 0.0  ;;  %v17756_v61 = vmax.f32 %v6888_v39, 0.0  ;;  %v17758_v37 = vmax.f32 %v6891_v49, 0.0  ;;  %v17762_v59 = vadd.f32 %v22758_v43, %v22757_v32  ;;  %v22770_v63 = vld [vmem:[#allocation103_spill] sm:$0xff] }
 0x2c3   : > { %v7219_v55 = vcombine.high %v6901_v42, %v6901_v42  ;;  %v7226_v7 = vrot.slane %v6901_v42, %v14005_v12  ;;  %v7121_v50 = vcombine.high %v6899_v16, %v6899_v16  ;;  %v7128_v4 = vrot.slane %v6899_v16, %v14005_v12 }
 0x2c4   : > { %v7268_v36 = vcombine.high %v6902_v57, %v6902_v57  ;;  %v7275_v18 = vrot.slane %v6902_v57, %v14005_v12  ;;  %v7170_v14 = vcombine.high %v6900_v3, %v6900_v3  ;;  %v7177_v52 = vrot.slane %v6900_v3, %v14005_v12 }
 0x2c5   : > { %v7233_v17 = vrot.slane %v7219_v55, %v14005_v12  ;;  %v7234_v41 = vcombine.high %v7226_v7, %v7226_v7  ;;  %v17770_v28 = vrot.slane %v7226_v7, %v14005_v12  ;;  %v7135_v62 = vrot.slane %v7121_v50, %v14005_v12 }
 0x2c6   : > { %v7136_v24 = vcombine.high %v7128_v4, %v7128_v4  ;;  %v17774_v8 = vrot.slane %v7128_v4, %v14005_v12  ;;  %v7282_v47 = vrot.slane %v7268_v36, %v14005_v12  ;;  %v7283_v39 = vcombine.high %v7275_v18, %v7275_v18  ;;  %v22767_v4 = vld [vmem:[#allocation158_spill] sm:$0xff] }
 0x2c7   : > { %22759 = vst [vmem:[#allocation45_spill] sm:$0xff] %v17770_v28  ;;  %v7235_v49 = vcombine.high %v7233_v17, %v7233_v17  ;;  %v7249_v42 = vrot.slane %v7233_v17, %v14005_v12  ;;  %v17779_v16 = vrot.slane %v7234_v41, %v14005_v12  ;;  %v7137_v57 = vcombine.high %v7135_v62, %v7135_v62  ;;  %v22768_v41 = vld [vmem:[#allocation121_spill] sm:$0xff] }
 0x2c8   : > { %22760 = vst [vmem:[#allocation208_spill] sm:$0xff] %v17774_v8  ;;  %v17782_v3 = vrot.slane %v7135_v62, %v14005_v12  ;;  %v17785_v32 = vrot.slane %v7136_v24, %v14005_v12  ;;  %v17789_v43 = vcombine.high %v17774_v8, %v17774_v8  ;;  %v7284_v55 = vcombine.high %v7282_v47, %v7282_v47 }
 0x2c9   : > { %22761 = vst [vmem:[#allocation139_spill] sm:$0xff] %v17779_v16  ;;  %v17792_v7 = vrot.slane %v7235_v49, %v14005_v12  ;;  %v17794_v50 = vcombine.high %v7249_v42, %v7249_v42  ;;  %v7865_v36 = vmul.f32 %v22767_v4, %v7249_v42  ;;  %v8616_v17 = vmul.f32 %v22528_v46, %v7249_v42 }
 0x2ca   : > { %22762 = vst [vmem:[#allocation211_spill] sm:$0xff] %v17782_v3  ;;  %22763 = vst [vmem:[#allocation50_spill] sm:$0xff] %v17785_v32  ;;  %v17799_v62 = vmul.f32 %v22768_v41, %v7249_v42  ;;  %v10118_v24 = vmul.f32 %v22770_v63, %v7249_v42  ;;  %v10869_v51 = vmul.f32 %v22771_v15, %v7249_v42  ;;  %v22777_v42 = vld [vmem:[#allocation130_spill] sm:$0xff] }
 0x2cb   : > { %22764 = vst [vmem:[#allocation212_spill] sm:$0xff] %v17789_v43  ;;  %22765 = vst [vmem:[#allocation149_spill] sm:$0xff] %v17792_v7  ;;  %v17804_v11 = vrot.slane %v7137_v57, %v14005_v12  ;;  %v17808_v49 = vcombine.high %v17792_v7, %v17792_v7  ;;  %v7972_v2 = vmul.f32 %v22774_v19, %v17792_v7 }
 0x2cc   : > { %22766 = vst [vmem:[#allocation216_spill] sm:$0xff] %v17794_v50  ;;  %22769 = vst [vmem:[#allocation96_spill] sm:$0xff] %v17799_v62  ;;  %v8723_v4 = vmul.f32 %v22677_v6, %v17792_v7  ;;  %v10225_v62 = vmul.f32 %v22775_v22, %v17792_v7  ;;  %v10377_v5 = vmul.f32 %v22776_v27, %v17794_v50 }
 0x2cd   : > { %22772 = vst [vmem:[#allocation220_spill] sm:$0xff] %v17804_v11  ;;  %22773 = vst [vmem:[#allocation78_spill] sm:$0xff] %v17808_v49  ;;  %v10976_v57 = vmul.f32 %v22777_v42, %v17792_v7  ;;  %v17822_v43 = vcombine.high %v17804_v11, %v17804_v11  ;;  %v17825_v49 = vrot.slane %v7275_v18, %v14005_v12 }
 0x2ce   : > { %v17827_v19 = vadd.f32 %v7972_v2, %v7865_v36  ;;  %v17829_v8 = vadd.f32 %v8723_v4, %v8616_v17  ;;  %v10270_v33 = vadd.f32 %v10225_v62, %v10118_v24  ;;  %v17832_v1 = vrot.slane %v7282_v47, %v14005_v12 }
 0x2cf   : > { %22778 = vst [vmem:[#allocation221_spill] sm:$0xff] %v17822_v43  ;;  %22779 = vst [vmem:[#allocation152_spill] sm:$0xff] %v17825_v49  ;;  %v17834_v34 = vadd.f32 %v10976_v57, %v10869_v51  ;;  %v17837_v27 = vrot.slane %v7283_v39, %v14005_v12  ;;  %v17840_v50 = vrot.slane %v7284_v55, %v14005_v12 }
 0x2d0   : > { %22780 = vst [vmem:[#allocation222_spill] sm:$0xff] %v17827_v19  ;;  %22781 = vst [vmem:[#allocation192_spill] sm:$0xff] %v17829_v8  ;;  %v7184_v7 = vrot.slane %v7170_v14, %v14005_v12  ;;  %v17843_v18 = vadd.f32 %v10377_v5, %v10270_v33  ;;  %v7185_v2 = vcombine.high %v7177_v52, %v7177_v52 }
 0x2d1   : > { %22782 = vst [vmem:[#allocation154_spill] sm:$0xff] %v17832_v1  ;;  %22783 = vst [vmem:[#allocation224_spill] sm:$0xff] %v17834_v34  ;;  %v17846_v4 = vrot.slane %v7177_v52, %v14005_v12  ;;  %v7415_v47 = vcombine.high %v17754_v30, %v17754_v30  ;;  %v7422_v39 = vrot.slane %v17754_v30, %v14005_v12 }
 0x2d2   : > { %22784 = vst [vmem:[#allocation241_spill] sm:$0xff] %v17837_v27  ;;  %22785 = vst [vmem:[#allocation242_spill] sm:$0xff] %v17840_v50  ;;  %v7186_v36 = vcombine.high %v7184_v7, %v7184_v7  ;;  %v17851_v51 = vrot.slane %v7184_v7, %v14005_v12  ;;  %v7317_v55 = vcombine.high %v17756_v61, %v17756_v61 }
 0x2d3   : > { %22786 = vst [vmem:[#allocation243_spill] sm:$0xff] %v17843_v18  ;;  %22787 = vst [vmem:[#allocation244_spill] sm:$0xff] %v17846_v4  ;;  %v17858_v33 = vrot.slane %v7185_v2, %v14005_v12  ;;  %v17862_v5 = vcombine.high %v17846_v4, %v17846_v4  ;;  %v7429_v14 = vrot.slane %v7415_v47, %v14005_v12 }
 0x2d4   : > { %22788 = vst [vmem:[#allocation245_spill] sm:$0xff] %v17851_v51  ;;  %v7324_v52 = vrot.slane %v17756_v61, %v14005_v12  ;;  %v17868_v7 = vrot.slane %v7186_v36, %v14005_v12  ;;  %v17872_v30 = vcombine.high %v17851_v51, %v17851_v51  ;;  %v7430_v17 = vcombine.high %v7422_v39, %v7422_v39 }
 0x2d5   : > { %22789 = vst [vmem:[#allocation246_spill] sm:$0xff] %v17858_v33  ;;  %22790 = vst [vmem:[#allocation247_spill] sm:$0xff] %v17862_v5  ;;  %v17875_v62 = vrot.slane %v7422_v39, %v14005_v12  ;;  %v17879_v24 = vcombine.high %v17858_v33, %v17858_v33  ;;  %v7431_v57 = vcombine.high %v7429_v14, %v7429_v14 }
 0x2d6   : > { %22791 = vst [vmem:[#allocation248_spill] sm:$0xff] %v17868_v7  ;;  %22792 = vst [vmem:[#allocation249_spill] sm:$0xff] %v17872_v30  ;;  %v17882_v2 = vrot.slane %v7429_v14, %v14005_v12  ;;  %v7331_v61 = vrot.slane %v7317_v55, %v14005_v12  ;;  %v17886_v47 = vrot.slane %v7430_v17, %v14005_v12 }
 0x2d7   : > { %22793 = vst [vmem:[#allocation250_spill] sm:$0xff] %v17875_v62  ;;  %22794 = vst [vmem:[#allocation251_spill] sm:$0xff] %v17879_v24  ;;  %v17890_v36 = vcombine.high %v17875_v62, %v17875_v62  ;;  %v7332_v19 = vcombine.high %v7324_v52, %v7324_v52  ;;  %v17893_v39 = vrot.slane %v7324_v52, %v14005_v12 }
 0x2d8   : > { %22795 = vst [vmem:[#allocation252_spill] sm:$0xff] %v17882_v2  ;;  %22796 = vst [vmem:[#allocation253_spill] sm:$0xff] %v17886_v47  ;;  %v17896_v8 = vrot.slane %v7431_v57, %v14005_v12  ;;  %v7333_v34 = vcombine.high %v7331_v61, %v7331_v61  ;;  %v17899_v14 = vrot.slane %v7331_v61, %v14005_v12 }
 0x2d9   : > { %22797 = vst [vmem:[#allocation254_spill] sm:$0xff] %v17890_v36  ;;  %22798 = vst [vmem:[#allocation255_spill] sm:$0xff] %v17893_v39  ;;  %v7464_v55 = vcombine.high %v17758_v37, %v17758_v37  ;;  %v17905_v17 = vcombine.high %v17886_v47, %v17886_v47  ;;  %v7354_v36 = vrot.slane %v7332_v19, %v14005_v12  ;;  %v22806_v47 = vld [vmem:[#allocation143_spill] sm:$0xff]  ;;  %v22807_v19 = vld [vmem:[#allocation132_spill] sm:$0xff] }
 0x2da   : > { %22799 = vst [vmem:[#allocation256_spill] sm:$0xff] %v17896_v8  ;;  %22800 = vst [vmem:[#allocation257_spill] sm:$0xff] %v17899_v14  ;;  %v17910_v52 = vcombine.high %v17893_v39, %v17893_v39  ;;  %v17914_v57 = vmul.f32 %v16816_v35, %v17893_v39  ;;  %v17917_v61 = vrot.slane %v7333_v34, %v14005_v12  ;;  %v22810_v35 = vld [vmem:[#allocation14_spill] sm:$0xff] }
 0x2db   : > { %22801 = vst [vmem:[#allocation258_spill] sm:$0xff] %v17905_v17  ;;  %v17921_v62 = vcombine.high %v17899_v14, %v17899_v14  ;;  %v11289_v17 = vmul.f32 %v22806_v47, %v17899_v14  ;;  %v17927_v8 = vmul.f32 %v22807_v19, %v17893_v39  ;;  %v17929_v2 = vcombine.high %v7354_v36, %v7354_v36 }
 0x2dc   : > { %22802 = vst [vmem:[#allocation259_spill] sm:$0xff] %v17910_v52  ;;  %22803 = vst [vmem:[#allocation260_spill] sm:$0xff] %v17914_v57  ;;  %v8625_v18 = vmul.f32 %v22528_v46, %v7354_v36  ;;  %v8732_v57 = vmul.f32 %v22677_v6, %v17910_v52  ;;  %v9376_v34 = vmul.f32 %v22768_v41, %v7354_v36  ;;  %v22811_v46 = vld [vmem:[#allocation90_spill] sm:$0xff] }
 0x2dd   : > { %22804 = vst [vmem:[#allocation261_spill] sm:$0xff] %v17917_v61  ;;  %22805 = vst [vmem:[#allocation262_spill] sm:$0xff] %v17921_v62  ;;  %v9483_v11 = vmul.f32 %v22810_v35, %v17910_v52  ;;  %v10127_v62 = vmul.f32 %v22770_v63, %v7354_v36  ;;  %v10234_v14 = vmul.f32 %v22775_v22, %v17910_v52  ;;  %v22813_v35 = vld [vmem:[#allocation65_spill] sm:$0xff] }
 0x2de   : > { %22808 = vst [vmem:[#allocation263_spill] sm:$0xff] %v17927_v8  ;;  %22809 = vst [vmem:[#allocation264_spill] sm:$0xff] %v17929_v2  ;;  %v10878_v39 = vmul.f32 %v22771_v15, %v7354_v36  ;;  %v8777_v8 = vadd.f32 %v8732_v57, %v8625_v18  ;;  %v8884_v30 = vmul.f32 %v22566_v20, %v17929_v2 }
 0x2df   : > { %v9635_v51 = vmul.f32 %v22811_v46, %v17929_v2  ;;  %v10985_v6 = vmul.f32 %v22777_v42, %v17910_v52  ;;  %v9528_v24 = vadd.f32 %v9483_v11, %v9376_v34  ;;  %v17947_v5 = vadd.f32 %v10234_v14, %v10127_v62  ;;  %v22817_v62 = vld [vmem:[#allocation164_spill] sm:$0xff]  ;;  %v22818_v14 = vld [vmem:[#allocation227_spill] sm:$0xff] }
 0x2e0   : > { %v11137_v33 = vmul.f32 %v22813_v35, %v17929_v2  ;;  %v7471_v4 = vrot.slane %v17758_v37, %v14005_v12  ;;  %v17953_v36 = vadd.f32 %v8884_v30, %v8777_v8  ;;  %v7478_v57 = vrot.slane %v7464_v55, %v14005_v12  ;;  %v22823_v55 = vld [vmem:[#allocation232_spill] sm:$0xff] }
 0x2e1   : > { %22812 = vst [vmem:[#allocation265_spill] sm:$0xff] %v17947_v5  ;;  %v11030_v18 = vadd.f32 %v10985_v6, %v10878_v39  ;;  %v6889_v20 = vadd.f32 %v17762_v59, %v22755_v23  ;;  %v17958_v46 = vadd.f32 %v9635_v51, %v9528_v24  ;;  %v6872_v34 = vadd.f32 %v22818_v14, %v22817_v62  ;;  %v22820_v59 = vld [vmem:[#allocation168_spill] sm:$0xff]  ;;  %v22821_v51 = vld [vmem:[#allocation230_spill] sm:$0xff] }
 0x2e2   : > { %22814 = vst [vmem:[#allocation266_spill] sm:$0xff] %v17953_v36  ;;  %v7479_v52 = vcombine.high %v7471_v4, %v7471_v4  ;;  %v17961_v11 = vrot.slane %v7471_v4, %v14005_v12  ;;  %v7480_v2 = vcombine.high %v7478_v57, %v7478_v57  ;;  %v7494_v37 = vrot.slane %v7478_v57, %v14005_v12  ;;  %v22822_v39 = vld [vmem:[#allocation176_spill] sm:$0xff] }
 0x2e3   : > { %22815 = vst [vmem:[#allocation267_spill] sm:$0xff] %v17958_v46  ;;  %v11182_v5 = vadd.f32 %v11137_v33, %v11030_v18  ;;  %v6904_v8 = vmax.f32 %v6889_v20, 0.0  ;;  %v6894_v30 = vadd.f32 %v22755_v23, %v6872_v34  ;;  %v6870_v24 = vadd.f32 %v22821_v51, %v22820_v59  ;;  %v22827_v18 = vld [vmem:[#allocation42_spill] sm:$0xff]  ;;  %v22828_v14 = vld [vmem:[#allocation24_spill] sm:$0xff] }
 0x2e4   : > { %22816 = vst [vmem:[#allocation268_spill] sm:$0xff] %v17961_v11  ;;  %v17967_v6 = vrot.slane %v7479_v52, %v14005_v12  ;;  %v6871_v4 = vadd.f32 %v22823_v55, %v22822_v39  ;;  %v17977_v62 = vrot.slane %v7480_v2, %v14005_v12  ;;  %v17979_v33 = vcombine.high %v7494_v37, %v7494_v37  ;;  %v22830_v2 = vld [vmem:[#allocation109_spill] sm:$0xff]  ;;  %v22831_v51 = vld [vmem:[#allocation62_spill] sm:$0xff] }
 0x2e5   : > { %v17974_v36 = vadd.f32 %v11289_v17, %v11182_v5  ;;  %v10146_v20 = vmul.f32 %v22827_v18, %v7494_v37  ;;  %v10252_v57 = vmul.f32 %v22775_v22, %v7494_v37  ;;  %v10897_v34 = vmul.f32 %v22828_v14, %v7494_v37 }
 0x2e6   : > { %22819 = vst [vmem:[#allocation164_spill] sm:$0xff] %v17967_v6  ;;  %22825 = vst [vmem:[#allocation168_spill] sm:$0xff] %v17977_v62  ;;  %v7511_v52 = vcombine.high %v17967_v6, %v17967_v6  ;;  %v11003_v59 = vmul.f32 %v22777_v42, %v7494_v37  ;;  %v17989_v5 = vcombine.high %v17977_v62, %v17977_v62  ;;  %v6909_v11 = vmax.f32 %v6894_v30, 0.0 }
 0x2e7   : > { %22824 = vst [vmem:[#allocation227_spill] sm:$0xff] %v17974_v36  ;;  %22826 = vst [vmem:[#allocation230_spill] sm:$0xff] %v17979_v33  ;;  %v10253_v17 = vmul.f32 %v22830_v2, %v17977_v62  ;;  %v11004_v39 = vmul.f32 %v22831_v51, %v17977_v62  ;;  %v7366_v55 = vcombine.high %v6904_v8, %v6904_v8 }
 0x2e8   : > { %22829 = vst [vmem:[#allocation176_spill] sm:$0xff] %v17989_v5  ;;  %v10145_v33 = vmul.f32 %v22770_v63, %v7511_v52  ;;  %v10896_v6 = vmul.f32 %v22771_v15, %v7511_v52  ;;  %v7373_v46 = vrot.slane %v6904_v8, %v14005_v12  ;;  %v6892_v22 = vadd.f32 %v22755_v23, %v6870_v24  ;;  %v13837_v23 = vld [vmem:[%s20843_s5] ss:$0 sm:$0xff] }
 0x2e9   : > { %v17998_v36 = vadd.f32 %v10253_v17, %v10146_v20  ;;  %v18000_v37 = vadd.f32 %v11004_v39, %v10897_v34  ;;  %v7380_v5 = vrot.slane %v7366_v55, %v14005_v12  ;;  %v7611_v30 = vcombine.high %v6909_v11, %v6909_v11 }
 0x2ea   : > { %v18004_v2 = vadd.f32 %v10252_v57, %v10145_v33  ;;  %v18006_v18 = vadd.f32 %v11003_v59, %v10896_v6  ;;  %v7381_v62 = vcombine.high %v7373_v46, %v7373_v46  ;;  %v18009_v63 = vrot.slane %v7373_v46, %v14005_v12 }
 0x2eb   : > { %22832 = vst [vmem:[#allocation232_spill] sm:$0xff] %v17998_v36  ;;  %22833 = vst [vmem:[#allocation269_spill] sm:$0xff] %v18000_v37  ;;  %v7382_v52 = vcombine.high %v7380_v5, %v7380_v5  ;;  %v18012_v8 = vrot.slane %v7380_v5, %v14005_v12  ;;  %v7618_v20 = vrot.slane %v6909_v11, %v14005_v12  ;;  %v6907_v17 = vmax.f32 %v6892_v22, 0.0 }
 0x2ec   : > { %22834 = vst [vmem:[#allocation270_spill] sm:$0xff] %v18004_v2  ;;  %22835 = vst [vmem:[#allocation271_spill] sm:$0xff] %v18006_v18  ;;  %v18016_v34 = vrot.slane %v7381_v62, %v14005_v12  ;;  %v6893_v6 = vadd.f32 %v13837_v23, %v6871_v4  ;;  %v7625_v46 = vrot.slane %v7611_v30, %v14005_v12  ;;  %v22841_v11 = vmov 0.0  }
 0x2ed   : > { %22836 = vst [vmem:[#allocation272_spill] sm:$0xff] %v18009_v63  ;;  %22837 = vst [vmem:[#allocation273_spill] sm:$0xff] %v18012_v8  ;;  %v18022_v24 = vrot.slane %v7382_v52, %v14005_v12  ;;  %v7626_v33 = vcombine.high %v7618_v20, %v7618_v20  ;;  %v18026_v57 = vrot.slane %v7618_v20, %v14005_v12  ;;  %13590 = vmatprep.mubr.msk.bf16.mxu0 %vm13880_vm1, %v22841_v11 }
 0x2ee   : > { %22838 = vst [vmem:[#allocation274_spill] sm:$0xff] %v18016_v34  ;;  %v7513_v62 = vcombine.high %v6907_v17, %v6907_v17  ;;  %v7520_v22 = vrot.slane %v6907_v17, %v14005_v12  ;;  %v6908_v59 = vmax.f32 %v6893_v6, 0.0  ;;  %v18033_v4 = vcombine.high %v17782_v3, %v17782_v3  ;;  %v22847_v17 = vld [vmem:[#allocation64_spill] sm:$0xff] }
 0x2ef   : > { %22839 = vst [vmem:[#allocation275_spill] sm:$0xff] %v18022_v24  ;;  %22840 = vst [vmem:[#allocation276_spill] sm:$0xff] %v18026_v57  ;;  %v18037_v5 = vcombine.high %v18022_v24, %v18022_v24  ;;  %v18041_v39 = vmul.f32 %v22740_v45, %v18022_v24  ;;  %v7640_v55 = vrot.slane %v7625_v46, %v14005_v12 }
 0x2f0   : > { %22842 = vst [vmem:[#allocation277_spill] sm:$0xff] %v18033_v4  ;;  %v18045_v52 = vrot.slane %v7626_v33, %v14005_v12  ;;  %v18049_v30 = vcombine.high %v18026_v57, %v18026_v57  ;;  %v10913_v20 = vmul.f32 %v22771_v15, %v18026_v57  ;;  %v18055_v23 = vmul.f32 %v22847_v17, %v18026_v57  ;;  %v22850_v33 = vld [vmem:[#allocation20_spill] sm:$0xff] }
 0x2f1   : > { %22843 = vst [vmem:[#allocation278_spill] sm:$0xff] %v18037_v5  ;;  %22844 = vst [vmem:[#allocation279_spill] sm:$0xff] %v18041_v39  ;;  %v7527_v6 = vrot.slane %v7513_v62, %v14005_v12  ;;  %v22852_v39 = vld [vmem:[#allocation70_spill] sm:$0xff]  ;;  %v11476_v62 = vmul.f32 %v22807_v19, %v7640_v55  ;;  %v18078_v11 = vrot.slane %v7520_v22, %v14005_v12 }
 0x2f2   : > { %22845 = vst [vmem:[#allocation280_spill] sm:$0xff] %v18045_v52  ;;  %22846 = vst [vmem:[#allocation281_spill] sm:$0xff] %v18049_v30  ;;  %v18060_v36 = vcombine.high %v18045_v52, %v18045_v52  ;;  %v11020_v46 = vmul.f32 %v22777_v42, %v18045_v52  ;;  %v18066_v2 = vmul.f32 %v22850_v33, %v18045_v52  ;;  %v22872_v33 = vld [vmem:[#allocation2_spill] sm:$0xff] }
 0x2f3   : > { %22848 = vst [vmem:[#allocation282_spill] sm:$0xff] %v18055_v23  ;;  %v18070_v37 = vmul.f32 %v22852_v39, %v18045_v52  ;;  %v11172_v57 = vmul.f32 %v22813_v35, %v18049_v30  ;;  %v7528_v23 = vcombine.high %v7520_v22, %v7520_v22  ;;  %v7529_v18 = vcombine.high %v7527_v6, %v7527_v6 }
 0x2f4   : > { %22849 = vst [vmem:[#allocation283_spill] sm:$0xff] %v18060_v36  ;;  %22851 = vst [vmem:[#allocation284_spill] sm:$0xff] %v18066_v2  ;;  %v11065_v24 = vadd.f32 %v11020_v46, %v10913_v20  ;;  %v11324_v5 = vmul.f32 %v22806_v47, %v18060_v36  ;;  %v18081_v2 = vrot.slane %v7527_v6, %v14005_v12 }
 0x2f5   : > { %22853 = vst [vmem:[#allocation285_spill] sm:$0xff] %v18070_v37  ;;  %22854 = vst [vmem:[#allocation286_spill] sm:$0xff] %v18078_v11  ;;  %v18084_v52 = vrot.slane %v7528_v23, %v14005_v12  ;;  %v18087_v37 = vrot.slane %v7529_v18, %v14005_v12  ;;  %v7562_v30 = vcombine.high %v6908_v59, %v6908_v59 }
 0x2f6   : > { %22855 = vst [vmem:[#allocation287_spill] sm:$0xff] %v18081_v2  ;;  %v7569_v55 = vrot.slane %v6908_v59, %v14005_v12  ;;  %v11217_v8 = vadd.f32 %v11172_v57, %v11065_v24  ;;  %v18092_v20 = vcombine.high %v18078_v11, %v18078_v11  ;;  %v18096_v22 = vcombine.high %v17785_v32, %v17785_v32 }
 0x2f7   : > { %22856 = vst [vmem:[#allocation288_spill] sm:$0xff] %v18084_v52  ;;  %22857 = vst [vmem:[#allocation289_spill] sm:$0xff] %v18087_v37  ;;  %v18100_v6 = vcombine.high %v17868_v7, %v17868_v7  ;;  %v18104_v18 = vcombine.high %v18084_v52, %v18084_v52  ;;  %v7576_v23 = vrot.slane %v7562_v30, %v14005_v12 }
 0x2f8   : > { %22858 = vst [vmem:[#allocation290_spill] sm:$0xff] %v18092_v20  ;;  %22859 = vst [vmem:[#allocation291_spill] sm:$0xff] %v18096_v22  ;;  %v7577_v59 = vcombine.high %v7569_v55, %v7569_v55  ;;  %v7585_v24 = vrot.slane %v7569_v55, %v14005_v12  ;;  %v11369_v57 = vadd.f32 %v11324_v5, %v11217_v8 }
 0x2f9   : > { %22860 = vst [vmem:[#allocation292_spill] sm:$0xff] %v18100_v6  ;;  %22861 = vst [vmem:[#allocation293_spill] sm:$0xff] %v18104_v18  ;;  %v18110_v46 = vcombine.high %v17770_v28, %v17770_v28  ;;  %v18114_v36 = vcombine.high %v17779_v16, %v17779_v16  ;;  %v18118_v37 = vcombine.high %v17825_v49, %v17825_v49  ;;  %v22965_v16 = vld [vmem:[#allocation181_spill] sm:$0xff] }
 0x2fa   : > { %v7578_v2 = vcombine.high %v7576_v23, %v7576_v23  ;;  %v18121_v18 = vrot.slane %v7576_v23, %v14005_v12  ;;  %v7599_v30 = vrot.slane %v7577_v59, %v14005_v12  ;;  %v7607_v55 = vcombine.high %v7585_v24, %v7585_v24 }
 0x2fb   : > { %22862 = vst [vmem:[#allocation294_spill] sm:$0xff] %v18110_v46  ;;  %22863 = vst [vmem:[#allocation295_spill] sm:$0xff] %v18114_v36  ;;  %v18124_v8 = vadd.f32 %v11476_v62, %v11369_v57  ;;  %v10905_v5 = vmul.f32 %v22771_v15, %v7585_v24  ;;  %v18129_v20 = vcombine.high %v17832_v1, %v17832_v1  ;;  %v22871_v57 = vld [vmem:[#allocation25_spill] sm:$0xff] }
 0x2fc   : > { %22864 = vst [vmem:[#allocation296_spill] sm:$0xff] %v18118_v37  ;;  %22865 = vst [vmem:[#allocation297_spill] sm:$0xff] %v18121_v18  ;;  %v18133_v52 = vcombine.high %v17837_v27, %v17837_v27  ;;  %v18136_v11 = vrot.slane %v7578_v2, %v14005_v12  ;;  %v18140_v23 = vcombine.high %v18121_v18, %v18121_v18  ;;  %v22874_v12 = vld [vmem:[#allocation26_spill] sm:$0xff] }
 0x2fd   : > { %22866 = vst [vmem:[#allocation298_spill] sm:$0xff] %v18124_v8  ;;  %22867 = vst [vmem:[#allocation299_spill] sm:$0xff] %v18129_v20  ;;  %v7609_v59 = vcombine.high %v7599_v30, %v7599_v30  ;;  %v10906_v62 = vmul.f32 %v22828_v14, %v7599_v30  ;;  %v10907_v24 = vmul.f32 %v22871_v57, %v7607_v55  ;;  %v22875_v20 = vld [vmem:[#allocation21_spill] sm:$0xff] }
 0x2fe   : > { %22868 = vst [vmem:[#allocation300_spill] sm:$0xff] %v18133_v52  ;;  %22869 = vst [vmem:[#allocation301_spill] sm:$0xff] %v18136_v11  ;;  %v11012_v8 = vmul.f32 %v22777_v42, %v7599_v30  ;;  %v11013_v39 = vmul.f32 %v22831_v51, %v7607_v55  ;;  %v11015_v17 = vmul.f32 %v22872_v33, %v18121_v18  ;;  %v22876_v57 = vld [vmem:[#allocation17_spill] sm:$0xff]  ;;  %v22877_v30 = vld [vmem:[#allocation160_spill] sm:$0xff] }
 0x2ff   : > { %22870 = vst [vmem:[#allocation302_spill] sm:$0xff] %v18140_v23  ;;  %v18150_v2 = vcombine.high %v18136_v11, %v18136_v11  ;;  %v10908_v15 = vmul.f32 %v22874_v12, %v7609_v59  ;;  %v11014_v23 = vmul.f32 %v22875_v20, %v7609_v59  ;;  %v11164_v36 = vmul.f32 %v22813_v35, %v7607_v55  ;;  %v22880_v20 = vld [vmem:[#allocation161_spill] sm:$0xff] }
 0x300   : > { %v11057_v14 = vadd.f32 %v11012_v8, %v10905_v5  ;;  %v11058_v46 = vadd.f32 %v11013_v39, %v10906_v62  ;;  %v11165_v1 = vmul.f32 %v22876_v57, %v7609_v59  ;;  %v11166_v42 = vmul.f32 %v22877_v30, %v18121_v18  ;;  %v22889_v62 = vld [vmem:[#allocation59_spill] sm:$0xff]  ;;  %v22962_v30 = vld [vmem:[#allocation89_spill] sm:$0xff] }
 0x301   : > { %22873 = vst [vmem:[#allocation303_spill] sm:$0xff] %v18150_v2  ;;  %v11059_v51 = vadd.f32 %v11014_v23, %v10907_v24  ;;  %v18158_v52 = vadd.f32 %v11015_v17, %v10908_v15  ;;  %v11316_v33 = vmul.f32 %v22806_v47, %v7609_v59  ;;  %v22879_v2 = vld [vmem:[#allocation30_spill] sm:$0xff]  ;;  %v11318_v55 = vmul.f32 %v22880_v20, %v18136_v11  ;;  %v22888_v23 = vld [vmem:[#allocation11_spill] sm:$0xff] }
 0x302   : > { %v11317_v37 = vmul.f32 %v22879_v2, %v18121_v18  ;;  %v11209_v12 = vadd.f32 %v11164_v36, %v11057_v14  ;;  %v11210_v27 = vadd.f32 %v11165_v1, %v11058_v46  ;;  %v11468_v39 = vmul.f32 %v22807_v19, %v18121_v18 }
 0x303   : > { %22878 = vst [vmem:[#allocation304_spill] sm:$0xff] %v18158_v52  ;;  %v11211_v8 = vadd.f32 %v11166_v42, %v11059_v51  ;;  %v18169_v5 = vcombine.high %v17840_v50, %v17840_v50  ;;  %v18173_v15 = vcombine.high %v17917_v61, %v17917_v61  ;;  %v18177_v17 = vcombine.high %v18009_v63, %v18009_v63  ;;  %v22886_v42 = vld [vmem:[#allocation76_spill] sm:$0xff]  ;;  %v22890_v52 = vld [vmem:[#allocation91_spill] sm:$0xff]  ;;  %v22963_v61 = vld [vmem:[#allocation249_spill] sm:$0xff] }
 0x304   : > { %v11361_v1 = vadd.f32 %v11316_v33, %v11209_v12  ;;  %v18179_v36 = vadd.f32 %v11317_v37, %v11210_v27  ;;  %v18183_v14 = vcombine.high %v18016_v34, %v18016_v34  ;;  %v7841_v51 = vmul.f32 %v22886_v42, %v22687_v48  ;;  %v22892_v37 = vld [vmem:[#allocation134_spill] sm:$0xff]  ;;  %v22897_v42 = vld [vmem:[#allocation60_spill] sm:$0xff] }
 0x305   : > { %22881 = vst [vmem:[#allocation305_spill] sm:$0xff] %v18169_v5  ;;  %22882 = vst [vmem:[#allocation306_spill] sm:$0xff] %v18173_v15  ;;  %v18187_v46 = vadd.f32 %v11318_v55, %v11211_v8  ;;  %v7842_v59 = vmul.f32 %v22888_v23, %v22698_v21  ;;  %v7843_v24 = vmul.f32 %v22889_v62, %v22702_v29  ;;  %v22894_v55 = vld [vmem:[#allocation77_spill] sm:$0xff] }
 0x306   : > { %22883 = vst [vmem:[#allocation307_spill] sm:$0xff] %v18177_v17  ;;  %22884 = vst [vmem:[#allocation308_spill] sm:$0xff] %v18179_v36  ;;  %v7844_v12 = vmul.f32 %v22890_v52, %v22706_v38  ;;  %v18195_v27 = vadd.f32 %v11468_v39, %v11361_v1  ;;  %v7948_v33 = vmul.f32 %v22892_v37, %v22698_v21  ;;  %v22893_v36 = vld [vmem:[#allocation66_spill] sm:$0xff]  ;;  %v22896_v23 = vld [vmem:[#allocation101_spill] sm:$0xff] }
 0x307   : > { %22885 = vst [vmem:[#allocation309_spill] sm:$0xff] %v18183_v14  ;;  %22887 = vst [vmem:[#allocation310_spill] sm:$0xff] %v18187_v46  ;;  %v7949_v11 = vmul.f32 %v22893_v36, %v22702_v29  ;;  %v7950_v8 = vmul.f32 %v22894_v55, %v22706_v38  ;;  %v22895_v46 = vld [vmem:[#allocation100_spill] sm:$0xff]  ;;  %v8099_v62 = vmul.f32 %v22896_v23, %v22698_v21  ;;  %v22898_v39 = vld [vmem:[#allocation83_spill] sm:$0xff] }
 0x308   : > { %22891 = vst [vmem:[#allocation311_spill] sm:$0xff] %v18195_v27  ;;  %v7951_v18 = vmul.f32 %v22895_v46, %v22712_v53  ;;  %v8100_v52 = vmul.f32 %v22897_v42, %v22702_v29  ;;  %v8101_v1 = vmul.f32 %v22898_v39, %v22706_v38  ;;  %v7993_v27 = vadd.f32 %v7948_v33, %v7841_v51  ;;  %v22899_v36 = vld [vmem:[#allocation85_spill] sm:$0xff]  ;;  %v22900_v55 = vld [vmem:[#allocation120_spill] sm:$0xff] }
 0x309   : > { %v7994_v37 = vadd.f32 %v7949_v11, %v7842_v59  ;;  %v7995_v14 = vadd.f32 %v7950_v8, %v7843_v24  ;;  %v8102_v19 = vmul.f32 %v22899_v36, %v22712_v53  ;;  %v8103_v5 = vmul.f32 %v22900_v55, %v22718_v56  ;;  %v22901_v23 = vld [vmem:[#allocation104_spill] sm:$0xff]  ;;  %v22902_v39 = vld [vmem:[#allocation73_spill] sm:$0xff] }
 0x30a   : > { %v7996_v17 = vadd.f32 %v7951_v18, %v7844_v12  ;;  %v8144_v46 = vadd.f32 %v8099_v62, %v17602_v40  ;;  %v8251_v20 = vmul.f32 %v22901_v23, %v22702_v29  ;;  %v8145_v47 = vadd.f32 %v8100_v52, %v7993_v27  ;;  %v22903_v12 = vld [vmem:[#allocation147_spill] sm:$0xff] }
 0x30b   : > { %v8146_v42 = vadd.f32 %v8101_v1, %v7994_v37  ;;  %v8147_v2 = vadd.f32 %v8102_v19, %v7995_v14  ;;  %v8252_v51 = vmul.f32 %v22902_v39, %v22706_v38  ;;  %v8253_v59 = vmul.f32 %v22695_v54, %v22712_v53  ;;  %v22904_v19 = vld [vmem:[#allocation98_spill] sm:$0xff]  ;;  %v22925_v39 = vld [vmem:[#allocation169_spill] sm:$0xff] }
 0x30c   : > { %v8148_v11 = vadd.f32 %v8103_v5, %v7996_v17  ;;  %v8254_v18 = vmul.f32 %v22696_v44, %v22718_v56  ;;  %v8255_v24 = vmul.f32 %v22697_v10, %v17383_v26  ;;  %v8296_v40 = vadd.f32 %v8251_v20, %v8144_v46  ;;  %v22905_v1 = vld [vmem:[#allocation162_spill] sm:$0xff] }
 0x30d   : > { %v8297_v62 = vadd.f32 %v8252_v51, %v8145_v47  ;;  %v8403_v52 = vmul.f32 %v22903_v12, %v22706_v38  ;;  %v8404_v14 = vmul.f32 %v22904_v19, %v22712_v53  ;;  %v8298_v27 = vadd.f32 %v8253_v59, %v8146_v42 }
 0x30e   : > { %v8299_v37 = vadd.f32 %v8254_v18, %v8147_v2  ;;  %v8300_v5 = vadd.f32 %v8255_v24, %v8148_v11  ;;  %v8405_v17 = vmul.f32 %v22699_v13, %v22718_v56  ;;  %v8406_v33 = vmul.f32 %v22700_v0, %v17383_v26  ;;  %v22906_v2 = vld [vmem:[#allocation231_spill] sm:$0xff] }
 0x30f   : > { %v8407_v8 = vmul.f32 %v22701_v58, %v17440_v9  ;;  %v18236_v20 = vadd.f32 %v8403_v52, %v8296_v40  ;;  %v18238_v47 = vadd.f32 %v8404_v14, %v8297_v62  ;;  %v8592_v42 = vmul.f32 %v22905_v1, %v22687_v48  ;;  %v22907_v9 = vld [vmem:[#allocation117_spill] sm:$0xff]  ;;  %v22908_v18 = vld [vmem:[#allocation235_spill] sm:$0xff]  ;;  %v22910_v62 = vld [vmem:[#allocation208_spill] sm:$0xff] }
 0x310   : > { %v18240_v46 = vadd.f32 %v8405_v17, %v8298_v27  ;;  %v8600_v51 = vmul.f32 %v22703_v25, %v22906_v2  ;;  %v8601_v56 = vmul.f32 %v22905_v1, %v17481_v31  ;;  %v18248_v11 = vadd.f32 %v8406_v33, %v8299_v37  ;;  %v22909_v24 = vld [vmem:[#allocation111_spill] sm:$0xff]  ;;  %v22911_v52 = vld [vmem:[#allocation110_spill] sm:$0xff]  ;;  %v22913_v17 = vld [vmem:[#allocation16_spill] sm:$0xff] }
 0x311   : > { %v18250_v26 = vadd.f32 %v8407_v8, %v8300_v5  ;;  %v8602_v59 = vmul.f32 %v22907_v9, %v22724_v60  ;;  %v8603_v40 = vmul.f32 %v22909_v24, %v22908_v18  ;;  %v8604_v14 = vmul.f32 %v22911_v52, %v22910_v62  ;;  %v22912_v48 = vld [vmem:[#allocation163_spill] sm:$0xff]  ;;  %v22914_v5 = vld [vmem:[#allocation94_spill] sm:$0xff]  ;;  %v22916_v24 = vld [vmem:[#allocation12_spill] sm:$0xff] }
 0x312   : > { %v8699_v27 = vmul.f32 %v22912_v48, %v22698_v21  ;;  %v8707_v25 = vmul.f32 %v22913_v17, %v17481_v31  ;;  %v8708_v37 = vmul.f32 %v22912_v48, %v22724_v60  ;;  %v8709_v33 = vmul.f32 %v22914_v5, %v22908_v18  ;;  %v22915_v8 = vld [vmem:[#allocation159_spill] sm:$0xff]  ;;  %v22917_v52 = vld [vmem:[#allocation165_spill] sm:$0xff]  ;;  %v22918_v17 = vld [vmem:[#allocation166_spill] sm:$0xff] }
 0x313   : > { %v8710_v9 = vmul.f32 %v22915_v8, %v22910_v62  ;;  %v8711_v1 = vmul.f32 %v22916_v24, %v17785_v32  ;;  %v8850_v58 = vmul.f32 %v22917_v52, %v22698_v21  ;;  %v8851_v12 = vmul.f32 %v22918_v17, %v22702_v29  ;;  %v22919_v24 = vld [vmem:[#allocation75_spill] sm:$0xff]  ;;  %v22920_v21 = vld [vmem:[#allocation36_spill] sm:$0xff] }
 0x314   : > { %v8744_v0 = vadd.f32 %v8699_v27, %v8592_v42  ;;  %v8752_v13 = vadd.f32 %v8707_v25, %v8600_v51  ;;  %v8753_v19 = vadd.f32 %v8708_v37, %v8601_v56  ;;  %v8754_v10 = vadd.f32 %v8709_v33, %v8602_v59  ;;  %v22921_v25 = vld [vmem:[#allocation212_spill] sm:$0xff]  ;;  %v22922_v51 = vld [vmem:[#allocation6_spill] sm:$0xff] }
 0x315   : > { %v8755_v48 = vadd.f32 %v8710_v9, %v8603_v40  ;;  %v8756_v44 = vadd.f32 %v8711_v1, %v8604_v14  ;;  %v8859_v5 = vmul.f32 %v22917_v52, %v22724_v60  ;;  %v8860_v8 = vmul.f32 %v22918_v17, %v22908_v18  ;;  %v22923_v27 = vld [vmem:[#allocation210_spill] sm:$0xff]  ;;  %v22924_v1 = vld [vmem:[#allocation167_spill] sm:$0xff] }
 0x316   : > { %v8861_v54 = vmul.f32 %v22919_v24, %v22910_v62  ;;  %v8862_v42 = vmul.f32 %v22920_v21, %v17785_v32  ;;  %v8863_v56 = vmul.f32 %v22922_v51, %v22921_v25  ;;  %v8895_v37 = vadd.f32 %v8850_v58, %v22923_v27  ;;  %v22926_v58 = vld [vmem:[#allocation54_spill] sm:$0xff] }
 0x317   : > { %v8896_v59 = vadd.f32 %v8851_v12, %v8744_v0  ;;  %v8904_v9 = vadd.f32 %v8859_v5, %v8752_v13  ;;  %v9002_v40 = vmul.f32 %v22924_v1, %v22702_v29  ;;  %v8905_v14 = vadd.f32 %v8860_v8, %v8753_v19  ;;  %v22927_v13 = vld [vmem:[#allocation108_spill] sm:$0xff] }
 0x318   : > { %v8906_v33 = vadd.f32 %v8861_v54, %v8754_v10  ;;  %v8907_v52 = vadd.f32 %v8862_v42, %v8755_v48  ;;  %v8908_v17 = vadd.f32 %v8863_v56, %v8756_v44  ;;  %v9003_v24 = vmul.f32 %v22925_v39, %v22706_v38  ;;  %v22928_v29 = vld [vmem:[#allocation32_spill] sm:$0xff]  ;;  %v22929_v44 = vld [vmem:[#allocation170_spill] sm:$0xff] }
 0x319   : > { %v9011_v21 = vmul.f32 %v22924_v1, %v22908_v18  ;;  %v9012_v51 = vmul.f32 %v22925_v39, %v22910_v62  ;;  %v9013_v0 = vmul.f32 %v22926_v58, %v17785_v32  ;;  %v9014_v12 = vmul.f32 %v22927_v13, %v22921_v25  ;;  %v22930_v39 = vld [vmem:[#allocation171_spill] sm:$0xff] }
 0x31a   : > { %v9015_v10 = vmul.f32 %v22928_v29, %v18096_v22  ;;  %v9047_v54 = vadd.f32 %v9002_v40, %v8895_v37  ;;  %v9154_v19 = vmul.f32 %v22929_v44, %v22706_v38  ;;  %v9048_v48 = vadd.f32 %v9003_v24, %v8896_v59  ;;  %v22931_v37 = vld [vmem:[#allocation112_spill] sm:$0xff]  ;;  %v22932_v38 = vld [vmem:[#allocation9_spill] sm:$0xff] }
 0x31b   : > { %v9056_v5 = vadd.f32 %v9011_v21, %v8904_v9  ;;  %v9057_v8 = vadd.f32 %v9012_v51, %v8905_v14  ;;  %v9058_v42 = vadd.f32 %v9013_v0, %v8906_v33  ;;  %v9059_v56 = vadd.f32 %v9014_v12, %v8907_v52  ;;  %v22933_v21 = vld [vmem:[#allocation122_spill] sm:$0xff] }
 0x31c   : > { %v9060_v27 = vadd.f32 %v9015_v10, %v8908_v17  ;;  %v9155_v1 = vmul.f32 %v22930_v39, %v22712_v53  ;;  %v9163_v58 = vmul.f32 %v22929_v44, %v22910_v62  ;;  %v9164_v13 = vmul.f32 %v22930_v39, %v17785_v32  ;;  %v22934_v53 = vld [vmem:[#allocation172_spill] sm:$0xff] }
 0x31d   : > { %v9165_v40 = vmul.f32 %v22931_v37, %v22921_v25  ;;  %v9166_v24 = vmul.f32 %v22932_v38, %v18096_v22  ;;  %v9167_v51 = vmul.f32 %v22933_v21, %v17782_v3  ;;  %v9199_v52 = vadd.f32 %v9154_v19, %v9047_v54  ;;  %v22935_v10 = vld [vmem:[#allocation228_spill] sm:$0xff]  ;;  %v22937_v37 = vld [vmem:[#allocation229_spill] sm:$0xff]  ;;  %v22940_v54 = vld [vmem:[#allocation174_spill] sm:$0xff] }
 0x31e   : > { %v9200_v17 = vadd.f32 %v9155_v1, %v9048_v48  ;;  %v9208_v59 = vadd.f32 %v9163_v58, %v9056_v5  ;;  %v9351_v9 = vmul.f32 %v22934_v53, %v22906_v2  ;;  %v9209_v14 = vadd.f32 %v9164_v13, %v9057_v8  ;;  %v22945_v5 = vld [vmem:[#allocation87_spill] sm:$0xff] }
 0x31f   : > { %v9210_v33 = vadd.f32 %v9165_v40, %v9058_v42  ;;  %v9211_v0 = vadd.f32 %v9166_v24, %v9059_v56  ;;  %v9212_v12 = vadd.f32 %v9167_v51, %v9060_v27  ;;  %v18316_v39 = vadd.f32 %v9199_v52, %v22935_v10  ;;  %v22947_v56 = vld [vmem:[#allocation173_spill] sm:$0xff]  ;;  %v22950_v40 = vld [vmem:[#allocation86_spill] sm:$0xff] }
 0x320   : > { %v18319_v44 = vadd.f32 %v9200_v17, %v22937_v37  ;;  %v18322_v38 = vadd.f32 %v9208_v59, %v18236_v20  ;;  %v9352_v1 = vmul.f32 %v22940_v54, %v17481_v31  ;;  %v18327_v58 = vadd.f32 %v9209_v14, %v18238_v47  ;;  %v22946_v20 = vld [vmem:[#allocation125_spill] sm:$0xff]  ;;  %v22948_v47 = vld [vmem:[#allocation175_spill] sm:$0xff]  ;;  %v22951_v51 = vld [vmem:[#allocation246_spill] sm:$0xff] }
 0x321   : > { %22936 = vst [vmem:[#allocation210_spill] sm:$0xff] %v18316_v39  ;;  %v18330_v13 = vadd.f32 %v9210_v33, %v18240_v46  ;;  %v18333_v19 = vadd.f32 %v9211_v0, %v18248_v11  ;;  %v18336_v48 = vadd.f32 %v9212_v12, %v18250_v26  ;;  %v9353_v8 = vmul.f32 %v22945_v5, %v22724_v60  ;;  %v22949_v26 = vld [vmem:[#allocation244_spill] sm:$0xff]  ;;  %v22952_v17 = vld [vmem:[#allocation247_spill] sm:$0xff]  ;;  %v22954_v0 = vld [vmem:[#allocation245_spill] sm:$0xff] }
 0x322   : > { %22938 = vst [vmem:[#allocation228_spill] sm:$0xff] %v18319_v44  ;;  %22939 = vst [vmem:[#allocation229_spill] sm:$0xff] %v18322_v38  ;;  %v9354_v42 = vmul.f32 %v22946_v20, %v22908_v18  ;;  %v9355_v27 = vmul.f32 %v22947_v56, %v22910_v62  ;;  %v9356_v37 = vmul.f32 %v22948_v47, %v17785_v32  ;;  %v22953_v14 = vld [vmem:[#allocation251_spill] sm:$0xff]  ;;  %v22964_v39 = vld [vmem:[#allocation8_spill] sm:$0xff] }
 0x323   : > { %22941 = vst [vmem:[#allocation312_spill] sm:$0xff] %v18327_v58  ;;  %22942 = vst [vmem:[#allocation313_spill] sm:$0xff] %v18330_v13  ;;  %v9357_v46 = vmul.f32 %v22768_v41, %v22921_v25  ;;  %v9358_v11 = vmul.f32 %v22768_v41, %v17822_v43  ;;  %v9359_v24 = vmul.f32 %v22950_v40, %v22949_v26  ;;  %v22955_v41 = vld [vmem:[#allocation177_spill] sm:$0xff]  ;;  %v22956_v40 = vld [vmem:[#allocation179_spill] sm:$0xff] }
 0x324   : > { %22943 = vst [vmem:[#allocation314_spill] sm:$0xff] %v18333_v19  ;;  %22944 = vst [vmem:[#allocation315_spill] sm:$0xff] %v18336_v48  ;;  %v9360_v52 = vmul.f32 %v22934_v53, %v22951_v51  ;;  %v9361_v59 = vmul.f32 %v22940_v54, %v22952_v17  ;;  %v9362_v33 = vmul.f32 %v22945_v5, %v22953_v14  ;;  %v22957_v53 = vld [vmem:[#allocation88_spill] sm:$0xff]  ;;  %v22958_v54 = vld [vmem:[#allocation69_spill] sm:$0xff] }
 0x325   : > { %v9363_v12 = vmul.f32 %v22946_v20, %v22954_v0  ;;  %v9364_v10 = vmul.f32 %v22947_v56, %v17868_v7  ;;  %v9458_v47 = vmul.f32 %v22955_v41, %v17481_v31  ;;  %v9459_v21 = vmul.f32 %v22956_v40, %v22724_v60  ;;  %v22959_v5 = vld [vmem:[#allocation178_spill] sm:$0xff]  ;;  %v22960_v20 = vld [vmem:[#allocation180_spill] sm:$0xff] }
 0x326   : > { %v9460_v29 = vmul.f32 %v22957_v53, %v22908_v18  ;;  %v9461_v23 = vmul.f32 %v22958_v54, %v22910_v62  ;;  %v9462_v55 = vmul.f32 %v22959_v5, %v17785_v32  ;;  %v9463_v36 = vmul.f32 %v22960_v20, %v22921_v25  ;;  %v22961_v56 = vld [vmem:[#allocation14_spill] sm:$0xff] }
 0x327   : > { %v9464_v2 = vmul.f32 %v22961_v56, %v18096_v22  ;;  %v9465_v34 = vmul.f32 %v22961_v56, %v22949_v26  ;;  %v9466_v35 = vmul.f32 %v22962_v30, %v22951_v51  ;;  %v9467_v57 = vmul.f32 %v22955_v41, %v22952_v17 }
 0x328   : > { %v9468_v63 = vmul.f32 %v22956_v40, %v22953_v14  ;;  %v9469_v15 = vmul.f32 %v22957_v53, %v22954_v0  ;;  %v9470_v20 = vmul.f32 %v22958_v54, %v17868_v7  ;;  %v9471_v50 = vmul.f32 %v22959_v5, %v22963_v61 }
 0x329   : > { %v9503_v49 = vadd.f32 %v9458_v47, %v9351_v9  ;;  %v9504_v56 = vadd.f32 %v9459_v21, %v9352_v1  ;;  %v9505_v26 = vadd.f32 %v9460_v29, %v9353_v8  ;;  %v9506_v43 = vadd.f32 %v9461_v23, %v9354_v42  ;;  %v22966_v21 = vld [vmem:[#allocation183_spill] sm:$0xff] }
 0x32a   : > { %v9507_v30 = vadd.f32 %v9462_v55, %v9355_v27  ;;  %v9508_v48 = vadd.f32 %v9463_v36, %v9356_v37  ;;  %v9509_v19 = vadd.f32 %v9464_v2, %v9357_v46  ;;  %v9510_v41 = vadd.f32 %v9465_v34, %v9358_v11  ;;  %v22967_v23 = vld [vmem:[#allocation107_spill] sm:$0xff]  ;;  %v22968_v34 = vld [vmem:[#allocation92_spill] sm:$0xff]  ;;  %v22971_v55 = vld [vmem:[#allocation90_spill] sm:$0xff] }
 0x32b   : > { %v9511_v13 = vadd.f32 %v9466_v35, %v9359_v24  ;;  %v9512_v58 = vadd.f32 %v9467_v57, %v9360_v52  ;;  %v9513_v40 = vadd.f32 %v9468_v63, %v9361_v59  ;;  %v9514_v38 = vadd.f32 %v9469_v15, %v9362_v33  ;;  %v22969_v63 = vld [vmem:[#allocation182_spill] sm:$0xff]  ;;  %v22972_v37 = vld [vmem:[#allocation240_spill] sm:$0xff] }
 0x32c   : > { %v9515_v44 = vadd.f32 %v9470_v20, %v9363_v12  ;;  %v9516_v53 = vadd.f32 %v9471_v50, %v9364_v10  ;;  %v9609_v54 = vmul.f32 %v22964_v39, %v17481_v31  ;;  %v9610_v5 = vmul.f32 %v22965_v16, %v22724_v60  ;;  %v22970_v50 = vld [vmem:[#allocation184_spill] sm:$0xff] }
 0x32d   : > { %v9611_v29 = vmul.f32 %v22966_v21, %v22908_v18  ;;  %v9612_v36 = vmul.f32 %v22967_v23, %v22910_v62  ;;  %v9613_v35 = vmul.f32 %v22968_v34, %v17785_v32  ;;  %v9614_v57 = vmul.f32 %v22969_v63, %v22921_v25 }
 0x32e   : > { %v9615_v15 = vmul.f32 %v22970_v50, %v18096_v22  ;;  %v9616_v2 = vmul.f32 %v22971_v55, %v17782_v3  ;;  %v9617_v9 = vmul.f32 %v22971_v55, %v22951_v51  ;;  %v9618_v1 = vmul.f32 %v22964_v39, %v22952_v17 }
 0x32f   : > { %v9619_v8 = vmul.f32 %v22965_v16, %v22953_v14  ;;  %v9620_v20 = vmul.f32 %v22966_v21, %v22954_v0  ;;  %v9621_v42 = vmul.f32 %v22967_v23, %v17868_v7  ;;  %v9622_v27 = vmul.f32 %v22968_v34, %v22963_v61  ;;  %v22973_v34 = vld [vmem:[#allocation34_spill] sm:$0xff] }
 0x330   : > { %v9623_v47 = vmul.f32 %v22969_v63, %v18100_v6  ;;  %v9654_v46 = vadd.f32 %v9609_v54, %v22972_v37  ;;  %v9655_v11 = vadd.f32 %v9610_v5, %v9503_v49  ;;  %v9656_v24 = vadd.f32 %v9611_v29, %v9504_v56  ;;  %v22974_v63 = vld [vmem:[#allocation185_spill] sm:$0xff]  ;;  %v22975_v49 = vld [vmem:[#allocation187_spill] sm:$0xff] }
 0x331   : > { %v9657_v52 = vadd.f32 %v9612_v36, %v9505_v26  ;;  %v9658_v59 = vadd.f32 %v9613_v35, %v9506_v43  ;;  %v9659_v33 = vadd.f32 %v9614_v57, %v9507_v30  ;;  %v9660_v12 = vadd.f32 %v9615_v15, %v9508_v48  ;;  %v22976_v43 = vld [vmem:[#allocation102_spill] sm:$0xff]  ;;  %v22981_v48 = vld [vmem:[#allocation93_spill] sm:$0xff] }
 0x332   : > { %v9661_v10 = vadd.f32 %v9616_v2, %v9509_v19  ;;  %v9662_v16 = vadd.f32 %v9617_v9, %v9510_v41  ;;  %v9663_v21 = vadd.f32 %v9618_v1, %v9511_v13  ;;  %v9664_v39 = vadd.f32 %v9619_v8, %v9512_v58  ;;  %v22977_v41 = vld [vmem:[#allocation35_spill] sm:$0xff]  ;;  %v22978_v58 = vld [vmem:[#allocation186_spill] sm:$0xff]  ;;  %v22980_v19 = vld [vmem:[#allocation220_spill] sm:$0xff] }
 0x333   : > { %v9665_v55 = vadd.f32 %v9620_v20, %v9513_v40  ;;  %v9666_v23 = vadd.f32 %v9621_v42, %v9514_v38  ;;  %v9667_v50 = vadd.f32 %v9622_v27, %v9515_v44  ;;  %v9668_v31 = vadd.f32 %v9623_v47, %v9516_v53  ;;  %v22979_v44 = vld [vmem:[#allocation188_spill] sm:$0xff] }
 0x334   : > { %v9761_v51 = vmul.f32 %v22973_v34, %v22724_v60  ;;  %v9762_v54 = vmul.f32 %v22974_v63, %v22908_v18  ;;  %v9763_v5 = vmul.f32 %v22975_v49, %v22910_v62  ;;  %v9764_v30 = vmul.f32 %v22976_v43, %v17785_v32 }
 0x335   : > { %v9765_v13 = vmul.f32 %v22977_v41, %v22921_v25  ;;  %v9766_v38 = vmul.f32 %v22978_v58, %v18096_v22  ;;  %v9767_v53 = vmul.f32 %v22979_v44, %v17782_v3  ;;  %v9768_v56 = vmul.f32 %v22981_v48, %v22980_v19 }
 0x336   : > { %v9769_v26 = vmul.f32 %v22981_v48, %v22952_v17  ;;  %v9770_v40 = vmul.f32 %v22973_v34, %v22953_v14  ;;  %v9771_v29 = vmul.f32 %v22974_v63, %v22954_v0  ;;  %v9772_v36 = vmul.f32 %v22975_v49, %v17868_v7 }
 0x337   : > { %v9773_v35 = vmul.f32 %v22976_v43, %v22963_v61  ;;  %v9774_v57 = vmul.f32 %v22977_v41, %v18100_v6  ;;  %v9775_v15 = vmul.f32 %v22978_v58, %v17770_v28  ;;  %v9806_v2 = vadd.f32 %v9761_v51, %v9654_v46  ;;  %v22982_v41 = vld [vmem:[#allocation115_spill] sm:$0xff]  ;;  %v22983_v58 = vld [vmem:[#allocation189_spill] sm:$0xff] }
 0x338   : > { %v9807_v9 = vadd.f32 %v9762_v54, %v9655_v11  ;;  %v9808_v1 = vadd.f32 %v9763_v5, %v9656_v24  ;;  %v9809_v8 = vadd.f32 %v9764_v30, %v9657_v52  ;;  %v9810_v20 = vadd.f32 %v9765_v13, %v9658_v59  ;;  %v22984_v46 = vld [vmem:[#allocation191_spill] sm:$0xff]  ;;  %v22985_v24 = vld [vmem:[#allocation118_spill] sm:$0xff] }
 0x339   : > { %v9811_v42 = vadd.f32 %v9766_v38, %v9659_v33  ;;  %v9812_v27 = vadd.f32 %v9767_v53, %v9660_v12  ;;  %v9813_v47 = vadd.f32 %v9768_v56, %v9661_v10  ;;  %v9814_v37 = vadd.f32 %v9769_v26, %v9662_v16  ;;  %v22986_v16 = vld [vmem:[#allocation127_spill] sm:$0xff] }
 0x33a   : > { %v9815_v63 = vadd.f32 %v9770_v40, %v9663_v21  ;;  %v9816_v49 = vadd.f32 %v9771_v29, %v9664_v39  ;;  %v9817_v34 = vadd.f32 %v9772_v36, %v9665_v55  ;;  %v9818_v48 = vadd.f32 %v9773_v35, %v9666_v23  ;;  %v22987_v39 = vld [vmem:[#allocation190_spill] sm:$0xff]  ;;  %v22989_v30 = vld [vmem:[#allocation139_spill] sm:$0xff] }
 0x33b   : > { %v9819_v43 = vadd.f32 %v9774_v57, %v9667_v50  ;;  %v9820_v44 = vadd.f32 %v9775_v15, %v9668_v31  ;;  %v9913_v60 = vmul.f32 %v22982_v41, %v22908_v18  ;;  %v9914_v51 = vmul.f32 %v22983_v58, %v22910_v62  ;;  %v22988_v31 = vld [vmem:[#allocation193_spill] sm:$0xff] }
 0x33c   : > { %v9915_v11 = vmul.f32 %v22984_v46, %v17785_v32  ;;  %v9916_v52 = vmul.f32 %v22985_v24, %v22921_v25  ;;  %v9917_v21 = vmul.f32 %v22986_v16, %v18096_v22  ;;  %v9918_v23 = vmul.f32 %v22987_v39, %v17782_v3 }
 0x33d   : > { %v9919_v50 = vmul.f32 %v22988_v31, %v22980_v19  ;;  %v9920_v55 = vmul.f32 %v22740_v45, %v18033_v4  ;;  %v9921_v59 = vmul.f32 %v22740_v45, %v22953_v14  ;;  %v9922_v33 = vmul.f32 %v22982_v41, %v22954_v0  ;;  %v22990_v31 = vld [vmem:[#allocation223_spill] sm:$0xff]  ;;  %v22992_v4 = vld [vmem:[#allocation210_spill] sm:$0xff] }
 0x33e   : > { %v9923_v12 = vmul.f32 %v22983_v58, %v17868_v7  ;;  %v9924_v10 = vmul.f32 %v22984_v46, %v22963_v61  ;;  %v9925_v54 = vmul.f32 %v22985_v24, %v18100_v6  ;;  %v9926_v5 = vmul.f32 %v22986_v16, %v17770_v28 }
 0x33f   : > { %v9927_v13 = vmul.f32 %v22987_v39, %v22989_v30  ;;  %v9958_v38 = vadd.f32 %v9913_v60, %v9806_v2  ;;  %v9959_v53 = vadd.f32 %v9914_v51, %v9807_v9  ;;  %v9960_v56 = vadd.f32 %v9915_v11, %v9808_v1  ;;  %v22994_v60 = vld [vmem:[#allocation228_spill] sm:$0xff]  ;;  %v22996_v9 = vld [vmem:[#allocation214_spill] sm:$0xff] }
 0x340   : > { %v9961_v26 = vadd.f32 %v9916_v52, %v9809_v8  ;;  %v9962_v40 = vadd.f32 %v9917_v21, %v9810_v20  ;;  %v9963_v29 = vadd.f32 %v9918_v23, %v9811_v42  ;;  %v9964_v36 = vadd.f32 %v9919_v50, %v9812_v27  ;;  %v22998_v8 = vld [vmem:[#allocation215_spill] sm:$0xff]  ;;  %v23008_v27 = vld [vmem:[#allocation225_spill] sm:$0xff]  ;;  %v23012_v11 = vld [vmem:[#allocation312_spill] sm:$0xff] }
 0x341   : > { %v9965_v35 = vadd.f32 %v9920_v55, %v9813_v47  ;;  %v9966_v57 = vadd.f32 %v9921_v59, %v9814_v37  ;;  %v9967_v15 = vadd.f32 %v9922_v33, %v9815_v63  ;;  %v9968_v46 = vadd.f32 %v9923_v12, %v9816_v49  ;;  %v23000_v63 = vld [vmem:[#allocation213_spill] sm:$0xff]  ;;  %v23002_v49 = vld [vmem:[#allocation219_spill] sm:$0xff] }
 0x342   : > { %v9969_v58 = vadd.f32 %v9924_v10, %v9817_v34  ;;  %v9970_v41 = vadd.f32 %v9925_v54, %v9818_v48  ;;  %v9971_v24 = vadd.f32 %v9926_v5, %v9819_v43  ;;  %v9972_v45 = vadd.f32 %v9927_v13, %v9820_v44  ;;  %v23004_v44 = vld [vmem:[#allocation218_spill] sm:$0xff]  ;;  %v23010_v37 = vld [vmem:[#allocation229_spill] sm:$0xff]  ;;  %v23018_v55 = vld [vmem:[#allocation315_spill] sm:$0xff] }
 0x343   : > { %v18482_v16 = vadd.f32 %v9958_v38, %v22990_v31  ;;  %v18485_v39 = vadd.f32 %v9959_v53, %v22992_v4  ;;  %v18488_v2 = vadd.f32 %v9960_v56, %v22994_v60  ;;  %v18491_v1 = vadd.f32 %v9961_v26, %v22996_v9  ;;  %v23006_v4 = vld [vmem:[#allocation217_spill] sm:$0xff]  ;;  %v23016_v31 = vld [vmem:[#allocation314_spill] sm:$0xff]  ;;  %v23021_v12 = vld [vmem:[#allocation103_spill] sm:$0xff] }
 0x344   : > { %v18494_v20 = vadd.f32 %v9962_v40, %v22998_v8  ;;  %v18497_v34 = vadd.f32 %v9963_v29, %v23000_v63  ;;  %v18500_v43 = vadd.f32 %v9964_v36, %v23002_v49  ;;  %v18503_v48 = vadd.f32 %v9965_v35, %v23004_v44  ;;  %v23014_v21 = vld [vmem:[#allocation313_spill] sm:$0xff]  ;;  %v23022_v54 = vld [vmem:[#allocation244_spill] sm:$0xff]  ;;  %v23023_v5 = vld [vmem:[#allocation42_spill] sm:$0xff] }
 0x345   : > { %22991 = vst [vmem:[#allocation240_spill] sm:$0xff] %v18482_v16  ;;  %22993 = vst [vmem:[#allocation223_spill] sm:$0xff] %v18485_v39  ;;  %v18506_v42 = vadd.f32 %v9966_v57, %v23006_v4  ;;  %v18509_v47 = vadd.f32 %v9967_v15, %v23008_v27  ;;  %v18512_v51 = vadd.f32 %v9968_v46, %v23010_v37  ;;  %v23020_v33 = vld [vmem:[#allocation221_spill] sm:$0xff]  ;;  %v23024_v46 = vld [vmem:[#allocation246_spill] sm:$0xff] }
 0x346   : > { %22995 = vst [vmem:[#allocation210_spill] sm:$0xff] %v18488_v2  ;;  %22997 = vst [vmem:[#allocation228_spill] sm:$0xff] %v18491_v1  ;;  %v18515_v52 = vadd.f32 %v9969_v58, %v23012_v11  ;;  %v18518_v23 = vadd.f32 %v9970_v41, %v23014_v21  ;;  %v18521_v50 = vadd.f32 %v9971_v24, %v23016_v31  ;;  %v23025_v38 = vld [vmem:[#allocation194_spill] sm:$0xff]  ;;  %v23026_v58 = vld [vmem:[#allocation196_spill] sm:$0xff] }
 0x347   : > { %22999 = vst [vmem:[#allocation214_spill] sm:$0xff] %v18494_v20  ;;  %23001 = vst [vmem:[#allocation215_spill] sm:$0xff] %v18497_v34  ;;  %v18524_v59 = vadd.f32 %v9972_v45, %v23018_v55  ;;  %v10109_v10 = vmul.f32 %v23021_v12, %v23020_v33  ;;  %v10110_v13 = vmul.f32 %v23023_v5, %v23022_v54  ;;  %v23027_v41 = vld [vmem:[#allocation114_spill] sm:$0xff]  ;;  %v23028_v24 = vld [vmem:[#allocation145_spill] sm:$0xff] }
 0x348   : > { %23003 = vst [vmem:[#allocation213_spill] sm:$0xff] %v18500_v43  ;;  %23005 = vst [vmem:[#allocation219_spill] sm:$0xff] %v18503_v48  ;;  %v10111_v53 = vmul.f32 %v23025_v38, %v23024_v46  ;;  %v10112_v56 = vmul.f32 %v23026_v58, %v22952_v17  ;;  %v10113_v26 = vmul.f32 %v23027_v41, %v22953_v14  ;;  %v23029_v45 = vld [vmem:[#allocation195_spill] sm:$0xff]  ;;  %v23031_v15 = vld [vmem:[#allocation149_spill] sm:$0xff] }
 0x349   : > { %23007 = vst [vmem:[#allocation218_spill] sm:$0xff] %v18506_v42  ;;  %23009 = vst [vmem:[#allocation217_spill] sm:$0xff] %v18509_v47  ;;  %v10114_v40 = vmul.f32 %v23028_v24, %v22954_v0  ;;  %v10115_v29 = vmul.f32 %v23029_v45, %v17868_v7  ;;  %v23030_v36 = vld [vmem:[#allocation43_spill] sm:$0xff]  ;;  %v10117_v57 = vmul.f32 %v23021_v12, %v18100_v6  ;;  %v23032_v9 = vld [vmem:[#allocation216_spill] sm:$0xff] }
 0x34a   : > { %23011 = vst [vmem:[#allocation225_spill] sm:$0xff] %v18512_v51  ;;  %23013 = vst [vmem:[#allocation229_spill] sm:$0xff] %v18515_v52  ;;  %v10116_v35 = vmul.f32 %v23030_v36, %v22963_v61  ;;  %v10119_v60 = vmul.f32 %v23023_v5, %v23031_v15  ;;  %v10120_v8 = vmul.f32 %v23025_v38, %v23032_v9  ;;  %v23033_v63 = vld [vmem:[#allocation78_spill] sm:$0xff]  ;;  %v23034_v44 = vld [vmem:[#allocation152_spill] sm:$0xff] }
 0x34b   : > { %23015 = vst [vmem:[#allocation312_spill] sm:$0xff] %v18518_v23  ;;  %23017 = vst [vmem:[#allocation313_spill] sm:$0xff] %v18521_v50  ;;  %v10121_v49 = vmul.f32 %v23026_v58, %v23033_v63  ;;  %v10122_v4 = vmul.f32 %v23027_v41, %v23034_v44  ;;  %v23035_v27 = vld [vmem:[#allocation241_spill] sm:$0xff]  ;;  %v23036_v11 = vld [vmem:[#allocation296_spill] sm:$0xff] }
 0x34c   : > { %23019 = vst [vmem:[#allocation314_spill] sm:$0xff] %v18524_v59  ;;  %v10123_v37 = vmul.f32 %v23028_v24, %v23035_v27  ;;  %v10124_v21 = vmul.f32 %v23029_v45, %v23036_v11  ;;  %v23037_v31 = vld [vmem:[#allocation67_spill] sm:$0xff]  ;;  %v23038_v5 = vld [vmem:[#allocation109_spill] sm:$0xff]  ;;  %v23040_v58 = vld [vmem:[#allocation52_spill] sm:$0xff] }
 0x34d   : > { %v10216_v55 = vmul.f32 %v23037_v31, %v23022_v54  ;;  %v10217_v12 = vmul.f32 %v23038_v5, %v23024_v46  ;;  %v23039_v38 = vld [vmem:[#allocation197_spill] sm:$0xff]  ;;  %v10219_v19 = vmul.f32 %v23040_v58, %v22953_v14  ;;  %v23041_v41 = vld [vmem:[#allocation155_spill] sm:$0xff]  ;;  %v23043_v45 = vld [vmem:[#allocation40_spill] sm:$0xff]  ;;  %v10224_v32 = vmul.f32 %v23037_v31, %v17770_v28 }
 0x34e   : > { %v10218_v36 = vmul.f32 %v23039_v38, %v22952_v17  ;;  %v10220_v3 = vmul.f32 %v23041_v41, %v22954_v0  ;;  %v23042_v24 = vld [vmem:[#allocation37_spill] sm:$0xff]  ;;  %v10222_v33 = vmul.f32 %v23043_v45, %v22963_v61  ;;  %v10226_v62 = vmul.f32 %v23038_v5, %v23032_v9  ;;  %v23045_v23 = vld [vmem:[#allocation300_spill] sm:$0xff]  ;;  %v23066_v16 = vld [vmem:[#allocation38_spill] sm:$0xff] }
 0x34f   : > { %v10221_v22 = vmul.f32 %v23042_v24, %v17868_v7  ;;  %v23044_v54 = vld [vmem:[#allocation53_spill] sm:$0xff]  ;;  %v10227_v18 = vmul.f32 %v23039_v38, %v23033_v63  ;;  %v10228_v15 = vmul.f32 %v23040_v58, %v23034_v44  ;;  %v10229_v59 = vmul.f32 %v23041_v41, %v23035_v27 }
 0x350   : > { %v10223_v25 = vmul.f32 %v23044_v54, %v18100_v6  ;;  %v10230_v50 = vmul.f32 %v23042_v24, %v23036_v11  ;;  %v10231_v54 = vmul.f32 %v23043_v45, %v23045_v23  ;;  %v10261_v52 = vadd.f32 %v10216_v55, %v10109_v10  ;;  %v23046_v24 = vld [vmem:[#allocation28_spill] sm:$0xff] }
 0x351   : > { %v10262_v31 = vadd.f32 %v10217_v12, %v10110_v13  ;;  %v10263_v51 = vadd.f32 %v10218_v36, %v10111_v53  ;;  %v10264_v47 = vadd.f32 %v10219_v19, %v10112_v56  ;;  %v10265_v5 = vadd.f32 %v10220_v3, %v10113_v26  ;;  %v23047_v45 = vld [vmem:[#allocation136_spill] sm:$0xff]  ;;  %v23048_v12 = vld [vmem:[#allocation198_spill] sm:$0xff]  ;;  %v23049_v3 = vld [vmem:[#allocation199_spill] sm:$0xff] }
 0x352   : > { %v10266_v9 = vadd.f32 %v10221_v22, %v10114_v40  ;;  %v10267_v42 = vadd.f32 %v10222_v33, %v10115_v29  ;;  %v10268_v38 = vadd.f32 %v10223_v25, %v10116_v35  ;;  %v10269_v48 = vadd.f32 %v10224_v32, %v10117_v57  ;;  %v23050_v32 = vld [vmem:[#allocation29_spill] sm:$0xff]  ;;  %v23053_v33 = vld [vmem:[#allocation200_spill] sm:$0xff]  ;;  %v23054_v36 = vld [vmem:[#allocation154_spill] sm:$0xff] }
 0x353   : > { %v10271_v43 = vadd.f32 %v10226_v62, %v10119_v60  ;;  %v10272_v58 = vadd.f32 %v10227_v18, %v10120_v8  ;;  %v10273_v34 = vadd.f32 %v10228_v15, %v10121_v49  ;;  %v10274_v20 = vadd.f32 %v10229_v59, %v10122_v4  ;;  %v23051_v18 = vld [vmem:[#allocation135_spill] sm:$0xff] }
 0x354   : > { %v10275_v41 = vadd.f32 %v10230_v50, %v10123_v37  ;;  %v10276_v1 = vadd.f32 %v10231_v54, %v10124_v21  ;;  %v10368_v2 = vmul.f32 %v23046_v24, %v23024_v46  ;;  %v10369_v10 = vmul.f32 %v23047_v45, %v22952_v17  ;;  %v23052_v50 = vld [vmem:[#allocation46_spill] sm:$0xff] }
 0x355   : > { %v10370_v19 = vmul.f32 %v23048_v12, %v22953_v14  ;;  %v10371_v22 = vmul.f32 %v23049_v3, %v22954_v0  ;;  %v10372_v62 = vmul.f32 %v23050_v32, %v17868_v7  ;;  %v10373_v25 = vmul.f32 %v23051_v18, %v22963_v61 }
 0x356   : > { %v10374_v59 = vmul.f32 %v23052_v50, %v18100_v6  ;;  %v10375_v54 = vmul.f32 %v23053_v33, %v17770_v28  ;;  %v10376_v13 = vmul.f32 %v23046_v24, %v22989_v30  ;;  %v10378_v53 = vmul.f32 %v23047_v45, %v23033_v63 }
 0x357   : > { %v10379_v56 = vmul.f32 %v23048_v12, %v23034_v44  ;;  %v10380_v26 = vmul.f32 %v23049_v3, %v23035_v27  ;;  %v10381_v40 = vmul.f32 %v23050_v32, %v23036_v11  ;;  %v10382_v29 = vmul.f32 %v23051_v18, %v23045_v23  ;;  %v23055_v18 = vld [vmem:[#allocation27_spill] sm:$0xff] }
 0x358   : > { %v10383_v35 = vmul.f32 %v23052_v50, %v23054_v36  ;;  %v10413_v57 = vadd.f32 %v10368_v2, %v10261_v52  ;;  %v10414_v15 = vadd.f32 %v10369_v10, %v10262_v31  ;;  %v10415_v60 = vadd.f32 %v10370_v19, %v10263_v51  ;;  %v23056_v50 = vld [vmem:[#allocation137_spill] sm:$0xff]  ;;  %v23057_v51 = vld [vmem:[#allocation142_spill] sm:$0xff]  ;;  %v23058_v52 = vld [vmem:[#allocation144_spill] sm:$0xff] }
 0x359   : > { %v10416_v8 = vadd.f32 %v10371_v22, %v10264_v47  ;;  %v10417_v49 = vadd.f32 %v10372_v62, %v10265_v5  ;;  %v10418_v4 = vadd.f32 %v10373_v25, %v10266_v9  ;;  %v10419_v37 = vadd.f32 %v10374_v59, %v10267_v42  ;;  %v23064_v59 = vld [vmem:[#allocation242_spill] sm:$0xff] }
 0x35a   : > { %v10420_v21 = vadd.f32 %v10375_v54, %v10268_v38  ;;  %v10421_v55 = vadd.f32 %v10376_v13, %v10269_v48  ;;  %v10423_v12 = vadd.f32 %v10378_v53, %v10271_v43  ;;  %v10424_v3 = vadd.f32 %v10379_v56, %v10272_v58  ;;  %v23059_v48 = vld [vmem:[#allocation138_spill] sm:$0xff] }
 0x35b   : > { %v10425_v45 = vadd.f32 %v10380_v26, %v10273_v34  ;;  %v10426_v24 = vadd.f32 %v10381_v40, %v10274_v20  ;;  %v10427_v32 = vadd.f32 %v10382_v29, %v10275_v41  ;;  %v10428_v33 = vadd.f32 %v10383_v35, %v10276_v1  ;;  %v23060_v34 = vld [vmem:[#allocation58_spill] sm:$0xff]  ;;  %v23061_v1 = vld [vmem:[#allocation201_spill] sm:$0xff] }
 0x35c   : > { %v10520_v46 = vmul.f32 %v23055_v18, %v22952_v17  ;;  %v10521_v2 = vmul.f32 %v23056_v50, %v22953_v14  ;;  %v10522_v47 = vmul.f32 %v23057_v51, %v22954_v0  ;;  %v10523_v42 = vmul.f32 %v23058_v52, %v17868_v7  ;;  %v23062_v38 = vld [vmem:[#allocation202_spill] sm:$0xff] }
 0x35d   : > { %v10524_v43 = vmul.f32 %v23059_v48, %v22963_v61  ;;  %v10525_v20 = vmul.f32 %v23060_v34, %v18100_v6  ;;  %v10526_v5 = vmul.f32 %v23061_v1, %v17770_v28  ;;  %v10527_v58 = vmul.f32 %v23062_v38, %v22989_v30  ;;  %v23063_v41 = vld [vmem:[#allocation294_spill] sm:$0xff] }
 0x35e   : > { %v10528_v9 = vmul.f32 %v23055_v18, %v23063_v41  ;;  %v10529_v31 = vmul.f32 %v23055_v18, %v23033_v63  ;;  %v10530_v10 = vmul.f32 %v23056_v50, %v23034_v44  ;;  %v10531_v19 = vmul.f32 %v23057_v51, %v23035_v27  ;;  %v23065_v18 = vld [vmem:[#allocation243_spill] sm:$0xff] }
 0x35f   : > { %v10532_v22 = vmul.f32 %v23058_v52, %v23036_v11  ;;  %v10533_v62 = vmul.f32 %v23059_v48, %v23045_v23  ;;  %v10534_v25 = vmul.f32 %v23060_v34, %v23054_v36  ;;  %v10535_v54 = vmul.f32 %v23061_v1, %v23064_v59 }
 0x360   : > { %v10565_v13 = vadd.f32 %v10520_v46, %v10413_v57  ;;  %v10566_v53 = vadd.f32 %v10521_v2, %v10414_v15  ;;  %v10567_v56 = vadd.f32 %v10522_v47, %v10415_v60  ;;  %v10568_v26 = vadd.f32 %v10523_v42, %v10416_v8  ;;  %v23067_v46 = vld [vmem:[#allocation18_spill] sm:$0xff]  ;;  %v23068_v15 = vld [vmem:[#allocation203_spill] sm:$0xff]  ;;  %v23069_v8 = vld [vmem:[#allocation205_spill] sm:$0xff] }
 0x361   : > { %v10569_v40 = vadd.f32 %v10524_v43, %v10417_v49  ;;  %v10570_v29 = vadd.f32 %v10525_v20, %v10418_v4  ;;  %v10571_v35 = vadd.f32 %v10526_v5, %v10419_v37  ;;  %v10572_v51 = vadd.f32 %v10527_v58, %v10420_v21  ;;  %v23074_v37 = vld [vmem:[#allocation295_spill] sm:$0xff] }
 0x362   : > { %v10573_v50 = vadd.f32 %v10528_v9, %v10421_v55  ;;  %v10574_v52 = vadd.f32 %v10529_v31, %v23065_v18  ;;  %v10575_v38 = vadd.f32 %v10530_v10, %v10423_v12  ;;  %v10576_v17 = vadd.f32 %v10531_v19, %v10424_v3  ;;  %v23070_v18 = vld [vmem:[#allocation15_spill] sm:$0xff]  ;;  %v23072_v3 = vld [vmem:[#allocation204_spill] sm:$0xff] }
 0x363   : > { %v10577_v48 = vadd.f32 %v10532_v22, %v10425_v45  ;;  %v10578_v63 = vadd.f32 %v10533_v62, %v10426_v24  ;;  %v10579_v39 = vadd.f32 %v10534_v25, %v10427_v32  ;;  %v10580_v34 = vadd.f32 %v10535_v54, %v10428_v33  ;;  %v23071_v45 = vld [vmem:[#allocation22_spill] sm:$0xff]  ;;  %v23075_v5 = vld [vmem:[#allocation299_spill] sm:$0xff] }
 0x364   : > { %v10672_v1 = vmul.f32 %v23066_v16, %v22953_v14  ;;  %v10673_v57 = vmul.f32 %v23067_v46, %v22954_v0  ;;  %v10674_v60 = vmul.f32 %v23068_v15, %v17868_v7  ;;  %v10675_v49 = vmul.f32 %v23069_v8, %v22963_v61  ;;  %v23073_v33 = vld [vmem:[#allocation206_spill] sm:$0xff] }
 0x365   : > { %v10676_v12 = vmul.f32 %v23070_v18, %v18100_v6  ;;  %v10677_v24 = vmul.f32 %v23071_v45, %v17770_v28  ;;  %v10678_v32 = vmul.f32 %v23072_v3, %v22989_v30  ;;  %v10679_v4 = vmul.f32 %v23073_v33, %v23063_v41 }
 0x366   : > { %v10680_v21 = vmul.f32 %v23066_v16, %v23074_v37  ;;  %v10681_v55 = vmul.f32 %v23066_v16, %v23034_v44  ;;  %v10682_v2 = vmul.f32 %v23067_v46, %v23035_v27  ;;  %v10683_v47 = vmul.f32 %v23068_v15, %v23036_v11 }
 0x367   : > { %v10684_v42 = vmul.f32 %v23069_v8, %v23045_v23  ;;  %v10685_v43 = vmul.f32 %v23070_v18, %v23054_v36  ;;  %v10686_v20 = vmul.f32 %v23071_v45, %v23064_v59  ;;  %v10687_v58 = vmul.f32 %v23072_v3, %v23075_v5  ;;  %v23076_v45 = vld [vmem:[#allocation226_spill] sm:$0xff]  ;;  %v23077_v3 = vld [vmem:[#allocation240_spill] sm:$0xff] }
 0x368   : > { %v10717_v9 = vadd.f32 %v10672_v1, %v10565_v13  ;;  %v10718_v31 = vadd.f32 %v10673_v57, %v10566_v53  ;;  %v10719_v10 = vadd.f32 %v10674_v60, %v10567_v56  ;;  %v10720_v19 = vadd.f32 %v10675_v49, %v10568_v26  ;;  %v23078_v13 = vld [vmem:[#allocation223_spill] sm:$0xff]  ;;  %v23080_v56 = vld [vmem:[#allocation210_spill] sm:$0xff]  ;;  %v23094_v57 = vld [vmem:[#allocation217_spill] sm:$0xff] }
 0x369   : > { %v10721_v22 = vadd.f32 %v10676_v12, %v10569_v40  ;;  %v10722_v62 = vadd.f32 %v10677_v24, %v10570_v29  ;;  %v10723_v25 = vadd.f32 %v10678_v32, %v10571_v35  ;;  %v10724_v54 = vadd.f32 %v10679_v4, %v10572_v51  ;;  %v23092_v29 = vld [vmem:[#allocation218_spill] sm:$0xff]  ;;  %v23096_v49 = vld [vmem:[#allocation225_spill] sm:$0xff] }
 0x36a   : > { %v10725_v15 = vadd.f32 %v10680_v21, %v10573_v50  ;;  %v10726_v46 = vadd.f32 %v10681_v55, %v10574_v52  ;;  %v10727_v8 = vadd.f32 %v10682_v2, %v10575_v38  ;;  %v10728_v16 = vadd.f32 %v10683_v47, %v10576_v17  ;;  %v23082_v50 = vld [vmem:[#allocation228_spill] sm:$0xff]  ;;  %v23084_v17 = vld [vmem:[#allocation214_spill] sm:$0xff]  ;;  %v23090_v38 = vld [vmem:[#allocation219_spill] sm:$0xff] }
 0x36b   : > { %v10729_v33 = vadd.f32 %v10684_v42, %v10577_v48  ;;  %v10730_v18 = vadd.f32 %v10685_v43, %v10578_v63  ;;  %v10731_v37 = vadd.f32 %v10686_v20, %v10579_v39  ;;  %v10732_v41 = vadd.f32 %v10687_v58, %v10580_v34  ;;  %v23086_v39 = vld [vmem:[#allocation215_spill] sm:$0xff]  ;;  %v23088_v48 = vld [vmem:[#allocation213_spill] sm:$0xff]  ;;  %v23107_v2 = vld [vmem:[#allocation24_spill] sm:$0xff] }
 0x36c   : > { %v18682_v30 = vadd.f32 %v10717_v9, %v23076_v45  ;;  %v18685_v1 = vadd.f32 %v10718_v31, %v23077_v3  ;;  %v18688_v53 = vadd.f32 %v10719_v10, %v23078_v13  ;;  %v18691_v26 = vadd.f32 %v10720_v19, %v23080_v56  ;;  %v23098_v45 = vld [vmem:[#allocation229_spill] sm:$0xff]  ;;  %v23100_v3 = vld [vmem:[#allocation312_spill] sm:$0xff]  ;;  %v23111_v20 = vld [vmem:[#allocation26_spill] sm:$0xff] }
 0x36d   : > { %v18694_v51 = vadd.f32 %v10721_v22, %v23082_v50  ;;  %v18697_v52 = vadd.f32 %v10722_v62, %v23084_v17  ;;  %v18700_v63 = vadd.f32 %v10723_v25, %v23086_v39  ;;  %v18703_v34 = vadd.f32 %v10724_v54, %v23088_v48  ;;  %v23102_v4 = vld [vmem:[#allocation313_spill] sm:$0xff]  ;;  %v23116_v22 = vld [vmem:[#allocation23_spill] sm:$0xff]  ;;  %v23118_v13 = vld [vmem:[#allocation264_spill] sm:$0xff] }
 0x36e   : > { %23079 = vst [vmem:[#allocation315_spill] sm:$0xff] %v18688_v53  ;;  %23081 = vst [vmem:[#allocation243_spill] sm:$0xff] %v18691_v26  ;;  %v18706_v40 = vadd.f32 %v10725_v15, %v23090_v38  ;;  %v18709_v35 = vadd.f32 %v10726_v46, %v23092_v29  ;;  %v18712_v60 = vadd.f32 %v10727_v8, %v23094_v57  ;;  %v23104_v15 = vld [vmem:[#allocation314_spill] sm:$0xff]  ;;  %v23106_v46 = vld [vmem:[#allocation149_spill] sm:$0xff] }
 0x36f   : > { %23083 = vst [vmem:[#allocation226_spill] sm:$0xff] %v18694_v51  ;;  %23085 = vst [vmem:[#allocation240_spill] sm:$0xff] %v18697_v52  ;;  %v18715_v12 = vadd.f32 %v10728_v16, %v23096_v49  ;;  %v18718_v24 = vadd.f32 %v10729_v33, %v23098_v45  ;;  %v18721_v32 = vadd.f32 %v10730_v18, %v23100_v3  ;;  %v23108_v8 = vld [vmem:[#allocation216_spill] sm:$0xff]  ;;  %v23109_v42 = vld [vmem:[#allocation25_spill] sm:$0xff] }
 0x370   : > { %23087 = vst [vmem:[#allocation223_spill] sm:$0xff] %v18700_v63  ;;  %23089 = vst [vmem:[#allocation210_spill] sm:$0xff] %v18703_v34  ;;  %v18724_v21 = vadd.f32 %v10731_v37, %v23102_v4  ;;  %v18727_v55 = vadd.f32 %v10732_v41, %v23104_v15  ;;  %v10870_v47 = vmul.f32 %v23107_v2, %v23106_v46  ;;  %v23110_v16 = vld [vmem:[#allocation78_spill] sm:$0xff]  ;;  %v23112_v33 = vld [vmem:[#allocation19_spill] sm:$0xff] }
 0x371   : > { %23091 = vst [vmem:[#allocation228_spill] sm:$0xff] %v18706_v40  ;;  %23093 = vst [vmem:[#allocation214_spill] sm:$0xff] %v18709_v35  ;;  %v10871_v43 = vmul.f32 %v23109_v42, %v23108_v8  ;;  %v10872_v58 = vmul.f32 %v23111_v20, %v23110_v16  ;;  %v10873_v9 = vmul.f32 %v23112_v33, %v23034_v44  ;;  %v23113_v18 = vld [vmem:[#allocation129_spill] sm:$0xff]  ;;  %v23114_v37 = vld [vmem:[#allocation207_spill] sm:$0xff] }
 0x372   : > { %23095 = vst [vmem:[#allocation215_spill] sm:$0xff] %v18712_v60  ;;  %23097 = vst [vmem:[#allocation213_spill] sm:$0xff] %v18715_v12  ;;  %v10874_v31 = vmul.f32 %v23113_v18, %v23035_v27  ;;  %v10875_v10 = vmul.f32 %v23114_v37, %v23036_v11  ;;  %v23115_v41 = vld [vmem:[#allocation209_spill] sm:$0xff]  ;;  %v10877_v62 = vmul.f32 %v23116_v22, %v23054_v36  ;;  %v23117_v25 = vld [vmem:[#allocation259_spill] sm:$0xff] }
 0x373   : > { %23099 = vst [vmem:[#allocation219_spill] sm:$0xff] %v18718_v24  ;;  %23101 = vst [vmem:[#allocation218_spill] sm:$0xff] %v18721_v32  ;;  %v10876_v19 = vmul.f32 %v23115_v41, %v23045_v23  ;;  %v10879_v54 = vmul.f32 %v23107_v2, %v23117_v25  ;;  %v10880_v56 = vmul.f32 %v23109_v42, %v23118_v13  ;;  %v23119_v50 = vld [vmem:[#allocation257_spill] sm:$0xff]  ;;  %v23121_v38 = vld [vmem:[#allocation262_spill] sm:$0xff] }
 0x374   : > { %23103 = vst [vmem:[#allocation217_spill] sm:$0xff] %v18724_v21  ;;  %23105 = vst [vmem:[#allocation225_spill] sm:$0xff] %v18727_v55  ;;  %v10881_v17 = vmul.f32 %v23111_v20, %v23119_v50  ;;  %v23120_v39 = vld [vmem:[#allocation261_spill] sm:$0xff]  ;;  %v10883_v29 = vmul.f32 %v23113_v18, %v23121_v38  ;;  %v23122_v57 = vld [vmem:[#allocation306_spill] sm:$0xff] }
 0x375   : > { %v10882_v48 = vmul.f32 %v23112_v33, %v23120_v39  ;;  %v10884_v49 = vmul.f32 %v23114_v37, %v23122_v57  ;;  %v23123_v45 = vld [vmem:[#allocation41_spill] sm:$0xff]  ;;  %v23125_v4 = vld [vmem:[#allocation62_spill] sm:$0xff]  ;;  %v23129_v25 = vld [vmem:[#allocation64_spill] sm:$0xff] }
 0x376   : > { %v18759_v3 = vcombine.high %v23123_v45, %v23123_v45  ;;  %v10977_v15 = vmul.f32 %v23125_v4, %v23108_v8  ;;  %v23126_v42 = vld [vmem:[#allocation21_spill] sm:$0xff]  ;;  %v23127_v20 = vld [vmem:[#allocation2_spill] sm:$0xff]  ;;  %v10980_v33 = vmul.f32 %v23123_v45, %v23035_v27  ;;  %v10983_v28 = vmul.f32 %v23129_v25, %v23054_v36  ;;  %v23131_v21 = vld [vmem:[#allocation272_spill] sm:$0xff] }
 0x377   : > { %v10978_v2 = vmul.f32 %v23126_v42, %v23110_v16  ;;  %v10979_v22 = vmul.f32 %v23127_v20, %v23034_v44  ;;  %v23128_v18 = vld [vmem:[#allocation49_spill] sm:$0xff]  ;;  %v23130_v46 = vld [vmem:[#allocation130_spill] sm:$0xff]  ;;  %v10986_v61 = vmul.f32 %v23125_v4, %v23118_v13  ;;  %v10987_v7 = vmul.f32 %v23126_v42, %v23119_v50  ;;  %v23132_v52 = vld [vmem:[#allocation140_spill] sm:$0xff] }
 0x378   : > { %23124 = vst [vmem:[#allocation229_spill] sm:$0xff] %v18759_v3  ;;  %v10981_v41 = vmul.f32 %v23128_v18, %v23036_v11  ;;  %v10982_v37 = vmul.f32 %v18759_v3, %v23045_v23  ;;  %v10984_v6 = vmul.f32 %v23130_v46, %v23064_v59  ;;  %v10988_v0 = vmul.f32 %v23127_v20, %v23120_v39  ;;  %v23134_v51 = vld [vmem:[#allocation17_spill] sm:$0xff]  ;;  %v23152_v53 = vld [vmem:[#allocation132_spill] sm:$0xff] }
 0x379   : > { %v10989_v14 = vmul.f32 %v23123_v45, %v23121_v38  ;;  %v10990_v55 = vmul.f32 %v23128_v18, %v23122_v57  ;;  %v10991_v25 = vmul.f32 %v18759_v3, %v23131_v21  ;;  %v11022_v32 = vadd.f32 %v10977_v15, %v10870_v47 }
 0x37a   : > { %v11023_v46 = vadd.f32 %v10978_v2, %v10871_v43  ;;  %v11024_v24 = vadd.f32 %v10979_v22, %v10872_v58  ;;  %v11025_v12 = vadd.f32 %v10980_v33, %v10873_v9  ;;  %v11026_v4 = vadd.f32 %v10981_v41, %v10874_v31  ;;  %v23136_v2 = vld [vmem:[#allocation65_spill] sm:$0xff]  ;;  %v23139_v58 = vld [vmem:[#allocation20_spill] sm:$0xff] }
 0x37b   : > { %v11027_v13 = vadd.f32 %v10982_v37, %v10875_v10  ;;  %v11028_v60 = vadd.f32 %v10983_v28, %v10876_v19  ;;  %v11029_v42 = vadd.f32 %v10984_v6, %v10877_v62  ;;  %v11031_v35 = vadd.f32 %v10986_v61, %v10879_v54  ;;  %v23140_v62 = vld [vmem:[#allocation274_spill] sm:$0xff]  ;;  %v23141_v54 = vld [vmem:[#allocation224_spill] sm:$0xff] }
 0x37c   : > { %v11032_v40 = vadd.f32 %v10987_v7, %v10880_v56  ;;  %v11033_v20 = vadd.f32 %v10988_v0, %v10881_v17  ;;  %v11034_v34 = vadd.f32 %v10989_v14, %v10882_v48  ;;  %v11035_v63 = vadd.f32 %v10990_v55, %v10883_v29  ;;  %v23137_v7 = vld [vmem:[#allocation160_spill] sm:$0xff] }
 0x37d   : > { %v11036_v45 = vadd.f32 %v10991_v25, %v10884_v49  ;;  %v18791_v18 = vcombine.high %v23132_v52, %v23132_v52  ;;  %v18795_v47 = vcombine.high %v23134_v51, %v23134_v51  ;;  %v11128_v43 = vmul.f32 %v23136_v2, %v23108_v8  ;;  %v23138_v14 = vld [vmem:[#allocation68_spill] sm:$0xff] }
 0x37e   : > { %v11129_v28 = vmul.f32 %v23134_v51, %v23110_v16  ;;  %v11130_v61 = vmul.f32 %v23137_v7, %v23034_v44  ;;  %v11132_v6 = vmul.f32 %v23132_v52, %v23036_v11  ;;  %v11133_v0 = vmul.f32 %v23138_v14, %v23045_v23 }
 0x37f   : > { %23133 = vst [vmem:[#allocation312_spill] sm:$0xff] %v18791_v18  ;;  %23135 = vst [vmem:[#allocation313_spill] sm:$0xff] %v18795_v47  ;;  %v11134_v55 = vmul.f32 %v18791_v18, %v23054_v36  ;;  %v11135_v33 = vmul.f32 %v23139_v58, %v23064_v59  ;;  %v11131_v9 = vmul.f32 %v18795_v47, %v23035_v27 }
 0x380   : > { %v11136_v31 = vmul.f32 %v23136_v2, %v23075_v5  ;;  %v11138_v37 = vmul.f32 %v23134_v51, %v23119_v50  ;;  %v11139_v10 = vmul.f32 %v23137_v7, %v23120_v39  ;;  %v11140_v41 = vmul.f32 %v18795_v47, %v23121_v38 }
 0x381   : > { %v11141_v19 = vmul.f32 %v23132_v52, %v23122_v57  ;;  %v11142_v22 = vmul.f32 %v23138_v14, %v23131_v21  ;;  %v11143_v25 = vmul.f32 %v18791_v18, %v23140_v62  ;;  %v11173_v56 = vadd.f32 %v11128_v43, %v23141_v54  ;;  %v23142_v14 = vld [vmem:[#allocation30_spill] sm:$0xff]  ;;  %v23144_v18 = vld [vmem:[#allocation79_spill] sm:$0xff] }
 0x382   : > { %v11174_v17 = vadd.f32 %v11129_v28, %v11022_v32  ;;  %v11175_v48 = vadd.f32 %v11130_v61, %v11023_v46  ;;  %v11176_v29 = vadd.f32 %v11131_v9, %v11024_v24  ;;  %v11177_v49 = vadd.f32 %v11132_v6, %v11025_v12  ;;  %v23146_v12 = vld [vmem:[#allocation143_spill] sm:$0xff] }
 0x383   : > { %v11178_v15 = vadd.f32 %v11133_v0, %v11026_v4  ;;  %v11179_v7 = vadd.f32 %v11134_v55, %v11027_v13  ;;  %v11180_v51 = vadd.f32 %v11135_v33, %v11028_v60  ;;  %v11181_v2 = vadd.f32 %v11136_v31, %v11029_v42  ;;  %v23150_v4 = vld [vmem:[#allocation305_spill] sm:$0xff]  ;;  %v23151_v33 = vld [vmem:[#allocation307_spill] sm:$0xff] }
 0x384   : > { %v11183_v47 = vadd.f32 %v11138_v37, %v11031_v35  ;;  %v11184_v58 = vadd.f32 %v11139_v10, %v11032_v40  ;;  %v11185_v3 = vadd.f32 %v11140_v41, %v11033_v20  ;;  %v11186_v52 = vadd.f32 %v11141_v19, %v11034_v34  ;;  %v23147_v40 = vld [vmem:[#allocation161_spill] sm:$0xff]  ;;  %v23148_v34 = vld [vmem:[#allocation31_spill] sm:$0xff]  ;;  %v23149_v20 = vld [vmem:[#allocation70_spill] sm:$0xff] }
 0x385   : > { %v11187_v50 = vadd.f32 %v11142_v22, %v11035_v63  ;;  %v11188_v8 = vadd.f32 %v11143_v25, %v11036_v45  ;;  %v18830_v26 = vcombine.high %v23142_v14, %v23142_v14  ;;  %v18834_v32 = vcombine.high %v23144_v18, %v23144_v18 }
 0x386   : > { %v11280_v24 = vmul.f32 %v23146_v12, %v23110_v16  ;;  %v11281_v60 = vmul.f32 %v23142_v14, %v23034_v44  ;;  %v11282_v35 = vmul.f32 %v23147_v40, %v23035_v27  ;;  %v11284_v46 = vmul.f32 %v23148_v34, %v23045_v23 }
 0x387   : > { %23143 = vst [vmem:[#allocation314_spill] sm:$0xff] %v18830_v26  ;;  %23145 = vst [vmem:[#allocation224_spill] sm:$0xff] %v18834_v32  ;;  %v11283_v63 = vmul.f32 %v18830_v26, %v23036_v11  ;;  %v11285_v42 = vmul.f32 %v23144_v18, %v23054_v36  ;;  %v11286_v13 = vmul.f32 %v23149_v20, %v23064_v59 }
 0x388   : > { %v11287_v45 = vmul.f32 %v18834_v32, %v23075_v5  ;;  %v11288_v43 = vmul.f32 %v23146_v12, %v23150_v4  ;;  %v11290_v28 = vmul.f32 %v23142_v14, %v23120_v39  ;;  %v11291_v61 = vmul.f32 %v23147_v40, %v23121_v38 }
 0x389   : > { %v11292_v6 = vmul.f32 %v18830_v26, %v23122_v57  ;;  %v11293_v0 = vmul.f32 %v23148_v34, %v23131_v21  ;;  %v11294_v55 = vmul.f32 %v23144_v18, %v23140_v62  ;;  %v11295_v9 = vmul.f32 %v23149_v20, %v23151_v33 }
 0x38a   : > { %v11325_v31 = vadd.f32 %v11280_v24, %v11173_v56  ;;  %v11326_v37 = vadd.f32 %v11281_v60, %v11174_v17  ;;  %v11327_v10 = vadd.f32 %v11282_v35, %v11175_v48  ;;  %v11328_v41 = vadd.f32 %v11283_v63, %v11176_v29  ;;  %v23154_v17 = vld [vmem:[#allocation131_spill] sm:$0xff] }
 0x38b   : > { %v11329_v19 = vadd.f32 %v11284_v46, %v11177_v49  ;;  %v11330_v22 = vadd.f32 %v11285_v42, %v11178_v15  ;;  %v11331_v25 = vadd.f32 %v11286_v13, %v11179_v7  ;;  %v11332_v54 = vadd.f32 %v11287_v45, %v11180_v51  ;;  %v23155_v7 = vld [vmem:[#allocation56_spill] sm:$0xff]  ;;  %v23159_v29 = vld [vmem:[#allocation55_spill] sm:$0xff]  ;;  %v23160_v42 = vld [vmem:[#allocation309_spill] sm:$0xff] }
 0x38c   : > { %v11333_v40 = vadd.f32 %v11288_v43, %v11181_v2  ;;  %v11335_v14 = vadd.f32 %v11290_v28, %v11183_v47  ;;  %v11336_v26 = vadd.f32 %v11291_v61, %v11184_v58  ;;  %v11337_v12 = vadd.f32 %v11292_v6, %v11185_v3  ;;  %v23156_v47 = vld [vmem:[#allocation51_spill] sm:$0xff] }
 0x38d   : > { %v11338_v32 = vadd.f32 %v11293_v0, %v11186_v52  ;;  %v11339_v34 = vadd.f32 %v11294_v55, %v11187_v50  ;;  %v11340_v16 = vadd.f32 %v11295_v9, %v11188_v8  ;;  %v18868_v18 = vcombine.high %v23152_v53, %v23152_v53  ;;  %v23157_v8 = vld [vmem:[#allocation44_spill] sm:$0xff]  ;;  %v23158_v3 = vld [vmem:[#allocation99_spill] sm:$0xff] }
 0x38e   : > { %v11432_v56 = vmul.f32 %v23152_v53, %v23034_v44  ;;  %v11433_v48 = vmul.f32 %v23154_v17, %v23035_v27  ;;  %v11435_v51 = vmul.f32 %v23155_v7, %v23045_v23  ;;  %v11436_v2 = vmul.f32 %v23156_v47, %v23054_v36 }
 0x38f   : > { %23153 = vst [vmem:[#allocation316_spill] sm:$0xff] %v18868_v18  ;;  %v11434_v52 = vmul.f32 %v18868_v18, %v23036_v11  ;;  %v11437_v50 = vmul.f32 %v23157_v8, %v23064_v59  ;;  %v11438_v58 = vmul.f32 %v23158_v3, %v23075_v5  ;;  %v11439_v49 = vmul.f32 %v23159_v29, %v23150_v4  ;;  %v23218_v5 = vld [vmem:[#allocation74_spill] sm:$0xff]  ;;  %v23240_v11 = vld [vmem:[#allocation141_spill] sm:$0xff] }
 0x390   : > { %v11441_v15 = vmul.f32 %v23152_v53, %v23120_v39  ;;  %v11442_v24 = vmul.f32 %v23154_v17, %v23121_v38  ;;  %v11443_v60 = vmul.f32 %v18868_v18, %v23122_v57  ;;  %v11444_v35 = vmul.f32 %v23155_v7, %v23131_v21  ;;  %v23161_v18 = vld [vmem:[#allocation263_spill] sm:$0xff] }
 0x391   : > { %v11445_v63 = vmul.f32 %v23156_v47, %v23140_v62  ;;  %v11446_v46 = vmul.f32 %v23157_v8, %v23151_v33  ;;  %v11447_v13 = vmul.f32 %v23158_v3, %v23160_v42  ;;  %v11477_v45 = vadd.f32 %v11432_v56, %v11325_v31  ;;  %v23162_v7 = vld [vmem:[#allocation227_spill] sm:$0xff] }
 0x392   : > { %v11478_v43 = vadd.f32 %v11433_v48, %v11326_v37  ;;  %v11479_v28 = vadd.f32 %v11434_v52, %v11327_v10  ;;  %v11480_v61 = vadd.f32 %v11435_v51, %v11328_v41  ;;  %v11481_v6 = vadd.f32 %v11436_v2, %v11329_v19  ;;  %v23163_v37 = vld [vmem:[#allocation315_spill] sm:$0xff]  ;;  %v23174_v52 = vld [vmem:[#allocation218_spill] sm:$0xff] }
 0x393   : > { %v11482_v0 = vadd.f32 %v11437_v50, %v11330_v22  ;;  %v11483_v55 = vadd.f32 %v11438_v58, %v11331_v25  ;;  %v11484_v9 = vadd.f32 %v11439_v49, %v11332_v54  ;;  %v11485_v17 = vadd.f32 %v23161_v18, %v11333_v40  ;;  %v23164_v41 = vld [vmem:[#allocation243_spill] sm:$0xff]  ;;  %v23165_v22 = vld [vmem:[#allocation226_spill] sm:$0xff]  ;;  %v23166_v54 = vld [vmem:[#allocation240_spill] sm:$0xff] }
 0x394   : > { %v11486_v53 = vadd.f32 %v11441_v15, %v23162_v7  ;;  %v11487_v29 = vadd.f32 %v11442_v24, %v11335_v14  ;;  %v11488_v47 = vadd.f32 %v11443_v60, %v11336_v26  ;;  %v11489_v20 = vadd.f32 %v11444_v35, %v11337_v12  ;;  %v23167_v40 = vld [vmem:[#allocation223_spill] sm:$0xff]  ;;  %v23168_v14 = vld [vmem:[#allocation210_spill] sm:$0xff]  ;;  %v23169_v12 = vld [vmem:[#allocation228_spill] sm:$0xff] }
 0x395   : > { %v11490_v62 = vadd.f32 %v11445_v63, %v11338_v32  ;;  %v11491_v8 = vadd.f32 %v11446_v46, %v11339_v34  ;;  %v11492_v33 = vadd.f32 %v11447_v13, %v11340_v16  ;;  %v11522_v3 = vadd.f32 %v11477_v45, %v18682_v30  ;;  %v23170_v34 = vld [vmem:[#allocation214_spill] sm:$0xff]  ;;  %v23171_v48 = vld [vmem:[#allocation215_spill] sm:$0xff]  ;;  %v23172_v7 = vld [vmem:[#allocation213_spill] sm:$0xff] }
 0x396   : > { %v11523_v31 = vadd.f32 %v11478_v43, %v18685_v1  ;;  %v11524_v10 = vadd.f32 %v11479_v28, %v23163_v37  ;;  %v11525_v19 = vadd.f32 %v11480_v61, %v23164_v41  ;;  %v11526_v25 = vadd.f32 %v11481_v6, %v23165_v22  ;;  %v23173_v51 = vld [vmem:[#allocation219_spill] sm:$0xff]  ;;  %v23175_v58 = vld [vmem:[#allocation217_spill] sm:$0xff]  ;;  %v23182_v37 = vld [vmem:[#allocation256_spill] sm:$0xff] }
 0x397   : > { %v11527_v18 = vadd.f32 %v11482_v0, %v23166_v54  ;;  %v11528_v56 = vadd.f32 %v11483_v55, %v23167_v40  ;;  %v11529_v26 = vadd.f32 %v11484_v9, %v23168_v14  ;;  %v11530_v32 = vadd.f32 %v11485_v17, %v23169_v12  ;;  %v23176_v15 = vld [vmem:[#allocation225_spill] sm:$0xff]  ;;  %v23177_v17 = vld [vmem:[#allocation3_spill] sm:$0xff]  ;;  %v23180_v9 = vld [vmem:[#allocation252_spill] sm:$0xff] }
 0x398   : > { %v11531_v16 = vadd.f32 %v11486_v53, %v23170_v34  ;;  %v11532_v30 = vadd.f32 %v11487_v29, %v23171_v48  ;;  %v11533_v1 = vadd.f32 %v11488_v47, %v23172_v7  ;;  %v11534_v2 = vadd.f32 %v11489_v20, %v23173_v51  ;;  %v23178_v61 = vld [vmem:[#allocation273_spill] sm:$0xff]  ;;  %v23184_v22 = vld [vmem:[#allocation268_spill] sm:$0xff]  ;;  %v23186_v54 = vld [vmem:[#allocation231_spill] sm:$0xff] }
 0x399   : > { %v11535_v50 = vadd.f32 %v11490_v62, %v23174_v52  ;;  %v11536_v49 = vadd.f32 %v11491_v8, %v23175_v58  ;;  %v11537_v24 = vadd.f32 %v11492_v33, %v23176_v15  ;;  %v11612_v60 = vcombine.low %v11522_v3, %v11523_v31  ;;  %v23189_v12 = vld [vmem:[#allocation76_spill] sm:$0xff]  ;;  %v23190_v34 = vld [vmem:[#allocation234_spill] sm:$0xff]  ;;  %v23193_v51 = vld [vmem:[#allocation59_spill] sm:$0xff] }
 0x39a   : > { %v11613_v35 = vcombine.low %v11524_v10, %v11525_v19  ;;  %v11614_v63 = vcombine.low %v11526_v25, %v11527_v18  ;;  %v11615_v46 = vcombine.low %v11528_v56, %v11529_v26  ;;  %v11661_v13 = vcombine.low %v11530_v32, %v11531_v16  ;;  %v23187_v18 = vld [vmem:[#allocation33_spill] sm:$0xff]  ;;  %v23191_v16 = vld [vmem:[#allocation11_spill] sm:$0xff]  ;;  %v23194_v52 = vld [vmem:[#allocation208_spill] sm:$0xff] }
 0x39b   : > { %v11622_v45 = vrot.slane %v11612_v60, %v23177_v17  ;;  %v11662_v53 = vcombine.low %v11532_v30, %v11533_v1  ;;  %v11663_v43 = vcombine.low %v11534_v2, %v11535_v50  ;;  %v11664_v29 = vcombine.low %v11536_v49, %v11537_v24  ;;  %v23188_v26 = vld [vmem:[#allocation233_spill] sm:$0xff]  ;;  %v23192_v1 = vld [vmem:[#allocation235_spill] sm:$0xff]  ;;  %v23196_v15 = vld [vmem:[#allocation50_spill] sm:$0xff] }
 0x39c   : > { %v11629_v47 = vrot.slane %v11613_v35, %v23177_v17  ;;  %v11636_v20 = vrot.slane %v11614_v63, %v23177_v17  ;;  %v11643_v62 = vrot.slane %v11615_v46, %v23177_v17  ;;  %v11671_v8 = vrot.slane %v11661_v13, %v23177_v17  ;;  %v23195_v50 = vld [vmem:[#allocation91_spill] sm:$0xff]  ;;  %v23197_v24 = vld [vmem:[#allocation61_spill] sm:$0xff]  ;;  %v23198_v35 = vld [vmem:[#allocation212_spill] sm:$0xff] }
 0x39d   : > { %v11678_v33 = vrot.slane %v11662_v53, %v23177_v17  ;;  %v11685_v3 = vrot.slane %v11663_v43, %v23177_v17  ;;  %v11692_v28 = vrot.slane %v11664_v29, %v23177_v17  ;;  %v18928_v6 = vcombine.high %v23178_v61, %v23178_v61  ;;  %v23199_v63 = vld [vmem:[#allocation158_spill] sm:$0xff]  ;;  %v23200_v13 = vld [vmem:[#allocation221_spill] sm:$0xff]  ;;  %v23201_v43 = vld [vmem:[#allocation244_spill] sm:$0xff] }
 0x39e   : > { %v11644_v0 = vcombine.low %v11622_v45, %v11629_v47  ;;  %v11645_v55 = vcombine.low %v11636_v20, %v11643_v62  ;;  %v18932_v31 = vcombine.high %v23180_v9, %v23180_v9  ;;  %v18936_v10 = vcombine.high %v23182_v37, %v23182_v37  ;;  %v23202_v29 = vld [vmem:[#allocation157_spill] sm:$0xff]  ;;  %v23203_v20 = vld [vmem:[#allocation246_spill] sm:$0xff] }
 0x39f   : > { %23179 = vst [vmem:[#allocation263_spill] sm:$0xff] %v18928_v6  ;;  %v11693_v41 = vcombine.low %v11671_v8, %v11678_v33  ;;  %v11694_v19 = vcombine.low %v11685_v3, %v11692_v28  ;;  %v18940_v25 = vcombine.high %v23184_v22, %v23184_v22  ;;  %v7849_v40 = vmul.f32 %v23187_v18, %v23186_v54  ;;  %v23204_v8 = vld [vmem:[#allocation247_spill] sm:$0xff] }
 0x3a0   : > { %23181 = vst [vmem:[#allocation227_spill] sm:$0xff] %v18932_v31  ;;  %23183 = vst [vmem:[#allocation315_spill] sm:$0xff] %v18936_v10  ;;  %v11652_v56 = vrot.slane %v11644_v0, %v23177_v17  ;;  %v11659_v14 = vrot.slane %v11645_v55, %v23177_v17  ;;  %v7850_v32 = vmul.f32 %v23189_v12, %v23188_v26  ;;  %v23205_v3 = vld [vmem:[#allocation251_spill] sm:$0xff]  ;;  %v23206_v0 = vld [vmem:[#allocation13_spill] sm:$0xff]  ;;  %v23217_v37 = vmov 0.0  }
 0x3a1   : > { %23185 = vst [vmem:[#allocation243_spill] sm:$0xff] %v18940_v25  ;;  %v7851_v48 = vmul.f32 %v23191_v16, %v23190_v34  ;;  %v11701_v30 = vrot.slane %v11693_v41, %v23177_v17  ;;  %v11708_v7 = vrot.slane %v11694_v19, %v23177_v17  ;;  %v7852_v2 = vmul.f32 %v23193_v51, %v23192_v1  ;;  %v23207_v41 = vld [vmem:[#allocation133_spill] sm:$0xff]  ;;  %v23213_v51 = vld [vmem:[#allocation291_spill] sm:$0xff] }
 0x3a2   : > { %v7853_v58 = vmul.f32 %v23195_v50, %v23194_v52  ;;  %v11660_v49 = vcombine.low %v11652_v56, %v11659_v14  ;;  %v7854_v60 = vmul.f32 %v23197_v24, %v23196_v15  ;;  %v7855_v46 = vmul.f32 %v23199_v63, %v23198_v35  ;;  %v23208_v56 = vld [vmem:[#allocation134_spill] sm:$0xff]  ;;  %v23214_v17 = vld [vmem:[#allocation71_spill] sm:$0xff] }
 0x3a3   : > { %v7856_v45 = vmul.f32 %v23199_v63, %v23200_v13  ;;  %v11709_v53 = vcombine.low %v11701_v30, %v11708_v7  ;;  %v7857_v47 = vmul.f32 %v23202_v29, %v23201_v43  ;;  %v7858_v62 = vmul.f32 %v23187_v18, %v23203_v20  ;;  %v23209_v7 = vld [vmem:[#allocation66_spill] sm:$0xff]  ;;  %v23210_v18 = vld [vmem:[#allocation77_spill] sm:$0xff] }
 0x3a4   : > { %v7859_v33 = vmul.f32 %v23189_v12, %v23204_v8  ;;  %v7860_v28 = vmul.f32 %v23191_v16, %v23205_v3  ;;  %v7955_v55 = vmul.f32 %v23206_v0, %v23186_v54  ;;  %v7956_v19 = vmul.f32 %v23207_v41, %v23188_v26  ;;  %v23211_v12 = vld [vmem:[#allocation100_spill] sm:$0xff]  ;;  %v23212_v16 = vld [vmem:[#allocation95_spill] sm:$0xff] }
 0x3a5   : > { %v7957_v14 = vmul.f32 %v23208_v56, %v23190_v34  ;;  %v11902_v30 = vpack.c.bf16 %v11709_v53, %v11660_v49  ;;  %v7958_v29 = vmul.f32 %v23209_v7, %v23192_v1  ;;  %v7959_v63 = vmul.f32 %v23210_v18, %v23194_v52 }
 0x3a6   : > { %v7960_v24 = vmul.f32 %v23211_v12, %v23196_v15  ;;  %v7961_v50 = vmul.f32 %v23212_v16, %v23198_v35  ;;  %v7962_v25 = vmul.f32 %v23214_v17, %v23213_v51  ;;  %v7963_v22 = vmul.f32 %v23214_v17, %v23201_v43  ;;  %v23215_v12 = vld [vmem:[#allocation245_spill] sm:$0xff]  ;;  %v23216_v16 = vld [vmem:[#allocation236_spill] sm:$0xff] }
 0x3a7   : > { %v7964_v49 = vmul.f32 %v23206_v0, %v23203_v20  ;;  %13591 = vmatmul.mubr.bf16.vlgmr.msra.gmra.mrb[24].mxu0 %v11902_v30  ;;  %v7965_v53 = vmul.f32 %v23207_v41, %v23204_v8  ;;  %v7966_v18 = vmul.f32 %v23208_v56, %v23205_v3  ;;  %v7967_v10 = vmul.f32 %v23209_v7, %v23215_v12 }
 0x3a8   : > { %v8000_v31 = vadd.f32 %v7955_v55, %v23216_v16  ;;  %13594 = vmatprep.mubr.msk.bf16.mxu0 %vm13880_vm1, %v23217_v37  ;;  %v8001_v61 = vadd.f32 %v7956_v19, %v7849_v40  ;;  %v8002_v17 = vadd.f32 %v7957_v14, %v7850_v32  ;;  %v8003_v9 = vadd.f32 %v7958_v29, %v7851_v48  ;;  %v23219_v16 = vld [vmem:[#allocation80_spill] sm:$0xff]  ;;  %v23220_v37 = vld [vmem:[#allocation101_spill] sm:$0xff] }
 0x3a9   : > { %v8004_v42 = vadd.f32 %v7959_v63, %v7852_v2  ;;  %v8005_v0 = vadd.f32 %v7960_v24, %v7853_v58  ;;  %v8006_v30 = vadd.f32 %v7961_v50, %v7854_v60  ;;  %v8007_v6 = vadd.f32 %v7962_v25, %v7855_v46  ;;  %v23221_v32 = vld [vmem:[#allocation60_spill] sm:$0xff]  ;;  %v23222_v2 = vld [vmem:[#allocation83_spill] sm:$0xff] }
 0x3aa   : > { %v8008_v21 = vadd.f32 %v7963_v22, %v7856_v45  ;;  %v8009_v41 = vadd.f32 %v7964_v49, %v7857_v47  ;;  %v8010_v4 = vadd.f32 %v7965_v53, %v7858_v62  ;;  %v8011_v57 = vadd.f32 %v7966_v18, %v7859_v33  ;;  %v23223_v22 = vld [vmem:[#allocation85_spill] sm:$0xff]  ;;  %v23226_v24 = vld [vmem:[#allocation211_spill] sm:$0xff]  ;;  %v23227_v47 = vld [vmem:[#allocation248_spill] sm:$0xff] }
 0x3ab   : > { %v8012_v56 = vadd.f32 %v7967_v10, %v7860_v28  ;;  %v8106_v7 = vmul.f32 %v23218_v5, %v23186_v54  ;;  %v8107_v55 = vmul.f32 %v23219_v16, %v23188_v26  ;;  %v8108_v40 = vmul.f32 %v23220_v37, %v23190_v34  ;;  %v23224_v10 = vld [vmem:[#allocation120_spill] sm:$0xff]  ;;  %v23225_v54 = vld [vmem:[#allocation126_spill] sm:$0xff]  ;;  %v23228_v33 = vld [vmem:[#allocation237_spill] sm:$0xff] }
 0x3ac   : > { %v8109_v48 = vmul.f32 %v23221_v32, %v23192_v1  ;;  %v8110_v25 = vmul.f32 %v23222_v2, %v23194_v52  ;;  %v8111_v50 = vmul.f32 %v23223_v22, %v23196_v15  ;;  %v8112_v18 = vmul.f32 %v23224_v10, %v23198_v35 }
 0x3ad   : > { %v8113_v58 = vmul.f32 %v23225_v54, %v23213_v51  ;;  %v8114_v60 = vmul.f32 %v23218_v5, %v23226_v24  ;;  %v8115_v63 = vmul.f32 %v23218_v5, %v23203_v20  ;;  %v8116_v46 = vmul.f32 %v23219_v16, %v23204_v8 }
 0x3ae   : > { %v8117_v45 = vmul.f32 %v23220_v37, %v23205_v3  ;;  %v8118_v29 = vmul.f32 %v23221_v32, %v23215_v12  ;;  %v8119_v62 = vmul.f32 %v23222_v2, %v23227_v47  ;;  %v8151_v28 = vadd.f32 %v8106_v7, %v23228_v33  ;;  %v23229_v32 = vld [vmem:[#allocation81_spill] sm:$0xff] }
 0x3af   : > { %v8152_v19 = vadd.f32 %v8107_v55, %v8000_v31  ;;  %v8153_v14 = vadd.f32 %v8108_v40, %v8001_v61  ;;  %v8154_v49 = vadd.f32 %v8109_v48, %v8002_v17  ;;  %v8155_v53 = vadd.f32 %v8110_v25, %v8003_v9  ;;  %v23230_v2 = vld [vmem:[#allocation5_spill] sm:$0xff]  ;;  %v23231_v31 = vld [vmem:[#allocation104_spill] sm:$0xff] }
 0x3b0   : > { %v8156_v54 = vadd.f32 %v8111_v50, %v8004_v42  ;;  %v8157_v5 = vadd.f32 %v8112_v18, %v8005_v0  ;;  %v8158_v10 = vadd.f32 %v8113_v58, %v8006_v30  ;;  %v8159_v22 = vadd.f32 %v8114_v60, %v8007_v6  ;;  %v23232_v17 = vld [vmem:[#allocation73_spill] sm:$0xff]  ;;  %v23233_v9 = vld [vmem:[#allocation48_spill] sm:$0xff] }
 0x3b1   : > { %v8160_v16 = vadd.f32 %v8115_v63, %v8008_v21  ;;  %v8161_v38 = vadd.f32 %v8116_v46, %v8009_v41  ;;  %v8162_v59 = vadd.f32 %v8117_v45, %v8010_v4  ;;  %v8163_v37 = vadd.f32 %v8118_v29, %v8011_v57  ;;  %v23234_v21 = vld [vmem:[#allocation148_spill] sm:$0xff]  ;;  %v23238_v25 = vld [vmem:[#allocation249_spill] sm:$0xff] }
 0x3b2   : > { %v8164_v39 = vadd.f32 %v8119_v62, %v8012_v56  ;;  %v8258_v36 = vmul.f32 %v23229_v32, %v23188_v26  ;;  %v8259_v23 = vmul.f32 %v23230_v2, %v23190_v34  ;;  %v8260_v61 = vmul.f32 %v23231_v31, %v23192_v1  ;;  %v23235_v57 = vld [vmem:[#allocation124_spill] sm:$0xff]  ;;  %v23236_v26 = vld [vmem:[#allocation82_spill] sm:$0xff] }
 0x3b3   : > { %v8261_v42 = vmul.f32 %v23232_v17, %v23194_v52  ;;  %v8262_v6 = vmul.f32 %v23233_v9, %v23196_v15  ;;  %v8263_v4 = vmul.f32 %v23234_v21, %v23198_v35  ;;  %v8264_v0 = vmul.f32 %v23235_v57, %v23213_v51  ;;  %v23237_v56 = vld [vmem:[#allocation220_spill] sm:$0xff]  ;;  %v23239_v21 = vld [vmem:[#allocation47_spill] sm:$0xff] }
 0x3b4   : > { %v8265_v41 = vmul.f32 %v23236_v26, %v23226_v24  ;;  %v8266_v7 = vmul.f32 %v23229_v32, %v23237_v56  ;;  %v8267_v30 = vmul.f32 %v23229_v32, %v23204_v8  ;;  %v8268_v55 = vmul.f32 %v23230_v2, %v23205_v3 }
 0x3b5   : > { %v8269_v40 = vmul.f32 %v23231_v31, %v23215_v12  ;;  %v8270_v48 = vmul.f32 %v23232_v17, %v23227_v47  ;;  %v8271_v50 = vmul.f32 %v23233_v9, %v23238_v25  ;;  %v8303_v18 = vadd.f32 %v8258_v36, %v8151_v28  ;;  %v23242_v28 = vld [vmem:[#allocation98_spill] sm:$0xff] }
 0x3b6   : > { %v8304_v58 = vadd.f32 %v8259_v23, %v8152_v19  ;;  %v8305_v60 = vadd.f32 %v8260_v61, %v8153_v14  ;;  %v8306_v63 = vadd.f32 %v8261_v42, %v8154_v49  ;;  %v8307_v46 = vadd.f32 %v8262_v6, %v8155_v53  ;;  %v23241_v23 = vld [vmem:[#allocation147_spill] sm:$0xff]  ;;  %v23248_v53 = vld [vmem:[#allocation292_spill] sm:$0xff] }
 0x3b7   : > { %v8308_v45 = vadd.f32 %v8263_v4, %v8156_v54  ;;  %v8309_v29 = vadd.f32 %v8264_v0, %v8157_v5  ;;  %v8310_v62 = vadd.f32 %v8265_v41, %v8158_v10  ;;  %v8311_v33 = vadd.f32 %v8266_v7, %v8159_v22  ;;  %v23243_v5 = vld [vmem:[#allocation97_spill] sm:$0xff] }
 0x3b8   : > { %v8312_v32 = vadd.f32 %v8267_v30, %v8160_v16  ;;  %v8313_v2 = vadd.f32 %v8268_v55, %v8161_v38  ;;  %v8314_v26 = vadd.f32 %v8269_v40, %v8162_v59  ;;  %v8315_v57 = vadd.f32 %v8270_v48, %v8163_v37  ;;  %v23244_v38 = vld [vmem:[#allocation151_spill] sm:$0xff]  ;;  %v23247_v10 = vld [vmem:[#allocation277_spill] sm:$0xff] }
 0x3b9   : > { %v8316_v31 = vadd.f32 %v8271_v50, %v8164_v39  ;;  %v8410_v17 = vmul.f32 %v23239_v21, %v23190_v34  ;;  %v8411_v9 = vmul.f32 %v23240_v11, %v23192_v1  ;;  %v8412_v36 = vmul.f32 %v23241_v23, %v23194_v52  ;;  %v23245_v39 = vld [vmem:[#allocation7_spill] sm:$0xff]  ;;  %v23246_v34 = vld [vmem:[#allocation128_spill] sm:$0xff] }
 0x3ba   : > { %v8413_v54 = vmul.f32 %v23242_v28, %v23196_v15  ;;  %v8414_v22 = vmul.f32 %v23243_v5, %v23198_v35  ;;  %v8415_v59 = vmul.f32 %v23244_v38, %v23213_v51  ;;  %v8416_v37 = vmul.f32 %v23245_v39, %v23226_v24  ;;  %v23282_v38 = vld [vmem:[#allocation45_spill] sm:$0xff] }
 0x3bb   : > { %v8417_v16 = vmul.f32 %v23246_v34, %v23237_v56  ;;  %v8418_v1 = vmul.f32 %v23239_v21, %v23247_v10  ;;  %v8419_v52 = vmul.f32 %v23239_v21, %v23205_v3  ;;  %v8420_v19 = vmul.f32 %v23240_v11, %v23215_v12  ;;  %v23281_v34 = vld [vmem:[#allocation12_spill] sm:$0xff]  ;;  %v23294_v10 = vld [vmem:[#allocation57_spill] sm:$0xff] }
 0x3bc   : > { %v8421_v14 = vmul.f32 %v23241_v23, %v23227_v47  ;;  %v8422_v49 = vmul.f32 %v23242_v28, %v23238_v25  ;;  %v8423_v61 = vmul.f32 %v23243_v5, %v23248_v53  ;;  %v19084_v42 = vadd.f32 %v8410_v17, %v8303_v18 }
 0x3bd   : > { %v19086_v6 = vadd.f32 %v8411_v9, %v8304_v58  ;;  %v19088_v4 = vadd.f32 %v8412_v36, %v8305_v60  ;;  %v19090_v0 = vadd.f32 %v8413_v54, %v8306_v63  ;;  %v19092_v41 = vadd.f32 %v8414_v22, %v8307_v46  ;;  %v23263_v58 = vld [vmem:[#allocation123_spill] sm:$0xff]  ;;  %v23264_v63 = vld [vmem:[#allocation150_spill] sm:$0xff] }
 0x3be   : > { %23249 = vst [vmem:[#allocation226_spill] sm:$0xff] %v19084_v42  ;;  %v19094_v7 = vadd.f32 %v8415_v59, %v8308_v45  ;;  %v19096_v30 = vadd.f32 %v8416_v37, %v8309_v29  ;;  %v19098_v55 = vadd.f32 %v8417_v16, %v8310_v62  ;;  %v19100_v40 = vadd.f32 %v8418_v1, %v8311_v33  ;;  %v23270_v54 = vld [vmem:[#allocation110_spill] sm:$0xff]  ;;  %v23271_v37 = vld [vmem:[#allocation149_spill] sm:$0xff]  ;;  %v23272_v1 = vld [vmem:[#allocation216_spill] sm:$0xff] }
 0x3bf   : > { %23250 = vst [vmem:[#allocation240_spill] sm:$0xff] %v19086_v6  ;;  %23251 = vst [vmem:[#allocation223_spill] sm:$0xff] %v19088_v4  ;;  %v19102_v48 = vadd.f32 %v8419_v52, %v8312_v32  ;;  %v19104_v17 = vadd.f32 %v8420_v19, %v8313_v2  ;;  %v19106_v9 = vadd.f32 %v8421_v14, %v8314_v26  ;;  %v23265_v32 = vld [vmem:[#allocation113_spill] sm:$0xff]  ;;  %v23266_v2 = vld [vmem:[#allocation106_spill] sm:$0xff] }
 0x3c0   : > { %23252 = vst [vmem:[#allocation210_spill] sm:$0xff] %v19090_v0  ;;  %23253 = vst [vmem:[#allocation228_spill] sm:$0xff] %v19092_v41  ;;  %v19108_v50 = vadd.f32 %v8422_v49, %v8315_v57  ;;  %v19110_v18 = vadd.f32 %v8423_v61, %v8316_v31  ;;  %v8605_v60 = vmul.f32 %v23263_v58, %v23196_v15  ;;  %v23267_v57 = vld [vmem:[#allocation162_spill] sm:$0xff]  ;;  %v23268_v31 = vld [vmem:[#allocation117_spill] sm:$0xff] }
 0x3c1   : > { %23254 = vst [vmem:[#allocation214_spill] sm:$0xff] %v19094_v7  ;;  %23255 = vst [vmem:[#allocation215_spill] sm:$0xff] %v19096_v30  ;;  %v8606_v46 = vmul.f32 %v23264_v63, %v23198_v35  ;;  %v8607_v45 = vmul.f32 %v23264_v63, %v23200_v13  ;;  %v8608_v29 = vmul.f32 %v23265_v32, %v23201_v43  ;;  %v23269_v15 = vld [vmem:[#allocation111_spill] sm:$0xff]  ;;  %v23273_v19 = vld [vmem:[#allocation78_spill] sm:$0xff] }
 0x3c2   : > { %23256 = vst [vmem:[#allocation213_spill] sm:$0xff] %v19098_v55  ;;  %23257 = vst [vmem:[#allocation219_spill] sm:$0xff] %v19100_v40  ;;  %v8609_v26 = vmul.f32 %v23266_v2, %v23203_v20  ;;  %v8610_v62 = vmul.f32 %v23267_v57, %v23204_v8  ;;  %v8611_v33 = vmul.f32 %v23268_v31, %v23205_v3  ;;  %v23274_v61 = vld [vmem:[#allocation10_spill] sm:$0xff] }
 0x3c3   : > { %23258 = vst [vmem:[#allocation218_spill] sm:$0xff] %v19102_v48  ;;  %23259 = vst [vmem:[#allocation217_spill] sm:$0xff] %v19104_v17  ;;  %v8612_v36 = vmul.f32 %v23269_v15, %v23215_v12  ;;  %v8613_v22 = vmul.f32 %v23270_v54, %v23227_v47  ;;  %v8614_v13 = vmul.f32 %v23263_v58, %v23238_v25  ;;  %v23275_v58 = vld [vmem:[#allocation156_spill] sm:$0xff] }
 0x3c4   : > { %23260 = vst [vmem:[#allocation225_spill] sm:$0xff] %v19106_v9  ;;  %23261 = vst [vmem:[#allocation231_spill] sm:$0xff] %v19108_v50  ;;  %v8615_v59 = vmul.f32 %v23264_v63, %v23248_v53  ;;  %v8617_v16 = vmul.f32 %v23265_v32, %v23271_v37  ;;  %v8618_v52 = vmul.f32 %v23266_v2, %v23272_v1  ;;  %v23276_v32 = vld [vmem:[#allocation146_spill] sm:$0xff]  ;;  %v23277_v2 = vld [vmem:[#allocation16_spill] sm:$0xff] }
 0x3c5   : > { %23262 = vst [vmem:[#allocation233_spill] sm:$0xff] %v19110_v18  ;;  %v8619_v14 = vmul.f32 %v23267_v57, %v23273_v19  ;;  %v8620_v49 = vmul.f32 %v23268_v31, %v23034_v44  ;;  %v8712_v54 = vmul.f32 %v23274_v61, %v23198_v35  ;;  %v8713_v15 = vmul.f32 %v23275_v58, %v23213_v51  ;;  %v23278_v57 = vld [vmem:[#allocation163_spill] sm:$0xff]  ;;  %v23279_v31 = vld [vmem:[#allocation94_spill] sm:$0xff] }
 0x3c6   : > { %v8714_v63 = vmul.f32 %v23275_v58, %v23201_v43  ;;  %v8715_v5 = vmul.f32 %v23276_v32, %v23203_v20  ;;  %v8716_v28 = vmul.f32 %v23277_v2, %v23204_v8  ;;  %v8717_v23 = vmul.f32 %v23278_v57, %v23205_v3  ;;  %v23280_v35 = vld [vmem:[#allocation159_spill] sm:$0xff] }
 0x3c7   : > { %v8718_v11 = vmul.f32 %v23279_v31, %v23215_v12  ;;  %v8719_v21 = vmul.f32 %v23280_v35, %v23227_v47  ;;  %v8720_v39 = vmul.f32 %v23281_v34, %v23238_v25  ;;  %v8721_v43 = vmul.f32 %v23274_v61, %v23248_v53 }
 0x3c8   : > { %v8722_v37 = vmul.f32 %v23275_v58, %v23282_v38  ;;  %v8724_v18 = vmul.f32 %v23276_v32, %v23272_v1  ;;  %v8725_v50 = vmul.f32 %v23277_v2, %v23273_v19  ;;  %v8726_v9 = vmul.f32 %v23278_v57, %v23034_v44  ;;  %v23283_v57 = vld [vmem:[#allocation4_spill] sm:$0xff] }
 0x3c9   : > { %v8727_v35 = vmul.f32 %v23279_v31, %v23035_v27  ;;  %v8757_v17 = vadd.f32 %v8712_v54, %v8605_v60  ;;  %v8758_v34 = vadd.f32 %v8713_v15, %v8606_v46  ;;  %v8759_v48 = vadd.f32 %v8714_v63, %v8607_v45  ;;  %v23284_v31 = vld [vmem:[#allocation153_spill] sm:$0xff]  ;;  %v23290_v46 = vld [vmem:[#allocation6_spill] sm:$0xff]  ;;  %v23292_v54 = vld [vmem:[#allocation296_spill] sm:$0xff] }
 0x3ca   : > { %v8760_v40 = vadd.f32 %v8715_v5, %v8608_v29  ;;  %v8761_v61 = vadd.f32 %v8716_v28, %v8609_v26  ;;  %v8762_v55 = vadd.f32 %v8717_v23, %v8610_v62  ;;  %v8763_v30 = vadd.f32 %v8718_v11, %v8611_v33  ;;  %v23285_v23 = vld [vmem:[#allocation105_spill] sm:$0xff]  ;;  %v23291_v29 = vld [vmem:[#allocation139_spill] sm:$0xff] }
 0x3cb   : > { %v8764_v58 = vadd.f32 %v8719_v21, %v8612_v36  ;;  %v8765_v7 = vadd.f32 %v8720_v39, %v8613_v22  ;;  %v8766_v41 = vadd.f32 %v8721_v43, %v8614_v13  ;;  %v8767_v32 = vadd.f32 %v8722_v37, %v8615_v59  ;;  %v23286_v21 = vld [vmem:[#allocation165_spill] sm:$0xff]  ;;  %v23287_v39 = vld [vmem:[#allocation166_spill] sm:$0xff] }
 0x3cc   : > { %v8769_v0 = vadd.f32 %v8724_v18, %v8617_v16  ;;  %v8770_v4 = vadd.f32 %v8725_v50, %v8618_v52  ;;  %v8771_v2 = vadd.f32 %v8726_v9, %v8619_v14  ;;  %v8772_v6 = vadd.f32 %v8727_v35, %v8620_v49  ;;  %v23288_v9 = vld [vmem:[#allocation75_spill] sm:$0xff] }
 0x3cd   : > { %v8864_v42 = vmul.f32 %v23283_v57, %v23213_v51  ;;  %v8865_v60 = vmul.f32 %v23284_v31, %v23226_v24  ;;  %v8866_v5 = vmul.f32 %v23284_v31, %v23203_v20  ;;  %v8867_v11 = vmul.f32 %v23285_v23, %v23204_v8  ;;  %v23289_v51 = vld [vmem:[#allocation36_spill] sm:$0xff] }
 0x3ce   : > { %v8868_v28 = vmul.f32 %v23286_v21, %v23205_v3  ;;  %v8869_v50 = vmul.f32 %v23287_v39, %v23215_v12  ;;  %v8870_v18 = vmul.f32 %v23288_v9, %v23227_v47  ;;  %v8871_v63 = vmul.f32 %v23289_v51, %v23238_v25 }
 0x3cf   : > { %v8872_v45 = vmul.f32 %v23290_v46, %v23248_v53  ;;  %v8873_v20 = vmul.f32 %v23283_v57, %v23282_v38  ;;  %v8874_v26 = vmul.f32 %v23284_v31, %v23291_v29  ;;  %v8875_v62 = vmul.f32 %v23284_v31, %v23272_v1  ;;  %v23293_v57 = vld [vmem:[#allocation192_spill] sm:$0xff] }
 0x3d0   : > { %v8876_v33 = vmul.f32 %v23285_v23, %v23273_v19  ;;  %v8877_v15 = vmul.f32 %v23286_v21, %v23034_v44  ;;  %v8878_v36 = vmul.f32 %v23287_v39, %v23035_v27  ;;  %v8879_v22 = vmul.f32 %v23288_v9, %v23292_v54 }
 0x3d1   : > { %v8909_v13 = vadd.f32 %v8864_v42, %v8757_v17  ;;  %v8910_v59 = vadd.f32 %v8865_v60, %v8758_v34  ;;  %v8911_v37 = vadd.f32 %v8866_v5, %v8759_v48  ;;  %v8912_v16 = vadd.f32 %v8867_v11, %v8760_v40  ;;  %v23295_v34 = vld [vmem:[#allocation72_spill] sm:$0xff] }
 0x3d2   : > { %v8913_v52 = vadd.f32 %v8868_v28, %v8761_v61  ;;  %v8914_v14 = vadd.f32 %v8869_v50, %v8762_v55  ;;  %v8915_v49 = vadd.f32 %v8870_v18, %v8763_v30  ;;  %v8916_v35 = vadd.f32 %v8871_v63, %v8764_v58  ;;  %v23296_v30 = vld [vmem:[#allocation39_spill] sm:$0xff]  ;;  %v23301_v58 = vld [vmem:[#allocation32_spill] sm:$0xff] }
 0x3d3   : > { %v8917_v43 = vadd.f32 %v8872_v45, %v8765_v7  ;;  %v8918_v31 = vadd.f32 %v8873_v20, %v8766_v41  ;;  %v8919_v23 = vadd.f32 %v8874_v26, %v8767_v32  ;;  %v8920_v46 = vadd.f32 %v8875_v62, %v23293_v57  ;;  %v23297_v41 = vld [vmem:[#allocation167_spill] sm:$0xff]  ;;  %v23303_v28 = vld [vmem:[#allocation300_spill] sm:$0xff] }
 0x3d4   : > { %v8921_v21 = vadd.f32 %v8876_v33, %v8769_v0  ;;  %v8922_v51 = vadd.f32 %v8877_v15, %v8770_v4  ;;  %v8923_v1 = vadd.f32 %v8878_v36, %v8771_v2  ;;  %v8924_v39 = vadd.f32 %v8879_v22, %v8772_v6  ;;  %v23298_v0 = vld [vmem:[#allocation169_spill] sm:$0xff]  ;;  %v23299_v6 = vld [vmem:[#allocation54_spill] sm:$0xff] }
 0x3d5   : > { %v9016_v9 = vmul.f32 %v23294_v10, %v23226_v24  ;;  %v9017_v42 = vmul.f32 %v23295_v34, %v23237_v56  ;;  %v9018_v55 = vmul.f32 %v23295_v34, %v23204_v8  ;;  %v9019_v7 = vmul.f32 %v23296_v30, %v23205_v3  ;;  %v23300_v24 = vld [vmem:[#allocation108_spill] sm:$0xff]  ;;  %v23302_v2 = vld [vmem:[#allocation294_spill] sm:$0xff] }
 0x3d6   : > { %v9020_v40 = vmul.f32 %v23297_v41, %v23215_v12  ;;  %v9021_v4 = vmul.f32 %v23298_v0, %v23227_v47  ;;  %v9022_v48 = vmul.f32 %v23299_v6, %v23238_v25  ;;  %v9023_v17 = vmul.f32 %v23300_v24, %v23248_v53 }
 0x3d7   : > { %v9024_v32 = vmul.f32 %v23301_v58, %v23282_v38  ;;  %v9025_v8 = vmul.f32 %v23294_v10, %v23291_v29  ;;  %v9026_v57 = vmul.f32 %v23295_v34, %v23302_v2  ;;  %v9027_v61 = vmul.f32 %v23295_v34, %v23273_v19 }
 0x3d8   : > { %v9028_v60 = vmul.f32 %v23296_v30, %v23034_v44  ;;  %v9029_v5 = vmul.f32 %v23297_v41, %v23035_v27  ;;  %v9030_v11 = vmul.f32 %v23298_v0, %v23292_v54  ;;  %v9031_v50 = vmul.f32 %v23299_v6, %v23303_v28  ;;  %v23304_v0 = vld [vmem:[#allocation84_spill] sm:$0xff]  ;;  %v23305_v6 = vld [vmem:[#allocation277_spill] sm:$0xff] }
 0x3d9   : > { %v9061_v18 = vadd.f32 %v9016_v9, %v8909_v13  ;;  %v9062_v63 = vadd.f32 %v9017_v42, %v8910_v59  ;;  %v9063_v45 = vadd.f32 %v9018_v55, %v8911_v37  ;;  %v9064_v20 = vadd.f32 %v9019_v7, %v8912_v16  ;;  %v23306_v9 = vld [vmem:[#allocation63_spill] sm:$0xff] }
 0x3da   : > { %v9065_v26 = vadd.f32 %v9020_v40, %v8913_v52  ;;  %v9066_v62 = vadd.f32 %v9021_v4, %v8914_v14  ;;  %v9067_v33 = vadd.f32 %v9022_v48, %v8915_v49  ;;  %v9068_v15 = vadd.f32 %v9023_v17, %v8916_v35  ;;  %v23307_v37 = vld [vmem:[#allocation119_spill] sm:$0xff]  ;;  %v23312_v52 = vld [vmem:[#allocation122_spill] sm:$0xff] }
 0x3db   : > { %v9069_v36 = vadd.f32 %v9024_v32, %v8917_v43  ;;  %v9070_v22 = vadd.f32 %v9025_v8, %v8918_v31  ;;  %v9071_v30 = vadd.f32 %v9026_v57, %v8919_v23  ;;  %v9072_v34 = vadd.f32 %v9027_v61, %v8920_v46  ;;  %v23308_v31 = vld [vmem:[#allocation170_spill] sm:$0xff]  ;;  %v23313_v49 = vld [vmem:[#allocation295_spill] sm:$0xff] }
 0x3dc   : > { %v9073_v10 = vadd.f32 %v9028_v60, %v8921_v21  ;;  %v9074_v41 = vadd.f32 %v9029_v5, %v8922_v51  ;;  %v9075_v58 = vadd.f32 %v9030_v11, %v8923_v1  ;;  %v9076_v24 = vadd.f32 %v9031_v50, %v8924_v39  ;;  %v23309_v21 = vld [vmem:[#allocation171_spill] sm:$0xff]  ;;  %v23310_v1 = vld [vmem:[#allocation112_spill] sm:$0xff]  ;;  %v23314_v40 = vld [vmem:[#allocation154_spill] sm:$0xff] }
 0x3dd   : > { %v9168_v19 = vmul.f32 %v23304_v0, %v23237_v56  ;;  %v9169_v13 = vmul.f32 %v23306_v9, %v23305_v6  ;;  %v9170_v59 = vmul.f32 %v23306_v9, %v23205_v3  ;;  %v9171_v16 = vmul.f32 %v23307_v37, %v23215_v12  ;;  %v23311_v56 = vld [vmem:[#allocation9_spill] sm:$0xff]  ;;  %v23370_v12 = vld [vmem:[#allocation242_spill] sm:$0xff] }
 0x3de   : > { %v9172_v23 = vmul.f32 %v23308_v31, %v23227_v47  ;;  %v9173_v51 = vmul.f32 %v23309_v21, %v23238_v25  ;;  %v9174_v39 = vmul.f32 %v23310_v1, %v23248_v53  ;;  %v9175_v46 = vmul.f32 %v23311_v56, %v23282_v38 }
 0x3df   : > { %v9176_v14 = vmul.f32 %v23312_v52, %v23291_v29  ;;  %v9177_v3 = vmul.f32 %v23304_v0, %v23302_v2  ;;  %v9178_v35 = vmul.f32 %v23306_v9, %v23313_v49  ;;  %v9179_v43 = vmul.f32 %v23306_v9, %v23034_v44 }
 0x3e0   : > { %v9180_v42 = vmul.f32 %v23307_v37, %v23035_v27  ;;  %v9181_v55 = vmul.f32 %v23308_v31, %v23292_v54  ;;  %v9182_v7 = vmul.f32 %v23309_v21, %v23303_v28  ;;  %v9183_v4 = vmul.f32 %v23310_v1, %v23314_v40  ;;  %v23315_v21 = vld [vmem:[#allocation238_spill] sm:$0xff]  ;;  %v23317_v1 = vld [vmem:[#allocation239_spill] sm:$0xff] }
 0x3e1   : > { %v9213_v6 = vadd.f32 %v9168_v19, %v9061_v18  ;;  %v9214_v48 = vadd.f32 %v9169_v13, %v9062_v63  ;;  %v9215_v17 = vadd.f32 %v9170_v59, %v9063_v45  ;;  %v9216_v32 = vadd.f32 %v9171_v16, %v9064_v20  ;;  %v23319_v18 = vld [vmem:[#allocation226_spill] sm:$0xff]  ;;  %v23321_v45 = vld [vmem:[#allocation240_spill] sm:$0xff]  ;;  %v23335_v13 = vld [vmem:[#allocation219_spill] sm:$0xff] }
 0x3e2   : > { %v9217_v8 = vadd.f32 %v9172_v23, %v9065_v26  ;;  %v9218_v57 = vadd.f32 %v9173_v51, %v9066_v62  ;;  %v9219_v61 = vadd.f32 %v9174_v39, %v9067_v33  ;;  %v9220_v60 = vadd.f32 %v9175_v46, %v9068_v15  ;;  %v23323_v26 = vld [vmem:[#allocation223_spill] sm:$0xff]  ;;  %v23337_v16 = vld [vmem:[#allocation218_spill] sm:$0xff] }
 0x3e3   : > { %v9221_v5 = vadd.f32 %v9176_v14, %v9069_v36  ;;  %v9222_v11 = vadd.f32 %v9177_v3, %v9070_v22  ;;  %v9223_v50 = vadd.f32 %v9178_v35, %v9071_v30  ;;  %v9224_v37 = vadd.f32 %v9179_v43, %v9072_v34  ;;  %v23325_v34 = vld [vmem:[#allocation210_spill] sm:$0xff]  ;;  %v23327_v30 = vld [vmem:[#allocation228_spill] sm:$0xff]  ;;  %v23331_v33 = vld [vmem:[#allocation215_spill] sm:$0xff] }
 0x3e4   : > { %v9225_v9 = vadd.f32 %v9180_v42, %v9073_v10  ;;  %v9226_v31 = vadd.f32 %v9181_v55, %v9074_v41  ;;  %v9227_v0 = vadd.f32 %v9182_v7, %v9075_v58  ;;  %v9228_v52 = vadd.f32 %v9183_v4, %v9076_v24  ;;  %v23329_v24 = vld [vmem:[#allocation214_spill] sm:$0xff]  ;;  %v23333_v36 = vld [vmem:[#allocation213_spill] sm:$0xff]  ;;  %v23343_v46 = vld [vmem:[#allocation231_spill] sm:$0xff] }
 0x3e5   : > { %v19270_v56 = vadd.f32 %v9213_v6, %v23315_v21  ;;  %v19273_v19 = vadd.f32 %v9214_v48, %v23317_v1  ;;  %v19276_v63 = vadd.f32 %v9215_v17, %v23319_v18  ;;  %v19279_v20 = vadd.f32 %v9216_v32, %v23321_v45  ;;  %v23339_v21 = vld [vmem:[#allocation217_spill] sm:$0xff]  ;;  %v23347_v43 = vld [vmem:[#allocation175_spill] sm:$0xff]  ;;  %v23350_v4 = vld [vmem:[#allocation86_spill] sm:$0xff] }
 0x3e6   : > { %v19282_v62 = vadd.f32 %v9217_v8, %v23323_v26  ;;  %v19285_v10 = vadd.f32 %v9218_v57, %v23325_v34  ;;  %v19288_v41 = vadd.f32 %v9219_v61, %v23327_v30  ;;  %v19291_v58 = vadd.f32 %v9220_v60, %v23329_v24  ;;  %v23341_v1 = vld [vmem:[#allocation225_spill] sm:$0xff]  ;;  %v23352_v48 = vld [vmem:[#allocation172_spill] sm:$0xff]  ;;  %v23354_v32 = vld [vmem:[#allocation174_spill] sm:$0xff] }
 0x3e7   : > { %23316 = vst [vmem:[#allocation234_spill] sm:$0xff] %v19270_v56  ;;  %23318 = vst [vmem:[#allocation235_spill] sm:$0xff] %v19273_v19  ;;  %v19294_v15 = vadd.f32 %v9221_v5, %v23331_v33  ;;  %v19297_v22 = vadd.f32 %v9222_v11, %v23333_v36  ;;  %v19300_v59 = vadd.f32 %v9223_v50, %v23335_v13  ;;  %v23345_v3 = vld [vmem:[#allocation233_spill] sm:$0xff]  ;;  %v23358_v18 = vld [vmem:[#allocation259_spill] sm:$0xff] }
 0x3e8   : > { %23320 = vst [vmem:[#allocation208_spill] sm:$0xff] %v19276_v63  ;;  %23322 = vst [vmem:[#allocation50_spill] sm:$0xff] %v19279_v20  ;;  %v19303_v23 = vadd.f32 %v9224_v37, %v23337_v16  ;;  %v19306_v51 = vadd.f32 %v9225_v9, %v23339_v21  ;;  %v19309_v39 = vadd.f32 %v9226_v31, %v23341_v1  ;;  %v23348_v55 = vld [vmem:[#allocation121_spill] sm:$0xff]  ;;  %v23351_v9 = vld [vmem:[#allocation216_spill] sm:$0xff] }
 0x3e9   : > { %23324 = vst [vmem:[#allocation212_spill] sm:$0xff] %v19282_v62  ;;  %23326 = vst [vmem:[#allocation221_spill] sm:$0xff] %v19285_v10  ;;  %v19312_v14 = vadd.f32 %v9227_v0, %v23343_v46  ;;  %v19315_v35 = vadd.f32 %v9228_v52, %v23345_v3  ;;  %v9365_v42 = vmul.f32 %v23347_v43, %v23238_v25  ;;  %v23349_v37 = vld [vmem:[#allocation149_spill] sm:$0xff]  ;;  %v23353_v31 = vld [vmem:[#allocation78_spill] sm:$0xff] }
 0x3ea   : > { %23328 = vst [vmem:[#allocation244_spill] sm:$0xff] %v19288_v41  ;;  %23330 = vst [vmem:[#allocation246_spill] sm:$0xff] %v19291_v58  ;;  %v9366_v7 = vmul.f32 %v23348_v55, %v23248_v53  ;;  %v9368_v6 = vmul.f32 %v23350_v4, %v23349_v37  ;;  %v9369_v17 = vmul.f32 %v23352_v48, %v23351_v9  ;;  %v23355_v0 = vld [vmem:[#allocation87_spill] sm:$0xff]  ;;  %v23356_v52 = vld [vmem:[#allocation125_spill] sm:$0xff] }
 0x3eb   : > { %23332 = vst [vmem:[#allocation247_spill] sm:$0xff] %v19294_v15  ;;  %23334 = vst [vmem:[#allocation251_spill] sm:$0xff] %v19297_v22  ;;  %v9370_v8 = vmul.f32 %v23354_v32, %v23353_v31  ;;  %v9371_v57 = vmul.f32 %v23355_v0, %v23034_v44  ;;  %v9372_v61 = vmul.f32 %v23356_v52, %v23035_v27  ;;  %v23357_v60 = vld [vmem:[#allocation173_spill] sm:$0xff]  ;;  %v23359_v26 = vld [vmem:[#allocation264_spill] sm:$0xff] }
 0x3ec   : > { %23336 = vst [vmem:[#allocation291_spill] sm:$0xff] %v19300_v59  ;;  %23338 = vst [vmem:[#allocation236_spill] sm:$0xff] %v19303_v23  ;;  %v9373_v5 = vmul.f32 %v23357_v60, %v23292_v54  ;;  %v9374_v11 = vmul.f32 %v23347_v43, %v23303_v28  ;;  %v9375_v50 = vmul.f32 %v23348_v55, %v23314_v40  ;;  %v23360_v30 = vld [vmem:[#allocation257_spill] sm:$0xff]  ;;  %v23362_v13 = vld [vmem:[#allocation180_spill] sm:$0xff] }
 0x3ed   : > { %23340 = vst [vmem:[#allocation211_spill] sm:$0xff] %v19306_v51  ;;  %23342 = vst [vmem:[#allocation237_spill] sm:$0xff] %v19309_v39  ;;  %v9377_v45 = vmul.f32 %v23350_v4, %v23358_v18  ;;  %v9378_v34 = vmul.f32 %v23352_v48, %v23359_v26  ;;  %v9379_v24 = vmul.f32 %v23354_v32, %v23360_v30  ;;  %v23361_v33 = vld [vmem:[#allocation261_spill] sm:$0xff]  ;;  %v23363_v21 = vld [vmem:[#allocation14_spill] sm:$0xff] }
 0x3ee   : > { %23344 = vst [vmem:[#allocation220_spill] sm:$0xff] %v19312_v14  ;;  %23346 = vst [vmem:[#allocation192_spill] sm:$0xff] %v19315_v35  ;;  %v9380_v36 = vmul.f32 %v23355_v0, %v23361_v33  ;;  %v9472_v16 = vmul.f32 %v23362_v13, %v23248_v53  ;;  %v9473_v1 = vmul.f32 %v23363_v21, %v23282_v38  ;;  %v23364_v3 = vld [vmem:[#allocation89_spill] sm:$0xff]  ;;  %v23366_v32 = vld [vmem:[#allocation179_spill] sm:$0xff] }
 0x3ef   : > { %v9474_v46 = vmul.f32 %v23363_v21, %v23349_v37  ;;  %v9475_v4 = vmul.f32 %v23364_v3, %v23351_v9  ;;  %v23365_v48 = vld [vmem:[#allocation177_spill] sm:$0xff]  ;;  %v9477_v43 = vmul.f32 %v23366_v32, %v23034_v44  ;;  %v23367_v0 = vld [vmem:[#allocation88_spill] sm:$0xff]  ;;  %v23369_v25 = vld [vmem:[#allocation178_spill] sm:$0xff]  ;;  %v9481_v37 = vmul.f32 %v23362_v13, %v23314_v40 }
 0x3f0   : > { %v9476_v55 = vmul.f32 %v23365_v48, %v23353_v31  ;;  %v9478_v60 = vmul.f32 %v23367_v0, %v23035_v27  ;;  %v23368_v52 = vld [vmem:[#allocation69_spill] sm:$0xff]  ;;  %v9480_v47 = vmul.f32 %v23369_v25, %v23303_v28  ;;  %v9482_v18 = vmul.f32 %v23363_v21, %v23370_v12  ;;  %v23371_v51 = vld [vmem:[#allocation262_spill] sm:$0xff]  ;;  %v23372_v59 = vld [vmem:[#allocation96_spill] sm:$0xff] }
 0x3f1   : > { %v9479_v53 = vmul.f32 %v23368_v52, %v23292_v54  ;;  %v9484_v35 = vmul.f32 %v23364_v3, %v23359_v26  ;;  %v9485_v14 = vmul.f32 %v23365_v48, %v23360_v30  ;;  %v9486_v39 = vmul.f32 %v23366_v32, %v23361_v33  ;;  %v23373_v32 = vld [vmem:[#allocation184_spill] sm:$0xff]  ;;  %v23394_v56 = vld [vmem:[#allocation193_spill] sm:$0xff] }
 0x3f2   : > { %v9487_v52 = vmul.f32 %v23367_v0, %v23371_v51  ;;  %v9517_v23 = vadd.f32 %v9472_v16, %v9365_v42  ;;  %v9518_v25 = vadd.f32 %v9473_v1, %v9366_v7  ;;  %v9519_v22 = vadd.f32 %v9474_v46, %v23372_v59  ;;  %v23374_v42 = vld [vmem:[#allocation90_spill] sm:$0xff] }
 0x3f3   : > { %v9520_v13 = vadd.f32 %v9475_v4, %v9368_v6  ;;  %v9521_v15 = vadd.f32 %v9476_v55, %v9369_v17  ;;  %v9522_v58 = vadd.f32 %v9477_v43, %v9370_v8  ;;  %v9523_v21 = vadd.f32 %v9478_v60, %v9371_v57  ;;  %v23375_v43 = vld [vmem:[#allocation8_spill] sm:$0xff]  ;;  %v23380_v17 = vld [vmem:[#allocation182_spill] sm:$0xff] }
 0x3f4   : > { %v9524_v41 = vadd.f32 %v9479_v53, %v9372_v61  ;;  %v9525_v10 = vadd.f32 %v9480_v47, %v9373_v5  ;;  %v9526_v3 = vadd.f32 %v9481_v37, %v9374_v11  ;;  %v9527_v26 = vadd.f32 %v9482_v18, %v9375_v50  ;;  %v23376_v47 = vld [vmem:[#allocation181_spill] sm:$0xff]  ;;  %v23379_v4 = vld [vmem:[#allocation92_spill] sm:$0xff]  ;;  %v23382_v50 = vld [vmem:[#allocation306_spill] sm:$0xff] }
 0x3f5   : > { %v9529_v62 = vadd.f32 %v9484_v35, %v9377_v45  ;;  %v9530_v48 = vadd.f32 %v9485_v14, %v9378_v34  ;;  %v9531_v20 = vadd.f32 %v9486_v39, %v9379_v24  ;;  %v9532_v63 = vadd.f32 %v9487_v52, %v9380_v36  ;;  %v23377_v35 = vld [vmem:[#allocation183_spill] sm:$0xff] }
 0x3f6   : > { %v9624_v19 = vmul.f32 %v23373_v32, %v23282_v38  ;;  %v9625_v7 = vmul.f32 %v23374_v42, %v23291_v29  ;;  %v9626_v59 = vmul.f32 %v23374_v42, %v23351_v9  ;;  %v9627_v55 = vmul.f32 %v23375_v43, %v23353_v31  ;;  %v23378_v39 = vld [vmem:[#allocation107_spill] sm:$0xff] }
 0x3f7   : > { %v9628_v53 = vmul.f32 %v23376_v47, %v23034_v44  ;;  %v9629_v14 = vmul.f32 %v23377_v35, %v23035_v27  ;;  %v9630_v37 = vmul.f32 %v23378_v39, %v23292_v54  ;;  %v9631_v6 = vmul.f32 %v23379_v4, %v23303_v28  ;;  %v23381_v52 = vld [vmem:[#allocation299_spill] sm:$0xff] }
 0x3f8   : > { %v9632_v8 = vmul.f32 %v23380_v17, %v23314_v40  ;;  %v9633_v57 = vmul.f32 %v23373_v32, %v23370_v12  ;;  %v9634_v61 = vmul.f32 %v23374_v42, %v23381_v52  ;;  %v9636_v60 = vmul.f32 %v23375_v43, %v23360_v30 }
 0x3f9   : > { %v9637_v5 = vmul.f32 %v23376_v47, %v23361_v33  ;;  %v9638_v11 = vmul.f32 %v23377_v35, %v23371_v51  ;;  %v9639_v18 = vmul.f32 %v23378_v39, %v23382_v50  ;;  %v9669_v45 = vadd.f32 %v9624_v19, %v9517_v23  ;;  %v23383_v35 = vld [vmem:[#allocation188_spill] sm:$0xff]  ;;  %v23384_v39 = vld [vmem:[#allocation93_spill] sm:$0xff]  ;;  %v23389_v23 = vld [vmem:[#allocation35_spill] sm:$0xff] }
 0x3fa   : > { %v9670_v34 = vadd.f32 %v9625_v7, %v9518_v25  ;;  %v9671_v24 = vadd.f32 %v9626_v59, %v9519_v22  ;;  %v9672_v36 = vadd.f32 %v9627_v55, %v9520_v13  ;;  %v9673_v16 = vadd.f32 %v9628_v53, %v9521_v15 }
 0x3fb   : > { %v9674_v1 = vadd.f32 %v9629_v14, %v9522_v58  ;;  %v9675_v46 = vadd.f32 %v9630_v37, %v9523_v21  ;;  %v9676_v42 = vadd.f32 %v9631_v6, %v9524_v41  ;;  %v9677_v32 = vadd.f32 %v9632_v8, %v9525_v10  ;;  %v23385_v58 = vld [vmem:[#allocation34_spill] sm:$0xff]  ;;  %v23386_v10 = vld [vmem:[#allocation185_spill] sm:$0xff]  ;;  %v23392_v37 = vld [vmem:[#allocation272_spill] sm:$0xff] }
 0x3fc   : > { %v9678_v17 = vadd.f32 %v9633_v57, %v9526_v3  ;;  %v9679_v43 = vadd.f32 %v9634_v61, %v9527_v26  ;;  %v9681_v4 = vadd.f32 %v9636_v60, %v9529_v62  ;;  %v9682_v0 = vadd.f32 %v9637_v5, %v9530_v48  ;;  %v23387_v62 = vld [vmem:[#allocation187_spill] sm:$0xff]  ;;  %v23390_v26 = vld [vmem:[#allocation186_spill] sm:$0xff]  ;;  %v23391_v3 = vld [vmem:[#allocation305_spill] sm:$0xff] }
 0x3fd   : > { %v9683_v47 = vadd.f32 %v9638_v11, %v9531_v20  ;;  %v9684_v38 = vadd.f32 %v9639_v18, %v9532_v63  ;;  %v9776_v9 = vmul.f32 %v23383_v35, %v23291_v29  ;;  %v9777_v19 = vmul.f32 %v23384_v39, %v23302_v2  ;;  %v23388_v63 = vld [vmem:[#allocation102_spill] sm:$0xff] }
 0x3fe   : > { %v9778_v25 = vmul.f32 %v23384_v39, %v23353_v31  ;;  %v9779_v15 = vmul.f32 %v23385_v58, %v23034_v44  ;;  %v9780_v41 = vmul.f32 %v23386_v10, %v23035_v27  ;;  %v9781_v22 = vmul.f32 %v23387_v62, %v23292_v54 }
 0x3ff   : > { %v9782_v20 = vmul.f32 %v23388_v63, %v23303_v28  ;;  %v9783_v48 = vmul.f32 %v23389_v23, %v23314_v40  ;;  %v9784_v13 = vmul.f32 %v23390_v26, %v23370_v12  ;;  %v9785_v21 = vmul.f32 %v23383_v35, %v23381_v52  ;;  %v23393_v23 = vld [vmem:[#allocation267_spill] sm:$0xff] }
 0x400   : > { %v9786_v7 = vmul.f32 %v23384_v39, %v23391_v3  ;;  %v9787_v59 = vmul.f32 %v23384_v39, %v23360_v30  ;;  %v9788_v55 = vmul.f32 %v23385_v58, %v23361_v33  ;;  %v9789_v53 = vmul.f32 %v23386_v10, %v23371_v51 }
 0x401   : > { %v9790_v14 = vmul.f32 %v23387_v62, %v23382_v50  ;;  %v9791_v6 = vmul.f32 %v23388_v63, %v23392_v37  ;;  %v9821_v8 = vadd.f32 %v9776_v9, %v9669_v45  ;;  %v9822_v57 = vadd.f32 %v9777_v19, %v9670_v34  ;;  %v23395_v9 = vld [vmem:[#allocation116_spill] sm:$0xff]  ;;  %v23402_v19 = vld [vmem:[#allocation255_spill] sm:$0xff] }
 0x402   : > { %v9823_v61 = vadd.f32 %v9778_v25, %v9671_v24  ;;  %v9824_v60 = vadd.f32 %v9779_v15, %v9672_v36  ;;  %v9825_v5 = vadd.f32 %v9780_v41, %v9673_v16  ;;  %v9826_v11 = vadd.f32 %v9781_v22, %v9674_v1  ;;  %v23400_v24 = vld [vmem:[#allocation127_spill] sm:$0xff]  ;;  %v23401_v16 = vld [vmem:[#allocation190_spill] sm:$0xff] }
 0x403   : > { %v9827_v18 = vadd.f32 %v9782_v20, %v9675_v46  ;;  %v9828_v39 = vadd.f32 %v9783_v48, %v9676_v42  ;;  %v9829_v35 = vadd.f32 %v9784_v13, %v9677_v32  ;;  %v9830_v26 = vadd.f32 %v9785_v21, %v9678_v17  ;;  %v23396_v42 = vld [vmem:[#allocation115_spill] sm:$0xff] }
 0x404   : > { %v9831_v58 = vadd.f32 %v9786_v7, %v9679_v43  ;;  %v9832_v29 = vadd.f32 %v9787_v59, %v23393_v23  ;;  %v9833_v10 = vadd.f32 %v9788_v55, %v9681_v4  ;;  %v9834_v31 = vadd.f32 %v9789_v53, %v9682_v0  ;;  %v23397_v43 = vld [vmem:[#allocation189_spill] sm:$0xff]  ;;  %v23398_v4 = vld [vmem:[#allocation191_spill] sm:$0xff]  ;;  %v23403_v23 = vld [vmem:[#allocation274_spill] sm:$0xff] }
 0x405   : > { %v9835_v30 = vadd.f32 %v9790_v14, %v9683_v47  ;;  %v9836_v62 = vadd.f32 %v9791_v6, %v9684_v38  ;;  %v9928_v63 = vmul.f32 %v23394_v56, %v23302_v2  ;;  %v9929_v45 = vmul.f32 %v23395_v9, %v23313_v49  ;;  %v23399_v38 = vld [vmem:[#allocation118_spill] sm:$0xff] }
 0x406   : > { %v9930_v34 = vmul.f32 %v23395_v9, %v23034_v44  ;;  %v9931_v32 = vmul.f32 %v23396_v42, %v23035_v27  ;;  %v9932_v17 = vmul.f32 %v23397_v43, %v23292_v54  ;;  %v9933_v0 = vmul.f32 %v23398_v4, %v23303_v28 }
 0x407   : > { %v9934_v47 = vmul.f32 %v23399_v38, %v23314_v40  ;;  %v9935_v36 = vmul.f32 %v23400_v24, %v23370_v12  ;;  %v9936_v1 = vmul.f32 %v23401_v16, %v23381_v52  ;;  %v9937_v46 = vmul.f32 %v23394_v56, %v23391_v3 }
 0x408   : > { %v9938_v25 = vmul.f32 %v23395_v9, %v23402_v19  ;;  %v9939_v15 = vmul.f32 %v23395_v9, %v23361_v33  ;;  %v9940_v41 = vmul.f32 %v23396_v42, %v23371_v51  ;;  %v9941_v22 = vmul.f32 %v23397_v43, %v23382_v50  ;;  %v23473_v19 = vld [vmem:[#allocation202_spill] sm:$0xff] }
 0x409   : > { %v9942_v20 = vmul.f32 %v23398_v4, %v23392_v37  ;;  %v9943_v48 = vmul.f32 %v23399_v38, %v23403_v23  ;;  %v9973_v13 = vadd.f32 %v9928_v63, %v9821_v8  ;;  %v9974_v21 = vadd.f32 %v9929_v45, %v9822_v57  ;;  %v23404_v4 = vld [vmem:[#allocation234_spill] sm:$0xff]  ;;  %v23406_v38 = vld [vmem:[#allocation235_spill] sm:$0xff]  ;;  %v23408_v8 = vld [vmem:[#allocation208_spill] sm:$0xff] }
 0x40a   : > { %v9975_v7 = vadd.f32 %v9930_v34, %v9823_v61  ;;  %v9976_v59 = vadd.f32 %v9931_v32, %v9824_v60  ;;  %v9977_v55 = vadd.f32 %v9932_v17, %v9825_v5  ;;  %v9978_v53 = vadd.f32 %v9933_v0, %v9826_v11  ;;  %v23410_v61 = vld [vmem:[#allocation50_spill] sm:$0xff]  ;;  %v23422_v11 = vld [vmem:[#allocation251_spill] sm:$0xff]  ;;  %v23426_v32 = vld [vmem:[#allocation236_spill] sm:$0xff] }
 0x40b   : > { %v9979_v14 = vadd.f32 %v9934_v47, %v9827_v18  ;;  %v9980_v6 = vadd.f32 %v9935_v36, %v9828_v39  ;;  %v9981_v9 = vadd.f32 %v9936_v1, %v9829_v35  ;;  %v9982_v56 = vadd.f32 %v9937_v46, %v9830_v26  ;;  %v23412_v35 = vld [vmem:[#allocation212_spill] sm:$0xff]  ;;  %v23420_v26 = vld [vmem:[#allocation247_spill] sm:$0xff] }
 0x40c   : > { %v9983_v42 = vadd.f32 %v9938_v25, %v9831_v58  ;;  %v9984_v16 = vadd.f32 %v9939_v15, %v9832_v29  ;;  %v9985_v24 = vadd.f32 %v9940_v41, %v9833_v10  ;;  %v9986_v43 = vadd.f32 %v9941_v22, %v9834_v31  ;;  %v23414_v29 = vld [vmem:[#allocation221_spill] sm:$0xff]  ;;  %v23416_v31 = vld [vmem:[#allocation244_spill] sm:$0xff]  ;;  %v23418_v10 = vld [vmem:[#allocation246_spill] sm:$0xff] }
 0x40d   : > { %v9987_v49 = vadd.f32 %v9942_v20, %v9835_v30  ;;  %v9988_v2 = vadd.f32 %v9943_v48, %v9836_v62  ;;  %v19472_v54 = vadd.f32 %v9973_v13, %v23404_v4  ;;  %v19475_v63 = vadd.f32 %v9974_v21, %v23406_v38  ;;  %v23424_v45 = vld [vmem:[#allocation291_spill] sm:$0xff]  ;;  %v23430_v38 = vld [vmem:[#allocation237_spill] sm:$0xff]  ;;  %v23432_v36 = vld [vmem:[#allocation220_spill] sm:$0xff] }
 0x40e   : > { %v19478_v57 = vadd.f32 %v9975_v7, %v23408_v8  ;;  %v19481_v60 = vadd.f32 %v9976_v59, %v23410_v61  ;;  %v19484_v39 = vadd.f32 %v9977_v55, %v23412_v35  ;;  %v19487_v58 = vadd.f32 %v9978_v53, %v23414_v29  ;;  %v23428_v4 = vld [vmem:[#allocation211_spill] sm:$0xff]  ;;  %v23439_v41 = vld [vmem:[#allocation42_spill] sm:$0xff]  ;;  %v23443_v13 = vld [vmem:[#allocation196_spill] sm:$0xff] }
 0x40f   : > { %23405 = vst [vmem:[#allocation277_spill] sm:$0xff] %v19472_v54  ;;  %23407 = vst [vmem:[#allocation238_spill] sm:$0xff] %v19475_v63  ;;  %v19490_v30 = vadd.f32 %v9979_v14, %v23416_v31  ;;  %v19493_v62 = vadd.f32 %v9980_v6, %v23418_v10  ;;  %v19496_v5 = vadd.f32 %v9981_v9, %v23420_v26  ;;  %v23434_v9 = vld [vmem:[#allocation192_spill] sm:$0xff]  ;;  %v23441_v20 = vld [vmem:[#allocation194_spill] sm:$0xff] }
 0x410   : > { %23409 = vst [vmem:[#allocation239_spill] sm:$0xff] %v19478_v57  ;;  %23411 = vst [vmem:[#allocation226_spill] sm:$0xff] %v19481_v60  ;;  %v19499_v18 = vadd.f32 %v9982_v56, %v23422_v11  ;;  %v19502_v34 = vadd.f32 %v9983_v42, %v23424_v45  ;;  %v19505_v17 = vadd.f32 %v9984_v16, %v23426_v32  ;;  %v23436_v56 = vld [vmem:[#allocation43_spill] sm:$0xff]  ;;  %v23448_v35 = vld [vmem:[#allocation278_spill] sm:$0xff] }
 0x411   : > { %23413 = vst [vmem:[#allocation240_spill] sm:$0xff] %v19484_v39  ;;  %23415 = vst [vmem:[#allocation223_spill] sm:$0xff] %v19487_v58  ;;  %v19508_v0 = vadd.f32 %v9985_v24, %v23428_v4  ;;  %v19511_v47 = vadd.f32 %v9986_v43, %v23430_v38  ;;  %v19514_v1 = vadd.f32 %v9987_v49, %v23432_v36  ;;  %v23437_v42 = vld [vmem:[#allocation103_spill] sm:$0xff]  ;;  %v23440_v24 = vld [vmem:[#allocation264_spill] sm:$0xff] }
 0x412   : > { %23417 = vst [vmem:[#allocation210_spill] sm:$0xff] %v19490_v30  ;;  %23419 = vst [vmem:[#allocation228_spill] sm:$0xff] %v19493_v62  ;;  %v19517_v46 = vadd.f32 %v9988_v2, %v23434_v9  ;;  %v10125_v25 = vmul.f32 %v23436_v56, %v23303_v28  ;;  %v10126_v15 = vmul.f32 %v23437_v42, %v23314_v40  ;;  %v23438_v16 = vld [vmem:[#allocation259_spill] sm:$0xff]  ;;  %v23442_v43 = vld [vmem:[#allocation257_spill] sm:$0xff] }
 0x413   : > { %23421 = vst [vmem:[#allocation214_spill] sm:$0xff] %v19496_v5  ;;  %23423 = vst [vmem:[#allocation215_spill] sm:$0xff] %v19499_v18  ;;  %v10128_v22 = vmul.f32 %v23439_v41, %v23438_v16  ;;  %v10129_v48 = vmul.f32 %v23441_v20, %v23440_v24  ;;  %v10130_v21 = vmul.f32 %v23443_v13, %v23442_v43  ;;  %v23444_v49 = vld [vmem:[#allocation114_spill] sm:$0xff]  ;;  %v23445_v2 = vld [vmem:[#allocation145_spill] sm:$0xff] }
 0x414   : > { %23425 = vst [vmem:[#allocation213_spill] sm:$0xff] %v19502_v34  ;;  %23427 = vst [vmem:[#allocation219_spill] sm:$0xff] %v19505_v17  ;;  %v10131_v7 = vmul.f32 %v23444_v49, %v23361_v33  ;;  %v10132_v59 = vmul.f32 %v23445_v2, %v23371_v51  ;;  %v23446_v55 = vld [vmem:[#allocation195_spill] sm:$0xff]  ;;  %v10134_v14 = vmul.f32 %v23436_v56, %v23392_v37  ;;  %v23449_v31 = vld [vmem:[#allocation250_spill] sm:$0xff] }
 0x415   : > { %23429 = vst [vmem:[#allocation218_spill] sm:$0xff] %v19508_v0  ;;  %23431 = vst [vmem:[#allocation217_spill] sm:$0xff] %v19511_v47  ;;  %v10133_v53 = vmul.f32 %v23446_v55, %v23382_v50  ;;  %v10135_v6 = vmul.f32 %v23437_v42, %v23403_v23  ;;  %v23447_v8 = vld [vmem:[#allocation263_spill] sm:$0xff]  ;;  %v10137_v29 = vmul.f32 %v23439_v41, %v23448_v35  ;;  %v23450_v26 = vld [vmem:[#allocation253_spill] sm:$0xff] }
 0x416   : > { %23433 = vst [vmem:[#allocation225_spill] sm:$0xff] %v19514_v1  ;;  %23435 = vst [vmem:[#allocation231_spill] sm:$0xff] %v19517_v46  ;;  %v10136_v61 = vmul.f32 %v23437_v42, %v23447_v8  ;;  %v10138_v10 = vmul.f32 %v23441_v20, %v23449_v31  ;;  %v10139_v11 = vmul.f32 %v23443_v13, %v23450_v26  ;;  %v23451_v45 = vld [vmem:[#allocation254_spill] sm:$0xff]  ;;  %v23452_v4 = vld [vmem:[#allocation53_spill] sm:$0xff] }
 0x417   : > { %v10140_v32 = vmul.f32 %v23444_v49, %v23451_v45  ;;  %v10232_v38 = vmul.f32 %v23452_v4, %v23314_v40  ;;  %v23453_v36 = vld [vmem:[#allocation67_spill] sm:$0xff]  ;;  %v23454_v42 = vld [vmem:[#allocation109_spill] sm:$0xff]  ;;  %v23456_v20 = vld [vmem:[#allocation52_spill] sm:$0xff]  ;;  %v10241_v44 = vmul.f32 %v23452_v4, %v23403_v23 }
 0x418   : > { %v10233_v9 = vmul.f32 %v23453_v36, %v23370_v12  ;;  %v10235_v56 = vmul.f32 %v23454_v42, %v23440_v24  ;;  %v23455_v41 = vld [vmem:[#allocation197_spill] sm:$0xff]  ;;  %v10237_v2 = vmul.f32 %v23456_v20, %v23361_v33  ;;  %v23457_v13 = vld [vmem:[#allocation155_spill] sm:$0xff]  ;;  %v23459_v40 = vld [vmem:[#allocation40_spill] sm:$0xff]  ;;  %v10243_v1 = vmul.f32 %v23453_v36, %v23448_v35 }
 0x419   : > { %v10236_v55 = vmul.f32 %v23455_v41, %v23442_v43  ;;  %v10238_v16 = vmul.f32 %v23457_v13, %v23371_v51  ;;  %v23458_v49 = vld [vmem:[#allocation37_spill] sm:$0xff]  ;;  %v10240_v27 = vmul.f32 %v23459_v40, %v23392_v37  ;;  %v23460_v8 = vld [vmem:[#allocation307_spill] sm:$0xff]  ;;  %v10244_v47 = vmul.f32 %v23454_v42, %v23449_v31  ;;  %v23461_v17 = vld [vmem:[#allocation258_spill] sm:$0xff] }
 0x41a   : > { %v10239_v28 = vmul.f32 %v23458_v49, %v23382_v50  ;;  %v10242_v46 = vmul.f32 %v23453_v36, %v23460_v8  ;;  %v10245_v0 = vmul.f32 %v23455_v41, %v23450_v26  ;;  %v10246_v49 = vmul.f32 %v23456_v20, %v23451_v45  ;;  %v23462_v20 = vld [vmem:[#allocation200_spill] sm:$0xff] }
 0x41b   : > { %v10247_v40 = vmul.f32 %v23457_v13, %v23461_v17  ;;  %v10277_v34 = vadd.f32 %v10232_v38, %v10125_v25  ;;  %v10278_v4 = vadd.f32 %v10233_v9, %v10126_v15  ;;  %v10280_v18 = vadd.f32 %v10235_v56, %v10128_v22  ;;  %v23463_v13 = vld [vmem:[#allocation28_spill] sm:$0xff]  ;;  %v23469_v22 = vld [vmem:[#allocation46_spill] sm:$0xff] }
 0x41c   : > { %v10281_v5 = vadd.f32 %v10236_v55, %v10129_v48  ;;  %v10282_v62 = vadd.f32 %v10237_v2, %v10130_v21  ;;  %v10283_v30 = vadd.f32 %v10238_v16, %v10131_v7  ;;  %v10284_v58 = vadd.f32 %v10239_v28, %v10132_v59  ;;  %v23464_v15 = vld [vmem:[#allocation136_spill] sm:$0xff] }
 0x41d   : > { %v10285_v36 = vadd.f32 %v10240_v27, %v10133_v53  ;;  %v10286_v35 = vadd.f32 %v10241_v44, %v10134_v14  ;;  %v10287_v39 = vadd.f32 %v10242_v46, %v10135_v6  ;;  %v10288_v42 = vadd.f32 %v10243_v1, %v10136_v61  ;;  %v23465_v44 = vld [vmem:[#allocation198_spill] sm:$0xff]  ;;  %v23468_v46 = vld [vmem:[#allocation135_spill] sm:$0xff]  ;;  %v23471_v14 = vld [vmem:[#allocation252_spill] sm:$0xff] }
 0x41e   : > { %v10289_v60 = vadd.f32 %v10244_v47, %v10137_v29  ;;  %v10290_v57 = vadd.f32 %v10245_v0, %v10138_v10  ;;  %v10291_v41 = vadd.f32 %v10246_v49, %v10139_v11  ;;  %v10292_v63 = vadd.f32 %v10247_v40, %v10140_v32  ;;  %v23466_v47 = vld [vmem:[#allocation199_spill] sm:$0xff]  ;;  %v23467_v40 = vld [vmem:[#allocation29_spill] sm:$0xff] }
 0x41f   : > { %v10384_v54 = vmul.f32 %v23462_v20, %v23370_v12  ;;  %v10385_v25 = vmul.f32 %v23463_v13, %v23381_v52  ;;  %v10386_v56 = vmul.f32 %v23463_v13, %v23440_v24  ;;  %v10387_v28 = vmul.f32 %v23464_v15, %v23442_v43  ;;  %v23470_v49 = vld [vmem:[#allocation309_spill] sm:$0xff] }
 0x420   : > { %v10388_v27 = vmul.f32 %v23465_v44, %v23361_v33  ;;  %v10389_v0 = vmul.f32 %v23466_v47, %v23371_v51  ;;  %v10390_v1 = vmul.f32 %v23467_v40, %v23382_v50  ;;  %v10391_v16 = vmul.f32 %v23468_v46, %v23392_v37  ;;  %v23472_v10 = vld [vmem:[#allocation265_spill] sm:$0xff] }
 0x421   : > { %v10392_v48 = vmul.f32 %v23469_v22, %v23403_v23  ;;  %v10393_v21 = vmul.f32 %v23462_v20, %v23460_v8  ;;  %v10394_v7 = vmul.f32 %v23463_v13, %v23470_v49  ;;  %v10395_v2 = vmul.f32 %v23463_v13, %v23449_v31 }
 0x422   : > { %v10396_v59 = vmul.f32 %v23464_v15, %v23450_v26  ;;  %v10397_v55 = vmul.f32 %v23465_v44, %v23451_v45  ;;  %v10398_v53 = vmul.f32 %v23466_v47, %v23461_v17  ;;  %v10399_v6 = vmul.f32 %v23467_v40, %v23471_v14 }
 0x423   : > { %v10429_v61 = vadd.f32 %v10384_v54, %v10277_v34  ;;  %v10430_v29 = vadd.f32 %v10385_v25, %v10278_v4  ;;  %v10431_v11 = vadd.f32 %v10386_v56, %v23472_v10  ;;  %v10432_v32 = vadd.f32 %v10387_v28, %v10280_v18  ;;  %v23474_v54 = vld [vmem:[#allocation27_spill] sm:$0xff]  ;;  %v23481_v25 = vld [vmem:[#allocation273_spill] sm:$0xff] }
 0x424   : > { %v10433_v38 = vadd.f32 %v10388_v27, %v10281_v5  ;;  %v10434_v9 = vadd.f32 %v10389_v0, %v10282_v62  ;;  %v10435_v13 = vadd.f32 %v10390_v1, %v10283_v30  ;;  %v10436_v20 = vadd.f32 %v10391_v16, %v10284_v58  ;;  %v23475_v30 = vld [vmem:[#allocation137_spill] sm:$0xff]  ;;  %v23476_v62 = vld [vmem:[#allocation142_spill] sm:$0xff]  ;;  %v23482_v16 = vld [vmem:[#allocation256_spill] sm:$0xff] }
 0x425   : > { %v10437_v22 = vadd.f32 %v10392_v48, %v10285_v36  ;;  %v10438_v15 = vadd.f32 %v10393_v21, %v10286_v35  ;;  %v10439_v46 = vadd.f32 %v10394_v7, %v10287_v39  ;;  %v10440_v24 = vadd.f32 %v10395_v2, %v10288_v42  ;;  %v23479_v35 = vld [vmem:[#allocation58_spill] sm:$0xff]  ;;  %v23480_v36 = vld [vmem:[#allocation201_spill] sm:$0xff] }
 0x426   : > { %v10441_v44 = vadd.f32 %v10396_v59, %v10289_v60  ;;  %v10442_v12 = vadd.f32 %v10397_v55, %v10290_v57  ;;  %v10443_v31 = vadd.f32 %v10398_v53, %v10291_v41  ;;  %v10444_v47 = vadd.f32 %v10399_v6, %v10292_v63  ;;  %v23477_v60 = vld [vmem:[#allocation144_spill] sm:$0xff]  ;;  %v23478_v63 = vld [vmem:[#allocation138_spill] sm:$0xff] }
 0x427   : > { %v10536_v40 = vmul.f32 %v23473_v19, %v23381_v52  ;;  %v10537_v34 = vmul.f32 %v23474_v54, %v23391_v3  ;;  %v10538_v5 = vmul.f32 %v23474_v54, %v23442_v43  ;;  %v10539_v58 = vmul.f32 %v23475_v30, %v23361_v33 }
 0x428   : > { %v10540_v39 = vmul.f32 %v23476_v62, %v23371_v51  ;;  %v10541_v57 = vmul.f32 %v23477_v60, %v23382_v50  ;;  %v10542_v18 = vmul.f32 %v23478_v63, %v23392_v37  ;;  %v10543_v4 = vmul.f32 %v23479_v35, %v23403_v23 }
 0x429   : > { %v10544_v41 = vmul.f32 %v23480_v36, %v23460_v8  ;;  %v10545_v42 = vmul.f32 %v23473_v19, %v23470_v49  ;;  %v10546_v56 = vmul.f32 %v23474_v54, %v23481_v25  ;;  %v10547_v28 = vmul.f32 %v23474_v54, %v23450_v26 }
 0x42a   : > { %v10548_v27 = vmul.f32 %v23475_v30, %v23451_v45  ;;  %v10549_v0 = vmul.f32 %v23476_v62, %v23461_v17  ;;  %v10550_v1 = vmul.f32 %v23477_v60, %v23471_v14  ;;  %v10551_v48 = vmul.f32 %v23478_v63, %v23482_v16  ;;  %v23483_v60 = vld [vmem:[#allocation206_spill] sm:$0xff]  ;;  %v23484_v63 = vld [vmem:[#allocation255_spill] sm:$0xff] }
 0x42b   : > { %v10581_v21 = vadd.f32 %v10536_v40, %v10429_v61  ;;  %v10582_v7 = vadd.f32 %v10537_v34, %v10430_v29  ;;  %v10583_v2 = vadd.f32 %v10538_v5, %v10431_v11  ;;  %v10584_v59 = vadd.f32 %v10539_v58, %v10432_v32  ;;  %v23485_v40 = vld [vmem:[#allocation38_spill] sm:$0xff]  ;;  %v23491_v11 = vld [vmem:[#allocation204_spill] sm:$0xff] }
 0x42c   : > { %v10585_v55 = vadd.f32 %v10540_v39, %v10433_v38  ;;  %v10586_v53 = vadd.f32 %v10541_v57, %v10434_v9  ;;  %v10587_v6 = vadd.f32 %v10542_v18, %v10435_v13  ;;  %v10588_v10 = vadd.f32 %v10543_v4, %v10436_v20  ;;  %v23486_v13 = vld [vmem:[#allocation18_spill] sm:$0xff]  ;;  %v23492_v9 = vld [vmem:[#allocation275_spill] sm:$0xff] }
 0x42d   : > { %v10589_v54 = vadd.f32 %v10544_v41, %v10437_v22  ;;  %v10590_v19 = vadd.f32 %v10545_v42, %v10438_v15  ;;  %v10591_v30 = vadd.f32 %v10546_v56, %v10439_v46  ;;  %v10592_v36 = vadd.f32 %v10547_v28, %v10440_v24  ;;  %v23487_v15 = vld [vmem:[#allocation203_spill] sm:$0xff]  ;;  %v23488_v24 = vld [vmem:[#allocation205_spill] sm:$0xff] }
 0x42e   : > { %v10593_v35 = vadd.f32 %v10548_v27, %v10441_v44  ;;  %v10594_v62 = vadd.f32 %v10549_v0, %v10442_v12  ;;  %v10595_v43 = vadd.f32 %v10550_v1, %v10443_v31  ;;  %v10596_v52 = vadd.f32 %v10551_v48, %v10444_v47  ;;  %v23489_v31 = vld [vmem:[#allocation15_spill] sm:$0xff]  ;;  %v23490_v47 = vld [vmem:[#allocation22_spill] sm:$0xff] }
 0x42f   : > { %v10688_v26 = vmul.f32 %v23483_v60, %v23391_v3  ;;  %v10689_v61 = vmul.f32 %v23485_v40, %v23484_v63  ;;  %v10690_v29 = vmul.f32 %v23485_v40, %v23361_v33  ;;  %v10691_v20 = vmul.f32 %v23486_v13, %v23371_v51  ;;  %v23493_v18 = vld [vmem:[#allocation227_spill] sm:$0xff] }
 0x430   : > { %v10692_v46 = vmul.f32 %v23487_v15, %v23382_v50  ;;  %v10693_v12 = vmul.f32 %v23488_v24, %v23392_v37  ;;  %v10694_v44 = vmul.f32 %v23489_v31, %v23403_v23  ;;  %v10695_v22 = vmul.f32 %v23490_v47, %v23460_v8  ;;  %v23549_v63 = vld [vmem:[#allocation315_spill] sm:$0xff] }
 0x431   : > { %v10696_v32 = vmul.f32 %v23491_v11, %v23470_v49  ;;  %v10697_v38 = vmul.f32 %v23483_v60, %v23481_v25  ;;  %v10698_v34 = vmul.f32 %v23485_v40, %v23492_v9  ;;  %v10699_v5 = vmul.f32 %v23485_v40, %v23451_v45 }
 0x432   : > { %v10700_v58 = vmul.f32 %v23486_v13, %v23461_v17  ;;  %v10701_v39 = vmul.f32 %v23487_v15, %v23471_v14  ;;  %v10702_v57 = vmul.f32 %v23488_v24, %v23482_v16  ;;  %v10703_v4 = vmul.f32 %v23489_v31, %v23493_v18  ;;  %v23494_v24 = vld [vmem:[#allocation277_spill] sm:$0xff]  ;;  %v23496_v31 = vld [vmem:[#allocation238_spill] sm:$0xff] }
 0x433   : > { %v10733_v41 = vadd.f32 %v10688_v26, %v10581_v21  ;;  %v10734_v42 = vadd.f32 %v10689_v61, %v10582_v7  ;;  %v10735_v56 = vadd.f32 %v10690_v29, %v10583_v2  ;;  %v10736_v28 = vadd.f32 %v10691_v20, %v10584_v59  ;;  %v23498_v21 = vld [vmem:[#allocation239_spill] sm:$0xff]  ;;  %v23500_v2 = vld [vmem:[#allocation226_spill] sm:$0xff]  ;;  %v23514_v61 = vld [vmem:[#allocation213_spill] sm:$0xff] }
 0x434   : > { %v10737_v27 = vadd.f32 %v10692_v46, %v10585_v55  ;;  %v10738_v0 = vadd.f32 %v10693_v12, %v10586_v53  ;;  %v10739_v1 = vadd.f32 %v10694_v44, %v10587_v6  ;;  %v10740_v48 = vadd.f32 %v10695_v22, %v10588_v10  ;;  %v23510_v55 = vld [vmem:[#allocation214_spill] sm:$0xff]  ;;  %v23512_v6 = vld [vmem:[#allocation215_spill] sm:$0xff]  ;;  %v23522_v22 = vld [vmem:[#allocation225_spill] sm:$0xff] }
 0x435   : > { %v10741_v40 = vadd.f32 %v10696_v32, %v10589_v54  ;;  %v10742_v60 = vadd.f32 %v10697_v38, %v10590_v19  ;;  %v10743_v13 = vadd.f32 %v10698_v34, %v10591_v30  ;;  %v10744_v11 = vadd.f32 %v10699_v5, %v10592_v36  ;;  %v23502_v54 = vld [vmem:[#allocation240_spill] sm:$0xff]  ;;  %v23504_v30 = vld [vmem:[#allocation223_spill] sm:$0xff] }
 0x436   : > { %v10745_v47 = vadd.f32 %v10700_v58, %v10593_v35  ;;  %v10746_v15 = vadd.f32 %v10701_v39, %v10594_v62  ;;  %v10747_v50 = vadd.f32 %v10702_v57, %v10595_v43  ;;  %v10748_v51 = vadd.f32 %v10703_v4, %v10596_v52  ;;  %v23506_v43 = vld [vmem:[#allocation210_spill] sm:$0xff]  ;;  %v23508_v62 = vld [vmem:[#allocation228_spill] sm:$0xff]  ;;  %v23516_v20 = vld [vmem:[#allocation219_spill] sm:$0xff] }
 0x437   : > { %v19677_v33 = vadd.f32 %v10733_v41, %v23494_v24  ;;  %v19680_v26 = vadd.f32 %v10734_v42, %v23496_v31  ;;  %v19683_v7 = vadd.f32 %v10735_v56, %v23498_v21  ;;  %v19686_v59 = vadd.f32 %v10736_v28, %v23500_v2  ;;  %v23518_v24 = vld [vmem:[#allocation218_spill] sm:$0xff]  ;;  %v23520_v31 = vld [vmem:[#allocation217_spill] sm:$0xff]  ;;  %v23530_v39 = vld [vmem:[#allocation24_spill] sm:$0xff] }
 0x438   : > { %v19689_v19 = vadd.f32 %v10737_v27, %v23502_v54  ;;  %v19692_v35 = vadd.f32 %v10738_v0, %v23504_v30  ;;  %v19695_v52 = vadd.f32 %v10739_v1, %v23506_v43  ;;  %v19698_v36 = vadd.f32 %v10740_v48, %v23508_v62  ;;  %v23532_v4 = vld [vmem:[#allocation25_spill] sm:$0xff]  ;;  %v23534_v42 = vld [vmem:[#allocation26_spill] sm:$0xff]  ;;  %v23537_v1 = vld [vmem:[#allocation207_spill] sm:$0xff] }
 0x439   : > { %23495 = vst [vmem:[#allocation233_spill] sm:$0xff] %v19677_v33  ;;  %23497 = vst [vmem:[#allocation96_spill] sm:$0xff] %v19680_v26  ;;  %v19701_v53 = vadd.f32 %v10741_v40, %v23510_v55  ;;  %v19704_v10 = vadd.f32 %v10742_v60, %v23512_v6  ;;  %v19707_v29 = vadd.f32 %v10743_v13, %v23514_v61  ;;  %v23524_v40 = vld [vmem:[#allocation231_spill] sm:$0xff]  ;;  %v23526_v60 = vld [vmem:[#allocation209_spill] sm:$0xff] }
 0x43a   : > { %23499 = vst [vmem:[#allocation267_spill] sm:$0xff] %v19683_v7  ;;  %23501 = vst [vmem:[#allocation234_spill] sm:$0xff] %v19686_v59  ;;  %v19710_v46 = vadd.f32 %v10744_v11, %v23516_v20  ;;  %v19713_v12 = vadd.f32 %v10745_v47, %v23518_v24  ;;  %v19716_v44 = vadd.f32 %v10746_v15, %v23520_v31  ;;  %v23527_v13 = vld [vmem:[#allocation23_spill] sm:$0xff]  ;;  %v23529_v47 = vld [vmem:[#allocation278_spill] sm:$0xff] }
 0x43b   : > { %23503 = vst [vmem:[#allocation235_spill] sm:$0xff] %v19689_v19  ;;  %23505 = vst [vmem:[#allocation208_spill] sm:$0xff] %v19692_v35  ;;  %v19719_v32 = vadd.f32 %v10747_v50, %v23522_v22  ;;  %v19722_v38 = vadd.f32 %v10748_v51, %v23524_v40  ;;  %v10885_v34 = vmul.f32 %v23526_v60, %v23392_v37  ;;  %v23528_v11 = vld [vmem:[#allocation263_spill] sm:$0xff]  ;;  %v23531_v15 = vld [vmem:[#allocation250_spill] sm:$0xff] }
 0x43c   : > { %23507 = vst [vmem:[#allocation50_spill] sm:$0xff] %v19695_v52  ;;  %23509 = vst [vmem:[#allocation212_spill] sm:$0xff] %v19698_v36  ;;  %v10886_v5 = vmul.f32 %v23527_v13, %v23403_v23  ;;  %v10887_v58 = vmul.f32 %v23527_v13, %v23528_v11  ;;  %v10888_v57 = vmul.f32 %v23530_v39, %v23529_v47  ;;  %v23533_v50 = vld [vmem:[#allocation253_spill] sm:$0xff]  ;;  %v23535_v51 = vld [vmem:[#allocation19_spill] sm:$0xff] }
 0x43d   : > { %23511 = vst [vmem:[#allocation221_spill] sm:$0xff] %v19701_v53  ;;  %23513 = vst [vmem:[#allocation244_spill] sm:$0xff] %v19704_v10  ;;  %v10889_v41 = vmul.f32 %v23532_v4, %v23531_v15  ;;  %v10890_v56 = vmul.f32 %v23534_v42, %v23533_v50  ;;  %v10891_v28 = vmul.f32 %v23535_v51, %v23451_v45  ;;  %v23536_v27 = vld [vmem:[#allocation129_spill] sm:$0xff]  ;;  %v23538_v54 = vld [vmem:[#allocation168_spill] sm:$0xff] }
 0x43e   : > { %23515 = vst [vmem:[#allocation246_spill] sm:$0xff] %v19707_v29  ;;  %23517 = vst [vmem:[#allocation247_spill] sm:$0xff] %v19710_v46  ;;  %v10892_v0 = vmul.f32 %v23536_v27, %v23461_v17  ;;  %v10893_v48 = vmul.f32 %v23537_v1, %v23471_v14  ;;  %v10894_v21 = vmul.f32 %v23526_v60, %v23482_v16  ;;  %v23539_v43 = vld [vmem:[#allocation230_spill] sm:$0xff]  ;;  %v23540_v55 = vld [vmem:[#allocation176_spill] sm:$0xff] }
 0x43f   : > { %23519 = vst [vmem:[#allocation251_spill] sm:$0xff] %v19713_v12  ;;  %23521 = vst [vmem:[#allocation291_spill] sm:$0xff] %v19716_v44  ;;  %v10895_v2 = vmul.f32 %v23527_v13, %v23493_v18  ;;  %v10898_v30 = vmul.f32 %v23532_v4, %v23538_v54  ;;  %v10899_v62 = vmul.f32 %v23534_v42, %v23539_v43  ;;  %v23541_v61 = vld [vmem:[#allocation64_spill] sm:$0xff]  ;;  %v23542_v24 = vld [vmem:[#allocation130_spill] sm:$0xff] }
 0x440   : > { %23523 = vst [vmem:[#allocation236_spill] sm:$0xff] %v19719_v32  ;;  %23525 = vst [vmem:[#allocation211_spill] sm:$0xff] %v19722_v38  ;;  %v10900_v6 = vmul.f32 %v23535_v51, %v23540_v55  ;;  %v10992_v20 = vmul.f32 %v23541_v61, %v23403_v23  ;;  %v10993_v31 = vmul.f32 %v23542_v24, %v23460_v8  ;;  %v23543_v40 = vld [vmem:[#allocation62_spill] sm:$0xff]  ;;  %v23544_v4 = vld [vmem:[#allocation21_spill] sm:$0xff] }
 0x441   : > { %v10994_v22 = vmul.f32 %v23542_v24, %v23529_v47  ;;  %v10995_v39 = vmul.f32 %v23543_v40, %v23531_v15  ;;  %v10996_v13 = vmul.f32 %v23544_v4, %v23533_v50  ;;  %v23545_v42 = vld [vmem:[#allocation2_spill] sm:$0xff]  ;;  %v23546_v51 = vld [vmem:[#allocation41_spill] sm:$0xff]  ;;  %v11001_v47 = vmul.f32 %v23541_v61, %v23493_v18  ;;  %v23551_v59 = vld [vmem:[#allocation20_spill] sm:$0xff] }
 0x442   : > { %v10997_v60 = vmul.f32 %v23545_v42, %v23451_v45  ;;  %v10998_v1 = vmul.f32 %v23546_v51, %v23461_v17  ;;  %v23547_v27 = vld [vmem:[#allocation49_spill] sm:$0xff]  ;;  %v11002_v40 = vmul.f32 %v23542_v24, %v23549_v63  ;;  %v11005_v3 = vmul.f32 %v23544_v4, %v23539_v43  ;;  %v23550_v32 = vld [vmem:[#allocation286_spill] sm:$0xff] }
 0x443   : > { %v10999_v11 = vmul.f32 %v23547_v27, %v23471_v14  ;;  %v23548_v23 = vld [vmem:[#allocation229_spill] sm:$0xff]  ;;  %v11006_v38 = vmul.f32 %v23545_v42, %v23540_v55  ;;  %v11007_v44 = vmul.f32 %v23546_v51, %v23550_v32  ;;  %v11037_v12 = vadd.f32 %v10992_v20, %v10885_v34 }
 0x444   : > { %v11000_v37 = vmul.f32 %v23548_v23, %v23482_v16  ;;  %v11038_v27 = vadd.f32 %v10993_v31, %v10886_v5  ;;  %v11039_v46 = vadd.f32 %v10994_v22, %v10887_v58  ;;  %v11040_v29 = vadd.f32 %v10995_v39, %v10888_v57  ;;  %v23552_v7 = vld [vmem:[#allocation65_spill] sm:$0xff]  ;;  %v23554_v5 = vld [vmem:[#allocation160_spill] sm:$0xff] }
 0x445   : > { %v11041_v23 = vadd.f32 %v10996_v13, %v10889_v41  ;;  %v11042_v10 = vadd.f32 %v10997_v60, %v10890_v56  ;;  %v11043_v53 = vadd.f32 %v10998_v1, %v10891_v28  ;;  %v11044_v61 = vadd.f32 %v10999_v11, %v10892_v0  ;;  %v23553_v13 = vld [vmem:[#allocation17_spill] sm:$0xff]  ;;  %v23557_v58 = vld [vmem:[#allocation68_spill] sm:$0xff] }
 0x446   : > { %v11045_v36 = vadd.f32 %v11000_v37, %v10893_v48  ;;  %v11046_v52 = vadd.f32 %v11001_v47, %v10894_v21  ;;  %v11047_v24 = vadd.f32 %v11002_v40, %v10895_v2  ;;  %v11050_v35 = vadd.f32 %v11005_v3, %v10898_v30  ;;  %v23555_v11 = vld [vmem:[#allocation313_spill] sm:$0xff]  ;;  %v23558_v57 = vld [vmem:[#allocation312_spill] sm:$0xff] }
 0x447   : > { %v11051_v19 = vadd.f32 %v11006_v38, %v10899_v62  ;;  %v11052_v4 = vadd.f32 %v11007_v44, %v10900_v6  ;;  %v11144_v42 = vmul.f32 %v23551_v59, %v23460_v8  ;;  %v11145_v51 = vmul.f32 %v23552_v7, %v23470_v49  ;;  %v23556_v44 = vld [vmem:[#allocation140_spill] sm:$0xff] }
 0x448   : > { %v11146_v34 = vmul.f32 %v23552_v7, %v23531_v15  ;;  %v11147_v60 = vmul.f32 %v23553_v13, %v23533_v50  ;;  %v11148_v37 = vmul.f32 %v23554_v5, %v23451_v45  ;;  %v11149_v3 = vmul.f32 %v23555_v11, %v23461_v17  ;;  %v23559_v28 = vld [vmem:[#allocation268_spill] sm:$0xff] }
 0x449   : > { %v11150_v38 = vmul.f32 %v23556_v44, %v23471_v14  ;;  %v11151_v47 = vmul.f32 %v23557_v58, %v23482_v16  ;;  %v11152_v41 = vmul.f32 %v23558_v57, %v23493_v18  ;;  %v11153_v56 = vmul.f32 %v23551_v59, %v23549_v63  ;;  %v23560_v30 = vld [vmem:[#allocation288_spill] sm:$0xff] }
 0x44a   : > { %v11154_v0 = vmul.f32 %v23552_v7, %v23559_v28  ;;  %v11155_v1 = vmul.f32 %v23552_v7, %v23538_v54  ;;  %v11156_v48 = vmul.f32 %v23553_v13, %v23539_v43  ;;  %v11157_v21 = vmul.f32 %v23554_v5, %v23540_v55  ;;  %v23561_v54 = vld [vmem:[#allocation271_spill] sm:$0xff]  ;;  %v23562_v5 = vld [vmem:[#allocation269_spill] sm:$0xff] }
 0x44b   : > { %v11158_v2 = vmul.f32 %v23555_v11, %v23550_v32  ;;  %v11159_v62 = vmul.f32 %v23556_v44, %v23560_v30  ;;  %v11189_v6 = vadd.f32 %v11144_v42, %v11037_v12  ;;  %v11190_v20 = vadd.f32 %v11145_v51, %v11038_v27  ;;  %v23563_v44 = vld [vmem:[#allocation224_spill] sm:$0xff]  ;;  %v23567_v51 = vld [vmem:[#allocation314_spill] sm:$0xff] }
 0x44c   : > { %v11191_v31 = vadd.f32 %v11146_v34, %v11039_v46  ;;  %v11192_v22 = vadd.f32 %v11147_v60, %v11040_v29  ;;  %v11193_v39 = vadd.f32 %v11148_v37, %v11041_v23  ;;  %v11194_v40 = vadd.f32 %v11149_v3, %v11042_v10  ;;  %v23564_v46 = vld [vmem:[#allocation143_spill] sm:$0xff]  ;;  %v23571_v34 = vld [vmem:[#allocation164_spill] sm:$0xff] }
 0x44d   : > { %v11195_v59 = vadd.f32 %v11150_v38, %v11043_v53  ;;  %v11196_v7 = vadd.f32 %v11151_v47, %v11044_v61  ;;  %v11197_v57 = vadd.f32 %v11152_v41, %v11045_v36  ;;  %v11198_v58 = vadd.f32 %v11153_v56, %v11046_v52  ;;  %v23565_v36 = vld [vmem:[#allocation30_spill] sm:$0xff]  ;;  %v23566_v53 = vld [vmem:[#allocation161_spill] sm:$0xff] }
 0x44e   : > { %v11199_v13 = vadd.f32 %v11154_v0, %v11047_v24  ;;  %v11200_v15 = vadd.f32 %v11155_v1, %v23561_v54  ;;  %v11201_v8 = vadd.f32 %v11156_v48, %v23562_v5  ;;  %v11202_v26 = vadd.f32 %v11157_v21, %v11050_v35  ;;  %v23569_v54 = vld [vmem:[#allocation79_spill] sm:$0xff]  ;;  %v23570_v24 = vld [vmem:[#allocation70_spill] sm:$0xff] }
 0x44f   : > { %v11203_v11 = vadd.f32 %v11158_v2, %v11051_v19  ;;  %v11204_v33 = vadd.f32 %v11159_v62, %v11052_v4  ;;  %v11296_v12 = vmul.f32 %v23563_v44, %v23470_v49  ;;  %v11297_v29 = vmul.f32 %v23564_v46, %v23481_v25  ;;  %v23568_v19 = vld [vmem:[#allocation31_spill] sm:$0xff]  ;;  %v23572_v41 = vld [vmem:[#allocation290_spill] sm:$0xff] }
 0x450   : > { %v11298_v23 = vmul.f32 %v23564_v46, %v23533_v50  ;;  %v11299_v52 = vmul.f32 %v23565_v36, %v23451_v45  ;;  %v11300_v10 = vmul.f32 %v23566_v53, %v23461_v17  ;;  %v11301_v35 = vmul.f32 %v23567_v51, %v23471_v14 }
 0x451   : > { %v11302_v27 = vmul.f32 %v23568_v19, %v23482_v16  ;;  %v11303_v61 = vmul.f32 %v23569_v54, %v23493_v18  ;;  %v11304_v4 = vmul.f32 %v23570_v24, %v23549_v63  ;;  %v11305_v42 = vmul.f32 %v23563_v44, %v23559_v28 }
 0x452   : > { %v11306_v60 = vmul.f32 %v23564_v46, %v23571_v34  ;;  %v11307_v37 = vmul.f32 %v23564_v46, %v23539_v43  ;;  %v11308_v3 = vmul.f32 %v23565_v36, %v23540_v55  ;;  %v11309_v38 = vmul.f32 %v23566_v53, %v23550_v32 }
 0x453   : > { %v11310_v47 = vmul.f32 %v23567_v51, %v23560_v30  ;;  %v11311_v56 = vmul.f32 %v23568_v19, %v23572_v41  ;;  %v11341_v0 = vadd.f32 %v11296_v12, %v11189_v6  ;;  %v11342_v1 = vadd.f32 %v11297_v29, %v11190_v20  ;;  %v23573_v51 = vld [vmem:[#allocation55_spill] sm:$0xff]  ;;  %v23574_v6 = vld [vmem:[#allocation132_spill] sm:$0xff] }
 0x454   : > { %v11343_v48 = vadd.f32 %v11298_v23, %v11191_v31  ;;  %v11344_v21 = vadd.f32 %v11299_v52, %v11192_v22  ;;  %v11345_v2 = vadd.f32 %v11300_v10, %v11193_v39  ;;  %v11346_v62 = vadd.f32 %v11301_v35, %v11194_v40  ;;  %v23580_v39 = vld [vmem:[#allocation99_spill] sm:$0xff]  ;;  %v23582_v10 = vld [vmem:[#allocation288_spill] sm:$0xff] }
 0x455   : > { %v11347_v5 = vadd.f32 %v11302_v27, %v11195_v59  ;;  %v11348_v46 = vadd.f32 %v11303_v61, %v11196_v7  ;;  %v11349_v44 = vadd.f32 %v11304_v4, %v11197_v57  ;;  %v11350_v24 = vadd.f32 %v11305_v42, %v11198_v58  ;;  %v23575_v59 = vld [vmem:[#allocation131_spill] sm:$0xff]  ;;  %v23576_v58 = vld [vmem:[#allocation316_spill] sm:$0xff]  ;;  %v23583_v61 = vld [vmem:[#allocation293_spill] sm:$0xff] }
 0x456   : > { %v11351_v36 = vadd.f32 %v11306_v60, %v11199_v13  ;;  %v11352_v54 = vadd.f32 %v11307_v37, %v11200_v15  ;;  %v11353_v43 = vadd.f32 %v11308_v3, %v11201_v8  ;;  %v11354_v53 = vadd.f32 %v11309_v38, %v11202_v26  ;;  %v23577_v8 = vld [vmem:[#allocation56_spill] sm:$0xff]  ;;  %v23581_v12 = vld [vmem:[#allocation243_spill] sm:$0xff] }
 0x457   : > { %v11355_v50 = vadd.f32 %v11310_v47, %v11203_v11  ;;  %v11356_v49 = vadd.f32 %v11311_v56, %v11204_v33  ;;  %v11448_v30 = vmul.f32 %v23573_v51, %v23481_v25  ;;  %v11449_v20 = vmul.f32 %v23574_v6, %v23492_v9  ;;  %v23578_v33 = vld [vmem:[#allocation51_spill] sm:$0xff]  ;;  %v23579_v11 = vld [vmem:[#allocation44_spill] sm:$0xff] }
 0x458   : > { %v11450_v31 = vmul.f32 %v23574_v6, %v23451_v45  ;;  %v11451_v7 = vmul.f32 %v23575_v59, %v23461_v17  ;;  %v11452_v57 = vmul.f32 %v23576_v58, %v23471_v14  ;;  %v11453_v26 = vmul.f32 %v23577_v8, %v23482_v16 }
 0x459   : > { %v11454_v15 = vmul.f32 %v23578_v33, %v23493_v18  ;;  %v11455_v22 = vmul.f32 %v23579_v11, %v23549_v63  ;;  %v11456_v40 = vmul.f32 %v23580_v39, %v23559_v28  ;;  %v11457_v13 = vmul.f32 %v23573_v51, %v23571_v34  ;;  %v23648_v34 = vld [vmem:[#allocation124_spill] sm:$0xff] }
 0x45a   : > { %v11458_v29 = vmul.f32 %v23574_v6, %v23581_v12  ;;  %v11459_v23 = vmul.f32 %v23574_v6, %v23540_v55  ;;  %v11460_v52 = vmul.f32 %v23575_v59, %v23550_v32  ;;  %v11461_v35 = vmul.f32 %v23576_v58, %v23582_v10  ;;  %v23585_v55 = vld [vmem:[#allocation96_spill] sm:$0xff] }
 0x45b   : > { %v11462_v27 = vmul.f32 %v23577_v8, %v23572_v41  ;;  %v11463_v4 = vmul.f32 %v23578_v33, %v23583_v61  ;;  %v11493_v42 = vadd.f32 %v11448_v30, %v11341_v0  ;;  %v11494_v60 = vadd.f32 %v11449_v20, %v11342_v1  ;;  %v23584_v8 = vld [vmem:[#allocation233_spill] sm:$0xff]  ;;  %v23586_v30 = vld [vmem:[#allocation267_spill] sm:$0xff]  ;;  %v23587_v1 = vld [vmem:[#allocation234_spill] sm:$0xff] }
 0x45c   : > { %v11495_v37 = vadd.f32 %v11450_v31, %v11343_v48  ;;  %v11496_v3 = vadd.f32 %v11451_v7, %v11344_v21  ;;  %v11497_v38 = vadd.f32 %v11452_v57, %v11345_v2  ;;  %v11498_v47 = vadd.f32 %v11453_v26, %v11346_v62  ;;  %v23588_v21 = vld [vmem:[#allocation235_spill] sm:$0xff]  ;;  %v23589_v62 = vld [vmem:[#allocation208_spill] sm:$0xff] }
 0x45d   : > { %v11499_v56 = vadd.f32 %v11454_v15, %v11347_v5  ;;  %v11500_v6 = vadd.f32 %v11455_v22, %v11348_v46  ;;  %v11501_v51 = vadd.f32 %v11456_v40, %v11349_v44  ;;  %v11502_v39 = vadd.f32 %v11457_v13, %v11350_v24  ;;  %v23590_v44 = vld [vmem:[#allocation50_spill] sm:$0xff]  ;;  %v23591_v5 = vld [vmem:[#allocation212_spill] sm:$0xff]  ;;  %v23595_v31 = vld [vmem:[#allocation247_spill] sm:$0xff] }
 0x45e   : > { %v11503_v59 = vadd.f32 %v11458_v29, %v11351_v36  ;;  %v11504_v11 = vadd.f32 %v11459_v23, %v11352_v54  ;;  %v11505_v19 = vadd.f32 %v11460_v52, %v11353_v43  ;;  %v11506_v58 = vadd.f32 %v11461_v35, %v11354_v53  ;;  %v23592_v43 = vld [vmem:[#allocation221_spill] sm:$0xff]  ;;  %v23594_v53 = vld [vmem:[#allocation246_spill] sm:$0xff]  ;;  %v23596_v7 = vld [vmem:[#allocation251_spill] sm:$0xff] }
 0x45f   : > { %v11507_v10 = vadd.f32 %v11462_v27, %v11355_v50  ;;  %v11508_v32 = vadd.f32 %v11463_v4, %v11356_v49  ;;  %v11538_v41 = vadd.f32 %v11493_v42, %v23584_v8  ;;  %v11539_v33 = vadd.f32 %v11494_v60, %v23585_v55  ;;  %v23593_v50 = vld [vmem:[#allocation244_spill] sm:$0xff]  ;;  %v23597_v8 = vld [vmem:[#allocation291_spill] sm:$0xff] }
 0x460   : > { %v11540_v0 = vadd.f32 %v11495_v37, %v23586_v30  ;;  %v11541_v48 = vadd.f32 %v11496_v3, %v23587_v1  ;;  %v11542_v2 = vadd.f32 %v11497_v38, %v23588_v21  ;;  %v11543_v46 = vadd.f32 %v11498_v47, %v23589_v62  ;;  %v23598_v15 = vld [vmem:[#allocation236_spill] sm:$0xff]  ;;  %v23599_v40 = vld [vmem:[#allocation211_spill] sm:$0xff]  ;;  %v23603_v47 = vld [vmem:[#allocation289_spill] sm:$0xff] }
 0x461   : > { %v11544_v24 = vadd.f32 %v11499_v56, %v23590_v44  ;;  %v11545_v54 = vadd.f32 %v11500_v6, %v23591_v5  ;;  %v11546_v36 = vadd.f32 %v11501_v51, %v23592_v43  ;;  %v11547_v49 = vadd.f32 %v11502_v39, %v23593_v50  ;;  %v23600_v27 = vld [vmem:[#allocation3_spill] sm:$0xff]  ;;  %v23605_v30 = vld [vmem:[#allocation245_spill] sm:$0xff]  ;;  %v23612_v50 = vld [vmem:[#allocation158_spill] sm:$0xff] }
 0x462   : > { %v11548_v20 = vadd.f32 %v11503_v59, %v23594_v53  ;;  %v11549_v55 = vadd.f32 %v11504_v11, %v23595_v31  ;;  %v11550_v57 = vadd.f32 %v11505_v19, %v23596_v7  ;;  %v11551_v26 = vadd.f32 %v11506_v58, %v23597_v8  ;;  %v23601_v60 = vld [vmem:[#allocation287_spill] sm:$0xff]  ;;  %v23609_v44 = vld [vmem:[#allocation249_spill] sm:$0xff]  ;;  %v23615_v7 = vld [vmem:[#allocation216_spill] sm:$0xff] }
 0x463   : > { %v11552_v22 = vadd.f32 %v11507_v10, %v23598_v15  ;;  %v11553_v13 = vadd.f32 %v11508_v32, %v23599_v40  ;;  %v11710_v29 = vcombine.low %v11538_v41, %v11539_v33  ;;  %v11711_v23 = vcombine.low %v11540_v0, %v11541_v48  ;;  %v23606_v0 = vld [vmem:[#allocation59_spill] sm:$0xff]  ;;  %v23613_v53 = vld [vmem:[#allocation149_spill] sm:$0xff]  ;;  %v23618_v15 = vld [vmem:[#allocation76_spill] sm:$0xff] }
 0x464   : > { %v11712_v52 = vcombine.low %v11542_v2, %v11543_v46  ;;  %v11713_v6 = vcombine.low %v11544_v24, %v11545_v54  ;;  %v11759_v35 = vcombine.low %v11546_v36, %v11547_v49  ;;  %v11760_v51 = vcombine.low %v11548_v20, %v11549_v55  ;;  %v23607_v2 = vld [vmem:[#allocation248_spill] sm:$0xff]  ;;  %v23608_v62 = vld [vmem:[#allocation91_spill] sm:$0xff]  ;;  %v23610_v24 = vld [vmem:[#allocation61_spill] sm:$0xff] }
 0x465   : > { %v11720_v39 = vrot.slane %v11710_v29, %v23600_v27  ;;  %v11727_v59 = vrot.slane %v11711_v23, %v23600_v27  ;;  %v11761_v4 = vcombine.low %v11550_v57, %v11551_v26  ;;  %v11762_v11 = vcombine.low %v11552_v22, %v11553_v13  ;;  %v23611_v36 = vld [vmem:[#allocation292_spill] sm:$0xff]  ;;  %v23614_v20 = vld [vmem:[#allocation157_spill] sm:$0xff]  ;;  %v23617_v26 = vld [vmem:[#allocation78_spill] sm:$0xff] }
 0x466   : > { %v11734_v19 = vrot.slane %v11712_v52, %v23600_v27  ;;  %v11741_v58 = vrot.slane %v11713_v6, %v23600_v27  ;;  %v11769_v10 = vrot.slane %v11759_v35, %v23600_v27  ;;  %v11776_v32 = vrot.slane %v11760_v51, %v23600_v27  ;;  %v23616_v57 = vld [vmem:[#allocation33_spill] sm:$0xff]  ;;  %v23619_v40 = vld [vmem:[#allocation152_spill] sm:$0xff]  ;;  %v23620_v13 = vld [vmem:[#allocation11_spill] sm:$0xff] }
 0x467   : > { %v11742_v41 = vcombine.low %v11720_v39, %v11727_v59  ;;  %v11783_v33 = vrot.slane %v11761_v4, %v23600_v27  ;;  %v11790_v42 = vrot.slane %v11762_v11, %v23600_v27  ;;  %v19904_v37 = vcombine.high %v23601_v60, %v23601_v60  ;;  %v23621_v52 = vld [vmem:[#allocation241_spill] sm:$0xff]  ;;  %v23622_v35 = vld [vmem:[#allocation296_spill] sm:$0xff]  ;;  %v23624_v11 = vld [vmem:[#allocation154_spill] sm:$0xff] }
 0x468   : > { %v11743_v3 = vcombine.low %v11734_v19, %v11741_v58  ;;  %v11791_v38 = vcombine.low %v11769_v10, %v11776_v32  ;;  %v19908_v56 = vcombine.high %v23603_v47, %v23603_v47  ;;  %v7861_v1 = vmul.f32 %v23606_v0, %v23605_v30  ;;  %v23623_v39 = vld [vmem:[#allocation300_spill] sm:$0xff]  ;;  %v23625_v58 = vld [vmem:[#allocation77_spill] sm:$0xff] }
 0x469   : > { %23602 = vst [vmem:[#allocation237_spill] sm:$0xff] %v19904_v37  ;;  %v11750_v48 = vrot.slane %v11742_v41, %v23600_v27  ;;  %v11792_v21 = vcombine.low %v11783_v33, %v11790_v42  ;;  %v7862_v46 = vmul.f32 %v23608_v62, %v23607_v2  ;;  %v7863_v5 = vmul.f32 %v23610_v24, %v23609_v44  ;;  %v23626_v32 = vld [vmem:[#allocation100_spill] sm:$0xff]  ;;  %v23627_v33 = vld [vmem:[#allocation95_spill] sm:$0xff] }
 0x46a   : > { %23604 = vst [vmem:[#allocation220_spill] sm:$0xff] %v19908_v56  ;;  %v11757_v54 = vrot.slane %v11743_v3, %v23600_v27  ;;  %v11799_v43 = vrot.slane %v11791_v38, %v23600_v27  ;;  %v7864_v49 = vmul.f32 %v23612_v50, %v23611_v36  ;;  %v7866_v31 = vmul.f32 %v23614_v20, %v23613_v53  ;;  %v23628_v3 = vld [vmem:[#allocation45_spill] sm:$0xff]  ;;  %v23629_v38 = vld [vmem:[#allocation71_spill] sm:$0xff]  ;;  %v23647_v12 = vld [vmem:[#allocation148_spill] sm:$0xff] }
 0x46b   : > { %v11806_v55 = vrot.slane %v11792_v21, %v23600_v27  ;;  %v7867_v8 = vmul.f32 %v23616_v57, %v23615_v7  ;;  %v7868_v22 = vmul.f32 %v23618_v15, %v23617_v26  ;;  %v7869_v29 = vmul.f32 %v23620_v13, %v23619_v40  ;;  %v23631_v21 = vld [vmem:[#allocation133_spill] sm:$0xff]  ;;  %v23634_v57 = vld [vmem:[#allocation242_spill] sm:$0xff] }
 0x46c   : > { %v11758_v23 = vcombine.low %v11750_v48, %v11757_v54  ;;  %v7870_v6 = vmul.f32 %v23606_v0, %v23621_v52  ;;  %v7871_v51 = vmul.f32 %v23608_v62, %v23622_v35  ;;  %v7872_v59 = vmul.f32 %v23610_v24, %v23623_v39  ;;  %v23630_v0 = vld [vmem:[#allocation13_spill] sm:$0xff]  ;;  %v23632_v54 = vld [vmem:[#allocation134_spill] sm:$0xff] }
 0x46d   : > { %v11807_v4 = vcombine.low %v11799_v43, %v11806_v55  ;;  %v7873_v19 = vmul.f32 %v23612_v50, %v23624_v11  ;;  %v7968_v10 = vmul.f32 %v23625_v58, %v23607_v2  ;;  %v7969_v41 = vmul.f32 %v23626_v32, %v23609_v44  ;;  %v23633_v2 = vld [vmem:[#allocation66_spill] sm:$0xff] }
 0x46e   : > { %v7970_v42 = vmul.f32 %v23627_v33, %v23611_v36  ;;  %v7971_v30 = vmul.f32 %v23629_v38, %v23628_v3  ;;  %v7973_v48 = vmul.f32 %v23630_v0, %v23615_v7  ;;  %v7974_v62 = vmul.f32 %v23631_v21, %v23617_v26 }
 0x46f   : > { %v11903_v24 = vpack.c.bf16 %v11807_v4, %v11758_v23  ;;  %v7975_v43 = vmul.f32 %v23632_v54, %v23619_v40  ;;  %v7976_v50 = vmul.f32 %v23633_v2, %v23621_v52  ;;  %v7977_v53 = vmul.f32 %v23625_v58, %v23622_v35 }
 0x470   : > { %v7978_v20 = vmul.f32 %v23626_v32, %v23623_v39  ;;  %v7979_v55 = vmul.f32 %v23627_v33, %v23624_v11  ;;  %v7980_v15 = vmul.f32 %v23629_v38, %v23634_v57  ;;  %v8013_v13 = vadd.f32 %v7968_v10, %v7861_v1  ;;  %v23636_v33 = vld [vmem:[#allocation85_spill] sm:$0xff]  ;;  %v23637_v1 = vld [vmem:[#allocation120_spill] sm:$0xff] }
 0x471   : > { %13595 = vmatmul.mubr.bf16.gmra.mrb[28].mxu0 %v11903_v24  ;;  %v8014_v23 = vadd.f32 %v7969_v41, %v7862_v46  ;;  %v8015_v4 = vadd.f32 %v7970_v42, %v7863_v5  ;;  %v8016_v0 = vadd.f32 %v7971_v30, %v7864_v49  ;;  %v8018_v21 = vadd.f32 %v7973_v48, %v7866_v31  ;;  %v23638_v46 = vld [vmem:[#allocation126_spill] sm:$0xff]  ;;  %v23639_v49 = vld [vmem:[#allocation139_spill] sm:$0xff] }
 0x472   : > { %v23635_v54 = vmov 0.0   ;;  %v8019_v2 = vadd.f32 %v7974_v62, %v7867_v8  ;;  %v8020_v58 = vadd.f32 %v7975_v43, %v7868_v22  ;;  %v8021_v27 = vadd.f32 %v7976_v50, %v7869_v29  ;;  %v23640_v31 = vld [vmem:[#allocation74_spill] sm:$0xff]  ;;  %v23641_v22 = vld [vmem:[#allocation80_spill] sm:$0xff]  ;;  %v23645_v48 = vld [vmem:[#allocation299_spill] sm:$0xff] }
 0x473   : > { %13598 = vmatprep.mubr.msk.bf16.mxu0 %vm13880_vm1, %v23635_v54  ;;  %v8022_v56 = vadd.f32 %v7977_v53, %v7870_v6  ;;  %v8023_v32 = vadd.f32 %v7978_v20, %v7871_v51  ;;  %v8024_v37 = vadd.f32 %v7979_v55, %v7872_v59  ;;  %v8025_v47 = vadd.f32 %v7980_v15, %v7873_v19  ;;  %v23642_v6 = vld [vmem:[#allocation101_spill] sm:$0xff]  ;;  %v23644_v19 = vld [vmem:[#allocation83_spill] sm:$0xff]  ;;  %v23646_v20 = vld [vmem:[#allocation222_spill] sm:$0xff] }
 0x474   : > { %v8120_v60 = vmul.f32 %v23636_v33, %v23609_v44  ;;  %v8121_v10 = vmul.f32 %v23637_v1, %v23611_v36  ;;  %v8122_v5 = vmul.f32 %v23638_v46, %v23628_v3  ;;  %v8123_v41 = vmul.f32 %v23640_v31, %v23639_v49  ;;  %v23643_v44 = vld [vmem:[#allocation60_spill] sm:$0xff] }
 0x475   : > { %v8124_v8 = vmul.f32 %v23640_v31, %v23615_v7  ;;  %v8125_v29 = vmul.f32 %v23641_v22, %v23617_v26  ;;  %v8126_v51 = vmul.f32 %v23642_v6, %v23619_v40  ;;  %v8127_v59 = vmul.f32 %v23643_v44, %v23621_v52 }
 0x476   : > { %v8128_v42 = vmul.f32 %v23644_v19, %v23622_v35  ;;  %v8129_v38 = vmul.f32 %v23636_v33, %v23623_v39  ;;  %v8130_v30 = vmul.f32 %v23637_v1, %v23624_v11  ;;  %v8131_v7 = vmul.f32 %v23638_v46, %v23634_v57 }
 0x477   : > { %v8132_v62 = vmul.f32 %v23640_v31, %v23645_v48  ;;  %v8165_v24 = vadd.f32 %v8120_v60, %v8013_v13  ;;  %v8166_v43 = vadd.f32 %v8121_v10, %v8014_v23  ;;  %v8167_v50 = vadd.f32 %v8122_v5, %v8015_v4  ;;  %v23649_v60 = vld [vmem:[#allocation82_spill] sm:$0xff]  ;;  %v23651_v4 = vld [vmem:[#allocation81_spill] sm:$0xff] }
 0x478   : > { %v8168_v53 = vadd.f32 %v8123_v41, %v8016_v0  ;;  %v8169_v55 = vadd.f32 %v8124_v8, %v23646_v20  ;;  %v8170_v15 = vadd.f32 %v8125_v29, %v8018_v21  ;;  %v8171_v22 = vadd.f32 %v8126_v51, %v8019_v2  ;;  %v23650_v23 = vld [vmem:[#allocation294_spill] sm:$0xff]  ;;  %v23656_v41 = vld [vmem:[#allocation305_spill] sm:$0xff] }
 0x479   : > { %v8172_v6 = vadd.f32 %v8127_v59, %v8020_v58  ;;  %v8173_v44 = vadd.f32 %v8128_v42, %v8021_v27  ;;  %v8174_v33 = vadd.f32 %v8129_v38, %v8022_v56  ;;  %v8175_v19 = vadd.f32 %v8130_v30, %v8023_v32  ;;  %v23652_v27 = vld [vmem:[#allocation5_spill] sm:$0xff]  ;;  %v23655_v58 = vld [vmem:[#allocation48_spill] sm:$0xff] }
 0x47a   : > { %v8176_v61 = vadd.f32 %v8131_v7, %v8024_v37  ;;  %v8177_v1 = vadd.f32 %v8132_v62, %v8025_v47  ;;  %v8272_v46 = vmul.f32 %v23647_v12, %v23611_v36  ;;  %v8273_v31 = vmul.f32 %v23648_v34, %v23628_v3  ;;  %v23653_v37 = vld [vmem:[#allocation104_spill] sm:$0xff]  ;;  %v23654_v36 = vld [vmem:[#allocation73_spill] sm:$0xff] }
 0x47b   : > { %v8274_v13 = vmul.f32 %v23649_v60, %v23639_v49  ;;  %v8275_v0 = vmul.f32 %v23651_v4, %v23650_v23  ;;  %v8276_v21 = vmul.f32 %v23651_v4, %v23617_v26  ;;  %v8277_v56 = vmul.f32 %v23652_v27, %v23619_v40 }
 0x47c   : > { %v8278_v47 = vmul.f32 %v23653_v37, %v23621_v52  ;;  %v8279_v2 = vmul.f32 %v23654_v36, %v23622_v35  ;;  %v8280_v32 = vmul.f32 %v23655_v58, %v23623_v39  ;;  %v8281_v10 = vmul.f32 %v23647_v12, %v23624_v11 }
 0x47d   : > { %v8282_v5 = vmul.f32 %v23648_v34, %v23634_v57  ;;  %v8283_v26 = vmul.f32 %v23649_v60, %v23645_v48  ;;  %v8284_v8 = vmul.f32 %v23651_v4, %v23656_v41  ;;  %v8317_v29 = vadd.f32 %v8272_v46, %v8165_v24  ;;  %v23657_v34 = vld [vmem:[#allocation151_spill] sm:$0xff]  ;;  %v23659_v24 = vld [vmem:[#allocation128_spill] sm:$0xff] }
 0x47e   : > { %v8318_v51 = vadd.f32 %v8273_v31, %v8166_v43  ;;  %v8319_v59 = vadd.f32 %v8274_v13, %v8167_v50  ;;  %v8320_v42 = vadd.f32 %v8275_v0, %v8168_v53  ;;  %v8321_v38 = vadd.f32 %v8276_v21, %v8169_v55  ;;  %v23658_v60 = vld [vmem:[#allocation7_spill] sm:$0xff] }
 0x47f   : > { %v8322_v30 = vadd.f32 %v8277_v56, %v8170_v15  ;;  %v8323_v7 = vadd.f32 %v8278_v47, %v8171_v22  ;;  %v8324_v62 = vadd.f32 %v8279_v2, %v8172_v6  ;;  %v8325_v20 = vadd.f32 %v8280_v32, %v8173_v44  ;;  %v23660_v50 = vld [vmem:[#allocation295_spill] sm:$0xff]  ;;  %v23662_v22 = vld [vmem:[#allocation141_spill] sm:$0xff] }
 0x480   : > { %v8326_v27 = vadd.f32 %v8281_v10, %v8174_v33  ;;  %v8327_v12 = vadd.f32 %v8282_v5, %v8175_v19  ;;  %v8328_v37 = vadd.f32 %v8283_v26, %v8176_v61  ;;  %v8329_v36 = vadd.f32 %v8284_v8, %v8177_v1  ;;  %v23661_v53 = vld [vmem:[#allocation47_spill] sm:$0xff] }
 0x481   : > { %v8424_v58 = vmul.f32 %v23657_v34, %v23628_v3  ;;  %v8425_v28 = vmul.f32 %v23658_v60, %v23639_v49  ;;  %v8426_v43 = vmul.f32 %v23659_v24, %v23650_v23  ;;  %v8427_v55 = vmul.f32 %v23661_v53, %v23660_v50  ;;  %v23663_v61 = vld [vmem:[#allocation147_spill] sm:$0xff]  ;;  %v23664_v3 = vld [vmem:[#allocation98_spill] sm:$0xff]  ;;  %v23665_v49 = vld [vmem:[#allocation97_spill] sm:$0xff] }
 0x482   : > { %v8428_v15 = vmul.f32 %v23661_v53, %v23619_v40  ;;  %v8429_v6 = vmul.f32 %v23662_v22, %v23621_v52  ;;  %v8430_v44 = vmul.f32 %v23663_v61, %v23622_v35  ;;  %v8431_v33 = vmul.f32 %v23664_v3, %v23623_v39  ;;  %v23666_v31 = vld [vmem:[#allocation255_spill] sm:$0xff] }
 0x483   : > { %v8432_v19 = vmul.f32 %v23665_v49, %v23624_v11  ;;  %v8433_v1 = vmul.f32 %v23657_v34, %v23634_v57  ;;  %v8434_v46 = vmul.f32 %v23658_v60, %v23645_v48  ;;  %v8435_v40 = vmul.f32 %v23659_v24, %v23656_v41  ;;  %v23678_v34 = vld [vmem:[#allocation264_spill] sm:$0xff]  ;;  %v23681_v60 = vld [vmem:[#allocation162_spill] sm:$0xff] }
 0x484   : > { %v8436_v13 = vmul.f32 %v23661_v53, %v23666_v31  ;;  %v20043_v23 = vadd.f32 %v8424_v58, %v8317_v29  ;;  %v20045_v4 = vadd.f32 %v8425_v28, %v8318_v51  ;;  %v20047_v0 = vadd.f32 %v8426_v43, %v8319_v59  ;;  %v23672_v29 = vld [vmem:[#allocation111_spill] sm:$0xff]  ;;  %v23673_v59 = vld [vmem:[#allocation110_spill] sm:$0xff]  ;;  %v23682_v43 = vld [vmem:[#allocation261_spill] sm:$0xff] }
 0x485   : > { %v20049_v21 = vadd.f32 %v8427_v55, %v8320_v42  ;;  %v20051_v56 = vadd.f32 %v8428_v15, %v8321_v38  ;;  %v20053_v47 = vadd.f32 %v8429_v6, %v8322_v30  ;;  %v20055_v2 = vadd.f32 %v8430_v44, %v8323_v7  ;;  %v23674_v38 = vld [vmem:[#allocation123_spill] sm:$0xff]  ;;  %v23675_v7 = vld [vmem:[#allocation150_spill] sm:$0xff]  ;;  %v23686_v6 = vld [vmem:[#allocation272_spill] sm:$0xff] }
 0x486   : > { %v20057_v32 = vadd.f32 %v8431_v33, %v8324_v62  ;;  %v20059_v10 = vadd.f32 %v8432_v19, %v8325_v20  ;;  %v20061_v5 = vadd.f32 %v8433_v1, %v8326_v27  ;;  %v20063_v26 = vadd.f32 %v8434_v46, %v8327_v12  ;;  %v23676_v20 = vld [vmem:[#allocation259_spill] sm:$0xff]  ;;  %v23677_v27 = vld [vmem:[#allocation113_spill] sm:$0xff]  ;;  %v23684_v53 = vld [vmem:[#allocation262_spill] sm:$0xff] }
 0x487   : > { %v20065_v28 = vadd.f32 %v8435_v40, %v8328_v37  ;;  %v20067_v8 = vadd.f32 %v8436_v13, %v8329_v36  ;;  %v8621_v51 = vmul.f32 %v23672_v29, %v23621_v52  ;;  %v8622_v42 = vmul.f32 %v23673_v59, %v23622_v35  ;;  %v23679_v37 = vld [vmem:[#allocation106_spill] sm:$0xff]  ;;  %v23680_v36 = vld [vmem:[#allocation257_spill] sm:$0xff]  ;;  %v23688_v33 = vld [vmem:[#allocation159_spill] sm:$0xff]  ;;  %v20102_v13 = vpop.f32.mrb[24].mxu0 }
 0x488   : > { %23667 = vst [vmem:[#allocation192_spill] sm:$0xff] %v20059_v10  ;;  %23668 = vst [vmem:[#allocation42_spill] sm:$0xff] %v20061_v5  ;;  %v8623_v30 = vmul.f32 %v23674_v38, %v23623_v39  ;;  %v8624_v62 = vmul.f32 %v23675_v7, %v23624_v11  ;;  %v8626_v12 = vmul.f32 %v23677_v27, %v23676_v20  ;;  %v23683_v52 = vld [vmem:[#allocation117_spill] sm:$0xff]  ;;  %v23685_v15 = vld [vmem:[#allocation306_spill] sm:$0xff] }
 0x489   : > { %23669 = vst [vmem:[#allocation109_spill] sm:$0xff] %v20063_v26  ;;  %23670 = vst [vmem:[#allocation265_spill] sm:$0xff] %v20065_v28  ;;  %v8627_v58 = vmul.f32 %v23679_v37, %v23678_v34  ;;  %v8628_v24 = vmul.f32 %v23681_v60, %v23680_v36  ;;  %v8629_v50 = vmul.f32 %v23683_v52, %v23682_v43  ;;  %v23687_v44 = vld [vmem:[#allocation274_spill] sm:$0xff]  ;;  %v23689_v19 = vld [vmem:[#allocation12_spill] sm:$0xff]  ;;  %v13592_v60 = vpop.f32.mrb[25].mxu0 }
 0x48a   : > { %23671 = vst [vmem:[#allocation273_spill] sm:$0xff] %v20067_v8  ;;  %v8630_v55 = vmul.f32 %v23672_v29, %v23684_v53  ;;  %v8631_v22 = vmul.f32 %v23673_v59, %v23685_v15  ;;  %v8632_v61 = vmul.f32 %v23674_v38, %v23686_v6  ;;  %v8633_v3 = vmul.f32 %v23675_v7, %v23687_v44  ;;  %v23690_v46 = vld [vmem:[#allocation10_spill] sm:$0xff]  ;;  %v23692_v29 = vld [vmem:[#allocation156_spill] sm:$0xff]  ;;  %v23695_v27 = vld [vmem:[#allocation163_spill] sm:$0xff] }
 0x48b   : > { %v8728_v49 = vmul.f32 %v23688_v33, %v23622_v35  ;;  %v8729_v1 = vmul.f32 %v23689_v19, %v23623_v39  ;;  %v8730_v40 = vmul.f32 %v23690_v46, %v23624_v11  ;;  %v13829_v31 = vld [vmem:[%s20846_s8] sm:$0xff]   ;;  %23691 = vst [vmem:[#allocation275_spill] sm:$0xff] %v20102_v13  ;;  %v8731_v59 = vmul.f32 %v23692_v29, %v23634_v57  ;;  %v23694_v35 = vld [vmem:[#allocation16_spill] sm:$0xff] }
 0x48c   : > { %v23693_v38 = vld [vmem:[#allocation146_spill] sm:$0xff]  ;;  %v8734_v20 = vmul.f32 %v23694_v35, %v23680_v36  ;;  %v8735_v37 = vmul.f32 %v23695_v27, %v23682_v43  ;;  %v8737_v18 = vmul.f32 %v23688_v33, %v23685_v15  ;;  %v8738_v13 = vmul.f32 %v23689_v19, %v23686_v6  ;;  %13603 = vmatpush3.bf16.msra.mxu0 %v13829_v31  ;;  %v23698_v35 = vld [vmem:[#allocation307_spill] sm:$0xff] }
 0x48d   : > { %v8733_v7 = vmul.f32 %v23693_v38, %v23678_v34  ;;  %v23696_v52 = vld [vmem:[#allocation94_spill] sm:$0xff]  ;;  %v8739_v16 = vmul.f32 %v23690_v46, %v23687_v44  ;;  %v13830_v34 = vld [vmem:[%s20846_s8 + $0x8] sm:$0xff]   ;;  %v20123_v38 = vpop.f32.mrb[26].mxu0  ;;  %v8740_v27 = vmul.f32 %v23692_v29, %v23698_v35  ;;  %v8773_v60 = vadd.f32 %v8728_v49, %v8621_v51  ;;  %13604 = vmatprep.subr.bf16.mxu0 %v23635_v54 }
 0x48e   : > { %v8736_v63 = vmul.f32 %v23696_v52, %v23684_v53  ;;  %23697 = vst [vmem:[#allocation277_spill] sm:$0xff] %v20123_v38  ;;  %v8774_v52 = vadd.f32 %v8729_v1, %v8622_v42  ;;  %v8775_v14 = vadd.f32 %v8730_v40, %v8623_v30  ;;  %v13593_v33 = vpop.f32.mrb[27].mxu0  ;;  %v8776_v19 = vadd.f32 %v8731_v59, %v8624_v62  ;;  %v23699_v38 = vld [vmem:[#allocation36_spill] sm:$0xff]  ;;  %v23700_v29 = vld [vmem:[#allocation6_spill] sm:$0xff]  ;;  %v23707_v1 = vld [vmem:[#allocation309_spill] sm:$0xff] }
 0x48f   : > { %v8778_v17 = vadd.f32 %v8733_v7, %v8626_v12  ;;  %v8779_v45 = vadd.f32 %v8734_v20, %v8627_v58  ;;  %v8780_v46 = vadd.f32 %v8735_v37, %v8628_v24  ;;  %v8782_v8 = vadd.f32 %v8737_v18, %v8630_v55  ;;  %v23701_v42 = vld [vmem:[#allocation4_spill] sm:$0xff]  ;;  %v23704_v58 = vld [vmem:[#allocation165_spill] sm:$0xff]  ;;  %v23705_v24 = vld [vmem:[#allocation166_spill] sm:$0xff] }
 0x490   : > { %v8781_v31 = vadd.f32 %v8736_v63, %v8629_v50  ;;  %v8783_v28 = vadd.f32 %v8738_v13, %v8631_v22  ;;  %v8784_v26 = vadd.f32 %v8739_v16, %v8632_v61  ;;  %v8785_v5 = vadd.f32 %v8740_v27, %v8633_v3  ;;  %13605 = vmatpush3.bf16.msra.mxu0 %v13830_v34  ;;  %v13831_v62 = vld [vmem:[%s20846_s8 + $0x10] sm:$0xff]   ;;  %v23702_v63 = vld [vmem:[#allocation153_spill] sm:$0xff]  ;;  %v23706_v55 = vld [vmem:[#allocation75_spill] sm:$0xff] }
 0x491   : > { %v8880_v10 = vmul.f32 %v23699_v38, %v23623_v39  ;;  %v8881_v51 = vmul.f32 %v23700_v29, %v23624_v11  ;;  %v8882_v30 = vmul.f32 %v23701_v42, %v23634_v57  ;;  %v8883_v18 = vmul.f32 %v23702_v63, %v23645_v48  ;;  %v23703_v16 = vld [vmem:[#allocation105_spill] sm:$0xff]  ;;  %13606 = vmatprep.subr.bf16.mxu0 %v23635_v54 }
 0x492   : > { %v8885_v12 = vmul.f32 %v23703_v16, %v23680_v36  ;;  %v8886_v39 = vmul.f32 %v23704_v58, %v23682_v43  ;;  %v8887_v50 = vmul.f32 %v23705_v24, %v23684_v53  ;;  %v8888_v22 = vmul.f32 %v23706_v55, %v23685_v15 }
 0x493   : > { %v8889_v61 = vmul.f32 %v23699_v38, %v23686_v6  ;;  %v8890_v3 = vmul.f32 %v23700_v29, %v23687_v44  ;;  %v8891_v49 = vmul.f32 %v23701_v42, %v23698_v35  ;;  %v8892_v40 = vmul.f32 %v23702_v63, %v23707_v1  ;;  %v13832_v38 = vld [vmem:[%s20846_s8 + $0x18] sm:$0xff]  }
 0x494   : > { %v8925_v13 = vadd.f32 %v8880_v10, %v8773_v60  ;;  %v8926_v59 = vadd.f32 %v8881_v51, %v8774_v52  ;;  %v8927_v7 = vadd.f32 %v8882_v30, %v8775_v14  ;;  %v8928_v20 = vadd.f32 %v8883_v18, %v8776_v19  ;;  %13607 = vmatpush3.bf16.msra.mxu0 %v13831_v62  ;;  %v23708_v10 = vld [vmem:[#allocation108_spill] sm:$0xff]  ;;  %v23715_v30 = vld [vmem:[#allocation54_spill] sm:$0xff] }
 0x495   : > { %v8930_v37 = vadd.f32 %v8885_v12, %v8778_v17  ;;  %v8931_v34 = vadd.f32 %v8886_v39, %v8779_v45  ;;  %v8932_v27 = vadd.f32 %v8887_v50, %v8780_v46  ;;  %v8933_v33 = vadd.f32 %v8888_v22, %v8781_v31  ;;  %13608 = vmatprep.subr.bf16.mxu0 %v23635_v54  ;;  %v23709_v14 = vld [vmem:[#allocation32_spill] sm:$0xff]  ;;  %v23710_v45 = vld [vmem:[#allocation57_spill] sm:$0xff] }
 0x496   : > { %v8934_v29 = vadd.f32 %v8889_v61, %v8782_v8  ;;  %v8935_v16 = vadd.f32 %v8890_v3, %v8783_v28  ;;  %v8936_v58 = vadd.f32 %v8891_v49, %v8784_v26  ;;  %v8937_v42 = vadd.f32 %v8892_v40, %v8785_v5  ;;  %v23711_v19 = vld [vmem:[#allocation72_spill] sm:$0xff]  ;;  %v23712_v26 = vld [vmem:[#allocation39_spill] sm:$0xff]  ;;  %v23716_v61 = vld [vmem:[#allocation266_spill] sm:$0xff] }
 0x497   : > { %v9032_v60 = vmul.f32 %v23708_v10, %v23624_v11  ;;  %v9033_v17 = vmul.f32 %v23709_v14, %v23634_v57  ;;  %v9034_v52 = vmul.f32 %v23710_v45, %v23645_v48  ;;  %v9035_v46 = vmul.f32 %v23711_v19, %v23656_v41  ;;  %v23713_v5 = vld [vmem:[#allocation167_spill] sm:$0xff]  ;;  %v23714_v11 = vld [vmem:[#allocation169_spill] sm:$0xff] }
 0x498   : > { %v9036_v8 = vmul.f32 %v23711_v19, %v23680_v36  ;;  %v9037_v28 = vmul.f32 %v23712_v26, %v23682_v43  ;;  %v9038_v31 = vmul.f32 %v23713_v5, %v23684_v53  ;;  %v9039_v51 = vmul.f32 %v23714_v11, %v23685_v15  ;;  %13609 = vmatpush3.bf16.msra.mxu0 %v13832_v38  ;;  %v13833_v36 = vld [vmem:[%s20846_s8 + $0x20] sm:$0xff]  }
 0x499   : > { %v9040_v62 = vmul.f32 %v23715_v30, %v23686_v6  ;;  %v9041_v63 = vmul.f32 %v23708_v10, %v23687_v44  ;;  %v9042_v18 = vmul.f32 %v23709_v14, %v23698_v35  ;;  %v9043_v12 = vmul.f32 %v23710_v45, %v23707_v1  ;;  %13610 = vmatprep.subr.bf16.mxu0 %v23635_v54  ;;  %v23717_v45 = vld [vmem:[#allocation9_spill] sm:$0xff] }
 0x49a   : > { %v9044_v39 = vmul.f32 %v23711_v19, %v23481_v25  ;;  %v9077_v24 = vadd.f32 %v9032_v60, %v8925_v13  ;;  %v9078_v50 = vadd.f32 %v9033_v17, %v8926_v59  ;;  %v9079_v55 = vadd.f32 %v9034_v52, %v8927_v7  ;;  %v13834_v13 = vld [vmem:[%s20846_s8 + $0x28] sm:$0xff]   ;;  %v23718_v59 = vld [vmem:[#allocation122_spill] sm:$0xff]  ;;  %v23724_v60 = vld [vmem:[#allocation112_spill] sm:$0xff] }
 0x49b   : > { %v9080_v22 = vadd.f32 %v9035_v46, %v8928_v20  ;;  %v9081_v3 = vadd.f32 %v9036_v8, %v23716_v61  ;;  %v9082_v49 = vadd.f32 %v9037_v28, %v8930_v37  ;;  %v9083_v40 = vadd.f32 %v9038_v31, %v8931_v34  ;;  %v23719_v20 = vld [vmem:[#allocation84_spill] sm:$0xff]  ;;  %v23720_v34 = vld [vmem:[#allocation63_spill] sm:$0xff] }
 0x49c   : > { %v9084_v38 = vadd.f32 %v9039_v51, %v8932_v27  ;;  %v9085_v10 = vadd.f32 %v9040_v62, %v8933_v33  ;;  %v9086_v14 = vadd.f32 %v9041_v63, %v8934_v29  ;;  %v9087_v26 = vadd.f32 %v9042_v18, %v8935_v16  ;;  %13611 = vmatpush3.bf16.msra.mxu0 %v13833_v36  ;;  %v23721_v33 = vld [vmem:[#allocation119_spill] sm:$0xff]  ;;  %v23725_v28 = vld [vmem:[#allocation260_spill] sm:$0xff] }
 0x49d   : > { %v9088_v5 = vadd.f32 %v9043_v12, %v8936_v58  ;;  %v9089_v11 = vadd.f32 %v9044_v39, %v8937_v42  ;;  %v9184_v30 = vmul.f32 %v23717_v45, %v23634_v57  ;;  %v9185_v7 = vmul.f32 %v23718_v59, %v23645_v48  ;;  %13612 = vmatprep.subr.bf16.mxu0 %v23635_v54  ;;  %v23722_v57 = vld [vmem:[#allocation170_spill] sm:$0xff]  ;;  %v23723_v58 = vld [vmem:[#allocation171_spill] sm:$0xff]  ;;  %v13835_v62 = vld [vmem:[%s20846_s8 + $0x30] sm:$0xff]  }
 0x49e   : > { %v9186_v37 = vmul.f32 %v23719_v20, %v23656_v41  ;;  %v9188_v27 = vmul.f32 %v23720_v34, %v23682_v43  ;;  %v9189_v29 = vmul.f32 %v23721_v33, %v23684_v53  ;;  %v9190_v16 = vmul.f32 %v23722_v57, %v23685_v15  ;;  %v23742_v33 = vld [vmem:[#allocation278_spill] sm:$0xff] }
 0x49f   : > { %v9191_v42 = vmul.f32 %v23723_v58, %v23686_v6  ;;  %v9192_v48 = vmul.f32 %v23724_v60, %v23687_v44  ;;  %v9193_v41 = vmul.f32 %v23717_v45, %v23698_v35  ;;  %v9194_v43 = vmul.f32 %v23718_v59, %v23707_v1  ;;  %v23739_v59 = vld [vmem:[#allocation175_spill] sm:$0xff]  ;;  %v23745_v58 = vld [vmem:[#allocation172_spill] sm:$0xff]  ;;  %v23746_v60 = vld [vmem:[#allocation253_spill] sm:$0xff] }
 0x4a0   : > { %v9195_v17 = vmul.f32 %v23719_v20, %v23481_v25  ;;  %v9196_v52 = vmul.f32 %v23720_v34, %v23492_v9  ;;  %v9229_v19 = vadd.f32 %v9184_v30, %v9077_v24  ;;  %v9230_v46 = vadd.f32 %v9185_v7, %v9078_v50  ;;  %13613 = vmatpush3.bf16.msra.mxu0 %v13834_v13  ;;  %v23738_v30 = vld [vmem:[#allocation173_spill] sm:$0xff]  ;;  %v23741_v34 = vld [vmem:[#allocation263_spill] sm:$0xff] }
 0x4a1   : > { %v9231_v8 = vadd.f32 %v9186_v37, %v9079_v55  ;;  %v9232_v31 = vadd.f32 %v23725_v28, %v9080_v22  ;;  %v9233_v51 = vadd.f32 %v9188_v27, %v9081_v3  ;;  %v9234_v63 = vadd.f32 %v9189_v29, %v9082_v49  ;;  %13614 = vmatprep.subr.bf16.mxu0 %v23635_v54  ;;  %v23740_v20 = vld [vmem:[#allocation121_spill] sm:$0xff]  ;;  %v23743_v29 = vld [vmem:[#allocation86_spill] sm:$0xff]  ;;  %v23752_v28 = vld [vmem:[#allocation256_spill] sm:$0xff] }
 0x4a2   : > { %v9235_v18 = vadd.f32 %v9190_v16, %v9083_v40  ;;  %v9236_v36 = vadd.f32 %v9191_v42, %v9084_v38  ;;  %v9237_v12 = vadd.f32 %v9192_v48, %v9085_v10  ;;  %v9238_v39 = vadd.f32 %v9193_v41, %v9086_v14  ;;  %v23729_v10 = vld [vmem:[#allocation42_spill] sm:$0xff]  ;;  %v23731_v14 = vld [vmem:[#allocation109_spill] sm:$0xff] }
 0x4a3   : > { %v9239_v61 = vadd.f32 %v9194_v43, %v9087_v26  ;;  %v9240_v9 = vadd.f32 %v9195_v17, %v9088_v5  ;;  %v9241_v24 = vadd.f32 %v9196_v52, %v9089_v11  ;;  %v20225_v50 = vadd.f32 %v9229_v19, %v20043_v23  ;;  %v23733_v26 = vld [vmem:[#allocation265_spill] sm:$0xff]  ;;  %v23744_v16 = vld [vmem:[#allocation250_spill] sm:$0xff]  ;;  %v23749_v43 = vld [vmem:[#allocation87_spill] sm:$0xff] }
 0x4a4   : > { %v20228_v55 = vadd.f32 %v9230_v46, %v20045_v4  ;;  %v20231_v22 = vadd.f32 %v9231_v8, %v20047_v0  ;;  %v20234_v3 = vadd.f32 %v9232_v31, %v20049_v21  ;;  %v20237_v49 = vadd.f32 %v9233_v51, %v20051_v56  ;;  %13615 = vmatpush3.bf16.msra.mxu0 %v13835_v62  ;;  %v13836_v4 = vld [vmem:[%s20846_s8 + $0x38] sm:$0xff]   ;;  %v23727_v0 = vld [vmem:[#allocation192_spill] sm:$0xff]  ;;  %v23748_v41 = vld [vmem:[#allocation254_spill] sm:$0xff] }
 0x4a5   : > { %v20240_v40 = vadd.f32 %v9234_v63, %v20053_v47  ;;  %v20243_v38 = vadd.f32 %v9235_v18, %v20055_v2  ;;  %v20246_v23 = vadd.f32 %v9236_v36, %v20057_v32  ;;  %v20252_v21 = vadd.f32 %v9237_v12, %v23727_v0  ;;  %13616 = vmatprep.subr.bf16.mxu0 %v23635_v54  ;;  %v23735_v32 = vld [vmem:[#allocation273_spill] sm:$0xff]  ;;  %v23750_v52 = vld [vmem:[#allocation258_spill] sm:$0xff]  ;;  %v23751_v46 = vld [vmem:[#allocation252_spill] sm:$0xff] }
 0x4a6   : > { %v20255_v56 = vadd.f32 %v9238_v39, %v23729_v10  ;;  %v20258_v47 = vadd.f32 %v9239_v61, %v23731_v14  ;;  %v20261_v2 = vadd.f32 %v9240_v9, %v23733_v26  ;;  %v20265_v5 = vadd.f32 %v9241_v24, %v23735_v32  ;;  %v23737_v11 = vld [vmem:[#allocation125_spill] sm:$0xff]  ;;  %v23753_v51 = vld [vmem:[#allocation227_spill] sm:$0xff]  ;;  %v23755_v36 = vld [vmem:[#allocation178_spill] sm:$0xff] }
 0x4a7   : > { %23726 = vst [vmem:[#allocation238_spill] sm:$0xff] %v20246_v23  ;;  %23728 = vst [vmem:[#allocation239_spill] sm:$0xff] %v20252_v21  ;;  %v9381_v45 = vmul.f32 %v23737_v11, %v23684_v53  ;;  %v9382_v13 = vmul.f32 %v23738_v30, %v23685_v15  ;;  %v9383_v7 = vmul.f32 %v23739_v59, %v23686_v6  ;;  %v23747_v53 = vld [vmem:[#allocation174_spill] sm:$0xff]  ;;  %v23754_v63 = vld [vmem:[#allocation69_spill] sm:$0xff] }
 0x4a8   : > { %23730 = vst [vmem:[#allocation226_spill] sm:$0xff] %v20255_v56  ;;  %23732 = vst [vmem:[#allocation240_spill] sm:$0xff] %v20258_v47  ;;  %v9384_v37 = vmul.f32 %v23740_v20, %v23687_v44  ;;  %v9385_v27 = vmul.f32 %v23740_v20, %v23741_v34  ;;  %v9386_v57 = vmul.f32 %v23743_v29, %v23742_v33  ;;  %13617 = vmatpush3.bf16.msra.mxu0 %v13836_v4  ;;  %v23756_v39 = vld [vmem:[#allocation180_spill] sm:$0xff]  ;;  %v23757_v9 = vld [vmem:[#allocation14_spill] sm:$0xff] }
 0x4a9   : > { %23734 = vst [vmem:[#allocation223_spill] sm:$0xff] %v20261_v2  ;;  %23736 = vst [vmem:[#allocation210_spill] sm:$0xff] %v20265_v5  ;;  %v9387_v42 = vmul.f32 %v23745_v58, %v23744_v16  ;;  %v9388_v48 = vmul.f32 %v23747_v53, %v23746_v60  ;;  %v9389_v17 = vmul.f32 %v23749_v43, %v23748_v41  ;;  %v23758_v0 = vld [vmem:[#allocation89_spill] sm:$0xff] }
 0x4aa   : > { %v9390_v19 = vmul.f32 %v23737_v11, %v23750_v52  ;;  %v9391_v8 = vmul.f32 %v23738_v30, %v23751_v46  ;;  %v9392_v31 = vmul.f32 %v23739_v59, %v23752_v28  ;;  %v9393_v62 = vmul.f32 %v23740_v20, %v23753_v51  ;;  %v23759_v14 = vld [vmem:[#allocation177_spill] sm:$0xff]  ;;  %v23761_v11 = vld [vmem:[#allocation88_spill] sm:$0xff] }
 0x4ab   : > { %v9488_v18 = vmul.f32 %v23754_v63, %v23685_v15  ;;  %v9489_v12 = vmul.f32 %v23755_v36, %v23686_v6  ;;  %v9490_v61 = vmul.f32 %v23756_v39, %v23687_v44  ;;  %v9491_v24 = vmul.f32 %v23757_v9, %v23698_v35  ;;  %v23760_v15 = vld [vmem:[#allocation179_spill] sm:$0xff] }
 0x4ac   : > { %v9492_v4 = vmul.f32 %v23757_v9, %v23742_v33  ;;  %v9493_v10 = vmul.f32 %v23758_v0, %v23744_v16  ;;  %v9494_v26 = vmul.f32 %v23759_v14, %v23746_v60  ;;  %v9495_v32 = vmul.f32 %v23760_v15, %v23748_v41  ;;  %v23762_v33 = vld [vmem:[#allocation315_spill] sm:$0xff] }
 0x4ad   : > { %v9496_v30 = vmul.f32 %v23761_v11, %v23750_v52  ;;  %v9497_v59 = vmul.f32 %v23754_v63, %v23751_v46  ;;  %v9498_v20 = vmul.f32 %v23755_v36, %v23752_v28  ;;  %v9499_v34 = vmul.f32 %v23756_v39, %v23753_v51  ;;  %v23763_v36 = vld [vmem:[#allocation92_spill] sm:$0xff]  ;;  %v23764_v39 = vld [vmem:[#allocation182_spill] sm:$0xff] }
 0x4ae   : > { %v9500_v29 = vmul.f32 %v23757_v9, %v23762_v33  ;;  %v9533_v58 = vadd.f32 %v9488_v18, %v9381_v45  ;;  %v9534_v53 = vadd.f32 %v9489_v12, %v9382_v13  ;;  %v9535_v43 = vadd.f32 %v9490_v61, %v9383_v7  ;;  %v23765_v45 = vld [vmem:[#allocation184_spill] sm:$0xff]  ;;  %v23766_v7 = vld [vmem:[#allocation90_spill] sm:$0xff] }
 0x4af   : > { %v9536_v0 = vadd.f32 %v9491_v24, %v9384_v37  ;;  %v9537_v14 = vadd.f32 %v9492_v4, %v9385_v27  ;;  %v9538_v15 = vadd.f32 %v9493_v10, %v9386_v57  ;;  %v9539_v54 = vadd.f32 %v9494_v26, %v9387_v42  ;;  %v23767_v57 = vld [vmem:[#allocation8_spill] sm:$0xff] }
 0x4b0   : > { %v9540_v11 = vadd.f32 %v9495_v32, %v9388_v48  ;;  %v9541_v5 = vadd.f32 %v9496_v30, %v9389_v17  ;;  %v9542_v2 = vadd.f32 %v9497_v59, %v9390_v19  ;;  %v9543_v63 = vadd.f32 %v9498_v20, %v9391_v8  ;;  %v23768_v48 = vld [vmem:[#allocation181_spill] sm:$0xff]  ;;  %v23770_v8 = vld [vmem:[#allocation107_spill] sm:$0xff]  ;;  %v23771_v12 = vld [vmem:[#allocation268_spill] sm:$0xff] }
 0x4b1   : > { %v9544_v47 = vadd.f32 %v9499_v34, %v9392_v31  ;;  %v9545_v56 = vadd.f32 %v9500_v29, %v9393_v62  ;;  %v9640_v21 = vmul.f32 %v23763_v36, %v23686_v6  ;;  %v9641_v23 = vmul.f32 %v23764_v39, %v23687_v44  ;;  %v23769_v6 = vld [vmem:[#allocation183_spill] sm:$0xff] }
 0x4b2   : > { %v9642_v13 = vmul.f32 %v23765_v45, %v23698_v35  ;;  %v9643_v37 = vmul.f32 %v23766_v7, %v23707_v1  ;;  %v9644_v27 = vmul.f32 %v23766_v7, %v23744_v16  ;;  %v9645_v42 = vmul.f32 %v23767_v57, %v23746_v60 }
 0x4b3   : > { %v9646_v17 = vmul.f32 %v23768_v48, %v23748_v41  ;;  %v9647_v19 = vmul.f32 %v23769_v6, %v23750_v52  ;;  %v9648_v31 = vmul.f32 %v23770_v8, %v23751_v46  ;;  %v9649_v62 = vmul.f32 %v23763_v36, %v23752_v28 }
 0x4b4   : > { %v9650_v18 = vmul.f32 %v23764_v39, %v23753_v51  ;;  %v9651_v16 = vmul.f32 %v23765_v45, %v23762_v33  ;;  %v9652_v61 = vmul.f32 %v23766_v7, %v23771_v12  ;;  %v9685_v9 = vadd.f32 %v9640_v21, %v9533_v58  ;;  %v23772_v39 = vld [vmem:[#allocation35_spill] sm:$0xff]  ;;  %v23773_v45 = vld [vmem:[#allocation186_spill] sm:$0xff]  ;;  %v23774_v21 = vld [vmem:[#allocation188_spill] sm:$0xff] }
 0x4b5   : > { %v9686_v24 = vadd.f32 %v9641_v23, %v9534_v53  ;;  %v9687_v4 = vadd.f32 %v9642_v13, %v9535_v43  ;;  %v9688_v10 = vadd.f32 %v9643_v37, %v9536_v0  ;;  %v9689_v26 = vadd.f32 %v9644_v27, %v9537_v14  ;;  %v23775_v58 = vld [vmem:[#allocation93_spill] sm:$0xff]  ;;  %v23779_v0 = vld [vmem:[#allocation102_spill] sm:$0xff] }
 0x4b6   : > { %v9690_v32 = vadd.f32 %v9645_v42, %v9538_v15  ;;  %v9691_v30 = vadd.f32 %v9646_v17, %v9539_v54  ;;  %v9692_v59 = vadd.f32 %v9647_v19, %v9540_v11  ;;  %v9693_v20 = vadd.f32 %v9648_v31, %v9541_v5 }
 0x4b7   : > { %v9694_v34 = vadd.f32 %v9649_v62, %v9542_v2  ;;  %v9695_v29 = vadd.f32 %v9650_v18, %v9543_v63  ;;  %v9696_v36 = vadd.f32 %v9651_v16, %v9544_v47  ;;  %v9697_v57 = vadd.f32 %v9652_v61, %v9545_v56  ;;  %v23776_v2 = vld [vmem:[#allocation34_spill] sm:$0xff]  ;;  %v23777_v56 = vld [vmem:[#allocation185_spill] sm:$0xff]  ;;  %v23780_v63 = vld [vmem:[#allocation164_spill] sm:$0xff] }
 0x4b8   : > { %v9792_v48 = vmul.f32 %v23772_v39, %v23687_v44  ;;  %v9793_v6 = vmul.f32 %v23773_v45, %v23698_v35  ;;  %v9794_v23 = vmul.f32 %v23774_v21, %v23707_v1  ;;  %v9795_v53 = vmul.f32 %v23775_v58, %v23481_v25  ;;  %v23778_v44 = vld [vmem:[#allocation187_spill] sm:$0xff] }
 0x4b9   : > { %v9796_v54 = vmul.f32 %v23775_v58, %v23746_v60  ;;  %v9797_v5 = vmul.f32 %v23776_v2, %v23748_v41  ;;  %v9798_v47 = vmul.f32 %v23777_v56, %v23750_v52  ;;  %v9799_v43 = vmul.f32 %v23778_v44, %v23751_v46 }
 0x4ba   : > { %v9800_v14 = vmul.f32 %v23779_v0, %v23752_v28  ;;  %v9801_v15 = vmul.f32 %v23772_v39, %v23753_v51  ;;  %v9802_v11 = vmul.f32 %v23773_v45, %v23762_v33  ;;  %v9803_v60 = vmul.f32 %v23774_v21, %v23771_v12  ;;  %v23781_v45 = vld [vmem:[#allocation127_spill] sm:$0xff]  ;;  %v23782_v21 = vld [vmem:[#allocation190_spill] sm:$0xff] }
 0x4bb   : > { %v9804_v13 = vmul.f32 %v23775_v58, %v23780_v63  ;;  %v9837_v7 = vadd.f32 %v9792_v48, %v9685_v9  ;;  %v9838_v37 = vadd.f32 %v9793_v6, %v9686_v24  ;;  %v9839_v27 = vadd.f32 %v9794_v23, %v9687_v4  ;;  %v23783_v9 = vld [vmem:[#allocation193_spill] sm:$0xff]  ;;  %v23784_v4 = vld [vmem:[#allocation116_spill] sm:$0xff]  ;;  %v23790_v58 = vld [vmem:[#allocation279_spill] sm:$0xff] }
 0x4bc   : > { %v9840_v42 = vadd.f32 %v9795_v53, %v9688_v10  ;;  %v9841_v17 = vadd.f32 %v9796_v54, %v9689_v26  ;;  %v9842_v19 = vadd.f32 %v9797_v5, %v9690_v32  ;;  %v9843_v8 = vadd.f32 %v9798_v47, %v9691_v30  ;;  %v23785_v26 = vld [vmem:[#allocation115_spill] sm:$0xff]  ;;  %v23786_v30 = vld [vmem:[#allocation189_spill] sm:$0xff] }
 0x4bd   : > { %v9844_v31 = vadd.f32 %v9799_v43, %v9692_v59  ;;  %v9845_v62 = vadd.f32 %v9800_v14, %v9693_v20  ;;  %v9846_v18 = vadd.f32 %v9801_v15, %v9694_v34  ;;  %v9847_v16 = vadd.f32 %v9802_v11, %v9695_v29  ;;  %v23787_v20 = vld [vmem:[#allocation191_spill] sm:$0xff] }
 0x4be   : > { %v9848_v61 = vadd.f32 %v9803_v60, %v9696_v36  ;;  %v9849_v39 = vadd.f32 %v9804_v13, %v9697_v57  ;;  %v9944_v2 = vmul.f32 %v23781_v45, %v23698_v35  ;;  %v9945_v56 = vmul.f32 %v23782_v21, %v23707_v1  ;;  %v23788_v35 = vld [vmem:[#allocation118_spill] sm:$0xff]  ;;  %v23789_v36 = vld [vmem:[#allocation243_spill] sm:$0xff] }
 0x4bf   : > { %v9946_v24 = vmul.f32 %v23783_v9, %v23481_v25  ;;  %v9948_v10 = vmul.f32 %v23784_v4, %v23748_v41  ;;  %v9949_v32 = vmul.f32 %v23785_v26, %v23750_v52  ;;  %v9950_v59 = vmul.f32 %v23786_v30, %v23751_v46  ;;  %v23808_v26 = vld [vmem:[#allocation230_spill] sm:$0xff] }
 0x4c0   : > { %v9951_v34 = vmul.f32 %v23787_v20, %v23752_v28  ;;  %v9952_v29 = vmul.f32 %v23788_v35, %v23753_v51  ;;  %v9953_v1 = vmul.f32 %v23781_v45, %v23762_v33  ;;  %v9954_v25 = vmul.f32 %v23782_v21, %v23771_v12  ;;  %v23811_v20 = vld [vmem:[#allocation114_spill] sm:$0xff] }
 0x4c1   : > { %v9955_v41 = vmul.f32 %v23783_v9, %v23780_v63  ;;  %v9956_v57 = vmul.f32 %v23784_v4, %v23789_v36  ;;  %v9989_v48 = vadd.f32 %v9944_v2, %v9837_v7  ;;  %v9990_v6 = vadd.f32 %v9945_v56, %v9838_v37  ;;  %v23804_v2 = vld [vmem:[#allocation43_spill] sm:$0xff]  ;;  %v23807_v4 = vld [vmem:[#allocation194_spill] sm:$0xff] }
 0x4c2   : > { %v9991_v23 = vadd.f32 %v9946_v24, %v9839_v27  ;;  %v9992_v53 = vadd.f32 %v23790_v58, %v9840_v42  ;;  %v9993_v54 = vadd.f32 %v9948_v10, %v9841_v17  ;;  %v9994_v5 = vadd.f32 %v9949_v32, %v9842_v19  ;;  %v23805_v56 = vld [vmem:[#allocation103_spill] sm:$0xff]  ;;  %v23806_v24 = vld [vmem:[#allocation168_spill] sm:$0xff]  ;;  %v23812_v35 = vld [vmem:[#allocation286_spill] sm:$0xff] }
 0x4c3   : > { %v9995_v47 = vadd.f32 %v9950_v59, %v9843_v8  ;;  %v9996_v44 = vadd.f32 %v9951_v34, %v9844_v31  ;;  %v9997_v43 = vadd.f32 %v9952_v29, %v9845_v62  ;;  %v9998_v0 = vadd.f32 %v9953_v1, %v9846_v18  ;;  %v23809_v32 = vld [vmem:[#allocation196_spill] sm:$0xff] }
 0x4c4   : > { %v9999_v14 = vadd.f32 %v9954_v25, %v9847_v16  ;;  %v10000_v15 = vadd.f32 %v9955_v41, %v9848_v61  ;;  %v10001_v11 = vadd.f32 %v9956_v57, %v9849_v39  ;;  %v20397_v60 = vadd.f32 %v9989_v48, %v20225_v50  ;;  %v23791_v50 = vld [vmem:[#allocation238_spill] sm:$0xff]  ;;  %v23803_v39 = vld [vmem:[#allocation195_spill] sm:$0xff]  ;;  %v23810_v59 = vld [vmem:[#allocation176_spill] sm:$0xff] }
 0x4c5   : > { %v20400_v13 = vadd.f32 %v9990_v6, %v20228_v55  ;;  %v20403_v7 = vadd.f32 %v9991_v23, %v20231_v22  ;;  %v20406_v37 = vadd.f32 %v9992_v53, %v20234_v3  ;;  %v20409_v27 = vadd.f32 %v9993_v54, %v20237_v49  ;;  %v23792_v55 = vld [vmem:[#allocation239_spill] sm:$0xff]  ;;  %v23794_v22 = vld [vmem:[#allocation226_spill] sm:$0xff]  ;;  %v23796_v3 = vld [vmem:[#allocation240_spill] sm:$0xff] }
 0x4c6   : > { %v20412_v42 = vadd.f32 %v9994_v5, %v20240_v40  ;;  %v20415_v17 = vadd.f32 %v9995_v47, %v20243_v38  ;;  %v20418_v19 = vadd.f32 %v9996_v44, %v23791_v50  ;;  %v20421_v8 = vadd.f32 %v9997_v43, %v23792_v55  ;;  %v23798_v49 = vld [vmem:[#allocation223_spill] sm:$0xff]  ;;  %v23800_v40 = vld [vmem:[#allocation210_spill] sm:$0xff]  ;;  %v23802_v38 = vld [vmem:[#allocation145_spill] sm:$0xff] }
 0x4c7   : > { %v20424_v31 = vadd.f32 %v9998_v0, %v23794_v22  ;;  %v20427_v62 = vadd.f32 %v9999_v14, %v23796_v3  ;;  %v20430_v18 = vadd.f32 %v10000_v15, %v23798_v49  ;;  %v20433_v16 = vadd.f32 %v10001_v11, %v23800_v40  ;;  %v23813_v29 = vld [vmem:[#allocation288_spill] sm:$0xff]  ;;  %v23814_v25 = vld [vmem:[#allocation290_spill] sm:$0xff]  ;;  %v23815_v57 = vld [vmem:[#allocation293_spill] sm:$0xff] }
 0x4c8   : > { %23793 = vst [vmem:[#allocation228_spill] sm:$0xff] %v20421_v8  ;;  %v10141_v61 = vmul.f32 %v23802_v38, %v23750_v52  ;;  %v10142_v45 = vmul.f32 %v23803_v39, %v23751_v46  ;;  %v10143_v21 = vmul.f32 %v23804_v2, %v23752_v28  ;;  %v10144_v9 = vmul.f32 %v23805_v56, %v23753_v51  ;;  %v23816_v6 = vld [vmem:[#allocation37_spill] sm:$0xff]  ;;  %v23817_v58 = vld [vmem:[#allocation40_spill] sm:$0xff]  ;;  %v23819_v47 = vld [vmem:[#allocation67_spill] sm:$0xff] }
 0x4c9   : > { %23795 = vst [vmem:[#allocation214_spill] sm:$0xff] %v20424_v31  ;;  %23797 = vst [vmem:[#allocation215_spill] sm:$0xff] %v20427_v62  ;;  %v10147_v10 = vmul.f32 %v23807_v4, %v23806_v24  ;;  %v10148_v30 = vmul.f32 %v23809_v32, %v23808_v26  ;;  %v10149_v34 = vmul.f32 %v23811_v20, %v23810_v59  ;;  %v23818_v54 = vld [vmem:[#allocation53_spill] sm:$0xff]  ;;  %v23821_v14 = vld [vmem:[#allocation52_spill] sm:$0xff] }
 0x4ca   : > { %23799 = vst [vmem:[#allocation213_spill] sm:$0xff] %v20430_v18  ;;  %23801 = vst [vmem:[#allocation219_spill] sm:$0xff] %v20433_v16  ;;  %v10150_v52 = vmul.f32 %v23802_v38, %v23812_v35  ;;  %v10151_v1 = vmul.f32 %v23803_v39, %v23813_v29  ;;  %v10152_v41 = vmul.f32 %v23804_v2, %v23814_v25  ;;  %v23820_v43 = vld [vmem:[#allocation197_spill] sm:$0xff]  ;;  %v23822_v11 = vld [vmem:[#allocation155_spill] sm:$0xff] }
 0x4cb   : > { %v10153_v48 = vmul.f32 %v23805_v56, %v23815_v57  ;;  %v10248_v23 = vmul.f32 %v23816_v6, %v23751_v46  ;;  %v10249_v53 = vmul.f32 %v23817_v58, %v23752_v28  ;;  %v10250_v5 = vmul.f32 %v23818_v54, %v23753_v51  ;;  %v23823_v3 = vld [vmem:[#allocation287_spill] sm:$0xff]  ;;  %v23825_v16 = vld [vmem:[#allocation46_spill] sm:$0xff]  ;;  %v23826_v18 = vld [vmem:[#allocation200_spill] sm:$0xff] }
 0x4cc   : > { %v10251_v44 = vmul.f32 %v23819_v47, %v23762_v33  ;;  %v10254_v0 = vmul.f32 %v23820_v43, %v23808_v26  ;;  %v10255_v15 = vmul.f32 %v23821_v14, %v23810_v59  ;;  %v10256_v50 = vmul.f32 %v23822_v11, %v23812_v35  ;;  %v23824_v11 = vld [vmem:[#allocation135_spill] sm:$0xff] }
 0x4cd   : > { %v10257_v46 = vmul.f32 %v23816_v6, %v23813_v29  ;;  %v10258_v55 = vmul.f32 %v23817_v58, %v23814_v25  ;;  %v10259_v22 = vmul.f32 %v23818_v54, %v23815_v57  ;;  %v10260_v49 = vmul.f32 %v23819_v47, %v23823_v3 }
 0x4ce   : > { %v10293_v40 = vadd.f32 %v10248_v23, %v10141_v61  ;;  %v10294_v38 = vadd.f32 %v10249_v53, %v10142_v45  ;;  %v10295_v39 = vadd.f32 %v10250_v5, %v10143_v21  ;;  %v10296_v2 = vadd.f32 %v10251_v44, %v10144_v9  ;;  %v23827_v61 = vld [vmem:[#allocation28_spill] sm:$0xff]  ;;  %v23832_v53 = vld [vmem:[#allocation289_spill] sm:$0xff] }
 0x4cf   : > { %v10299_v56 = vadd.f32 %v10254_v0, %v10147_v10  ;;  %v10300_v4 = vadd.f32 %v10255_v15, %v10148_v30  ;;  %v10301_v32 = vadd.f32 %v10256_v50, %v10149_v34  ;;  %v10302_v20 = vadd.f32 %v10257_v46, %v10150_v52  ;;  %v23828_v9 = vld [vmem:[#allocation136_spill] sm:$0xff]  ;;  %v23829_v30 = vld [vmem:[#allocation198_spill] sm:$0xff] }
 0x4d0   : > { %v10303_v43 = vadd.f32 %v10258_v55, %v10151_v1  ;;  %v10304_v14 = vadd.f32 %v10259_v22, %v10152_v41  ;;  %v10305_v6 = vadd.f32 %v10260_v49, %v10153_v48  ;;  %v10400_v58 = vmul.f32 %v23824_v11, %v23752_v28  ;;  %v23830_v28 = vld [vmem:[#allocation199_spill] sm:$0xff]  ;;  %v23831_v1 = vld [vmem:[#allocation29_spill] sm:$0xff]  ;;  %v23833_v46 = vld [vmem:[#allocation270_spill] sm:$0xff] }
 0x4d1   : > { %v10401_v54 = vmul.f32 %v23825_v16, %v23753_v51  ;;  %v10402_v47 = vmul.f32 %v23826_v18, %v23762_v33  ;;  %v10403_v45 = vmul.f32 %v23827_v61, %v23771_v12  ;;  %v10404_v21 = vmul.f32 %v23827_v61, %v23806_v24  ;;  %v23834_v22 = vld [vmem:[#allocation232_spill] sm:$0xff] }
 0x4d2   : > { %v10405_v10 = vmul.f32 %v23828_v9, %v23808_v26  ;;  %v10406_v34 = vmul.f32 %v23829_v30, %v23810_v59  ;;  %v10407_v52 = vmul.f32 %v23830_v28, %v23812_v35  ;;  %v10408_v41 = vmul.f32 %v23831_v1, %v23813_v29 }
 0x4d3   : > { %v10409_v48 = vmul.f32 %v23824_v11, %v23814_v25  ;;  %v10410_v23 = vmul.f32 %v23825_v16, %v23815_v57  ;;  %v10411_v24 = vmul.f32 %v23826_v18, %v23823_v3  ;;  %v10412_v5 = vmul.f32 %v23827_v61, %v23832_v53  ;;  %v23835_v18 = vld [vmem:[#allocation58_spill] sm:$0xff]  ;;  %v23836_v61 = vld [vmem:[#allocation201_spill] sm:$0xff] }
 0x4d4   : > { %v10445_v44 = vadd.f32 %v10400_v58, %v10293_v40  ;;  %v10446_v0 = vadd.f32 %v10401_v54, %v10294_v38  ;;  %v10447_v15 = vadd.f32 %v10402_v47, %v10295_v39  ;;  %v10448_v50 = vadd.f32 %v10403_v45, %v10296_v2  ;;  %v23837_v38 = vld [vmem:[#allocation202_spill] sm:$0xff]  ;;  %v23838_v2 = vld [vmem:[#allocation27_spill] sm:$0xff] }
 0x4d5   : > { %v10449_v55 = vadd.f32 %v10404_v21, %v23833_v46  ;;  %v10450_v49 = vadd.f32 %v10405_v10, %v23834_v22  ;;  %v10451_v9 = vadd.f32 %v10406_v34, %v10299_v56  ;;  %v10452_v30 = vadd.f32 %v10407_v52, %v10300_v4  ;;  %v23839_v4 = vld [vmem:[#allocation137_spill] sm:$0xff] }
 0x4d6   : > { %v10453_v11 = vadd.f32 %v10408_v41, %v10301_v32  ;;  %v10454_v28 = vadd.f32 %v10409_v48, %v10302_v20  ;;  %v10455_v1 = vadd.f32 %v10410_v23, %v10303_v43  ;;  %v10456_v16 = vadd.f32 %v10411_v24, %v10304_v14  ;;  %v23840_v20 = vld [vmem:[#allocation142_spill] sm:$0xff]  ;;  %v23843_v21 = vld [vmem:[#allocation237_spill] sm:$0xff] }
 0x4d7   : > { %v10457_v62 = vadd.f32 %v10412_v5, %v10305_v6  ;;  %v10552_v31 = vmul.f32 %v23835_v18, %v23753_v51  ;;  %v10553_v40 = vmul.f32 %v23836_v61, %v23762_v33  ;;  %v10554_v39 = vmul.f32 %v23837_v38, %v23771_v12  ;;  %v23841_v51 = vld [vmem:[#allocation144_spill] sm:$0xff]  ;;  %v23842_v6 = vld [vmem:[#allocation138_spill] sm:$0xff] }
 0x4d8   : > { %v10555_v58 = vmul.f32 %v23838_v2, %v23780_v63  ;;  %v10556_v56 = vmul.f32 %v23838_v2, %v23808_v26  ;;  %v10557_v32 = vmul.f32 %v23839_v4, %v23810_v59  ;;  %v10558_v43 = vmul.f32 %v23840_v20, %v23812_v35 }
 0x4d9   : > { %v10559_v14 = vmul.f32 %v23841_v51, %v23813_v29  ;;  %v10560_v54 = vmul.f32 %v23842_v6, %v23814_v25  ;;  %v10561_v47 = vmul.f32 %v23835_v18, %v23815_v57  ;;  %v10562_v45 = vmul.f32 %v23836_v61, %v23823_v3  ;;  %v23844_v61 = vld [vmem:[#allocation22_spill] sm:$0xff] }
 0x4da   : > { %v10563_v26 = vmul.f32 %v23837_v38, %v23832_v53  ;;  %v10564_v10 = vmul.f32 %v23838_v2, %v23843_v21  ;;  %v10597_v34 = vadd.f32 %v10552_v31, %v10445_v44  ;;  %v10598_v52 = vadd.f32 %v10553_v40, %v10446_v0  ;;  %v23845_v38 = vld [vmem:[#allocation204_spill] sm:$0xff]  ;;  %v23846_v31 = vld [vmem:[#allocation206_spill] sm:$0xff] }
 0x4db   : > { %v10599_v41 = vadd.f32 %v10554_v39, %v10447_v15  ;;  %v10600_v48 = vadd.f32 %v10555_v58, %v10448_v50  ;;  %v10601_v23 = vadd.f32 %v10556_v56, %v10449_v55  ;;  %v10602_v24 = vadd.f32 %v10557_v32, %v10450_v49  ;;  %v23847_v0 = vld [vmem:[#allocation38_spill] sm:$0xff] }
 0x4dc   : > { %v10603_v5 = vadd.f32 %v10558_v43, %v10451_v9  ;;  %v10604_v46 = vadd.f32 %v10559_v14, %v10452_v30  ;;  %v10605_v22 = vadd.f32 %v10560_v54, %v10453_v11  ;;  %v10606_v4 = vadd.f32 %v10561_v47, %v10454_v28  ;;  %v23848_v55 = vld [vmem:[#allocation18_spill] sm:$0xff]  ;;  %v23852_v28 = vld [vmem:[#allocation220_spill] sm:$0xff] }
 0x4dd   : > { %v10607_v18 = vadd.f32 %v10562_v45, %v10455_v1  ;;  %v10608_v20 = vadd.f32 %v10563_v26, %v10456_v16  ;;  %v10609_v51 = vadd.f32 %v10564_v10, %v10457_v62  ;;  %v10704_v6 = vmul.f32 %v23844_v61, %v23762_v33  ;;  %v23849_v62 = vld [vmem:[#allocation203_spill] sm:$0xff]  ;;  %v23850_v33 = vld [vmem:[#allocation205_spill] sm:$0xff] }
 0x4de   : > { %v10705_v8 = vmul.f32 %v23845_v38, %v23771_v12  ;;  %v10706_v44 = vmul.f32 %v23846_v31, %v23780_v63  ;;  %v10707_v15 = vmul.f32 %v23847_v0, %v23789_v36  ;;  %v10708_v50 = vmul.f32 %v23847_v0, %v23810_v59  ;;  %v23851_v12 = vld [vmem:[#allocation15_spill] sm:$0xff] }
 0x4df   : > { %v10709_v49 = vmul.f32 %v23848_v55, %v23812_v35  ;;  %v10710_v9 = vmul.f32 %v23849_v62, %v23813_v29  ;;  %v10711_v30 = vmul.f32 %v23850_v33, %v23814_v25  ;;  %v10712_v11 = vmul.f32 %v23851_v12, %v23815_v57  ;;  %v23865_v55 = vld [vmem:[#allocation302_spill] sm:$0xff]  ;;  %v23866_v62 = vld [vmem:[#allocation303_spill] sm:$0xff] }
 0x4e0   : > { %v10713_v63 = vmul.f32 %v23844_v61, %v23823_v3  ;;  %v10714_v36 = vmul.f32 %v23845_v38, %v23832_v53  ;;  %v10715_v59 = vmul.f32 %v23846_v31, %v23843_v21  ;;  %v10716_v1 = vmul.f32 %v23847_v0, %v23852_v28  ;;  %v23862_v31 = vld [vmem:[#allocation297_spill] sm:$0xff] }
 0x4e1   : > { %v10749_v16 = vadd.f32 %v10704_v6, %v10597_v34  ;;  %v10750_v40 = vadd.f32 %v10705_v8, %v10598_v52  ;;  %v10751_v39 = vadd.f32 %v10706_v44, %v10599_v41  ;;  %v10752_v2 = vadd.f32 %v10707_v15, %v10600_v48  ;;  %v23861_v6 = vld [vmem:[#allocation23_spill] sm:$0xff]  ;;  %v23864_v15 = vld [vmem:[#allocation301_spill] sm:$0xff] }
 0x4e2   : > { %v10753_v58 = vadd.f32 %v10708_v50, %v10601_v23  ;;  %v10754_v56 = vadd.f32 %v10709_v49, %v10602_v24  ;;  %v10755_v32 = vadd.f32 %v10710_v9, %v10603_v5  ;;  %v10756_v43 = vadd.f32 %v10711_v30, %v10604_v46  ;;  %v23863_v44 = vld [vmem:[#allocation19_spill] sm:$0xff]  ;;  %v23867_v9 = vld [vmem:[#allocation49_spill] sm:$0xff] }
 0x4e3   : > { %v10757_v14 = vadd.f32 %v10712_v11, %v10605_v22  ;;  %v10758_v54 = vadd.f32 %v10713_v63, %v10606_v4  ;;  %v10759_v47 = vadd.f32 %v10714_v36, %v10607_v18  ;;  %v10760_v45 = vadd.f32 %v10715_v59, %v10608_v20  ;;  %v23860_v20 = vld [vmem:[#allocation209_spill] sm:$0xff]  ;;  %v23869_v11 = vld [vmem:[#allocation64_spill] sm:$0xff]  ;;  %v23870_v36 = vld [vmem:[#allocation130_spill] sm:$0xff] }
 0x4e4   : > { %v10761_v26 = vadd.f32 %v10716_v1, %v10609_v51  ;;  %v20560_v10 = vadd.f32 %v10749_v16, %v20397_v60  ;;  %v20563_v61 = vadd.f32 %v10750_v40, %v20400_v13  ;;  %v20566_v34 = vadd.f32 %v10751_v39, %v20403_v7  ;;  %v23853_v13 = vld [vmem:[#allocation228_spill] sm:$0xff]  ;;  %v23854_v7 = vld [vmem:[#allocation214_spill] sm:$0xff]  ;;  %v23868_v30 = vld [vmem:[#allocation229_spill] sm:$0xff] }
 0x4e5   : > { %v20569_v8 = vadd.f32 %v10752_v2, %v20406_v37  ;;  %v20572_v52 = vadd.f32 %v10753_v58, %v20409_v27  ;;  %v20575_v41 = vadd.f32 %v10754_v56, %v20412_v42  ;;  %v20578_v48 = vadd.f32 %v10755_v32, %v20415_v17  ;;  %v23855_v37 = vld [vmem:[#allocation215_spill] sm:$0xff]  ;;  %v23856_v27 = vld [vmem:[#allocation213_spill] sm:$0xff]  ;;  %v23872_v58 = vld [vmem:[#allocation282_spill] sm:$0xff] }
 0x4e6   : > { %v20581_v60 = vadd.f32 %v10756_v43, %v20418_v19  ;;  %v20584_v23 = vadd.f32 %v10757_v14, %v23853_v13  ;;  %v20587_v24 = vadd.f32 %v10758_v54, %v23854_v7  ;;  %v20590_v5 = vadd.f32 %v10759_v47, %v23855_v37  ;;  %v23857_v42 = vld [vmem:[#allocation219_spill] sm:$0xff]  ;;  %v23858_v17 = vld [vmem:[#allocation129_spill] sm:$0xff]  ;;  %v23874_v13 = vld [vmem:[#allocation312_spill] sm:$0xff] }
 0x4e7   : > { %v20593_v46 = vadd.f32 %v10760_v45, %v23856_v27  ;;  %v20596_v22 = vadd.f32 %v10761_v26, %v23857_v42  ;;  %v10901_v4 = vmul.f32 %v23858_v17, %v23812_v35  ;;  %v23859_v19 = vld [vmem:[#allocation207_spill] sm:$0xff]  ;;  %v10903_v51 = vmul.f32 %v23860_v20, %v23814_v25  ;;  %v23871_v1 = vld [vmem:[#allocation41_spill] sm:$0xff]  ;;  %v23873_v45 = vld [vmem:[#allocation68_spill] sm:$0xff] }
 0x4e8   : > { %v10902_v18 = vmul.f32 %v23859_v19, %v23813_v29  ;;  %v10904_v38 = vmul.f32 %v23861_v6, %v23815_v57  ;;  %v10909_v0 = vmul.f32 %v23863_v44, %v23862_v31  ;;  %v10910_v50 = vmul.f32 %v23858_v17, %v23864_v15  ;;  %v23875_v37 = vld [vmem:[#allocation20_spill] sm:$0xff]  ;;  %v23876_v42 = vld [vmem:[#allocation65_spill] sm:$0xff] }
 0x4e9   : > { %v10911_v49 = vmul.f32 %v23859_v19, %v23865_v55  ;;  %v10912_v35 = vmul.f32 %v23860_v20, %v23866_v62  ;;  %v11008_v33 = vmul.f32 %v23867_v9, %v23813_v29  ;;  %v11009_v12 = vmul.f32 %v23868_v30, %v23814_v25  ;;  %v23879_v6 = vld [vmem:[#allocation276_spill] sm:$0xff] }
 0x4ea   : > { %v11010_v63 = vmul.f32 %v23869_v11, %v23815_v57  ;;  %v11011_v59 = vmul.f32 %v23870_v36, %v23823_v3  ;;  %v11016_v16 = vmul.f32 %v23871_v1, %v23864_v15  ;;  %v11017_v40 = vmul.f32 %v23867_v9, %v23865_v55  ;;  %v23882_v11 = vld [vmem:[#allocation79_spill] sm:$0xff]  ;;  %v23883_v36 = vld [vmem:[#allocation70_spill] sm:$0xff]  ;;  %v23884_v1 = vld [vmem:[#allocation224_spill] sm:$0xff] }
 0x4eb   : > { %v11018_v39 = vmul.f32 %v23868_v30, %v23866_v62  ;;  %v11053_v2 = vadd.f32 %v11008_v33, %v10901_v4  ;;  %v11054_v29 = vadd.f32 %v11009_v12, %v10902_v18  ;;  %v11064_v56 = vadd.f32 %v23872_v58, %v10912_v35  ;;  %v23877_v4 = vld [vmem:[#allocation313_spill] sm:$0xff]  ;;  %v23878_v18 = vld [vmem:[#allocation140_spill] sm:$0xff]  ;;  %v23887_v58 = vld [vmem:[#allocation31_spill] sm:$0xff] }
 0x4ec   : > { %v11055_v32 = vadd.f32 %v11010_v63, %v10903_v51  ;;  %v11056_v43 = vadd.f32 %v11011_v59, %v10904_v38  ;;  %v11061_v14 = vadd.f32 %v11016_v16, %v10909_v0  ;;  %v11062_v54 = vadd.f32 %v11017_v40, %v10910_v50  ;;  %v23880_v50 = vld [vmem:[#allocation304_spill] sm:$0xff]  ;;  %v23885_v40 = vld [vmem:[#allocation143_spill] sm:$0xff] }
 0x4ed   : > { %v11063_v47 = vadd.f32 %v11018_v39, %v10911_v49  ;;  %v11160_v26 = vmul.f32 %v23873_v45, %v23814_v25  ;;  %v11161_v7 = vmul.f32 %v23874_v13, %v23815_v57  ;;  %v11162_v27 = vmul.f32 %v23875_v37, %v23823_v3  ;;  %v23881_v30 = vld [vmem:[#allocation284_spill] sm:$0xff]  ;;  %v23889_v37 = vld [vmem:[#allocation285_spill] sm:$0xff] }
 0x4ee   : > { %v11163_v17 = vmul.f32 %v23876_v42, %v23832_v53  ;;  %v11167_v19 = vmul.f32 %v23877_v4, %v23864_v15  ;;  %v11168_v20 = vmul.f32 %v23878_v18, %v23865_v55  ;;  %v11169_v51 = vmul.f32 %v23873_v45, %v23866_v62 }
 0x4ef   : > { %v11170_v25 = vmul.f32 %v23874_v13, %v23879_v6  ;;  %v11205_v38 = vadd.f32 %v11160_v26, %v11053_v2  ;;  %v11206_v31 = vadd.f32 %v11161_v7, %v11054_v29  ;;  %v11207_v44 = vadd.f32 %v11162_v27, %v11055_v32  ;;  %v23886_v2 = vld [vmem:[#allocation314_spill] sm:$0xff] }
 0x4f0   : > { %v11208_v0 = vadd.f32 %v11163_v17, %v11056_v43  ;;  %v11212_v49 = vadd.f32 %v11167_v19, %v23880_v50  ;;  %v11213_v35 = vadd.f32 %v11168_v20, %v11061_v14  ;;  %v11214_v9 = vadd.f32 %v11169_v51, %v11062_v54  ;;  %v23888_v43 = vld [vmem:[#allocation281_spill] sm:$0xff]  ;;  %v23890_v17 = vld [vmem:[#allocation44_spill] sm:$0xff]  ;;  %v23891_v19 = vld [vmem:[#allocation99_spill] sm:$0xff] }
 0x4f1   : > { %v11215_v33 = vadd.f32 %v11170_v25, %v11063_v47  ;;  %v11216_v12 = vadd.f32 %v23881_v30, %v11064_v56  ;;  %v11312_v63 = vmul.f32 %v23882_v11, %v23815_v57  ;;  %v11313_v59 = vmul.f32 %v23883_v36, %v23823_v3  ;;  %v23892_v20 = vld [vmem:[#allocation55_spill] sm:$0xff]  ;;  %v23893_v25 = vld [vmem:[#allocation132_spill] sm:$0xff] }
 0x4f2   : > { %v11314_v16 = vmul.f32 %v23884_v1, %v23832_v53  ;;  %v11315_v39 = vmul.f32 %v23885_v40, %v23843_v21  ;;  %v11319_v29 = vmul.f32 %v23886_v2, %v23865_v55  ;;  %v11320_v32 = vmul.f32 %v23887_v58, %v23866_v62  ;;  %v23899_v30 = vld [vmem:[#allocation283_spill] sm:$0xff] }
 0x4f3   : > { %v11321_v56 = vmul.f32 %v23882_v11, %v23879_v6  ;;  %v11323_v57 = vmul.f32 %v23884_v1, %v23888_v43  ;;  %v11357_v14 = vadd.f32 %v11312_v63, %v11205_v38  ;;  %v11358_v54 = vadd.f32 %v11313_v59, %v11206_v31  ;;  %v23894_v31 = vld [vmem:[#allocation131_spill] sm:$0xff]  ;;  %v23901_v59 = vld [vmem:[#allocation310_spill] sm:$0xff] }
 0x4f4   : > { %v11359_v47 = vadd.f32 %v11314_v16, %v11207_v44  ;;  %v11360_v45 = vadd.f32 %v11315_v39, %v11208_v0  ;;  %v11364_v26 = vadd.f32 %v11319_v29, %v11212_v49  ;;  %v11365_v13 = vadd.f32 %v11320_v32, %v11213_v35  ;;  %v23895_v0 = vld [vmem:[#allocation316_spill] sm:$0xff] }
 0x4f5   : > { %v11366_v7 = vadd.f32 %v11321_v56, %v11214_v9  ;;  %v11367_v27 = vadd.f32 %v23889_v37, %v11215_v33  ;;  %v11368_v42 = vadd.f32 %v11323_v57, %v11216_v12  ;;  %v11464_v4 = vmul.f32 %v23890_v17, %v23823_v3  ;;  %v23896_v49 = vld [vmem:[#allocation56_spill] sm:$0xff]  ;;  %v23897_v3 = vld [vmem:[#allocation51_spill] sm:$0xff] }
 0x4f6   : > { %v11465_v18 = vmul.f32 %v23891_v19, %v23832_v53  ;;  %v11466_v51 = vmul.f32 %v23892_v20, %v23843_v21  ;;  %v11467_v38 = vmul.f32 %v23893_v25, %v23852_v28  ;;  %v11469_v44 = vmul.f32 %v23894_v31, %v23864_v15  ;;  %v23898_v33 = vld [vmem:[#allocation280_spill] sm:$0xff]  ;;  %v23902_v56 = vld [vmem:[#allocation311_spill] sm:$0xff] }
 0x4f7   : > { %v11470_v50 = vmul.f32 %v23895_v0, %v23865_v55  ;;  %v11471_v35 = vmul.f32 %v23896_v49, %v23866_v62  ;;  %v11472_v9 = vmul.f32 %v23897_v3, %v23879_v6  ;;  %v11473_v53 = vmul.f32 %v23890_v17, %v23898_v33  ;;  %v23900_v55 = vld [vmem:[#allocation308_spill] sm:$0xff] }
 0x4f8   : > { %v11474_v21 = vmul.f32 %v23891_v19, %v23888_v43  ;;  %v11475_v28 = vmul.f32 %v23892_v20, %v23899_v30  ;;  %v11509_v12 = vadd.f32 %v11464_v4, %v11357_v14  ;;  %v11510_v15 = vadd.f32 %v11465_v18, %v11358_v54  ;;  %v23906_v18 = vld [vmem:[#allocation277_spill] sm:$0xff] }
 0x4f9   : > { %v11511_v11 = vadd.f32 %v11466_v51, %v11359_v47  ;;  %v11512_v63 = vadd.f32 %v11467_v38, %v11360_v45  ;;  %v11514_v36 = vadd.f32 %v11469_v44, %v23900_v55  ;;  %v11515_v62 = vadd.f32 %v11470_v50, %v23901_v59 }
 0x4fa   : > { %v11516_v1 = vadd.f32 %v11471_v35, %v11364_v26  ;;  %v11517_v16 = vadd.f32 %v11472_v9, %v11365_v13  ;;  %v11518_v6 = vadd.f32 %v11473_v53, %v11366_v7  ;;  %v11519_v40 = vadd.f32 %v11474_v21, %v11367_v27  ;;  %v23904_v7 = vld [vmem:[#allocation3_spill] sm:$0xff] }
 0x4fb   : > { %v11520_v39 = vadd.f32 %v11475_v28, %v11368_v42  ;;  %v11554_v2 = vadd.f32 %v11509_v12, %v20560_v10  ;;  %v11555_v29 = vadd.f32 %v11510_v15, %v20563_v61  ;;  %v11556_v58 = vadd.f32 %v11511_v11, %v20566_v34  ;;  %v13196_v61 = vld [vmem:[%s20845_s7] ss:$0 sm:$0xff] }
 0x4fc   : > { %v11557_v32 = vadd.f32 %v11512_v63, %v20569_v8  ;;  %v11558_v43 = vadd.f32 %v23902_v56, %v20572_v52  ;;  %v11559_v57 = vadd.f32 %v11514_v36, %v20575_v41  ;;  %v11560_v14 = vadd.f32 %v11515_v62, %v20578_v48  ;;  %v23903_v8 = vld [vmem:[#allocation298_spill] sm:$0xff] }
 0x4fd   : > { %v11561_v54 = vadd.f32 %v11516_v1, %v20581_v60  ;;  %v11562_v47 = vadd.f32 %v11517_v16, %v20584_v23  ;;  %v11563_v45 = vadd.f32 %v11518_v6, %v20587_v24  ;;  %v11564_v10 = vadd.f32 %v11519_v40, %v20590_v5  ;;  %v23905_v5 = vld [vmem:[#allocation275_spill] sm:$0xff] }
 0x4fe   : > { %v11565_v34 = vadd.f32 %v11520_v39, %v20593_v46  ;;  %v11566_v52 = vadd.f32 %v23903_v8, %v20596_v22  ;;  %v11808_v41 = vcombine.low %v11554_v2, %v11555_v29  ;;  %v11809_v26 = vcombine.low %v11556_v58, %v11557_v32  ;;  %v20729_v29 = vld [vmem:[%s20847_s9] ss:$0 sm:$0xff] }
 0x4ff   : > { %v11810_v48 = vcombine.low %v11558_v43, %v11559_v57  ;;  %v11811_v13 = vcombine.low %v11560_v14, %v11561_v54  ;;  %v11857_v60 = vcombine.low %v11562_v47, %v11563_v45  ;;  %v12011_v27 = vadd.f32 %v13196_v61, %v23905_v5 }
 0x500   : > { %v11818_v23 = vrot.slane %v11808_v41, %v23904_v7  ;;  %v11825_v24 = vrot.slane %v11809_v26, %v23904_v7  ;;  %v11858_v37 = vcombine.low %v11564_v10, %v11565_v34  ;;  %v11879_v46 = vrot.slane %v11566_v52, %v23904_v7 }
 0x501   : > { %v11832_v42 = vrot.slane %v11810_v48, %v23904_v7  ;;  %v11839_v17 = vrot.slane %v11811_v13, %v23904_v7  ;;  %v11865_v22 = vrot.slane %v11857_v60, %v23904_v7  ;;  %v12014_v20 = vadd.f32 %v13196_v61, %v23906_v18 }
 0x502   : > { %v11840_v4 = vcombine.low %v11818_v23, %v11825_v24  ;;  %v11872_v19 = vrot.slane %v11858_v37, %v23904_v7  ;;  %v12033_v38 = vmax.f32 %v12011_v27, 0.0  ;;  %v11894_v49 = vrot.slane %v11879_v46, %v23904_v7 }
 0x503   : > { %v11841_v51 = vcombine.low %v11832_v42, %v11839_v17  ;;  %v12034_v31 = vmax.f32 %v12014_v20, 0.0  ;;  %v23907_v53 = vmov 0.0  }
 0x504   : > { %v11880_v25 = vcombine.low %v11865_v22, %v11872_v19  ;;  %v11848_v44 = vrot.slane %v11840_v4, %v23904_v7 }
 0x505   : > { %v11855_v0 = vrot.slane %v11841_v51, %v23904_v7  ;;  %v12039_v35 = vpack.c.bf16 %v12034_v31, %v12033_v38 }
 0x506   : > { %v11887_v50 = vrot.slane %v11880_v25, %v23904_v7 }
 0x507   : > { %v11856_v3 = vcombine.low %v11848_v44, %v11855_v0 }
 0x508   : > { %v11895_v9 = vcombine.low %v11887_v50, %v11894_v49 }
 0x50a   : > { %v11904_v33 = vpack.c.bf16 %v11895_v9, %v11856_v3 }
 0x50c   : > { %13599 = vmatmul.mubr.bf16.gmra.mrb[32].mxu0 %v11904_v33 }
 0x50d   : > { %13618 = vmatprep.mubr.msk.bf16.mxu0 %vm13880_vm1, %v23907_v53 }
 0x514   : > { %13619 = vmatmul.mubr.bf16.vlgmr.msra.gmra.mrb[36].mxu0 %v12039_v35 }
 0x515   : > { %13622 = vmatprep.mubr.msk.bf16.mxu0 %vm13880_vm1, %v23907_v53 }
 0x544   : > { %v12018_v21 = vpop.f32.mrb[28].mxu0 }
 0x545   : > { %v12019_v30 = vadd.f32 %v13196_v61, %v12018_v21  ;;  %v13596_v28 = vpop.f32.mrb[29].mxu0 }
 0x546   : > { %v12021_v12 = vpop.f32.mrb[30].mxu0 }
 0x547   : > { %v12022_v15 = vadd.f32 %v13196_v61, %v12021_v12  ;;  %v13597_v11 = vpop.f32.mrb[31].mxu0  ;;  %v12035_v63 = vmax.f32 %v12019_v30, 0.0 }
 0x549   : > { %v12036_v55 = vmax.f32 %v12022_v15, 0.0 }
 0x54b   : > { %v12040_v36 = vpack.c.bf16 %v12036_v55, %v12035_v63 }
 0x54d   : > { %13623 = vmatmul.mubr.bf16.gmra.mrb[40].mxu0 %v12040_v36 }
 0x54e   : > { %13626 = vmatprep.mubr.msk.bf16.mxu0 %vm13880_vm1, %v23907_v53 }
 0x5df   : > { %v12026_v59 = vpop.f32.mrb[32].mxu0 }
 0x5e0   : > { %v12027_v62 = vadd.f32 %v13196_v61, %v12026_v59  ;;  %v13600_v1 = vpop.f32.mrb[33].mxu0 }
 0x5e1   : > { %v12029_v16 = vpop.f32.mrb[34].mxu0 }
 0x5e2   : > { %v12030_v6 = vadd.f32 %v13196_v61, %v12029_v16  ;;  %v13601_v40 = vpop.f32.mrb[35].mxu0  ;;  %v12037_v39 = vmax.f32 %v12027_v62, 0.0 }
 0x5e4   : > { %v12038_v2 = vmax.f32 %v12030_v6, 0.0 }
 0x5e6   : > { %v12041_v58 = vpack.c.bf16 %v12038_v2, %v12037_v39 }
 0x5e7   : > { %v12147_v32 = vpop.f32.mrb[36].mxu0 }
 0x5e8   : > { %13627 = vmatmul.mubr.bf16.gmra.mrb[44].mxu0 %v12041_v58  ;;  %v12148_v56 = vadd.f32 %v20729_v29, %v12147_v32  ;;  %v13620_v43 = vpop.f32.mrb[37].mxu0 }
 0x5e9   : > { %v12150_v57 = vpop.f32.mrb[38].mxu0 }
 0x5ea   : > { %v12176_v14 = vcombine.high %v12148_v56, %v12148_v56  ;;  %v12183_v54 = vrot.slane %v12148_v56, %v23904_v7  ;;  %v12151_v47 = vadd.f32 %v20729_v29, %v12150_v57  ;;  %v13621_v45 = vpop.f32.mrb[39].mxu0 }
 0x5ec   : > { %v12190_v10 = vrot.slane %v12176_v14, %v23904_v7  ;;  %v12191_v61 = vcombine.high %v12183_v54, %v12183_v54  ;;  %v12232_v34 = vrot.slane %v12151_v47, %v23904_v7  ;;  %v12199_v52 = vrot.slane %v12183_v54, %v23904_v7 }
 0x5ed   : > { %v12225_v25 = vcombine.high %v12151_v47, %v12151_v47 }
 0x5ee   : > { %v12192_v8 = vcombine.high %v12190_v10, %v12190_v10  ;;  %v12213_v41 = vrot.slane %v12191_v61, %v23904_v7  ;;  %v12248_v26 = vrot.slane %v12232_v34, %v23904_v7  ;;  %v12206_v48 = vrot.slane %v12190_v10, %v23904_v7 }
 0x5ef   : > { %v12240_v51 = vcombine.high %v12232_v34, %v12232_v34  ;;  %v12239_v31 = vrot.slane %v12225_v25, %v23904_v7 }
 0x5f0   : > { %v12220_v13 = vrot.slane %v12192_v8, %v23904_v7  ;;  %v12460_v60 = vcombine.low %v12199_v52, %v12213_v41  ;;  %v13214_v23 = vcombine.high %v12199_v52, %v12213_v41  ;;  %v12515_v24 = vrot.slane %v12248_v26, %v23904_v7 }
 0x5f1   : > { %v12262_v38 = vrot.slane %v12240_v51, %v23904_v7  ;;  %v12255_v0 = vrot.slane %v12239_v31, %v23904_v7  ;;  %v12270_v50 = vcombine.high %v12248_v26, %v12248_v26  ;;  %v12241_v49 = vcombine.high %v12239_v31, %v12239_v31 }
 0x5f2   : > { %v12462_v37 = vcombine.low %v12206_v48, %v12220_v13  ;;  %v13215_v5 = vcombine.high %v12206_v48, %v12220_v13  ;;  %v12470_v27 = vrot.slane %v12460_v60, %v23904_v7  ;;  %v12477_v42 = vrot.slane %v13214_v23, %v23904_v7  ;;  %13220 = vst.sshfl [vmem:[%s20743_s24 + $0x8] sm:$0x1 pattern:$0x73625140] %v12515_v24 }
 0x5f3   : > { %v12272_v44 = vcombine.high %v12262_v38, %v12262_v38  ;;  %v12523_v3 = vcombine.low %v12262_v38, %v12270_v50  ;;  %v12269_v9 = vrot.slane %v12241_v49, %v23904_v7  ;;  %v12271_v33 = vcombine.high %v12255_v0, %v12255_v0 }
 0x5f4   : > { %v12484_v17 = vrot.slane %v12462_v37, %v23904_v7  ;;  %v12491_v46 = vrot.slane %v13215_v5, %v23904_v7  ;;  %v12492_v4 = vcombine.low %v12470_v27, %v12477_v42 }
 0x5f5   : > { %v12524_v35 = vcombine.low %v12272_v44, %v12255_v0  ;;  %v12533_v30 = vrot.slane %v12523_v3, %v23904_v7  ;;  %v12525_v15 = vcombine.low %v12269_v9, %v12271_v33  ;;  %v12273_v11 = vcombine.high %v12269_v9, %v12269_v9 }
 0x5f6   : > { %v12493_v22 = vcombine.low %v12484_v17, %v12491_v46  ;;  %v12500_v19 = vrot.slane %v12492_v4, %v23904_v7 }
 0x5f7   : > { %v12540_v53 = vrot.slane %v12524_v35, %v23904_v7  ;;  %v12547_v2 = vrot.slane %v12525_v15, %v23904_v7 }
 0x5f8   : > { %v12507_v18 = vrot.slane %v12493_v22, %v23904_v7 }
 0x5f9   : > { %v12555_v55 = vcombine.low %v12533_v30, %v12540_v53 }
 0x5fa   : > { %v12508_v20 = vcombine.low %v12500_v19, %v12507_v18 }
 0x5fb   : > { %v12563_v32 = vrot.slane %v12555_v55, %v23904_v7 }
 0x5fc   : > { %12785 = vst [vmem:[%s20743_s24] sm:$0xff] %v12508_v20 }
 0x620   : > { %v12155_v21 = vpop.f32.mrb[40].mxu0 }
 0x621   : > { %v12156_v28 = vadd.f32 %v20729_v29, %v12155_v21  ;;  %v13624_v12 = vpop.f32.mrb[41].mxu0 }
 0x622   : > { %v12158_v63 = vpop.f32.mrb[42].mxu0 }
 0x623   : > { %v12274_v36 = vcombine.high %v12156_v28, %v12156_v28  ;;  %v12281_v59 = vrot.slane %v12156_v28, %v23904_v7  ;;  %v12159_v62 = vadd.f32 %v20729_v29, %v12158_v63  ;;  %v13625_v1 = vpop.f32.mrb[43].mxu0 }
 0x625   : > { %v12288_v16 = vrot.slane %v12274_v36, %v23904_v7  ;;  %v12289_v6 = vcombine.high %v12281_v59, %v12281_v59  ;;  %v12297_v40 = vrot.slane %v12281_v59, %v23904_v7  ;;  %v12323_v39 = vcombine.high %v12159_v62, %v12159_v62 }
 0x626   : > { %v12330_v58 = vrot.slane %v12159_v62, %v23904_v7 }
 0x627   : > { %v12290_v56 = vcombine.high %v12288_v16, %v12288_v16  ;;  %v12311_v43 = vrot.slane %v12289_v6, %v23904_v7  ;;  %v12526_v57 = vcombine.low %v12273_v11, %v12297_v40  ;;  %v12304_v14 = vrot.slane %v12288_v16, %v23904_v7 }
 0x628   : > { %v12337_v54 = vrot.slane %v12323_v39, %v23904_v7  ;;  %v12338_v47 = vcombine.high %v12330_v58, %v12330_v58  ;;  %v12346_v45 = vrot.slane %v12330_v58, %v23904_v7 }
 0x629   : > { %v12318_v10 = vrot.slane %v12290_v56, %v23904_v7  ;;  %v12554_v61 = vrot.slane %v12526_v57, %v23904_v7  ;;  %v12578_v34 = vrot.slane %v12311_v43, %v23904_v7  ;;  %v13216_v8 = vcombine.high %v12297_v40, %v12311_v43 }
 0x62a   : > { %v12339_v52 = vcombine.high %v12337_v54, %v12337_v54  ;;  %v12353_v41 = vrot.slane %v12337_v54, %v23904_v7  ;;  %v12360_v26 = vrot.slane %v12338_v47, %v23904_v7  ;;  %v12368_v48 = vcombine.high %v12346_v45, %v12346_v45 }
 0x62b   : > { %v12556_v13 = vcombine.low %v12547_v2, %v12554_v61  ;;  %v12587_v60 = vcombine.low %v12304_v14, %v12318_v10  ;;  %v13217_v23 = vcombine.high %v12304_v14, %v12318_v10  ;;  %v12596_v24 = vrot.slane %v13216_v8, %v23904_v7  ;;  %13221 = vst.sshfl [vmem:[%s20743_s24 + $0x18] sm:$0x1 pattern:$0x73625140] %v12578_v34 }
 0x62c   : > { %v12367_v37 = vrot.slane %v12339_v52, %v23904_v7  ;;  %v12369_v5 = vcombine.high %v12353_v41, %v12353_v41  ;;  %v12370_v27 = vcombine.high %v12360_v26, %v12360_v26  ;;  %v12589_v42 = vcombine.low %v12346_v45, %v12360_v26 }
 0x62d   : > { %v12570_v17 = vrot.slane %v12556_v13, %v23904_v7  ;;  %v12603_v46 = vrot.slane %v12587_v60, %v23904_v7  ;;  %v12610_v4 = vrot.slane %v13217_v23, %v23904_v7  ;;  %v12641_v22 = vrot.slane %v12368_v48, %v23904_v7 }
 0x62e   : > { %v12617_v19 = vrot.slane %v12589_v42, %v23904_v7  ;;  %v12649_v18 = vcombine.low %v12370_v27, %v12353_v41  ;;  %v12650_v20 = vcombine.low %v12367_v37, %v12369_v5  ;;  %v12371_v15 = vcombine.high %v12367_v37, %v12367_v37 }
 0x62f   : > { %v12571_v51 = vcombine.low %v12563_v32, %v12570_v17  ;;  %v12618_v25 = vcombine.low %v12596_v24, %v12603_v46  ;;  %13222 = vst.sshfl [vmem:[%s20743_s24 + $0x28] sm:$0x1 pattern:$0x73625140] %v12641_v22 }
 0x630   : > { %v12619_v38 = vcombine.low %v12610_v4, %v12617_v19  ;;  %v12659_v31 = vrot.slane %v12649_v18, %v23904_v7  ;;  %v12666_v44 = vrot.slane %v12650_v20, %v23904_v7 }
 0x631   : > { %v12626_v0 = vrot.slane %v12618_v25, %v23904_v7  ;;  %12787 = vst [vmem:[%s20743_s24 + $0x10] sm:$0xff] %v12571_v51 }
 0x632   : > { %v12633_v50 = vrot.slane %v12619_v38, %v23904_v7  ;;  %v12681_v49 = vcombine.low %v12659_v31, %v12666_v44 }
 0x634   : > { %v12634_v35 = vcombine.low %v12626_v0, %v12633_v50  ;;  %v12689_v60 = vrot.slane %v12681_v49, %v23904_v7 }
 0x636   : > { %12789 = vst [vmem:[%s20743_s24 + $0x20] sm:$0xff] %v12634_v35 }
 0x6bb   : > { %v12163_v3 = vpop.f32.mrb[44].mxu0 }
 0x6bc   : > { %v12164_v9 = vadd.f32 %v20729_v29, %v12163_v3  ;;  %v13628_v33 = vpop.f32.mrb[45].mxu0 }
 0x6bd   : > { %v12166_v53 = vpop.f32.mrb[46].mxu0 }
 0x6be   : > { %v12372_v21 = vcombine.high %v12164_v9, %v12164_v9  ;;  %v12379_v30 = vrot.slane %v12164_v9, %v23904_v7  ;;  %v12167_v28 = vadd.f32 %v20729_v29, %v12166_v53  ;;  %v13629_v12 = vpop.f32.mrb[47].mxu0 }
 0x6c0   : > { %v12386_v11 = vrot.slane %v12372_v21, %v23904_v7  ;;  %v12387_v63 = vcombine.high %v12379_v30, %v12379_v30  ;;  %v12395_v55 = vrot.slane %v12379_v30, %v23904_v7  ;;  %v12421_v36 = vcombine.high %v12167_v28, %v12167_v28 }
 0x6c1   : > { %v12428_v59 = vrot.slane %v12167_v28, %v23904_v7 }
 0x6c2   : > { %v12388_v62 = vcombine.high %v12386_v11, %v12386_v11  ;;  %v12409_v1 = vrot.slane %v12387_v63, %v23904_v7  ;;  %v12417_v16 = vcombine.high %v12395_v55, %v12395_v55  ;;  %v12651_v6 = vcombine.low %v12371_v15, %v12395_v55 }
 0x6c3   : > { %v12435_v40 = vrot.slane %v12421_v36, %v23904_v7  ;;  %v12436_v39 = vcombine.high %v12428_v59, %v12428_v59  ;;  %v12402_v29 = vrot.slane %v12386_v11, %v23904_v7  ;;  %v12443_v43 = vrot.slane %v12428_v59, %v23904_v7 }
 0x6c4   : > { %v12416_v2 = vrot.slane %v12388_v62, %v23904_v7  ;;  %v12419_v58 = vcombine.high %v12409_v1, %v12409_v1  ;;  %v12652_v32 = vcombine.low %v12409_v1, %v12417_v16  ;;  %v12673_v56 = vrot.slane %v12651_v6, %v23904_v7 }
 0x6c5   : > { %v12450_v57 = vrot.slane %v12435_v40, %v23904_v7  ;;  %v12457_v14 = vrot.slane %v12436_v39, %v23904_v7 }
 0x6c6   : > { %v12680_v54 = vrot.slane %v12652_v32, %v23904_v7  ;;  %v12704_v47 = vrot.slane %v12419_v58, %v23904_v7  ;;  %v12712_v45 = vcombine.low %v12402_v29, %v12416_v2  ;;  %v13218_v10 = vcombine.high %v12402_v29, %v12416_v2 }
 0x6c7   : > { %v12714_v61 = vcombine.low %v12443_v43, %v12457_v14  ;;  %v13219_v34 = vcombine.high %v12443_v43, %v12457_v14  ;;  %v12767_v8 = vrot.slane %v12450_v57, %v23904_v7 }
 0x6c8   : > { %v12682_v52 = vcombine.low %v12673_v56, %v12680_v54  ;;  %v12722_v41 = vrot.slane %v12712_v45, %v23904_v7  ;;  %v12729_v26 = vrot.slane %v13218_v10, %v23904_v7  ;;  %13223 = vst.sshfl [vmem:[%s20743_s24 + $0x38] sm:$0x1 pattern:$0x73625140] %v12704_v47 }
 0x6c9   : > { %v12736_v48 = vrot.slane %v12714_v61, %v23904_v7  ;;  %v12743_v13 = vrot.slane %v13219_v34, %v23904_v7  ;;  %13224 = vst.sshfl [vmem:[%s20743_s24 + $0x48] sm:$0x1 pattern:$0x73625140] %v12767_v8 }
 0x6ca   : > { %v12696_v23 = vrot.slane %v12682_v52, %v23904_v7  ;;  %v12744_v24 = vcombine.low %v12722_v41, %v12729_v26 }
 0x6cb   : > { %v12745_v37 = vcombine.low %v12736_v48, %v12743_v13 }
 0x6cc   : > { %v12697_v5 = vcombine.low %v12689_v60, %v12696_v23  ;;  %v12752_v27 = vrot.slane %v12744_v24, %v23904_v7 }
 0x6cd   : > { %v12759_v42 = vrot.slane %v12745_v37, %v23904_v7 }
 0x6ce   : > { %12791 = vst [vmem:[%s20743_s24 + $0x30] sm:$0xff] %v12697_v5 }
 0x6cf   : > { %v12760_v17 = vcombine.low %v12752_v27, %v12759_v42 }
 0x6d1   : > { %12793 = vst [vmem:[%s20743_s24 + $0x40] sm:$0xff] %v12760_v17 }
 0x6d2 PF: > { %s20_s17 = sadd.s32 1, %s13876_s17   ;;  %s23908_s13 = smov %s13868_s15 }
 0x6d3   : > { %p17_p7 = scmp.ge.s32.totalorder %s20_s17, 6   ;;  %s23909_s14 = smov %s13872_s16 }
 0x6d4   : > { %s23910_s15 = smov %s23913_s18  ;;  %s23911_s16 = smov %s23917_s19 }
 0x6d5   :  { %19 = sbr.rel (!%p17_p7) target bundleno = 3 (0x3), region = 110 }

</bundles_post_ra>
